<compile_context>
chip_gen: v7x
topology: tpu7x:2x2x1
jax: 0.10.0
libtpu: 0.0.40
codegen_flags: <defaults>
</compile_context>

<pallas_src>
import functools

import jax
import jax.numpy as jnp
from jax.experimental import pallas as pl
from jax.experimental.pallas import tpu as pltpu


def _round_up(x, m):
    return ((x + m - 1) // m) * m


# ----------------------------------------------------------------------------
# Fused matmul + BN + ReLU Pallas kernel (full-K block, single-pass epilogue)
# ----------------------------------------------------------------------------

def _matmul_bn_act_kernel(a_ref, w_ref, scale_ref, bias_ref, o_ref, *, apply_relu):
    acc = jnp.dot(a_ref[...], w_ref[...], preferred_element_type=jnp.float32)
    y = acc * scale_ref[...] + bias_ref[...]
    if apply_relu:
        y = jnp.maximum(y, 0.0)
    o_ref[...] = y.astype(o_ref.dtype)


def matmul_bn_act(a, w, scale, bias, apply_relu=True, tm=256, tn=256):
    """act((a @ w) * scale + bias); a:(M,K) w:(K,N) scale/bias:(1,N).

    Full-K blocks (largest K here is 27*96=2592, well within VMEM even on
    v7x), bf16 MXU inputs, f32 accumulate + f32 BN/ReLU epilogue.  K is never
    padded or split; M/N only get padded when they don't divide the tile.
    """
    M, K = a.shape
    _, N = w.shape
    tm = min(tm, _round_up(M, 8))
    tn = min(tn, _round_up(N, 128))
    Mp = _round_up(M, tm)
    Np = _round_up(N, tn)

    a16 = a.astype(jnp.bfloat16)
    w16 = w.astype(jnp.bfloat16)
    if Mp != M:
        a16 = jnp.pad(a16, ((0, Mp - M), (0, 0)))
    if Np != N:
        w16 = jnp.pad(w16, ((0, 0), (0, Np - N)))
        scale = jnp.pad(scale, ((0, 0), (0, Np - N)))
        bias = jnp.pad(bias, ((0, 0), (0, Np - N)))

    out = pl.pallas_call(
        functools.partial(_matmul_bn_act_kernel, apply_relu=apply_relu),
        out_shape=jax.ShapeDtypeStruct((Mp, Np), jnp.float32),
        grid=(Mp // tm, Np // tn),
        in_specs=[
            pl.BlockSpec((tm, K), lambda i, j: (i, 0)),
            pl.BlockSpec((K, tn), lambda i, j: (0, j)),
            pl.BlockSpec((1, tn), lambda i, j: (0, j)),
            pl.BlockSpec((1, tn), lambda i, j: (0, j)),
        ],
        out_specs=pl.BlockSpec((tm, tn), lambda i, j: (i, j)),
        compiler_params=pltpu.CompilerParams(
            dimension_semantics=("parallel", "parallel")),
    )(a16, w16, scale, bias)

    if Mp != M or Np != N:
        out = out[:M, :N]
    return out


# ----------------------------------------------------------------------------
# MaxPool3d(kernel=3, stride=1, padding=1) — windows built inside the kernel
# ----------------------------------------------------------------------------

def _maxpool_3x3x3_kernel(p0_ref, p1_ref, p2_ref, o_ref, *, H, W):
    # Three haloed depth planes, each (1, 1, H+2, W+2, C): reduce over depth
    # first, then take the 3x3 spatial max via shifted slices in VMEM.
    d = jnp.maximum(jnp.maximum(p0_ref[...], p1_ref[...]), p2_ref[...])
    acc = d[:, :, 0:H, 0:W, :]
    for dh in range(3):
        for dw in range(3):
            if dh == 0 and dw == 0:
                continue
            acc = jnp.maximum(acc, d[:, :, dh:dh + H, dw:dw + W, :])
    o_ref[...] = acc


def maxpool3d_3x3x3_s1_p1(x):
    """x: (N, D, H, W, C) -> same shape (3x3x3 max pool, stride 1, pad 1)."""
    n, D, H, W, C = x.shape
    pad_val = float(jnp.finfo(x.dtype).min)
    xp = jnp.pad(x, ((0, 0), (1, 1), (1, 1), (1, 1), (0, 0)),
                 constant_values=pad_val)

    def plane_spec(off):
        return pl.BlockSpec((1, 1, H + 2, W + 2, C),
                            lambda i, d, o=off: (i, d + o, 0, 0, 0))

    return pl.pallas_call(
        functools.partial(_maxpool_3x3x3_kernel, H=H, W=W),
        out_shape=jax.ShapeDtypeStruct((n, D, H, W, C), x.dtype),
        grid=(n, D),
        in_specs=[plane_spec(0), plane_spec(1), plane_spec(2)],
        out_specs=pl.BlockSpec((1, 1, H, W, C), lambda i, d: (i, d, 0, 0, 0)),
        compiler_params=pltpu.CompilerParams(
            dimension_semantics=("parallel", "arbitrary")),
    )(xp, xp, xp)


# ----------------------------------------------------------------------------
# Conv glue (im2col for the two 3x3x3 convs) in plain JAX
# ----------------------------------------------------------------------------

def conv3x3x3_bn_relu(x, p):
    """3x3x3 stride-1 pad-1 Conv3d + folded BN + ReLU. x: (N,D,H,W,Cin)."""
    n, D, H, W, cin = x.shape
    cout = p["w"].shape[-1]
    xp = jnp.pad(x, ((0, 0), (1, 1), (1, 1), (1, 1), (0, 0)))
    cols = []
    for a in range(3):
        for b in range(3):
            for c in range(3):
                cols.append(xp[:, a:a + D, b:b + H, c:c + W, :])
    im2col = jnp.concatenate(cols, axis=-1).reshape(n * D * H * W, 27 * cin)
    w_mat = p["w"].reshape(27 * cin, cout)
    return matmul_bn_act(im2col, w_mat, p["scale"], p["bias"], True)  # (M, cout)


# ----------------------------------------------------------------------------
# Mixed_3b forward
# ----------------------------------------------------------------------------

def mixed_3b_forward(x_ncdhw, params):
    x = jnp.transpose(x_ncdhw, (0, 2, 3, 4, 1)).astype(jnp.float32)  # NDHWC
    n, D, H, W, C = x.shape
    M = n * D * H * W
    x2d = x.reshape(M, C)

    # Fused 1x1x1 convs for branch0 / branch1[0] / branch2[0]: one matmul.
    w_cat = jnp.concatenate(
        [params["b0"]["w"], params["b1a"]["w"], params["b2a"]["w"]], axis=1)
    s_cat = jnp.concatenate(
        [params["b0"]["scale"], params["b1a"]["scale"], params["b2a"]["scale"]], axis=1)
    b_cat = jnp.concatenate(
        [params["b0"]["bias"], params["b1a"]["bias"], params["b2a"]["bias"]], axis=1)
    fused = matmul_bn_act(x2d, w_cat, s_cat, b_cat, True)
    c0 = params["b0"]["w"].shape[1]      # 64
    c1a = params["b1a"]["w"].shape[1]    # 96
    c2a = params["b2a"]["w"].shape[1]    # 16
    x0 = fused[:, :c0]
    x1a = fused[:, c0:c0 + c1a].reshape(n, D, H, W, c1a)
    x2a = fused[:, c0 + c1a:c0 + c1a + c2a].reshape(n, D, H, W, c2a)

    # branch1 / branch2 second stage: 3x3x3 conv + BN + ReLU.
    x1 = conv3x3x3_bn_relu(x1a, params["b1b"])     # (M, 128)
    x2 = conv3x3x3_bn_relu(x2a, params["b2b"])     # (M, 32)

    # branch3: 3x3x3 stride-1 max pool (in-kernel windows) then 1x1 conv.
    xpool = maxpool3d_3x3x3_s1_p1(x).reshape(M, C)
    x3 = matmul_bn_act(xpool, params["b3"]["w"],
                       params["b3"]["scale"], params["b3"]["bias"], True)

    out = jnp.concatenate([x0, x1, x2, x3], axis=-1)   # (M, 256) — torch.cat order
    out = out.reshape(n, D, H, W, -1)
    return jnp.transpose(out, (0, 4, 1, 2, 3))         # back to NCDHW


# ----------------------------------------------------------------------------
# Pure-XLA reference (for a numerical sanity check)
# ----------------------------------------------------------------------------

def mixed_3b_reference(x_ncdhw, params):
    x = jnp.transpose(x_ncdhw, (0, 2, 3, 4, 1)).astype(jnp.float32)

    def conv_bn_relu(inp, p, ksize):
        w = p["w"]
        if ksize == 1:
            w5 = w.reshape(1, 1, 1, *w.shape)
            pad = 0
        else:
            w5 = w
            pad = 1
        y = jax.lax.conv_general_dilated(
            inp, w5, window_strides=(1, 1, 1), padding=[(pad, pad)] * 3,
            dimension_numbers=("NDHWC", "DHWIO", "NDHWC"))
        y = y * p["scale"].reshape(1, 1, 1, 1, -1) + p["bias"].reshape(1, 1, 1, 1, -1)
        return jnp.maximum(y, 0.0)

    x0 = conv_bn_relu(x, params["b0"], 1)
    x1 = conv_bn_relu(conv_bn_relu(x, params["b1a"], 1), params["b1b"], 3)
    x2 = conv_bn_relu(conv_bn_relu(x, params["b2a"], 1), params["b2b"], 3)
    xp = jax.lax.reduce_window(
        x, -jnp.inf, jax.lax.max, (1, 3, 3, 3, 1), (1, 1, 1, 1, 1),
        [(0, 0), (1, 1), (1, 1), (1, 1), (0, 0)])
    x3 = conv_bn_relu(xp, params["b3"], 1)
    out = jnp.concatenate([x0, x1, x2, x3], axis=-1)
    return jnp.transpose(out, (0, 4, 1, 2, 3))


# ----------------------------------------------------------------------------
# Parameter construction (deterministic, synthetic; BN folded to scale/bias)
# ----------------------------------------------------------------------------

def init_params(key):
    def make_conv(k, cin, cout, ksize):
        kw, kg, kb = jax.random.split(k, 3)
        if ksize == 1:
            fan_in = cin
            w = jax.random.normal(kw, (cin, cout), jnp.float32)
        else:
            fan_in = 27 * cin
            w = jax.random.normal(kw, (3, 3, 3, cin, cout), jnp.float32)
        w = w * (2.0 / fan_in) ** 0.5
        gamma = 1.0 + 0.01 * jax.random.normal(kg, (cout,), jnp.float32)
        beta = 0.01 * jax.random.normal(kb, (cout,), jnp.float32)
        r_mean = jnp.zeros((cout,), jnp.float32)
        r_var = jnp.ones((cout,), jnp.float32)
        scale = gamma * jax.lax.rsqrt(r_var + 1e-3)     # BN eps = 0.001
        bias = beta - r_mean * scale
        return dict(w=w, scale=scale.reshape(1, cout), bias=bias.reshape(1, cout))

    ks = jax.random.split(key, 6)
    return dict(
        b0=make_conv(ks[0], 192, 64, 1),
        b1a=make_conv(ks[1], 192, 96, 1),
        b1b=make_conv(ks[2], 96, 128, 3),
        b2a=make_conv(ks[3], 192, 16, 1),
        b2b=make_conv(ks[4], 16, 32, 3),
        b3=make_conv(ks[5], 192, 32, 1),
    )


# ----------------------------------------------------------------------------
# Main
# ----------------------------------------------------------------------------

if __name__ == "__main__":
    key = jax.random.PRNGKey(0)
    k_params, k_x = jax.random.split(key)
    params = init_params(k_params)

    # Mixed_3b requires 192 input channels; keep spatial/temporal extents small.
    x = jax.random.normal(k_x, (2, 192, 4, 8, 8), jnp.float32)

    fwd = jax.jit(lambda inp: mixed_3b_forward(inp, params))
    out = fwd(x)
    jax.block_until_ready(out)

    assert out.shape == (2, 256, 4, 8, 8), out.shape
    assert bool(jnp.all(jnp.isfinite(out)))

    # Numerical sanity check against the pure-XLA reference.  The Pallas path
    # feeds bf16 into the MXU (f32 accumulate), so compare with a relative L2
    # tolerance rather than elementwise equality.
    ref = jax.jit(lambda inp: mixed_3b_reference(inp, params))(x)
    jax.block_until_ready(ref)
    rel_err = jnp.sqrt(jnp.sum((out - ref) ** 2) / (jnp.sum(ref ** 2) + 1e-12))
    assert float(rel_err) < 2e-2, float(rel_err)

    print("KERNEL_OK")
</pallas_src>

<mosaic_0001>
module attributes {stable_mosaic.version = 11 : i64} {
  func.func @_matmul_bn_act_kernel(%arg0: i32, %arg1: i32, %arg2: memref<256x192xbf16, #tpu.memory_space<vmem>>, %arg3: memref<192x256xbf16, #tpu.memory_space<vmem>>, %arg4: memref<1x256xf32, #tpu.memory_space<vmem>>, %arg5: memref<1x256xf32, #tpu.memory_space<vmem>>, %arg6: memref<256x256xf32, #tpu.memory_space<vmem>>) attributes {dimension_semantics = [#tpu.dimension_semantics<parallel>, #tpu.dimension_semantics<parallel>], iteration_bounds = array<i64: 2, 1>, scalar_prefetch = 0 : i64, scratch_operands = 0 : i64, tpu.core_type = #tpu.core_type<tc>, window_params = [{transform_indices = @transform_0, window_bounds = array<i64: 256, 192>}, {transform_indices = @transform_1, window_bounds = array<i64: 192, 256>}, {transform_indices = @transform_2, window_bounds = array<i64: 1, 256>}, {transform_indices = @transform_3, window_bounds = array<i64: 1, 256>}, {transform_indices = @transform_4, window_bounds = array<i64: 256, 256>}]} {
    %c0 = arith.constant 0 : index
    %c0_0 = arith.constant 0 : index
    %0 = vector.load %arg2[%c0, %c0_0] : memref<256x192xbf16, #tpu.memory_space<vmem>>, vector<256x192xbf16>
    %c0_1 = arith.constant 0 : index
    %c0_2 = arith.constant 0 : index
    %1 = vector.load %arg3[%c0_1, %c0_2] : memref<192x256xbf16, #tpu.memory_space<vmem>>, vector<192x256xbf16>
    %cst = arith.constant dense<0.000000e+00> : vector<256x256xf32>
    %2 = tpu.matmul %0, %1, %cst {dimension_numbers = #tpu.dot_dimension_numbers<[1], [0], [0], [1], [0, 0, 1, 1], [], []>} : vector<256x192xbf16>, vector<192x256xbf16>, vector<256x256xf32> -> vector<256x256xf32>
    %c0_3 = arith.constant 0 : index
    %c0_4 = arith.constant 0 : index
    %3 = vector.load %arg4[%c0_3, %c0_4] : memref<1x256xf32, #tpu.memory_space<vmem>>, vector<1x256xf32>
    %4 = vector.broadcast %3 : vector<1x256xf32> to vector<256x256xf32>
    %5 = arith.mulf %2, %4 : vector<256x256xf32>
    %c0_5 = arith.constant 0 : index
    %c0_6 = arith.constant 0 : index
    %6 = vector.load %arg5[%c0_5, %c0_6] : memref<1x256xf32, #tpu.memory_space<vmem>>, vector<1x256xf32>
    %7 = vector.broadcast %6 : vector<1x256xf32> to vector<256x256xf32>
    %8 = arith.addf %5, %7 : vector<256x256xf32>
    %cst_7 = arith.constant 0.000000e+00 : f32
    %9 = vector.broadcast %cst_7 : f32 to vector<256x256xf32>
    %10 = arith.maximumf %8, %9 : vector<256x256xf32>
    %c0_8 = arith.constant 0 : index
    %c0_9 = arith.constant 0 : index
    %11 = vector.load %arg6[%c0_8, %c0_9] : memref<256x256xf32, #tpu.memory_space<vmem>>, vector<256x256xf32>
    tpu.vector_store %arg6[%c0_8, %c0_9], %10 {strides = array<i32>} : memref<256x256xf32, #tpu.memory_space<vmem>>, vector<256x256xf32>,
    return
  }
  func.func @transform_0(%arg0: i32, %arg1: i32) -> (i32, i32) {
    %c0_i32 = arith.constant 0 : i32
    %c0_i32_0 = arith.constant 0 : i32
    return %arg0, %c0_i32 : i32, i32
  }
  func.func @transform_1(%arg0: i32, %arg1: i32) -> (i32, i32) {
    %c0_i32 = arith.constant 0 : i32
    %c0_i32_0 = arith.constant 0 : i32
    return %c0_i32, %arg1 : i32, i32
  }
  func.func @transform_2(%arg0: i32, %arg1: i32) -> (i32, i32) {
    %c0_i32 = arith.constant 0 : i32
    %c0_i32_0 = arith.constant 0 : i32
    return %c0_i32, %arg1 : i32, i32
  }
  func.func @transform_3(%arg0: i32, %arg1: i32) -> (i32, i32) {
    %c0_i32 = arith.constant 0 : i32
    %c0_i32_0 = arith.constant 0 : i32
    return %c0_i32, %arg1 : i32, i32
  }
  func.func @transform_4(%arg0: i32, %arg1: i32) -> (i32, i32) {
    %c0_i32 = arith.constant 0 : i32
    return %arg0, %arg1 : i32, i32
  }
}

module attributes {stable_mosaic.version = 11 : i64} {
  func.func @_matmul_bn_act_kernel(%arg0: i32, %arg1: i32, %arg2: memref<256x2592xbf16, #tpu.memory_space<vmem>>, %arg3: memref<2592x128xbf16, #tpu.memory_space<vmem>>, %arg4: memref<1x128xf32, #tpu.memory_space<vmem>>, %arg5: memref<1x128xf32, #tpu.memory_space<vmem>>, %arg6: memref<256x128xf32, #tpu.memory_space<vmem>>) attributes {dimension_semantics = [#tpu.dimension_semantics<parallel>, #tpu.dimension_semantics<parallel>], iteration_bounds = array<i64: 2, 1>, scalar_prefetch = 0 : i64, scratch_operands = 0 : i64, tpu.core_type = #tpu.core_type<tc>, window_params = [{transform_indices = @transform_0, window_bounds = array<i64: 256, 2592>}, {transform_indices = @transform_1, window_bounds = array<i64: 2592, 128>}, {transform_indices = @transform_2, window_bounds = array<i64: 1, 128>}, {transform_indices = @transform_3, window_bounds = array<i64: 1, 128>}, {transform_indices = @transform_4, window_bounds = array<i64: 256, 128>}]} {
    %c0 = arith.constant 0 : index
    %c0_0 = arith.constant 0 : index
    %0 = vector.load %arg2[%c0, %c0_0] : memref<256x2592xbf16, #tpu.memory_space<vmem>>, vector<256x2592xbf16>
    %c0_1 = arith.constant 0 : index
    %c0_2 = arith.constant 0 : index
    %1 = vector.load %arg3[%c0_1, %c0_2] : memref<2592x128xbf16, #tpu.memory_space<vmem>>, vector<2592x128xbf16>
    %cst = arith.constant dense<0.000000e+00> : vector<256x128xf32>
    %2 = tpu.matmul %0, %1, %cst {dimension_numbers = #tpu.dot_dimension_numbers<[1], [0], [0], [1], [0, 0, 1, 1], [], []>} : vector<256x2592xbf16>, vector<2592x128xbf16>, vector<256x128xf32> -> vector<256x128xf32>
    %c0_3 = arith.constant 0 : index
    %c0_4 = arith.constant 0 : index
    %3 = vector.load %arg4[%c0_3, %c0_4] : memref<1x128xf32, #tpu.memory_space<vmem>>, vector<1x128xf32>
    %4 = vector.broadcast %3 : vector<1x128xf32> to vector<256x128xf32>
    %5 = arith.mulf %2, %4 : vector<256x128xf32>
    %c0_5 = arith.constant 0 : index
    %c0_6 = arith.constant 0 : index
    %6 = vector.load %arg5[%c0_5, %c0_6] : memref<1x128xf32, #tpu.memory_space<vmem>>, vector<1x128xf32>
    %7 = vector.broadcast %6 : vector<1x128xf32> to vector<256x128xf32>
    %8 = arith.addf %5, %7 : vector<256x128xf32>
    %cst_7 = arith.constant 0.000000e+00 : f32
    %9 = vector.broadcast %cst_7 : f32 to vector<256x128xf32>
    %10 = arith.maximumf %8, %9 : vector<256x128xf32>
    %c0_8 = arith.constant 0 : index
    %c0_9 = arith.constant 0 : index
    %11 = vector.load %arg6[%c0_8, %c0_9] : memref<256x128xf32, #tpu.memory_space<vmem>>, vector<256x128xf32>
    tpu.vector_store %arg6[%c0_8, %c0_9], %10 {strides = array<i32>} : memref<256x128xf32, #tpu.memory_space<vmem>>, vector<256x128xf32>,
    return
  }
  func.func @transform_0(%arg0: i32, %arg1: i32) -> (i32, i32) {
    %c0_i32 = arith.constant 0 : i32
    %c0_i32_0 = arith.constant 0 : i32
    return %arg0, %c0_i32 : i32, i32
  }
  func.func @transform_1(%arg0: i32, %arg1: i32) -> (i32, i32) {
    %c0_i32 = arith.constant 0 : i32
    %c0_i32_0 = arith.constant 0 : i32
    return %c0_i32, %arg1 : i32, i32
  }
  func.func @transform_2(%arg0: i32, %arg1: i32) -> (i32, i32) {
    %c0_i32 = arith.constant 0 : i32
    %c0_i32_0 = arith.constant 0 : i32
    return %c0_i32, %arg1 : i32, i32
  }
  func.func @transform_3(%arg0: i32, %arg1: i32) -> (i32, i32) {
    %c0_i32 = arith.constant 0 : i32
    %c0_i32_0 = arith.constant 0 : i32
    return %c0_i32, %arg1 : i32, i32
  }
  func.func @transform_4(%arg0: i32, %arg1: i32) -> (i32, i32) {
    %c0_i32 = arith.constant 0 : i32
    return %arg0, %arg1 : i32, i32
  }
}

module attributes {stable_mosaic.version = 11 : i64} {
  func.func @_matmul_bn_act_kernel(%arg0: i32, %arg1: i32, %arg2: memref<256x432xbf16, #tpu.memory_space<vmem>>, %arg3: memref<432x128xbf16, #tpu.memory_space<vmem>>, %arg4: memref<1x128xf32, #tpu.memory_space<vmem>>, %arg5: memref<1x128xf32, #tpu.memory_space<vmem>>, %arg6: memref<256x128xf32, #tpu.memory_space<vmem>>) attributes {dimension_semantics = [#tpu.dimension_semantics<parallel>, #tpu.dimension_semantics<parallel>], iteration_bounds = array<i64: 2, 1>, scalar_prefetch = 0 : i64, scratch_operands = 0 : i64, tpu.core_type = #tpu.core_type<tc>, window_params = [{transform_indices = @transform_0, window_bounds = array<i64: 256, 432>}, {transform_indices = @transform_1, window_bounds = array<i64: 432, 128>}, {transform_indices = @transform_2, window_bounds = array<i64: 1, 128>}, {transform_indices = @transform_3, window_bounds = array<i64: 1, 128>}, {transform_indices = @transform_4, window_bounds = array<i64: 256, 128>}]} {
    %c0 = arith.constant 0 : index
    %c0_0 = arith.constant 0 : index
    %0 = vector.load %arg2[%c0, %c0_0] : memref<256x432xbf16, #tpu.memory_space<vmem>>, vector<256x432xbf16>
    %c0_1 = arith.constant 0 : index
    %c0_2 = arith.constant 0 : index
    %1 = vector.load %arg3[%c0_1, %c0_2] : memref<432x128xbf16, #tpu.memory_space<vmem>>, vector<432x128xbf16>
    %cst = arith.constant dense<0.000000e+00> : vector<256x128xf32>
    %2 = tpu.matmul %0, %1, %cst {dimension_numbers = #tpu.dot_dimension_numbers<[1], [0], [0], [1], [0, 0, 1, 1], [], []>} : vector<256x432xbf16>, vector<432x128xbf16>, vector<256x128xf32> -> vector<256x128xf32>
    %c0_3 = arith.constant 0 : index
    %c0_4 = arith.constant 0 : index
    %3 = vector.load %arg4[%c0_3, %c0_4] : memref<1x128xf32, #tpu.memory_space<vmem>>, vector<1x128xf32>
    %4 = vector.broadcast %3 : vector<1x128xf32> to vector<256x128xf32>
    %5 = arith.mulf %2, %4 : vector<256x128xf32>
    %c0_5 = arith.constant 0 : index
    %c0_6 = arith.constant 0 : index
    %6 = vector.load %arg5[%c0_5, %c0_6] : memref<1x128xf32, #tpu.memory_space<vmem>>, vector<1x128xf32>
    %7 = vector.broadcast %6 : vector<1x128xf32> to vector<256x128xf32>
    %8 = arith.addf %5, %7 : vector<256x128xf32>
    %cst_7 = arith.constant 0.000000e+00 : f32
    %9 = vector.broadcast %cst_7 : f32 to vector<256x128xf32>
    %10 = arith.maximumf %8, %9 : vector<256x128xf32>
    %c0_8 = arith.constant 0 : index
    %c0_9 = arith.constant 0 : index
    %11 = vector.load %arg6[%c0_8, %c0_9] : memref<256x128xf32, #tpu.memory_space<vmem>>, vector<256x128xf32>
    tpu.vector_store %arg6[%c0_8, %c0_9], %10 {strides = array<i32>} : memref<256x128xf32, #tpu.memory_space<vmem>>, vector<256x128xf32>,
    return
  }
  func.func @transform_0(%arg0: i32, %arg1: i32) -> (i32, i32) {
    %c0_i32 = arith.constant 0 : i32
    %c0_i32_0 = arith.constant 0 : i32
    return %arg0, %c0_i32 : i32, i32
  }
  func.func @transform_1(%arg0: i32, %arg1: i32) -> (i32, i32) {
    %c0_i32 = arith.constant 0 : i32
    %c0_i32_0 = arith.constant 0 : i32
    return %c0_i32, %arg1 : i32, i32
  }
  func.func @transform_2(%arg0: i32, %arg1: i32) -> (i32, i32) {
    %c0_i32 = arith.constant 0 : i32
    %c0_i32_0 = arith.constant 0 : i32
    return %c0_i32, %arg1 : i32, i32
  }
  func.func @transform_3(%arg0: i32, %arg1: i32) -> (i32, i32) {
    %c0_i32 = arith.constant 0 : i32
    %c0_i32_0 = arith.constant 0 : i32
    return %c0_i32, %arg1 : i32, i32
  }
  func.func @transform_4(%arg0: i32, %arg1: i32) -> (i32, i32) {
    %c0_i32 = arith.constant 0 : i32
    return %arg0, %arg1 : i32, i32
  }
}

module attributes {stable_mosaic.version = 11 : i64} {
  func.func @_maxpool_3x3x3_kernel(%arg0: i32, %arg1: i32, %arg2: memref<1x1x10x10x192xf32, #tpu.memory_space<vmem>>, %arg3: memref<1x1x10x10x192xf32, #tpu.memory_space<vmem>>, %arg4: memref<1x1x10x10x192xf32, #tpu.memory_space<vmem>>, %arg5: memref<1x1x8x8x192xf32, #tpu.memory_space<vmem>>) attributes {dimension_semantics = [#tpu.dimension_semantics<parallel>, #tpu.dimension_semantics<arbitrary>], iteration_bounds = array<i64: 2, 4>, scalar_prefetch = 0 : i64, scratch_operands = 0 : i64, tpu.core_type = #tpu.core_type<tc>, window_params = [{transform_indices = @transform_0, window_bounds = array<i64: 1, 1, 10, 10, 192>}, {transform_indices = @transform_1, window_bounds = array<i64: 1, 1, 10, 10, 192>}, {transform_indices = @transform_2, window_bounds = array<i64: 1, 1, 10, 10, 192>}, {transform_indices = @transform_3, window_bounds = array<i64: 1, 1, 8, 8, 192>}]} {
    %c0 = arith.constant 0 : index
    %c0_0 = arith.constant 0 : index
    %c0_1 = arith.constant 0 : index
    %c0_2 = arith.constant 0 : index
    %c0_3 = arith.constant 0 : index
    %0 = vector.load %arg2[%c0, %c0_0, %c0_1, %c0_2, %c0_3] : memref<1x1x10x10x192xf32, #tpu.memory_space<vmem>>, vector<1x1x10x10x192xf32>
    %c0_4 = arith.constant 0 : index
    %c0_5 = arith.constant 0 : index
    %c0_6 = arith.constant 0 : index
    %c0_7 = arith.constant 0 : index
    %c0_8 = arith.constant 0 : index
    %1 = vector.load %arg3[%c0_4, %c0_5, %c0_6, %c0_7, %c0_8] : memref<1x1x10x10x192xf32, #tpu.memory_space<vmem>>, vector<1x1x10x10x192xf32>
    %2 = arith.maximumf %0, %1 : vector<1x1x10x10x192xf32>
    %c0_9 = arith.constant 0 : index
    %c0_10 = arith.constant 0 : index
    %c0_11 = arith.constant 0 : index
    %c0_12 = arith.constant 0 : index
    %c0_13 = arith.constant 0 : index
    %3 = vector.load %arg4[%c0_9, %c0_10, %c0_11, %c0_12, %c0_13] : memref<1x1x10x10x192xf32, #tpu.memory_space<vmem>>, vector<1x1x10x10x192xf32>
    %4 = arith.maximumf %2, %3 : vector<1x1x10x10x192xf32>
    %5 = vector.extract_strided_slice %4 {offsets = [0, 0, 0, 0, 0], sizes = [1, 1, 8, 8, 192], strides = [1, 1, 1, 1, 1]} : vector<1x1x10x10x192xf32> to vector<1x1x8x8x192xf32>
    %6 = vector.extract_strided_slice %4 {offsets = [0, 0, 0, 1, 0], sizes = [1, 1, 8, 8, 192], strides = [1, 1, 1, 1, 1]} : vector<1x1x10x10x192xf32> to vector<1x1x8x8x192xf32>
    %7 = arith.maximumf %5, %6 : vector<1x1x8x8x192xf32>
    %8 = vector.extract_strided_slice %4 {offsets = [0, 0, 0, 2, 0], sizes = [1, 1, 8, 8, 192], strides = [1, 1, 1, 1, 1]} : vector<1x1x10x10x192xf32> to vector<1x1x8x8x192xf32>
    %9 = arith.maximumf %7, %8 : vector<1x1x8x8x192xf32>
    %10 = vector.extract_strided_slice %4 {offsets = [0, 0, 1, 0, 0], sizes = [1, 1, 8, 8, 192], strides = [1, 1, 1, 1, 1]} : vector<1x1x10x10x192xf32> to vector<1x1x8x8x192xf32>
    %11 = arith.maximumf %9, %10 : vector<1x1x8x8x192xf32>
    %12 = vector.extract_strided_slice %4 {offsets = [0, 0, 1, 1, 0], sizes = [1, 1, 8, 8, 192], strides = [1, 1, 1, 1, 1]} : vector<1x1x10x10x192xf32> to vector<1x1x8x8x192xf32>
    %13 = arith.maximumf %11, %12 : vector<1x1x8x8x192xf32>
    %14 = vector.extract_strided_slice %4 {offsets = [0, 0, 1, 2, 0], sizes = [1, 1, 8, 8, 192], strides = [1, 1, 1, 1, 1]} : vector<1x1x10x10x192xf32> to vector<1x1x8x8x192xf32>
    %15 = arith.maximumf %13, %14 : vector<1x1x8x8x192xf32>
    %16 = vector.extract_strided_slice %4 {offsets = [0, 0, 2, 0, 0], sizes = [1, 1, 8, 8, 192], strides = [1, 1, 1, 1, 1]} : vector<1x1x10x10x192xf32> to vector<1x1x8x8x192xf32>
    %17 = arith.maximumf %15, %16 : vector<1x1x8x8x192xf32>
    %18 = vector.extract_strided_slice %4 {offsets = [0, 0, 2, 1, 0], sizes = [1, 1, 8, 8, 192], strides = [1, 1, 1, 1, 1]} : vector<1x1x10x10x192xf32> to vector<1x1x8x8x192xf32>
    %19 = arith.maximumf %17, %18 : vector<1x1x8x8x192xf32>
    %20 = vector.extract_strided_slice %4 {offsets = [0, 0, 2, 2, 0], sizes = [1, 1, 8, 8, 192], strides = [1, 1, 1, 1, 1]} : vector<1x1x10x10x192xf32> to vector<1x1x8x8x192xf32>
    %21 = arith.maximumf %19, %20 : vector<1x1x8x8x192xf32>
    %c0_14 = arith.constant 0 : index
    %c0_15 = arith.constant 0 : index
    %c0_16 = arith.constant 0 : index
    %c0_17 = arith.constant 0 : index
    %c0_18 = arith.constant 0 : index
    %22 = vector.load %arg5[%c0_14, %c0_15, %c0_16, %c0_17, %c0_18] : memref<1x1x8x8x192xf32, #tpu.memory_space<vmem>>, vector<1x1x8x8x192xf32>
    tpu.vector_store %arg5[%c0_14, %c0_15, %c0_16, %c0_17, %c0_18], %21 {strides = array<i32>} : memref<1x1x8x8x192xf32, #tpu.memory_space<vmem>>, vector<1x1x8x8x192xf32>,
    return
  }
  func.func @transform_0(%arg0: i32, %arg1: i32) -> (i32, i32, i32, i32, i32) {
    %c0_i32 = arith.constant 0 : i32
    %0 = arith.addi %arg1, %c0_i32 : i32
    %c0_i32_0 = arith.constant 0 : i32
    %c0_i32_1 = arith.constant 0 : i32
    %c0_i32_2 = arith.constant 0 : i32
    %c0_i32_3 = arith.constant 0 : i32
    return %arg0, %0, %c0_i32_0, %c0_i32_1, %c0_i32_2 : i32, i32, i32, i32, i32
  }
  func.func @transform_1(%arg0: i32, %arg1: i32) -> (i32, i32, i32, i32, i32) {
    %c1_i32 = arith.constant 1 : i32
    %0 = arith.addi %arg1, %c1_i32 : i32
    %c0_i32 = arith.constant 0 : i32
    %c0_i32_0 = arith.constant 0 : i32
    %c0_i32_1 = arith.constant 0 : i32
    %c0_i32_2 = arith.constant 0 : i32
    return %arg0, %0, %c0_i32, %c0_i32_0, %c0_i32_1 : i32, i32, i32, i32, i32
  }
  func.func @transform_2(%arg0: i32, %arg1: i32) -> (i32, i32, i32, i32, i32) {
    %c2_i32 = arith.constant 2 : i32
    %0 = arith.addi %arg1, %c2_i32 : i32
    %c0_i32 = arith.constant 0 : i32
    %c0_i32_0 = arith.constant 0 : i32
    %c0_i32_1 = arith.constant 0 : i32
    %c0_i32_2 = arith.constant 0 : i32
    return %arg0, %0, %c0_i32, %c0_i32_0, %c0_i32_1 : i32, i32, i32, i32, i32
  }
  func.func @transform_3(%arg0: i32, %arg1: i32) -> (i32, i32, i32, i32, i32) {
    %c0_i32 = arith.constant 0 : i32
    %c0_i32_0 = arith.constant 0 : i32
    %c0_i32_1 = arith.constant 0 : i32
    %c0_i32_2 = arith.constant 0 : i32
    return %arg0, %arg1, %c0_i32, %c0_i32_0, %c0_i32_1 : i32, i32, i32, i32, i32
  }
}

module attributes {stable_mosaic.version = 11 : i64} {
  func.func @_matmul_bn_act_kernel(%arg0: i32, %arg1: i32, %arg2: memref<256x192xbf16, #tpu.memory_space<vmem>>, %arg3: memref<192x128xbf16, #tpu.memory_space<vmem>>, %arg4: memref<1x128xf32, #tpu.memory_space<vmem>>, %arg5: memref<1x128xf32, #tpu.memory_space<vmem>>, %arg6: memref<256x128xf32, #tpu.memory_space<vmem>>) attributes {dimension_semantics = [#tpu.dimension_semantics<parallel>, #tpu.dimension_semantics<parallel>], iteration_bounds = array<i64: 2, 1>, scalar_prefetch = 0 : i64, scratch_operands = 0 : i64, tpu.core_type = #tpu.core_type<tc>, window_params = [{transform_indices = @transform_0, window_bounds = array<i64: 256, 192>}, {transform_indices = @transform_1, window_bounds = array<i64: 192, 128>}, {transform_indices = @transform_2, window_bounds = array<i64: 1, 128>}, {transform_indices = @transform_3, window_bounds = array<i64: 1, 128>}, {transform_indices = @transform_4, window_bounds = array<i64: 256, 128>}]} {
    %c0 = arith.constant 0 : index
    %c0_0 = arith.constant 0 : index
    %0 = vector.load %arg2[%c0, %c0_0] : memref<256x192xbf16, #tpu.memory_space<vmem>>, vector<256x192xbf16>
    %c0_1 = arith.constant 0 : index
    %c0_2 = arith.constant 0 : index
    %1 = vector.load %arg3[%c0_1, %c0_2] : memref<192x128xbf16, #tpu.memory_space<vmem>>, vector<192x128xbf16>
    %cst = arith.constant dense<0.000000e+00> : vector<256x128xf32>
    %2 = tpu.matmul %0, %1, %cst {dimension_numbers = #tpu.dot_dimension_numbers<[1], [0], [0], [1], [0, 0, 1, 1], [], []>} : vector<256x192xbf16>, vector<192x128xbf16>, vector<256x128xf32> -> vector<256x128xf32>
    %c0_3 = arith.constant 0 : index
    %c0_4 = arith.constant 0 : index
    %3 = vector.load %arg4[%c0_3, %c0_4] : memref<1x128xf32, #tpu.memory_space<vmem>>, vector<1x128xf32>
    %4 = vector.broadcast %3 : vector<1x128xf32> to vector<256x128xf32>
    %5 = arith.mulf %2, %4 : vector<256x128xf32>
    %c0_5 = arith.constant 0 : index
    %c0_6 = arith.constant 0 : index
    %6 = vector.load %arg5[%c0_5, %c0_6] : memref<1x128xf32, #tpu.memory_space<vmem>>, vector<1x128xf32>
    %7 = vector.broadcast %6 : vector<1x128xf32> to vector<256x128xf32>
    %8 = arith.addf %5, %7 : vector<256x128xf32>
    %cst_7 = arith.constant 0.000000e+00 : f32
    %9 = vector.broadcast %cst_7 : f32 to vector<256x128xf32>
    %10 = arith.maximumf %8, %9 : vector<256x128xf32>
    %c0_8 = arith.constant 0 : index
    %c0_9 = arith.constant 0 : index
    %11 = vector.load %arg6[%c0_8, %c0_9] : memref<256x128xf32, #tpu.memory_space<vmem>>, vector<256x128xf32>
    tpu.vector_store %arg6[%c0_8, %c0_9], %10 {strides = array<i32>} : memref<256x128xf32, #tpu.memory_space<vmem>>, vector<256x128xf32>,
    return
  }
  func.func @transform_0(%arg0: i32, %arg1: i32) -> (i32, i32) {
    %c0_i32 = arith.constant 0 : i32
    %c0_i32_0 = arith.constant 0 : i32
    return %arg0, %c0_i32 : i32, i32
  }
  func.func @transform_1(%arg0: i32, %arg1: i32) -> (i32, i32) {
    %c0_i32 = arith.constant 0 : i32
    %c0_i32_0 = arith.constant 0 : i32
    return %c0_i32, %arg1 : i32, i32
  }
  func.func @transform_2(%arg0: i32, %arg1: i32) -> (i32, i32) {
    %c0_i32 = arith.constant 0 : i32
    %c0_i32_0 = arith.constant 0 : i32
    return %c0_i32, %arg1 : i32, i32
  }
  func.func @transform_3(%arg0: i32, %arg1: i32) -> (i32, i32) {
    %c0_i32 = arith.constant 0 : i32
    %c0_i32_0 = arith.constant 0 : i32
    return %c0_i32, %arg1 : i32, i32
  }
  func.func @transform_4(%arg0: i32, %arg1: i32) -> (i32, i32) {
    %c0_i32 = arith.constant 0 : i32
    return %arg0, %arg1 : i32, i32
  }
}

</mosaic_0001>

<bundles_post_ra>
// kernel: _lambda_.5
= control target key start
LH: loop header
LB: loop body
LE: loop exit
PB: predicated region body
PF: predicated region fallthrough
CT: control target
= control target key end

     0   :  { %9 = vsyncpa [#allocation3], 0  ;;  %s2063_s0 = inlined_call_operand.vmem [shape: bf16[512,192], index: 0, kind: input, shape index: {}]   ;;  %s2064_s1 = inlined_call_operand.vmem [shape: bf16[192,256], index: 1, kind: input, shape index: {}]   ;;  %s2065_s2 = inlined_call_operand.hbm [shape: f32[1,256], index: 2, kind: input, shape index: {}]   ;;  %s2066_s3 = inlined_call_operand.hbm [shape: f32[1,256], index: 3, kind: input, shape index: {}]   ;;  %s2067_s4 = inlined_call_operand.vmem [shape: f32[512,256], index: 4, kind: output, shape index: {}]  }
   0x1   :  { %10 = vsyncpa [#allocation5], 0  ;;  %s1623_s15 = smov 0   ;;  %s1625_s16 = smov 0  }
   0x2   :  { %s1627_s17 = smov 0  }
   0x3 LB: > { %s1263_s18 = sadd.s32 4294967295, %s1594_s17   ;;  %s28_s19 = sadd.s32 1, %s1590_s16  ;;  %s1594_s17 = sphi %s1627_s17, %s16_s17   ;;  %s1590_s16 = sphi %s1625_s16, %s2077_s16   ;;  %s1586_s15 = sphi %s1623_s15, %s2076_s15  }
   0x4   : > { %p30_p0 = scmp.ge.s32.totalorder %s28_s19, 2  ;;  %p1265_p1 = scmp.ge.s32.totalorder %s1594_s17, 1 }
   0x5   : > { %p165_p2 = scmp.lt.s32.totalorder %s1594_s17, 3  ;;  %p1648_p4 = scmp.eq.s32.totalorder %s1263_s18, 0 }
   0x6   : > { %s2079_s19 = smov (%p30_p0, %s28_s19), 0  ;;  %s1596_s22 = smov [#allocation2]  }
   0x7   : > { %p1644_p3 = pnand %p1265_p1, %p165_p2  ;;  %s190_s23 = sshll.u32 %s1596_s22, 4  ;;  %s191_s23 = int_to_ptr.vmem [resolvable:$true] %s190_s23 }
   0x8   : > { %s2072_s21 = scalar_select %p1648_p4, 1, 0 }
   0x9   : > { %s2071_s20 = scalar_select %p1644_p3, 1, 0 }
   0xa   : > { %p1387_p5 = pneg %p1644_p3  ;;  %s1597_s24 = smov [#allocation4]  }
   0xb   : > { %s204_s25 = sshll.u32 %s1597_s24, 4  ;;  %s1508_s29 = scalar_lea.hbm %s2065_s2, 32  ;;  %s1660_s25 = int_to_ptr.vmem [resolvable:$true] %s204_s25 }
   0xc   : > { %p1656_p6 = pnand %p1648_p4, %p1387_p5  ;;  %p1509_p7 = scmp.ne.s32.totalorder %s2065_s2, %s1508_s29 }
   0xd   : > { %p1515_p11 = scmp.lt.u32.totalorder %s1508_s29, %s2065_s2 }
   0xe   : > { %p1510_p8 = pneg %p1656_p6 }
  0x10   : > { %p1511_p9 = pnand %p1510_p8, %p1509_p7 }
  0x12   : > { %p1512_p10 = pneg %p1511_p9 }
  0x14   : > { %p1517_p12 = pnand %p1515_p11, %p1512_p10 }
  0x16   : > { %1520 = shalt.err (!%p1517_p12)
}
  0x17   : > { %s1521_s8 = scalar_lea.vmem %s191_s23, 32  ;;  %p1529_p2 = scmp.lt.s32.totalorder %s191_s23, %s191_s23 }
  0x18   : > { %p1522_p13 = scmp.ne.s32.totalorder %s191_s23, %s1521_s8  ;;  %p1530_p5 = scmp.lt.s32.totalorder %s1521_s8, %s1521_s8 }
  0x1a   : > { %p1524_p0 = pnand %p1522_p13, %p1510_p8  ;;  %p1531_p4 = por %p1530_p5, %p1529_p2 }
  0x1c   : > { %p1525_p1 = pneg %p1524_p0 }
  0x1e   : > { %p1532_p3 = pnand %p1531_p4, %p1525_p1 }
  0x20   : > { %1535 = shalt.err (!%p1532_p3)
}
  0x21   : > { %1390 = dma.hbm_to_vmem [thread:$0]  (!%p1656_p6), %s2065_s2, 32, %s191_s23, [#allocation3]  }
  0x22   : > { %s1536_s13 = scalar_lea.hbm %s2066_s3, 32 }
  0x23   : > { %p1537_p7 = scmp.ne.s32.totalorder %s2066_s3, %s1536_s13  ;;  %p1543_p3 = scmp.lt.u32.totalorder %s1536_s13, %s2066_s3 }
  0x25   : > { %p1539_p9 = pnand %p1537_p7, %p1510_p8 }
  0x27   : > { %p1540_p4 = pneg %p1539_p9 }
  0x29   : > { %p1545_p10 = pnand %p1543_p3, %p1540_p4 }
  0x2b   : > { %1548 = shalt.err (!%p1545_p10)
}
  0x2c   : > { %s1549_s23 = scalar_lea.vmem %s1660_s25, 32  ;;  %p1557_p0 = scmp.lt.s32.totalorder %s1660_s25, %s1660_s25 }
  0x2d   : > { %p1550_p11 = scmp.ne.s32.totalorder %s1660_s25, %s1549_s23  ;;  %p1558_p1 = scmp.lt.s32.totalorder %s1549_s23, %s1549_s23 }
  0x2f   : > { %p1552_p12 = pnand %p1550_p11, %p1510_p8  ;;  %p1559_p2 = por %p1558_p1, %p1557_p0 }
  0x31   : > { %p1553_p13 = pneg %p1552_p12 }
  0x33   : > { %p1560_p5 = pnand %p1559_p2, %p1553_p13 }
  0x35   : > { %1563 = shalt.err (!%p1560_p5)
}
  0x36   : > { %1393 = dma.hbm_to_vmem [thread:$0]  (!%p1656_p6), %s2066_s3, 32, %s1660_s25, [#allocation5]  }
  0x37   : > { %p2074_p7 = scmp.ne.s32.totalorder %s2071_s20, 0 }
  0x38   : > { %p2075_p9 = scmp.ne.s32.totalorder (!%p2074_p7), %s2072_s21, 0 }
  0x39   : > { %227 = sbr.rel (%p2074_p7) target bundleno = 394 (0x18a), region = 36 }
  0x40   : > { %1577 = dma.done.wait (%p2075_p9), [#allocation3], 32  }
  0x41   : > { %1579 = vsyncadd (%p2075_p9), [#allocation3], 4294967264 }
  0x42   : > { %1581 = dma.done.wait (%p2075_p9), [#allocation5], 32  }
  0x43   : > { %1583 = vsyncadd (%p2075_p9), [#allocation5], 4294967264  ;;  %v1424_v0 = vld [vmem:[%s2064_s1 + $0x4] ss:$8 sps:$4 sm:$0xff]   ;;  %s1273_s25 = sshll.u32 %s1586_s15, 5  ;;  %vm616_vm0 = vcmask 523264   ;;  %v860_v56 = vlaneseq }
  0x44   : > { %v1426_v1 = vld [vmem:[%s2064_s1] ss:$8 sps:$4 sm:$0xff]   ;;  %665 = vmatprep.subr.bf16.mxu0 %v1424_v0  ;;  %1355 = vmatprep.subr.bf16.mxu1 %v1424_v0  ;;  %v1427_v2 = vld [vmem:[%s2064_s1 + $0x14] ss:$8 sps:$4 sm:$0xff]   ;;  %v1429_v3 = vld [vmem:[%s2064_s1 + $0x10] ss:$8 sps:$4 sm:$0xff]  }
  0x45   : > { %666 = vmatpush1.bf16.msra.mxu0 %v1426_v1  ;;  %1367 = vmatpush1.bf16.msra.mxu1 %v1426_v1  ;;  %p269_p6 = scmp.lt.s32.totalorder %s1273_s25, 63  ;;  %v1430_v4 = vld [vmem:[%s2064_s1 + $0x24] ss:$8 sps:$4 sm:$0xff]   ;;  %v1432_v5 = vld [vmem:[%s2064_s1 + $0x20] ss:$8 sps:$4 sm:$0xff]   ;;  %v861_v57 = vshrl.u32 %v860_v56, 7 }
  0x46   : > { %667 = vmatprep.subr.bf16.mxu0 %v1427_v2  ;;  %1356 = vmatprep.subr.bf16.mxu1 %v1427_v2  ;;  %v1433_v6 = vld [vmem:[%s2064_s1 + $0x34] ss:$8 sps:$4 sm:$0xff]   ;;  %v1435_v7 = vld [vmem:[%s2064_s1 + $0x30] ss:$8 sps:$4 sm:$0xff]   ;;  %v1436_v8 = vld [vmem:[%s2064_s1 + $0x44] ss:$8 sps:$4 sm:$0xff]  }
  0x47   : > { %s2081_s25 = smov (!%p269_p6, %s1273_s25), 63  ;;  %v1438_v9 = vld [vmem:[%s2064_s1 + $0x40] ss:$8 sps:$4 sm:$0xff]   ;;  %v1439_v10 = vld [vmem:[%s2064_s1 + $0x54] ss:$8 sps:$4 sm:$0xff]   ;;  %v862_v58 = vsub.s32 0, %v861_v57 }
  0x48   : > { %s1353_s18 = sshll.u32 %s2081_s25, 3  ;;  %v1441_v13 = vld [vmem:[%s2064_s1 + $0x50] ss:$8 sps:$4 sm:$0xff]   ;;  %v1442_v14 = vld [vmem:[%s2064_s1 + $0x64] ss:$8 sps:$4 sm:$0xff]   ;;  %v866_v60 = vsub.s32 1, %v861_v57 }
  0x49   : > { %668 = vmatpush1.bf16.msra.mxu0 %v1429_v3  ;;  %1368 = vmatpush1.bf16.msra.mxu1 %v1429_v3  ;;  %s1753_s28 = scalar_lea.vmem %s2063_s0, %s1353_s18  ;;  %v1444_v15 = vld [vmem:[%s2064_s1 + $0x60] ss:$8 sps:$4 sm:$0xff]   ;;  %v1445_v16 = vld [vmem:[%s2064_s1 + $0x74] ss:$8 sps:$4 sm:$0xff]   ;;  %v1447_v17 = vld [vmem:[%s2064_s1 + $0x70] ss:$8 sps:$4 sm:$0xff]  }
  0x4a   : > { %669 = vmatprep.subr.bf16.mxu0 %v1430_v4  ;;  %1357 = vmatprep.subr.bf16.mxu1 %v1430_v4  ;;  %v1462_v11 = vld [vmem:[%s1753_s28 + $0x4] ss:$8 sps:$4 sm:$0xff]   ;;  %v1450_v19 = vld [vmem:[%s2064_s1 + $0x80] ss:$8 sps:$4 sm:$0xff]   ;;  %v1451_v20 = vld [vmem:[%s2064_s1 + $0x94] ss:$8 sps:$4 sm:$0xff]  }
  0x4b   : > { %v1465_v12 = vld [vmem:[%s1753_s28 + $0x84] ss:$8 sps:$4 sm:$0xff]   ;;  %1335 = vmatprep.mubr.msk.bf16.mxu0 %vm616_vm0, %v1462_v11  ;;  %v1453_v21 = vld [vmem:[%s2064_s1 + $0x90] ss:$8 sps:$4 sm:$0xff]   ;;  %v1456_v23 = vld [vmem:[%s2064_s1 + $0xa0] ss:$8 sps:$4 sm:$0xff]  }
  0x4c   : > { %1343 = vmatprep.mubr.msk.bf16.mxu1 %vm616_vm0, %v1465_v12  ;;  %v1448_v18 = vld [vmem:[%s2064_s1 + $0x84] ss:$8 sps:$4 sm:$0xff]   ;;  %v1457_v24 = vld [vmem:[%s2064_s1 + $0xb4] ss:$8 sps:$4 sm:$0xff]   ;;  %v1459_v25 = vld [vmem:[%s2064_s1 + $0xb0] ss:$8 sps:$4 sm:$0xff]  }
  0x4d   : > { %670 = vmatpush1.bf16.msra.mxu0 %v1432_v5  ;;  %1369 = vmatpush1.bf16.msra.mxu1 %v1432_v5  ;;  %v1454_v22 = vld [vmem:[%s2064_s1 + $0xa4] ss:$8 sps:$4 sm:$0xff]   ;;  %v1460_v26 = vld [vmem:[%s1753_s28] ss:$8 sps:$4 sm:$0xff]   ;;  %v1466_v28 = vld [vmem:[%s1753_s28 + $0x14] ss:$8 sps:$4 sm:$0xff]  }
  0x4e   : > { %671 = vmatprep.subr.bf16.mxu0 %v1433_v6  ;;  %1358 = vmatprep.subr.bf16.mxu1 %v1433_v6  ;;  %v1463_v27 = vld [vmem:[%s1753_s28 + $0x80] ss:$8 sps:$4 sm:$0xff]   ;;  %v1468_v29 = vld [vmem:[%s1753_s28 + $0x94] ss:$8 sps:$4 sm:$0xff]   ;;  %v1470_v30 = vld [vmem:[%s1753_s28 + $0x10] ss:$8 sps:$4 sm:$0xff]  }
  0x4f   : > { %v1471_v31 = vld [vmem:[%s1753_s28 + $0x90] ss:$8 sps:$4 sm:$0xff]   ;;  %v1472_v32 = vld [vmem:[%s1753_s28 + $0x24] ss:$8 sps:$4 sm:$0xff]   ;;  %v1476_v34 = vld [vmem:[%s1753_s28 + $0x20] ss:$8 sps:$4 sm:$0xff]  }
  0x50   : > { %v1474_v33 = vld [vmem:[%s1753_s28 + $0xa4] ss:$8 sps:$4 sm:$0xff]   ;;  %v1477_v35 = vld [vmem:[%s1753_s28 + $0xa0] ss:$8 sps:$4 sm:$0xff]   ;;  %v1478_v36 = vld [vmem:[%s1753_s28 + $0x34] ss:$8 sps:$4 sm:$0xff]  }
  0x51   : > { %672 = vmatpush1.bf16.msra.mxu0 %v1435_v7  ;;  %1370 = vmatpush1.bf16.msra.mxu1 %v1435_v7  ;;  %v1480_v37 = vld [vmem:[%s1753_s28 + $0xb4] ss:$8 sps:$4 sm:$0xff]   ;;  %v1482_v38 = vld [vmem:[%s1753_s28 + $0x30] ss:$8 sps:$4 sm:$0xff]   ;;  %v1484_v40 = vld [vmem:[%s1753_s28 + $0x44] ss:$8 sps:$4 sm:$0xff]  }
  0x52   : > { %673 = vmatprep.subr.bf16.mxu0 %v1436_v8  ;;  %1359 = vmatprep.subr.bf16.mxu1 %v1436_v8  ;;  %v1483_v39 = vld [vmem:[%s1753_s28 + $0xb0] ss:$8 sps:$4 sm:$0xff]   ;;  %v1486_v41 = vld [vmem:[%s1753_s28 + $0xc4] ss:$8 sps:$4 sm:$0xff]   ;;  %v1488_v42 = vld [vmem:[%s1753_s28 + $0x40] ss:$8 sps:$4 sm:$0xff]  }
  0x53   : > { %v1489_v43 = vld [vmem:[%s1753_s28 + $0xc0] ss:$8 sps:$4 sm:$0xff]   ;;  %v1490_v44 = vld [vmem:[%s1753_s28 + $0x54] ss:$8 sps:$4 sm:$0xff]   ;;  %v1494_v46 = vld [vmem:[%s1753_s28 + $0x50] ss:$8 sps:$4 sm:$0xff]  }
  0x54   : > { %v1492_v45 = vld [vmem:[%s1753_s28 + $0xd4] ss:$8 sps:$4 sm:$0xff]   ;;  %v1495_v47 = vld [vmem:[%s1753_s28 + $0xd0] ss:$8 sps:$4 sm:$0xff]   ;;  %v1496_v48 = vld [vmem:[%s1753_s28 + $0x64] ss:$8 sps:$4 sm:$0xff]  }
  0x55   : > { %674 = vmatpush1.bf16.msra.mxu0 %v1438_v9  ;;  %1371 = vmatpush1.bf16.msra.mxu1 %v1438_v9  ;;  %v1498_v49 = vld [vmem:[%s1753_s28 + $0xe4] ss:$8 sps:$4 sm:$0xff]   ;;  %v1500_v50 = vld [vmem:[%s1753_s28 + $0x60] ss:$8 sps:$4 sm:$0xff]   ;;  %v1502_v52 = vld [vmem:[%s1753_s28 + $0x74] ss:$8 sps:$4 sm:$0xff]  }
  0x56   : > { %675 = vmatprep.subr.bf16.mxu0 %v1439_v10  ;;  %1360 = vmatprep.subr.bf16.mxu1 %v1439_v10  ;;  %v1501_v51 = vld [vmem:[%s1753_s28 + $0xe0] ss:$8 sps:$4 sm:$0xff]   ;;  %v1504_v53 = vld [vmem:[%s1753_s28 + $0xf4] ss:$8 sps:$4 sm:$0xff]   ;;  %v1506_v54 = vld [vmem:[%s1753_s28 + $0x70] ss:$8 sps:$4 sm:$0xff]  }
  0x57   : > { %v1507_v55 = vld [vmem:[%s1753_s28 + $0xf0] ss:$8 sps:$4 sm:$0xff]   ;;  %v858_v59 = vld [vmem:[#allocation2] sm:$0x3]  ;;  %v934_v61 = vld [vmem:[#allocation4] sm:$0x3] }
  0x58   : > { %v1848_v62 = vrot.slane %v858_v59, %v862_v58  ;;  %v1850_v63 = vrot.slane %v858_v59, %v866_v60  ;;  %v1852_v0 = vrot.slane %v934_v61, %v862_v58  ;;  %v1854_v3 = vrot.slane %v934_v61, %v866_v60  ;;  %s1354_s8 = sshll.u32 %s2081_s25, 4 }
  0x59   : > { %676 = vmatpush1.bf16.msra.mxu0 %v1441_v13  ;;  %1372 = vmatpush1.bf16.msra.mxu1 %v1441_v13  ;;  %s1868_s9 = scalar_lea.vmem %s2067_s4, %s1354_s8 }
  0x5a   : > { %677 = vmatprep.subr.bf16.mxu0 %v1442_v14  ;;  %1361 = vmatprep.subr.bf16.mxu1 %v1442_v14 }
  0x5d   : > { %678 = vmatpush1.bf16.msra.mxu0 %v1444_v15  ;;  %1373 = vmatpush1.bf16.msra.mxu1 %v1444_v15 }
  0x5e   : > { %679 = vmatprep.subr.bf16.mxu0 %v1445_v16  ;;  %1362 = vmatprep.subr.bf16.mxu1 %v1445_v16 }
  0x61   : > { %680 = vmatpush1.bf16.msra.mxu0 %v1447_v17  ;;  %1374 = vmatpush1.bf16.msra.mxu1 %v1447_v17 }
  0x62   : > { %681 = vmatprep.subr.bf16.mxu0 %v1448_v18  ;;  %1363 = vmatprep.subr.bf16.mxu1 %v1448_v18 }
  0x65   : > { %682 = vmatpush1.bf16.msra.mxu0 %v1450_v19  ;;  %1375 = vmatpush1.bf16.msra.mxu1 %v1450_v19 }
  0x66   : > { %683 = vmatprep.subr.bf16.mxu0 %v1451_v20  ;;  %1364 = vmatprep.subr.bf16.mxu1 %v1451_v20 }
  0x69   : > { %684 = vmatpush1.bf16.msra.mxu0 %v1453_v21  ;;  %1376 = vmatpush1.bf16.msra.mxu1 %v1453_v21 }
  0x6a   : > { %685 = vmatprep.subr.bf16.mxu0 %v1454_v22  ;;  %1365 = vmatprep.subr.bf16.mxu1 %v1454_v22 }
  0x6d   : > { %686 = vmatpush1.bf16.msra.mxu0 %v1456_v23  ;;  %1377 = vmatpush1.bf16.msra.mxu1 %v1456_v23 }
  0x6e   : > { %687 = vmatprep.subr.bf16.mxu0 %v1457_v24  ;;  %1366 = vmatprep.subr.bf16.mxu1 %v1457_v24 }
  0x71   : > { %688 = vmatpush1.bf16.msra.mxu0 %v1459_v25  ;;  %1378 = vmatpush1.bf16.msra.mxu1 %v1459_v25 }
  0x74   : > { %698 = vmatmul.mubr.bf16.vlgmr.msra.gmra.mrb[0].mxu0 %v1460_v26  ;;  %778 = vmatmul.mubr.bf16.vlgmr.msra.gmra.mrb[0].mxu1 %v1463_v27 }
  0x75   : > { %1336 = vmatprep.mubr.msk.bf16.mxu0 %vm616_vm0, %v1466_v28  ;;  %1344 = vmatprep.mubr.msk.bf16.mxu1 %vm616_vm0, %v1468_v29 }
  0x7c   : > { %708 = vmatmul.mubr.bf16.gmra.mrb[4].mxu0 %v1470_v30  ;;  %788 = vmatmul.mubr.bf16.gmra.mrb[4].mxu1 %v1471_v31 }
  0x7d   : > { %1337 = vmatprep.mubr.msk.bf16.mxu0 %vm616_vm0, %v1472_v32  ;;  %1345 = vmatprep.mubr.msk.bf16.mxu1 %vm616_vm0, %v1474_v33 }
  0x84   : > { %718 = vmatmul.mubr.bf16.gmra.mrb[8].mxu0 %v1476_v34  ;;  %798 = vmatmul.mubr.bf16.gmra.mrb[8].mxu1 %v1477_v35 }
  0x85   : > { %1338 = vmatprep.mubr.msk.bf16.mxu0 %vm616_vm0, %v1478_v36  ;;  %1346 = vmatprep.mubr.msk.bf16.mxu1 %vm616_vm0, %v1480_v37 }
  0x8c   : > { %728 = vmatmul.mubr.bf16.gmra.mrb[12].mxu0 %v1482_v38  ;;  %808 = vmatmul.mubr.bf16.gmra.mrb[12].mxu1 %v1483_v39 }
  0x8d   : > { %1339 = vmatprep.mubr.msk.bf16.mxu0 %vm616_vm0, %v1484_v40  ;;  %1347 = vmatprep.mubr.msk.bf16.mxu1 %vm616_vm0, %v1486_v41 }
  0x94   : > { %738 = vmatmul.mubr.bf16.gmra.mrb[16].mxu0 %v1488_v42  ;;  %818 = vmatmul.mubr.bf16.gmra.mrb[16].mxu1 %v1489_v43 }
  0x95   : > { %1340 = vmatprep.mubr.msk.bf16.mxu0 %vm616_vm0, %v1490_v44  ;;  %1348 = vmatprep.mubr.msk.bf16.mxu1 %vm616_vm0, %v1492_v45 }
  0x9c   : > { %748 = vmatmul.mubr.bf16.gmra.mrb[20].mxu0 %v1494_v46  ;;  %828 = vmatmul.mubr.bf16.gmra.mrb[20].mxu1 %v1495_v47 }
  0x9d   : > { %1341 = vmatprep.mubr.msk.bf16.mxu0 %vm616_vm0, %v1496_v48  ;;  %1349 = vmatprep.mubr.msk.bf16.mxu1 %vm616_vm0, %v1498_v49 }
  0xa4   : > { %758 = vmatmul.mubr.bf16.gmra.mrb[24].mxu0 %v1500_v50  ;;  %838 = vmatmul.mubr.bf16.gmra.mrb[24].mxu1 %v1501_v51 }
  0xa5   : > { %1342 = vmatprep.mubr.msk.bf16.mxu0 %vm616_vm0, %v1502_v52  ;;  %1350 = vmatprep.mubr.msk.bf16.mxu1 %vm616_vm0, %v1504_v53 }
  0xac   : > { %768 = vmatmul.mubr.bf16.gmra.mrb[28].mxu0 %v1506_v54  ;;  %848 = vmatmul.mubr.bf16.gmra.mrb[28].mxu1 %v1507_v55 }
 0x147   : > { %v699_v1 = vpop.f32.mrb[0].mxu0  ;;  %v779_v2 = vpop.f32.mrb[0].mxu1 }
 0x148   : > { %v870_v4 = vmul.f32 %v1848_v62, %v699_v1  ;;  %v902_v5 = vmul.f32 %v1848_v62, %v779_v2  ;;  %v701_v6 = vpop.f32.mrb[1].mxu0  ;;  %v781_v7 = vpop.f32.mrb[1].mxu1 }
 0x149   : > { %v871_v8 = vmul.f32 %v1850_v63, %v701_v6  ;;  %v903_v9 = vmul.f32 %v1850_v63, %v781_v7  ;;  %v703_v10 = vpop.f32.mrb[2].mxu0  ;;  %v783_v11 = vpop.f32.mrb[2].mxu1 }
 0x14a   : > { %v946_v12 = vadd.f32 %v1852_v0, %v870_v4  ;;  %v978_v13 = vadd.f32 %v1852_v0, %v902_v5  ;;  %v872_v14 = vmul.f32 %v1848_v62, %v703_v10  ;;  %v904_v15 = vmul.f32 %v1848_v62, %v783_v11  ;;  %v705_v16 = vpop.f32.mrb[3].mxu0  ;;  %v785_v17 = vpop.f32.mrb[3].mxu1 }
 0x14b   : > { %v947_v18 = vadd.f32 %v1854_v3, %v871_v8  ;;  %v979_v19 = vadd.f32 %v1854_v3, %v903_v9  ;;  %v873_v20 = vmul.f32 %v1850_v63, %v705_v16  ;;  %v905_v21 = vmul.f32 %v1850_v63, %v785_v17 }
 0x14c   : > { %v1010_v22 = vmax.f32 %v946_v12, 0.0  ;;  %v1042_v23 = vmax.f32 %v978_v13, 0.0  ;;  %v948_v24 = vadd.f32 %v1852_v0, %v872_v14  ;;  %v980_v25 = vadd.f32 %v1852_v0, %v904_v15 }
 0x14d   : > { %v1011_v26 = vmax.f32 %v947_v18, 0.0  ;;  %v1043_v27 = vmax.f32 %v979_v19, 0.0  ;;  %v949_v28 = vadd.f32 %v1854_v3, %v873_v20  ;;  %v981_v29 = vadd.f32 %v1854_v3, %v905_v21 }
 0x14e   : > { %1074 = vst [vmem:[%s1868_s9] sm:$0xff] %v1010_v22  ;;  %1106 = vst [vmem:[%s1868_s9 + $0x100] sm:$0xff] %v1042_v23  ;;  %v1012_v30 = vmax.f32 %v948_v24, 0.0  ;;  %v1044_v31 = vmax.f32 %v980_v25, 0.0 }
 0x14f   : > { %1075 = vst [vmem:[%s1868_s9 + $0x8] sm:$0xff] %v1011_v26  ;;  %1107 = vst [vmem:[%s1868_s9 + $0x108] sm:$0xff] %v1043_v27  ;;  %v1013_v32 = vmax.f32 %v949_v28, 0.0  ;;  %v1045_v33 = vmax.f32 %v981_v29, 0.0  ;;  %v709_v34 = vpop.f32.mrb[4].mxu0  ;;  %v789_v35 = vpop.f32.mrb[4].mxu1 }
 0x150   : > { %1076 = vst [vmem:[%s1868_s9 + $0x10] sm:$0xff] %v1012_v30  ;;  %1108 = vst [vmem:[%s1868_s9 + $0x110] sm:$0xff] %v1044_v31  ;;  %v874_v36 = vmul.f32 %v1848_v62, %v709_v34  ;;  %v906_v37 = vmul.f32 %v1848_v62, %v789_v35  ;;  %v711_v38 = vpop.f32.mrb[5].mxu0  ;;  %v791_v39 = vpop.f32.mrb[5].mxu1 }
 0x151   : > { %1077 = vst [vmem:[%s1868_s9 + $0x18] sm:$0xff] %v1013_v32  ;;  %1109 = vst [vmem:[%s1868_s9 + $0x118] sm:$0xff] %v1045_v33  ;;  %v875_v40 = vmul.f32 %v1850_v63, %v711_v38  ;;  %v907_v41 = vmul.f32 %v1850_v63, %v791_v39  ;;  %v713_v42 = vpop.f32.mrb[6].mxu0  ;;  %v793_v43 = vpop.f32.mrb[6].mxu1 }
 0x152   : > { %v950_v44 = vadd.f32 %v1852_v0, %v874_v36  ;;  %v982_v45 = vadd.f32 %v1852_v0, %v906_v37  ;;  %v876_v46 = vmul.f32 %v1848_v62, %v713_v42  ;;  %v908_v47 = vmul.f32 %v1848_v62, %v793_v43  ;;  %v715_v48 = vpop.f32.mrb[7].mxu0  ;;  %v795_v49 = vpop.f32.mrb[7].mxu1 }
 0x153   : > { %v951_v50 = vadd.f32 %v1854_v3, %v875_v40  ;;  %v983_v51 = vadd.f32 %v1854_v3, %v907_v41  ;;  %v877_v52 = vmul.f32 %v1850_v63, %v715_v48  ;;  %v909_v53 = vmul.f32 %v1850_v63, %v795_v49 }
 0x154   : > { %v1014_v54 = vmax.f32 %v950_v44, 0.0  ;;  %v1046_v55 = vmax.f32 %v982_v45, 0.0  ;;  %v952_v56 = vadd.f32 %v1852_v0, %v876_v46  ;;  %v984_v57 = vadd.f32 %v1852_v0, %v908_v47 }
 0x155   : > { %v1015_v58 = vmax.f32 %v951_v50, 0.0  ;;  %v1047_v59 = vmax.f32 %v983_v51, 0.0  ;;  %v953_v60 = vadd.f32 %v1854_v3, %v877_v52  ;;  %v985_v61 = vadd.f32 %v1854_v3, %v909_v53 }
 0x156   : > { %1078 = vst [vmem:[%s1868_s9 + $0x20] sm:$0xff] %v1014_v54  ;;  %1110 = vst [vmem:[%s1868_s9 + $0x120] sm:$0xff] %v1046_v55  ;;  %v1016_v1 = vmax.f32 %v952_v56, 0.0  ;;  %v1048_v2 = vmax.f32 %v984_v57, 0.0 }
 0x157   : > { %1079 = vst [vmem:[%s1868_s9 + $0x28] sm:$0xff] %v1015_v58  ;;  %1111 = vst [vmem:[%s1868_s9 + $0x128] sm:$0xff] %v1047_v59  ;;  %v1017_v4 = vmax.f32 %v953_v60, 0.0  ;;  %v1049_v5 = vmax.f32 %v985_v61, 0.0  ;;  %v719_v6 = vpop.f32.mrb[8].mxu0  ;;  %v799_v7 = vpop.f32.mrb[8].mxu1 }
 0x158   : > { %1080 = vst [vmem:[%s1868_s9 + $0x30] sm:$0xff] %v1016_v1  ;;  %1112 = vst [vmem:[%s1868_s9 + $0x130] sm:$0xff] %v1048_v2  ;;  %v878_v8 = vmul.f32 %v1848_v62, %v719_v6  ;;  %v910_v9 = vmul.f32 %v1848_v62, %v799_v7  ;;  %v721_v10 = vpop.f32.mrb[9].mxu0  ;;  %v801_v11 = vpop.f32.mrb[9].mxu1 }
 0x159   : > { %1081 = vst [vmem:[%s1868_s9 + $0x38] sm:$0xff] %v1017_v4  ;;  %1113 = vst [vmem:[%s1868_s9 + $0x138] sm:$0xff] %v1049_v5  ;;  %v879_v12 = vmul.f32 %v1850_v63, %v721_v10  ;;  %v911_v13 = vmul.f32 %v1850_v63, %v801_v11  ;;  %v723_v14 = vpop.f32.mrb[10].mxu0  ;;  %v803_v15 = vpop.f32.mrb[10].mxu1 }
 0x15a   : > { %v954_v16 = vadd.f32 %v1852_v0, %v878_v8  ;;  %v986_v17 = vadd.f32 %v1852_v0, %v910_v9  ;;  %v880_v18 = vmul.f32 %v1848_v62, %v723_v14  ;;  %v912_v19 = vmul.f32 %v1848_v62, %v803_v15  ;;  %v725_v20 = vpop.f32.mrb[11].mxu0  ;;  %v805_v21 = vpop.f32.mrb[11].mxu1 }
 0x15b   : > { %v955_v22 = vadd.f32 %v1854_v3, %v879_v12  ;;  %v987_v23 = vadd.f32 %v1854_v3, %v911_v13  ;;  %v881_v24 = vmul.f32 %v1850_v63, %v725_v20  ;;  %v913_v25 = vmul.f32 %v1850_v63, %v805_v21 }
 0x15c   : > { %v1018_v26 = vmax.f32 %v954_v16, 0.0  ;;  %v1050_v27 = vmax.f32 %v986_v17, 0.0  ;;  %v956_v28 = vadd.f32 %v1852_v0, %v880_v18  ;;  %v988_v29 = vadd.f32 %v1852_v0, %v912_v19 }
 0x15d   : > { %v1019_v30 = vmax.f32 %v955_v22, 0.0  ;;  %v1051_v31 = vmax.f32 %v987_v23, 0.0  ;;  %v957_v32 = vadd.f32 %v1854_v3, %v881_v24  ;;  %v989_v33 = vadd.f32 %v1854_v3, %v913_v25 }
 0x15e   : > { %1082 = vst [vmem:[%s1868_s9 + $0x40] sm:$0xff] %v1018_v26  ;;  %1114 = vst [vmem:[%s1868_s9 + $0x140] sm:$0xff] %v1050_v27  ;;  %v1020_v34 = vmax.f32 %v956_v28, 0.0  ;;  %v1052_v35 = vmax.f32 %v988_v29, 0.0 }
 0x15f   : > { %1083 = vst [vmem:[%s1868_s9 + $0x48] sm:$0xff] %v1019_v30  ;;  %1115 = vst [vmem:[%s1868_s9 + $0x148] sm:$0xff] %v1051_v31  ;;  %v1021_v36 = vmax.f32 %v957_v32, 0.0  ;;  %v1053_v37 = vmax.f32 %v989_v33, 0.0  ;;  %v729_v38 = vpop.f32.mrb[12].mxu0  ;;  %v809_v39 = vpop.f32.mrb[12].mxu1 }
 0x160   : > { %1084 = vst [vmem:[%s1868_s9 + $0x50] sm:$0xff] %v1020_v34  ;;  %1116 = vst [vmem:[%s1868_s9 + $0x150] sm:$0xff] %v1052_v35  ;;  %v882_v40 = vmul.f32 %v1848_v62, %v729_v38  ;;  %v914_v41 = vmul.f32 %v1848_v62, %v809_v39  ;;  %v731_v42 = vpop.f32.mrb[13].mxu0  ;;  %v811_v43 = vpop.f32.mrb[13].mxu1 }
 0x161   : > { %1085 = vst [vmem:[%s1868_s9 + $0x58] sm:$0xff] %v1021_v36  ;;  %1117 = vst [vmem:[%s1868_s9 + $0x158] sm:$0xff] %v1053_v37  ;;  %v883_v44 = vmul.f32 %v1850_v63, %v731_v42  ;;  %v915_v45 = vmul.f32 %v1850_v63, %v811_v43  ;;  %v733_v46 = vpop.f32.mrb[14].mxu0  ;;  %v813_v47 = vpop.f32.mrb[14].mxu1 }
 0x162   : > { %v958_v48 = vadd.f32 %v1852_v0, %v882_v40  ;;  %v990_v49 = vadd.f32 %v1852_v0, %v914_v41  ;;  %v884_v50 = vmul.f32 %v1848_v62, %v733_v46  ;;  %v916_v51 = vmul.f32 %v1848_v62, %v813_v47  ;;  %v735_v52 = vpop.f32.mrb[15].mxu0  ;;  %v815_v53 = vpop.f32.mrb[15].mxu1 }
 0x163   : > { %v959_v54 = vadd.f32 %v1854_v3, %v883_v44  ;;  %v991_v55 = vadd.f32 %v1854_v3, %v915_v45  ;;  %v885_v56 = vmul.f32 %v1850_v63, %v735_v52  ;;  %v917_v57 = vmul.f32 %v1850_v63, %v815_v53 }
 0x164   : > { %v1022_v58 = vmax.f32 %v958_v48, 0.0  ;;  %v1054_v59 = vmax.f32 %v990_v49, 0.0  ;;  %v960_v60 = vadd.f32 %v1852_v0, %v884_v50  ;;  %v992_v61 = vadd.f32 %v1852_v0, %v916_v51 }
 0x165   : > { %v1023_v1 = vmax.f32 %v959_v54, 0.0  ;;  %v1055_v2 = vmax.f32 %v991_v55, 0.0  ;;  %v961_v4 = vadd.f32 %v1854_v3, %v885_v56  ;;  %v993_v5 = vadd.f32 %v1854_v3, %v917_v57 }
 0x166   : > { %1086 = vst [vmem:[%s1868_s9 + $0x60] sm:$0xff] %v1022_v58  ;;  %1118 = vst [vmem:[%s1868_s9 + $0x160] sm:$0xff] %v1054_v59  ;;  %v1024_v6 = vmax.f32 %v960_v60, 0.0  ;;  %v1056_v7 = vmax.f32 %v992_v61, 0.0 }
 0x167   : > { %1087 = vst [vmem:[%s1868_s9 + $0x68] sm:$0xff] %v1023_v1  ;;  %1119 = vst [vmem:[%s1868_s9 + $0x168] sm:$0xff] %v1055_v2  ;;  %v1025_v8 = vmax.f32 %v961_v4, 0.0  ;;  %v1057_v9 = vmax.f32 %v993_v5, 0.0  ;;  %v739_v10 = vpop.f32.mrb[16].mxu0  ;;  %v819_v11 = vpop.f32.mrb[16].mxu1 }
 0x168   : > { %1088 = vst [vmem:[%s1868_s9 + $0x70] sm:$0xff] %v1024_v6  ;;  %1120 = vst [vmem:[%s1868_s9 + $0x170] sm:$0xff] %v1056_v7  ;;  %v886_v12 = vmul.f32 %v1848_v62, %v739_v10  ;;  %v918_v13 = vmul.f32 %v1848_v62, %v819_v11  ;;  %v741_v14 = vpop.f32.mrb[17].mxu0  ;;  %v821_v15 = vpop.f32.mrb[17].mxu1 }
 0x169   : > { %1089 = vst [vmem:[%s1868_s9 + $0x78] sm:$0xff] %v1025_v8  ;;  %1121 = vst [vmem:[%s1868_s9 + $0x178] sm:$0xff] %v1057_v9  ;;  %v887_v16 = vmul.f32 %v1850_v63, %v741_v14  ;;  %v919_v17 = vmul.f32 %v1850_v63, %v821_v15  ;;  %v743_v18 = vpop.f32.mrb[18].mxu0  ;;  %v823_v19 = vpop.f32.mrb[18].mxu1 }
 0x16a   : > { %v962_v20 = vadd.f32 %v1852_v0, %v886_v12  ;;  %v994_v21 = vadd.f32 %v1852_v0, %v918_v13  ;;  %v888_v22 = vmul.f32 %v1848_v62, %v743_v18  ;;  %v920_v23 = vmul.f32 %v1848_v62, %v823_v19  ;;  %v745_v24 = vpop.f32.mrb[19].mxu0  ;;  %v825_v25 = vpop.f32.mrb[19].mxu1 }
 0x16b   : > { %v963_v26 = vadd.f32 %v1854_v3, %v887_v16  ;;  %v995_v27 = vadd.f32 %v1854_v3, %v919_v17  ;;  %v889_v28 = vmul.f32 %v1850_v63, %v745_v24  ;;  %v921_v29 = vmul.f32 %v1850_v63, %v825_v25 }
 0x16c   : > { %v1026_v30 = vmax.f32 %v962_v20, 0.0  ;;  %v1058_v31 = vmax.f32 %v994_v21, 0.0  ;;  %v964_v32 = vadd.f32 %v1852_v0, %v888_v22  ;;  %v996_v33 = vadd.f32 %v1852_v0, %v920_v23 }
 0x16d   : > { %v1027_v34 = vmax.f32 %v963_v26, 0.0  ;;  %v1059_v35 = vmax.f32 %v995_v27, 0.0  ;;  %v965_v36 = vadd.f32 %v1854_v3, %v889_v28  ;;  %v997_v37 = vadd.f32 %v1854_v3, %v921_v29 }
 0x16e   : > { %1090 = vst [vmem:[%s1868_s9 + $0x80] sm:$0xff] %v1026_v30  ;;  %1122 = vst [vmem:[%s1868_s9 + $0x180] sm:$0xff] %v1058_v31  ;;  %v1028_v38 = vmax.f32 %v964_v32, 0.0  ;;  %v1060_v39 = vmax.f32 %v996_v33, 0.0 }
 0x16f   : > { %1091 = vst [vmem:[%s1868_s9 + $0x88] sm:$0xff] %v1027_v34  ;;  %1123 = vst [vmem:[%s1868_s9 + $0x188] sm:$0xff] %v1059_v35  ;;  %v1029_v40 = vmax.f32 %v965_v36, 0.0  ;;  %v1061_v41 = vmax.f32 %v997_v37, 0.0  ;;  %v749_v42 = vpop.f32.mrb[20].mxu0  ;;  %v829_v43 = vpop.f32.mrb[20].mxu1 }
 0x170   : > { %1092 = vst [vmem:[%s1868_s9 + $0x90] sm:$0xff] %v1028_v38  ;;  %1124 = vst [vmem:[%s1868_s9 + $0x190] sm:$0xff] %v1060_v39  ;;  %v890_v44 = vmul.f32 %v1848_v62, %v749_v42  ;;  %v922_v45 = vmul.f32 %v1848_v62, %v829_v43  ;;  %v751_v46 = vpop.f32.mrb[21].mxu0  ;;  %v831_v47 = vpop.f32.mrb[21].mxu1 }
 0x171   : > { %1093 = vst [vmem:[%s1868_s9 + $0x98] sm:$0xff] %v1029_v40  ;;  %1125 = vst [vmem:[%s1868_s9 + $0x198] sm:$0xff] %v1061_v41  ;;  %v891_v48 = vmul.f32 %v1850_v63, %v751_v46  ;;  %v923_v49 = vmul.f32 %v1850_v63, %v831_v47  ;;  %v753_v50 = vpop.f32.mrb[22].mxu0  ;;  %v833_v51 = vpop.f32.mrb[22].mxu1 }
 0x172   : > { %v966_v52 = vadd.f32 %v1852_v0, %v890_v44  ;;  %v998_v53 = vadd.f32 %v1852_v0, %v922_v45  ;;  %v892_v54 = vmul.f32 %v1848_v62, %v753_v50  ;;  %v924_v55 = vmul.f32 %v1848_v62, %v833_v51  ;;  %v755_v56 = vpop.f32.mrb[23].mxu0  ;;  %v835_v57 = vpop.f32.mrb[23].mxu1 }
 0x173   : > { %v967_v58 = vadd.f32 %v1854_v3, %v891_v48  ;;  %v999_v59 = vadd.f32 %v1854_v3, %v923_v49  ;;  %v893_v60 = vmul.f32 %v1850_v63, %v755_v56  ;;  %v925_v61 = vmul.f32 %v1850_v63, %v835_v57 }
 0x174   : > { %v1030_v1 = vmax.f32 %v966_v52, 0.0  ;;  %v1062_v2 = vmax.f32 %v998_v53, 0.0  ;;  %v968_v4 = vadd.f32 %v1852_v0, %v892_v54  ;;  %v1000_v5 = vadd.f32 %v1852_v0, %v924_v55 }
 0x175   : > { %v1031_v6 = vmax.f32 %v967_v58, 0.0  ;;  %v1063_v7 = vmax.f32 %v999_v59, 0.0  ;;  %v969_v8 = vadd.f32 %v1854_v3, %v893_v60  ;;  %v1001_v9 = vadd.f32 %v1854_v3, %v925_v61 }
 0x176   : > { %1094 = vst [vmem:[%s1868_s9 + $0xa0] sm:$0xff] %v1030_v1  ;;  %1126 = vst [vmem:[%s1868_s9 + $0x1a0] sm:$0xff] %v1062_v2  ;;  %v1032_v10 = vmax.f32 %v968_v4, 0.0  ;;  %v1064_v11 = vmax.f32 %v1000_v5, 0.0 }
 0x177   : > { %1095 = vst [vmem:[%s1868_s9 + $0xa8] sm:$0xff] %v1031_v6  ;;  %1127 = vst [vmem:[%s1868_s9 + $0x1a8] sm:$0xff] %v1063_v7  ;;  %v1033_v12 = vmax.f32 %v969_v8, 0.0  ;;  %v1065_v13 = vmax.f32 %v1001_v9, 0.0  ;;  %v759_v14 = vpop.f32.mrb[24].mxu0  ;;  %v839_v15 = vpop.f32.mrb[24].mxu1 }
 0x178   : > { %1096 = vst [vmem:[%s1868_s9 + $0xb0] sm:$0xff] %v1032_v10  ;;  %1128 = vst [vmem:[%s1868_s9 + $0x1b0] sm:$0xff] %v1064_v11  ;;  %v894_v16 = vmul.f32 %v1848_v62, %v759_v14  ;;  %v926_v17 = vmul.f32 %v1848_v62, %v839_v15  ;;  %v761_v18 = vpop.f32.mrb[25].mxu0  ;;  %v841_v19 = vpop.f32.mrb[25].mxu1 }
 0x179   : > { %1097 = vst [vmem:[%s1868_s9 + $0xb8] sm:$0xff] %v1033_v12  ;;  %1129 = vst [vmem:[%s1868_s9 + $0x1b8] sm:$0xff] %v1065_v13  ;;  %v895_v20 = vmul.f32 %v1850_v63, %v761_v18  ;;  %v927_v21 = vmul.f32 %v1850_v63, %v841_v19  ;;  %v763_v22 = vpop.f32.mrb[26].mxu0  ;;  %v843_v23 = vpop.f32.mrb[26].mxu1 }
 0x17a   : > { %v970_v24 = vadd.f32 %v1852_v0, %v894_v16  ;;  %v1002_v25 = vadd.f32 %v1852_v0, %v926_v17  ;;  %v896_v26 = vmul.f32 %v1848_v62, %v763_v22  ;;  %v928_v27 = vmul.f32 %v1848_v62, %v843_v23  ;;  %v765_v28 = vpop.f32.mrb[27].mxu0  ;;  %v845_v29 = vpop.f32.mrb[27].mxu1 }
 0x17b   : > { %v971_v30 = vadd.f32 %v1854_v3, %v895_v20  ;;  %v1003_v31 = vadd.f32 %v1854_v3, %v927_v21  ;;  %v897_v32 = vmul.f32 %v1850_v63, %v765_v28  ;;  %v929_v33 = vmul.f32 %v1850_v63, %v845_v29 }
 0x17c   : > { %v1034_v34 = vmax.f32 %v970_v24, 0.0  ;;  %v1066_v35 = vmax.f32 %v1002_v25, 0.0  ;;  %v972_v36 = vadd.f32 %v1852_v0, %v896_v26  ;;  %v1004_v37 = vadd.f32 %v1852_v0, %v928_v27 }
 0x17d   : > { %v1035_v38 = vmax.f32 %v971_v30, 0.0  ;;  %v1067_v39 = vmax.f32 %v1003_v31, 0.0  ;;  %v973_v40 = vadd.f32 %v1854_v3, %v897_v32  ;;  %v1005_v41 = vadd.f32 %v1854_v3, %v929_v33 }
 0x17e   : > { %1098 = vst [vmem:[%s1868_s9 + $0xc0] sm:$0xff] %v1034_v34  ;;  %1130 = vst [vmem:[%s1868_s9 + $0x1c0] sm:$0xff] %v1066_v35  ;;  %v1036_v42 = vmax.f32 %v972_v36, 0.0  ;;  %v1068_v43 = vmax.f32 %v1004_v37, 0.0 }
 0x17f   : > { %1099 = vst [vmem:[%s1868_s9 + $0xc8] sm:$0xff] %v1035_v38  ;;  %1131 = vst [vmem:[%s1868_s9 + $0x1c8] sm:$0xff] %v1067_v39  ;;  %v1037_v44 = vmax.f32 %v973_v40, 0.0  ;;  %v1069_v45 = vmax.f32 %v1005_v41, 0.0  ;;  %v769_v46 = vpop.f32.mrb[28].mxu0  ;;  %v849_v47 = vpop.f32.mrb[28].mxu1 }
 0x180   : > { %1100 = vst [vmem:[%s1868_s9 + $0xd0] sm:$0xff] %v1036_v42  ;;  %1132 = vst [vmem:[%s1868_s9 + $0x1d0] sm:$0xff] %v1068_v43  ;;  %v898_v48 = vmul.f32 %v1848_v62, %v769_v46  ;;  %v930_v49 = vmul.f32 %v1848_v62, %v849_v47  ;;  %v771_v50 = vpop.f32.mrb[29].mxu0  ;;  %v851_v51 = vpop.f32.mrb[29].mxu1 }
 0x181   : > { %1101 = vst [vmem:[%s1868_s9 + $0xd8] sm:$0xff] %v1037_v44  ;;  %1133 = vst [vmem:[%s1868_s9 + $0x1d8] sm:$0xff] %v1069_v45  ;;  %v899_v52 = vmul.f32 %v1850_v63, %v771_v50  ;;  %v931_v53 = vmul.f32 %v1850_v63, %v851_v51  ;;  %v773_v54 = vpop.f32.mrb[30].mxu0  ;;  %v853_v55 = vpop.f32.mrb[30].mxu1 }
 0x182   : > { %v974_v56 = vadd.f32 %v1852_v0, %v898_v48  ;;  %v1006_v57 = vadd.f32 %v1852_v0, %v930_v49  ;;  %v900_v58 = vmul.f32 %v1848_v62, %v773_v54  ;;  %v932_v59 = vmul.f32 %v1848_v62, %v853_v55  ;;  %v775_v60 = vpop.f32.mrb[31].mxu0  ;;  %v855_v61 = vpop.f32.mrb[31].mxu1 }
 0x183   : > { %v975_v1 = vadd.f32 %v1854_v3, %v899_v52  ;;  %v1007_v2 = vadd.f32 %v1854_v3, %v931_v53  ;;  %v901_v4 = vmul.f32 %v1850_v63, %v775_v60  ;;  %v933_v5 = vmul.f32 %v1850_v63, %v855_v61 }
 0x184   : > { %v1038_v6 = vmax.f32 %v974_v56, 0.0  ;;  %v1070_v7 = vmax.f32 %v1006_v57, 0.0  ;;  %v976_v8 = vadd.f32 %v1852_v0, %v900_v58  ;;  %v1008_v62 = vadd.f32 %v1852_v0, %v932_v59 }
 0x185   : > { %v1039_v9 = vmax.f32 %v975_v1, 0.0  ;;  %v1071_v10 = vmax.f32 %v1007_v2, 0.0  ;;  %v977_v11 = vadd.f32 %v1854_v3, %v901_v4  ;;  %v1009_v12 = vadd.f32 %v1854_v3, %v933_v5 }
 0x186   : > { %1102 = vst [vmem:[%s1868_s9 + $0xe0] sm:$0xff] %v1038_v6  ;;  %1134 = vst [vmem:[%s1868_s9 + $0x1e0] sm:$0xff] %v1070_v7  ;;  %v1040_v13 = vmax.f32 %v976_v8, 0.0  ;;  %v1072_v63 = vmax.f32 %v1008_v62, 0.0 }
 0x187   : > { %1103 = vst [vmem:[%s1868_s9 + $0xe8] sm:$0xff] %v1039_v9  ;;  %1135 = vst [vmem:[%s1868_s9 + $0x1e8] sm:$0xff] %v1071_v10  ;;  %v1041_v14 = vmax.f32 %v977_v11, 0.0  ;;  %v1073_v15 = vmax.f32 %v1009_v12, 0.0 }
 0x188   : > { %1104 = vst [vmem:[%s1868_s9 + $0xf0] sm:$0xff] %v1040_v13  ;;  %1136 = vst [vmem:[%s1868_s9 + $0x1f0] sm:$0xff] %v1072_v63 }
 0x189   : > { %1105 = vst [vmem:[%s1868_s9 + $0xf8] sm:$0xff] %v1041_v14  ;;  %1137 = vst [vmem:[%s1868_s9 + $0x1f8] sm:$0xff] %v1073_v15 }
 0x18a PF: > { %s16_s17 = sadd.s32 1, %s1594_s17   ;;  %s2076_s15 = smov %s1590_s16 }
 0x18b   : > { %p13_p8 = scmp.ge.s32.totalorder %s16_s17, 4   ;;  %s2077_s16 = smov %s2079_s19 }
 0x18d   :  { %15 = sbr.rel (!%p13_p8) target bundleno = 3 (0x3), region = 80 }
 0x194   :  { %1171 = vsyncpa [#allocation3], 1 }
 0x195   :  { %1173 = vsyncpa [#allocation3 + $0x1], 1 }
 0x196   :  { %1174 = vsyncpa [#allocation5], 1 }

// kernel: _lambda_.6
= control target key start
LH: loop header
LB: loop body
LE: loop exit
PB: predicated region body
PF: predicated region fallthrough
CT: control target
= control target key end

     0   :  { %s8126_s15 = smov 0   ;;  %s8128_s16 = smov 0   ;;  %s10045_s0 = inlined_call_operand.vmem [shape: bf16[512,2592], index: 0, kind: input, shape index: {}]   ;;  %s10046_s1 = inlined_call_operand.vmem [shape: bf16[2592,128], index: 1, kind: input, shape index: {}]   ;;  %s10047_s2 = inlined_call_operand.vmem [shape: f32[1,128], index: 2, kind: input, shape index: {}]   ;;  %s10048_s3 = inlined_call_operand.vmem [shape: f32[1,128], index: 3, kind: input, shape index: {}]   ;;  %s10049_s4 = inlined_call_operand.vmem [shape: f32[512,128], index: 4, kind: output, shape index: {}]  }
   0x1   :  { %s8130_s17 = smov 0  }
   0x2 LB: > { %s26_s18 = sadd.s32 1, %s8095_s16  ;;  %p5681_p0 = scmp.ge.s32.totalorder %s8099_s17, 1  ;;  %s8099_s17 = sphi %s8130_s17, %s14_s17   ;;  %s8095_s16 = sphi %s8128_s16, %s10051_s16   ;;  %s8091_s15 = sphi %s8126_s15, %s10050_s15  }
   0x3   : > { %p28_p1 = scmp.ge.s32.totalorder %s26_s18, 2  ;;  %p203_p2 = scmp.lt.s32.totalorder %s8099_s17, 3 }
   0x5   : > { %s10053_s18 = smov (%p28_p1, %s26_s18), 0  ;;  %p204_p3 = pnand %p5681_p0, %p203_p2 }
   0x6   : > { %v7419_v0 = vld [vmem:[%s10046_s1 + $0x40] sm:$0xff] (!%p204_p3)   ;;  %s5682_s21 = sshll.u32 (!%p204_p3), %s8091_s15, 5  ;;  %v7421_v2 = vld [vmem:[%s10046_s1 + $0x48] sm:$0xff] (!%p204_p3)   ;;  %v7423_v4 = vld [vmem:[%s10046_s1 + $0x50] sm:$0xff] (!%p204_p3)   ;;  %vm3598_vm0 = vcmask (!%p204_p3), 261120  }
   0x7   : > { %207 = sbr.rel (%p204_p3) target bundleno = 931 (0x3a3), region = 36  ;;  %v7420_v1 = vld [vmem:[%s10046_s1] sm:$0xff] (!%p204_p3)   ;;  %6204 = vmatprep.subr.bf16.mxu0 (!%p204_p3), %v7419_v0  ;;  %7378 = vmatprep.subr.bf16.mxu1 (!%p204_p3), %v7419_v0  ;;  %p244_p4 = scmp.lt.s32.totalorder (!%p204_p3), %s5682_s21, 63  ;;  %v7422_v3 = vld [vmem:[%s10046_s1 + $0x8] sm:$0xff] (!%p204_p3)   ;;  %v7424_v5 = vld [vmem:[%s10046_s1 + $0x10] sm:$0xff] (!%p204_p3)  }
   0x8   : > { %6205 = vmatpush3.bf16.msra.mxu0 (!%p204_p3), %v7420_v1  ;;  %7386 = vmatpush3.bf16.msra.mxu1 (!%p204_p3), %v7420_v1  ;;  %v7425_v6 = vld [vmem:[%s10046_s1 + $0x58] sm:$0xff] (!%p204_p3)   ;;  %v7427_v8 = vld [vmem:[%s10046_s1 + $0x60] sm:$0xff] (!%p204_p3)   ;;  %v7429_v10 = vld [vmem:[%s10046_s1 + $0x68] sm:$0xff] (!%p204_p3)  }
   0x9   : > { %6206 = vmatprep.subr.bf16.mxu0 (!%p204_p3), %v7421_v2  ;;  %7379 = vmatprep.subr.bf16.mxu1 (!%p204_p3), %v7421_v2  ;;  %v7426_v7 = vld [vmem:[%s10046_s1 + $0x18] sm:$0xff] (!%p204_p3)   ;;  %v7428_v9 = vld [vmem:[%s10046_s1 + $0x20] sm:$0xff] (!%p204_p3)   ;;  %v7430_v13 = vld [vmem:[%s10046_s1 + $0x28] sm:$0xff] (!%p204_p3)  }
   0xa   : > { %v7431_v14 = vld [vmem:[%s10046_s1 + $0x70] sm:$0xff] (!%p204_p3)   ;;  %v7433_v16 = vld [vmem:[%s10046_s1 + $0x78] sm:$0xff] (!%p204_p3)   ;;  %v7441_v18 = vld [vmem:[%s10046_s1 + $0xc0] sm:$0xff] (!%p204_p3)  }
   0xb   : > { %v7432_v15 = vld [vmem:[%s10046_s1 + $0x30] sm:$0xff] (!%p204_p3)   ;;  %v7434_v17 = vld [vmem:[%s10046_s1 + $0x38] sm:$0xff] (!%p204_p3)   ;;  %v7444_v21 = vld [vmem:[%s10046_s1 + $0x140] sm:$0xff] (!%p204_p3)  }
   0xc   : > { %6207 = vmatpush3.bf16.msra.mxu0 (!%p204_p3), %v7422_v3  ;;  %7387 = vmatpush3.bf16.msra.mxu1 (!%p204_p3), %v7422_v3  ;;  %v7442_v22 = vld [vmem:[%s10046_s1 + $0x80] sm:$0xff] (!%p204_p3)   ;;  %v7443_v23 = vld [vmem:[%s10046_s1 + $0xc8] sm:$0xff] (!%p204_p3)   ;;  %v7453_v31 = vld [vmem:[%s10046_s1 + $0xd0] sm:$0xff] (!%p204_p3)  }
   0xd   : > { %6208 = vmatprep.subr.bf16.mxu0 (!%p204_p3), %v7423_v4  ;;  %7380 = vmatprep.subr.bf16.mxu1 (!%p204_p3), %v7423_v4  ;;  %v7446_v24 = vld [vmem:[%s10046_s1 + $0x100] sm:$0xff] (!%p204_p3)   ;;  %v7445_v27 = vld [vmem:[%s10046_s1 + $0x88] sm:$0xff] (!%p204_p3)   ;;  %v7454_v32 = vld [vmem:[%s10046_s1 + $0x90] sm:$0xff] (!%p204_p3)  }
   0xe   : > { %s10055_s21 = smov (!%p244_p4, %s5682_s21), 63  ;;  %v7464_v28 = vld [vmem:[%s10046_s1 + $0x148] sm:$0xff]   ;;  %v7455_v34 = vld [vmem:[%s10046_s1 + $0xd8] sm:$0xff]   ;;  %v7463_v40 = vld [vmem:[%s10046_s1 + $0xe0] sm:$0xff]  }
   0xf   : > { %s7394_s8 = smul.u32 84, %s10055_s21  ;;  %v7466_v33 = vld [vmem:[%s10046_s1 + $0x108] sm:$0xff]   ;;  %v7456_v37 = vld [vmem:[%s10046_s1 + $0x98] sm:$0xff]   ;;  %v7465_v41 = vld [vmem:[%s10046_s1 + $0xa0] sm:$0xff]   ;;  %s5685_s9 = sshll.u32 %s10055_s21, 3 }
  0x10   : > { %6209 = vmatpush3.bf16.msra.mxu0 %v7424_v5  ;;  %7388 = vmatpush3.bf16.msra.mxu1 %v7424_v5  ;;  %v7467_v42 = vld [vmem:[%s10046_s1 + $0xe8] sm:$0xff]   ;;  %v7478_v43 = vld [vmem:[%s10046_s1 + $0x150] sm:$0xff]   ;;  %v7477_v52 = vld [vmem:[%s10046_s1 + $0xf8] sm:$0xff]   ;;  %s9899_s11 = scalar_lea.vmem %s10049_s4, %s5685_s9 }
  0x11   : > { %6210 = vmatprep.subr.bf16.mxu0 %v7425_v6  ;;  %7381 = vmatprep.subr.bf16.mxu1 %v7425_v6  ;;  %s8177_s15 = scalar_lea.vmem %s10045_s0, %s7394_s8  ;;  %v7480_v46 = vld [vmem:[%s10046_s1 + $0x110] sm:$0xff]   ;;  %v7468_v47 = vld [vmem:[%s10046_s1 + $0xa8] sm:$0xff]   ;;  %v7495_v55 = vld [vmem:[%s10046_s1 + $0x158] sm:$0xff]  }
  0x12   : > { %v7437_v11 = vld [vmem:[%s8177_s15 + $0x4] ss:$84 sps:$4 sm:$0xff]   ;;  %v7435_v19 = vld [vmem:[%s8177_s15] ss:$84 sps:$4 sm:$0xff]   ;;  %v7451_v29 = vld [vmem:[%s8177_s15 + $0xa8] ss:$84 sps:$4 sm:$0xff]  }
  0x13   : > { %v7440_v12 = vld [vmem:[%s8177_s15 + $0x7e4] ss:$84 sps:$4 sm:$0xff]   ;;  %3679 = vmatprep.mubr.bf16.mxu0 %v7437_v11  ;;  %v7438_v20 = vld [vmem:[%s8177_s15 + $0x7e0] ss:$84 sps:$4 sm:$0xff]   ;;  %v7452_v30 = vld [vmem:[%s8177_s15 + $0x888] ss:$84 sps:$4 sm:$0xff]  }
  0x14   : > { %6211 = vmatpush3.bf16.msra.mxu0 %v7426_v7  ;;  %7389 = vmatpush3.bf16.msra.mxu1 %v7426_v7  ;;  %v7447_v25 = vld [vmem:[%s8177_s15 + $0xac] ss:$84 sps:$4 sm:$0xff]   ;;  %v7457_v35 = vld [vmem:[%s8177_s15 + $0x154] ss:$84 sps:$4 sm:$0xff]   ;;  %v7461_v38 = vld [vmem:[%s8177_s15 + $0x150] ss:$84 sps:$4 sm:$0xff]  }
  0x15   : > { %6212 = vmatprep.subr.bf16.mxu0 %v7427_v8  ;;  %7382 = vmatprep.subr.bf16.mxu1 %v7427_v8  ;;  %v7449_v26 = vld [vmem:[%s8177_s15 + $0x88c] ss:$84 sps:$4 sm:$0xff]   ;;  %v7459_v36 = vld [vmem:[%s8177_s15 + $0x934] ss:$84 sps:$4 sm:$0xff]   ;;  %v7462_v39 = vld [vmem:[%s8177_s15 + $0x930] ss:$84 sps:$4 sm:$0xff]  }
  0x16   : > { %3775 = vmatprep.mubr.bf16.mxu1 %v7440_v12  ;;  %v7469_v44 = vld [vmem:[%s8177_s15 + $0x1fc] ss:$84 sps:$4 sm:$0xff]   ;;  %v7473_v49 = vld [vmem:[%s8177_s15 + $0x1f8] ss:$84 sps:$4 sm:$0xff]   ;;  %v7486_v59 = vld [vmem:[%s8177_s15 + $0x2a0] ss:$84 sps:$4 sm:$0xff]  }
  0x17   : > { %v7471_v45 = vld [vmem:[%s8177_s15 + $0x9dc] ss:$84 sps:$4 sm:$0xff]   ;;  %v7474_v50 = vld [vmem:[%s8177_s15 + $0x9d8] ss:$84 sps:$4 sm:$0xff]   ;;  %v7487_v60 = vld [vmem:[%s10046_s1 + $0x1c0] sm:$0xff]  }
  0x18   : > { %6213 = vmatpush3.bf16.msra.mxu0 %v7428_v9  ;;  %7390 = vmatpush3.bf16.msra.mxu1 %v7428_v9  ;;  %v7475_v48 = vld [vmem:[%s10046_s1 + $0xf0] sm:$0xff]   ;;  %v7481_v53 = vld [vmem:[%s8177_s15 + $0x2a4] ss:$84 sps:$4 sm:$0xff]   ;;  %v7485_v54 = vld [vmem:[%s8177_s15 + $0xc] ss:$84 sps:$4 sm:$0xff]  }
  0x19   : > { %6214 = vmatprep.subr.bf16.mxu0 %v7429_v10  ;;  %7383 = vmatprep.subr.bf16.mxu1 %v7429_v10  ;;  %v7476_v51 = vld [vmem:[%s10046_s1 + $0xb0] sm:$0xff]   ;;  %v7496_v56 = vld [vmem:[%s10046_s1 + $0x118] sm:$0xff]   ;;  %v7488_v61 = vld [vmem:[%s10046_s1 + $0x180] sm:$0xff]  }
  0x1a   : > { %v7479_v57 = vld [vmem:[%s10046_s1 + $0xb8] sm:$0xff]   ;;  %v7489_v62 = vld [vmem:[%s8177_s15 + $0x34c] ss:$84 sps:$4 sm:$0xff]   ;;  %v7491_v63 = vld [vmem:[%s8177_s15 + $0xb4] ss:$84 sps:$4 sm:$0xff]  }
  0x1b   : > { %v7483_v58 = vld [vmem:[%s8177_s15 + $0x8] ss:$84 sps:$4 sm:$0xff]   ;;  %v7505_v0 = vld [vmem:[%s10046_s1 + $0x160] sm:$0xff]   ;;  %v7520_v9 = vld [vmem:[%s10046_s1 + $0x1d0] sm:$0xff]  }
  0x1c   : > { %6215 = vmatpush3.bf16.msra.mxu0 %v7430_v13  ;;  %7391 = vmatpush3.bf16.msra.mxu1 %v7430_v13  ;;  %v7503_v1 = vld [vmem:[%s10046_s1 + $0x1c8] sm:$0xff]   ;;  %v7506_v2 = vld [vmem:[%s10046_s1 + $0x120] sm:$0xff]   ;;  %v7499_v7 = vld [vmem:[%s8177_s15 + $0x15c] ss:$84 sps:$4 sm:$0xff]  }
  0x1d   : > { %6216 = vmatprep.subr.bf16.mxu0 %v7431_v14  ;;  %7384 = vmatprep.subr.bf16.mxu1 %v7431_v14  ;;  %v7504_v3 = vld [vmem:[%s10046_s1 + $0x188] sm:$0xff]   ;;  %v7494_v5 = vld [vmem:[%s8177_s15 + $0xb0] ss:$84 sps:$4 sm:$0xff]  }
  0x1e   : > { %v7493_v4 = vld [vmem:[%s8177_s15 + $0x348] ss:$84 sps:$4 sm:$0xff]   ;;  %v7522_v11 = vld [vmem:[%s10046_s1 + $0x190] sm:$0xff]   ;;  %v7502_v13 = vld [vmem:[%s8177_s15 + $0x158] ss:$84 sps:$4 sm:$0xff]  }
  0x1f   : > { %v7497_v6 = vld [vmem:[%s8177_s15 + $0x3f4] ss:$84 sps:$4 sm:$0xff]   ;;  %v7501_v12 = vld [vmem:[%s8177_s15 + $0x3f0] ss:$84 sps:$4 sm:$0xff]  }
  0x20   : > { %6217 = vmatpush3.bf16.msra.mxu0 %v7432_v15  ;;  %7392 = vmatpush3.bf16.msra.mxu1 %v7432_v15  ;;  %v7519_v8 = vld [vmem:[%s10046_s1 + $0x168] sm:$0xff]   ;;  %v7507_v14 = vld [vmem:[%s8177_s15 + $0x49c] ss:$84 sps:$4 sm:$0xff]  }
  0x21   : > { %6218 = vmatprep.subr.bf16.mxu0 %v7433_v16  ;;  %7385 = vmatprep.subr.bf16.mxu1 %v7433_v16  ;;  %v7521_v10 = vld [vmem:[%s10046_s1 + $0x128] sm:$0xff]   ;;  %v7529_v15 = vld [vmem:[%s10046_s1 + $0x170] sm:$0xff]  }
  0x22   : > { %v7530_v16 = vld [vmem:[%s10046_s1 + $0x130] sm:$0xff]  }
  0x24   : > { %6219 = vmatpush3.bf16.msra.mxu0 %v7434_v17  ;;  %7393 = vmatpush3.bf16.msra.mxu1 %v7434_v17  ;;  %v7509_v17 = vld [vmem:[%s8177_s15 + $0x204] ss:$84 sps:$4 sm:$0xff]  }
  0x25   : > { %6316 = vmatprep.subr.bf16.mxu1 %v7441_v18  ;;  %6428 = vmatprep.subr.bf16.mxu0 %v7444_v21  ;;  %v7537_v18 = vld [vmem:[%s10046_s1 + $0x1d8] sm:$0xff]   ;;  %v7512_v21 = vld [vmem:[%s8177_s15 + $0x200] ss:$84 sps:$4 sm:$0xff]  }
  0x27   : > { %3680 = vmatmul.mubr.bf16.vlgmr.msra.gmra.mrb[0].mxu0 %v7435_v19  ;;  %3776 = vmatmul.mubr.bf16.vlgmr.msra.gmra.mrb[0].mxu1 %v7438_v20  ;;  %v7538_v19 = vld [vmem:[%s10046_s1 + $0x198] sm:$0xff]  }
  0x28   : > { %6317 = vmatpush3.bf16.msra.mxu1 %v7442_v22  ;;  %6429 = vmatpush3.bf16.msra.mxu0 %v7446_v24  ;;  %v7511_v20 = vld [vmem:[%s8177_s15 + $0x498] ss:$84 sps:$4 sm:$0xff]  }
  0x29   : > { %6318 = vmatprep.subr.bf16.mxu1 %v7443_v23  ;;  %3687 = vmatprep.mubr.bf16.mxu0 %v7447_v25  ;;  %v7513_v22 = vld [vmem:[%s8177_s15 + $0x544] ss:$84 sps:$4 sm:$0xff]   ;;  %v7515_v23 = vld [vmem:[%s8177_s15 + $0x2ac] ss:$84 sps:$4 sm:$0xff]  }
  0x2a   : > { %3783 = vmatprep.mubr.bf16.mxu1 %v7449_v26  ;;  %6430 = vmatprep.subr.bf16.mxu0 %v7464_v28  ;;  %v7545_v24 = vld [vmem:[%s10046_s1 + $0x178] sm:$0xff]   ;;  %v7553_v26 = vld [vmem:[%s10046_s1 + $0x1e0] sm:$0xff]  }
  0x2b   : > { %v7546_v25 = vld [vmem:[%s10046_s1 + $0x138] sm:$0xff]  }
  0x2c   : > { %6319 = vmatpush3.bf16.msra.mxu1 %v7445_v27  ;;  %6431 = vmatpush3.bf16.msra.mxu0 %v7466_v33  ;;  %v7517_v27 = vld [vmem:[%s8177_s15 + $0x540] ss:$84 sps:$4 sm:$0xff]   ;;  %v7518_v28 = vld [vmem:[%s8177_s15 + $0x2a8] ss:$84 sps:$4 sm:$0xff]  }
  0x2d   : > { %6320 = vmatprep.subr.bf16.mxu1 %v7453_v31  ;;  %6432 = vmatprep.subr.bf16.mxu0 %v7478_v43  ;;  %v7523_v31 = vld [vmem:[%s8177_s15 + $0x5ec] ss:$84 sps:$4 sm:$0xff]   ;;  %v7527_v33 = vld [vmem:[%s8177_s15 + $0x5e8] ss:$84 sps:$4 sm:$0xff]   ;;  %v7585_v43 = vld [vmem:[%s10046_s1 + $0x1f0] sm:$0xff]  }
  0x2f   : > { %3688 = vmatmul.mubr.bf16.gmra.mrb[4].mxu0 %v7451_v29  ;;  %3784 = vmatmul.mubr.bf16.gmra.mrb[4].mxu1 %v7452_v30  ;;  %v7554_v29 = vld [vmem:[%s10046_s1 + $0x1a0] sm:$0xff]  }
  0x30   : > { %6321 = vmatpush3.bf16.msra.mxu1 %v7454_v32  ;;  %3695 = vmatprep.mubr.bf16.mxu0 %v7457_v35  ;;  %v7555_v30 = vld [vmem:[%s10046_s1 + $0x240] sm:$0xff]   ;;  %v7525_v32 = vld [vmem:[%s8177_s15 + $0x354] ss:$84 sps:$4 sm:$0xff]  }
  0x31   : > { %6322 = vmatprep.subr.bf16.mxu1 %v7455_v34  ;;  %3791 = vmatprep.mubr.bf16.mxu1 %v7459_v36  ;;  %v7528_v34 = vld [vmem:[%s8177_s15 + $0x350] ss:$84 sps:$4 sm:$0xff]   ;;  %v7569_v35 = vld [vmem:[%s10046_s1 + $0x1e8] sm:$0xff]  }
  0x32   : > { %6433 = vmatpush3.bf16.msra.mxu0 %v7480_v46  ;;  %v7570_v36 = vld [vmem:[%s10046_s1 + $0x1a8] sm:$0xff]   ;;  %v7544_v46 = vld [vmem:[%s8177_s15 + $0x4a0] ss:$84 sps:$4 sm:$0xff]  }
  0x33   : > { %6434 = vmatprep.subr.bf16.mxu0 %v7495_v55  ;;  %v7559_v55 = vld [vmem:[%s8177_s15 + $0xbc] ss:$84 sps:$4 sm:$0xff]  }
  0x34   : > { %6323 = vmatpush3.bf16.msra.mxu1 %v7456_v37  ;;  %v7531_v37 = vld [vmem:[%s8177_s15 + $0x694] ss:$84 sps:$4 sm:$0xff]  }
  0x35   : > { %6324 = vmatprep.subr.bf16.mxu1 %v7463_v40  ;;  %v7536_v40 = vld [vmem:[%s8177_s15 + $0x3f8] ss:$84 sps:$4 sm:$0xff]  }
  0x36   : > { %6435 = vmatpush3.bf16.msra.mxu0 %v7496_v56  ;;  %v7571_v56 = vld [vmem:[%s10046_s1 + $0x248] sm:$0xff]  }
  0x37   : > { %3696 = vmatmul.mubr.bf16.gmra.mrb[8].mxu0 %v7461_v38  ;;  %3792 = vmatmul.mubr.bf16.gmra.mrb[8].mxu1 %v7462_v39  ;;  %v7533_v38 = vld [vmem:[%s8177_s15 + $0x3fc] ss:$84 sps:$4 sm:$0xff]  }
  0x38   : > { %6325 = vmatpush3.bf16.msra.mxu1 %v7465_v41  ;;  %3703 = vmatprep.mubr.bf16.mxu0 %v7469_v44  ;;  %v7535_v39 = vld [vmem:[%s8177_s15 + $0x690] ss:$84 sps:$4 sm:$0xff]  }
  0x39   : > { %6326 = vmatprep.subr.bf16.mxu1 %v7467_v42  ;;  %3799 = vmatprep.mubr.bf16.mxu1 %v7471_v45  ;;  %v7539_v41 = vld [vmem:[%s8177_s15 + $0x73c] ss:$84 sps:$4 sm:$0xff]   ;;  %v7541_v42 = vld [vmem:[%s8177_s15 + $0x4a4] ss:$84 sps:$4 sm:$0xff]  }
  0x3a   : > { %6436 = vmatprep.subr.bf16.mxu0 %v7505_v0  ;;  %v7586_v44 = vld [vmem:[%s10046_s1 + $0x1b0] sm:$0xff]   ;;  %v7543_v45 = vld [vmem:[%s8177_s15 + $0x738] ss:$84 sps:$4 sm:$0xff]  }
  0x3b   : > { %6437 = vmatpush3.bf16.msra.mxu0 %v7506_v2  ;;  %v7588_v0 = vld [vmem:[%s10046_s1 + $0x210] sm:$0xff]   ;;  %v7567_v2 = vld [vmem:[%s8177_s15 + $0x698] ss:$84 sps:$4 sm:$0xff]  }
  0x3c   : > { %6327 = vmatpush3.bf16.msra.mxu1 %v7468_v47  ;;  %6438 = vmatprep.subr.bf16.mxu0 %v7519_v8  ;;  %v7547_v47 = vld [vmem:[%s8177_s15 + $0x54c] ss:$84 sps:$4 sm:$0xff]  }
  0x3d   : > { %6328 = vmatprep.subr.bf16.mxu1 %v7475_v48  ;;  %v7551_v48 = vld [vmem:[%s8177_s15 + $0x14] ss:$84 sps:$4 sm:$0xff]   ;;  %v7620_v8 = vld [vmem:[%s10046_s1 + $0x220] sm:$0xff]  }
  0x3f   : > { %3704 = vmatmul.mubr.bf16.gmra.mrb[12].mxu0 %v7473_v49  ;;  %3800 = vmatmul.mubr.bf16.gmra.mrb[12].mxu1 %v7474_v50  ;;  %v7601_v49 = vld [vmem:[%s10046_s1 + $0x1f8] sm:$0xff]  }
  0x40   : > { %6329 = vmatpush3.bf16.msra.mxu1 %v7476_v51  ;;  %3711 = vmatprep.mubr.bf16.mxu0 %v7481_v53  ;;  %v7602_v50 = vld [vmem:[%s10046_s1 + $0x1b8] sm:$0xff]   ;;  %v7549_v51 = vld [vmem:[%s8177_s15 + $0x10] ss:$84 sps:$4 sm:$0xff]  }
  0x41   : > { %6330 = vmatprep.subr.bf16.mxu1 %v7477_v52  ;;  %3840 = vmatprep.mubr.bf16.mxu1 %v7485_v54  ;;  %v7552_v52 = vld [vmem:[%s8177_s15 + $0x548] ss:$84 sps:$4 sm:$0xff]   ;;  %v7556_v53 = vld [vmem:[%s10046_s1 + $0x200] sm:$0xff]  }
  0x42   : > { %6439 = vmatpush3.bf16.msra.mxu0 %v7521_v10  ;;  %v7557_v54 = vld [vmem:[%s8177_s15 + $0x5f4] ss:$84 sps:$4 sm:$0xff]  }
  0x43   : > { %6440 = vmatprep.subr.bf16.mxu0 %v7529_v15  ;;  %v7577_v10 = vld [vmem:[%s8177_s15 + $0x740] ss:$84 sps:$4 sm:$0xff]  }
  0x44   : > { %6331 = vmatpush3.bf16.msra.mxu1 %v7479_v57  ;;  %v7617_v57 = vld [vmem:[%s10046_s1 + $0x2c0] sm:$0xff]   ;;  %v7581_v15 = vld [vmem:[%s8177_s15 + $0x2b4] ss:$84 sps:$4 sm:$0xff]  }
  0x45   : > { %6540 = vmatprep.subr.bf16.mxu1 %v7487_v60  ;;  %v7561_v60 = vld [vmem:[%s8177_s15 + $0x5f0] ss:$84 sps:$4 sm:$0xff]  }
  0x46   : > { %6441 = vmatpush3.bf16.msra.mxu0 %v7530_v16  ;;  %v7652_v16 = vld [vmem:[%s10046_s1 + $0x230] sm:$0xff]  }
  0x47   : > { %3712 = vmatmul.mubr.bf16.gmra.mrb[16].mxu0 %v7486_v59  ;;  %3841 = vmatmul.mubr.bf16.vlgmr.msra.gmra.mrb[16].mxu1 %v7483_v58  ;;  %v7572_v58 = vld [vmem:[%s10046_s1 + $0x208] sm:$0xff]   ;;  %v7587_v59 = vld [vmem:[%s10046_s1 + $0x250] sm:$0xff]  }
  0x48   : > { %6541 = vmatpush3.bf16.msra.mxu1 %v7488_v61  ;;  %3719 = vmatprep.mubr.bf16.mxu0 %v7489_v62  ;;  %v7562_v61 = vld [vmem:[%s8177_s15 + $0xb8] ss:$84 sps:$4 sm:$0xff]   ;;  %v7563_v62 = vld [vmem:[%s8177_s15 + $0x69c] ss:$84 sps:$4 sm:$0xff]  }
  0x49   : > { %3848 = vmatprep.mubr.bf16.mxu1 %v7491_v63  ;;  %6542 = vmatprep.subr.bf16.mxu1 %v7503_v1  ;;  %v7565_v63 = vld [vmem:[%s8177_s15 + $0x164] ss:$84 sps:$4 sm:$0xff]  }
  0x4a   : > { %6442 = vmatprep.subr.bf16.mxu0 %v7545_v24  ;;  %v7603_v1 = vld [vmem:[%s10046_s1 + $0x258] sm:$0xff]  }
  0x4b   : > { %6443 = vmatpush3.bf16.msra.mxu0 %v7546_v25  ;;  %v7594_v24 = vld [vmem:[%s8177_s15 + $0x358] ss:$84 sps:$4 sm:$0xff]   ;;  %v7595_v25 = vld [vmem:[%s8177_s15 + $0x93c] ss:$84 sps:$4 sm:$0xff]  }
  0x4c   : > { %6543 = vmatpush3.bf16.msra.mxu1 %v7504_v3  ;;  %6652 = vmatprep.subr.bf16.mxu0 %v7555_v30  ;;  %v7604_v3 = vld [vmem:[%s10046_s1 + $0x218] sm:$0xff]  }
  0x4d   : > { %6544 = vmatprep.subr.bf16.mxu1 %v7520_v9  ;;  %v7635_v9 = vld [vmem:[%s10046_s1 + $0x268] sm:$0xff]   ;;  %v7605_v30 = vld [vmem:[%s8177_s15 + $0x9e4] ss:$84 sps:$4 sm:$0xff]  }
  0x4f   : > { %3720 = vmatmul.mubr.bf16.gmra.mrb[20].mxu0 %v7493_v4  ;;  %3849 = vmatmul.mubr.bf16.gmra.mrb[20].mxu1 %v7494_v5  ;;  %v7619_v4 = vld [vmem:[%s10046_s1 + $0x260] sm:$0xff]  }
  0x50   : > { %3727 = vmatprep.mubr.bf16.mxu0 %v7497_v6  ;;  %3856 = vmatprep.mubr.bf16.mxu1 %v7499_v7  ;;  %v7568_v5 = vld [vmem:[%s8177_s15 + $0x160] ss:$84 sps:$4 sm:$0xff]   ;;  %v7573_v6 = vld [vmem:[%s8177_s15 + $0x744] ss:$84 sps:$4 sm:$0xff]  }
  0x51   : > { %6545 = vmatpush3.bf16.msra.mxu1 %v7522_v11  ;;  %v7575_v7 = vld [vmem:[%s8177_s15 + $0x20c] ss:$84 sps:$4 sm:$0xff]   ;;  %v7578_v11 = vld [vmem:[%s8177_s15 + $0x208] ss:$84 sps:$4 sm:$0xff]  }
  0x52   : > { %6546 = vmatprep.subr.bf16.mxu1 %v7537_v18  ;;  %v7584_v18 = vld [vmem:[%s8177_s15 + $0x2b0] ss:$84 sps:$4 sm:$0xff]  }
  0x55   : > { %6547 = vmatpush3.bf16.msra.mxu1 %v7538_v19  ;;  %v7589_v19 = vld [vmem:[%s8177_s15 + $0x894] ss:$84 sps:$4 sm:$0xff]  }
  0x56   : > { %6548 = vmatprep.subr.bf16.mxu1 %v7553_v26  ;;  %v7597_v26 = vld [vmem:[%s8177_s15 + $0x404] ss:$84 sps:$4 sm:$0xff]  }
  0x57   : > { %3728 = vmatmul.mubr.bf16.gmra.mrb[24].mxu0 %v7501_v12  ;;  %3857 = vmatmul.mubr.bf16.gmra.mrb[24].mxu1 %v7502_v13  ;;  %v7636_v12 = vld [vmem:[%s10046_s1 + $0x228] sm:$0xff]   ;;  %v7651_v13 = vld [vmem:[%s10046_s1 + $0x270] sm:$0xff]  }
  0x58   : > { %3735 = vmatprep.mubr.bf16.mxu0 %v7507_v14  ;;  %3864 = vmatprep.mubr.bf16.mxu1 %v7509_v17  ;;  %v7579_v14 = vld [vmem:[%s8177_s15 + $0x7ec] ss:$84 sps:$4 sm:$0xff]   ;;  %v7583_v17 = vld [vmem:[%s8177_s15 + $0x7e8] ss:$84 sps:$4 sm:$0xff]  }
  0x59   : > { %6549 = vmatpush3.bf16.msra.mxu1 %v7554_v29  ;;  %v7600_v29 = vld [vmem:[%s8177_s15 + $0x400] ss:$84 sps:$4 sm:$0xff]  }
  0x5a   : > { %6550 = vmatprep.subr.bf16.mxu1 %v7569_v35  ;;  %v7615_v35 = vld [vmem:[%s8177_s15 + $0x1c] ss:$84 sps:$4 sm:$0xff]  }
  0x5d   : > { %6551 = vmatpush3.bf16.msra.mxu1 %v7570_v36  ;;  %v7613_v36 = vld [vmem:[%s8177_s15 + $0x18] ss:$84 sps:$4 sm:$0xff]  }
  0x5e   : > { %6552 = vmatprep.subr.bf16.mxu1 %v7585_v43  ;;  %v7649_v43 = vld [vmem:[%s10046_s1 + $0x2d0] sm:$0xff]  }
  0x5f   : > { %3736 = vmatmul.mubr.bf16.gmra.mrb[28].mxu0 %v7511_v20  ;;  %3865 = vmatmul.mubr.bf16.gmra.mrb[28].mxu1 %v7512_v21  ;;  %v7591_v20 = vld [vmem:[%s8177_s15 + $0x35c] ss:$84 sps:$4 sm:$0xff]  }
  0x60   : > { %3743 = vmatprep.mubr.bf16.mxu0 %v7513_v22  ;;  %3872 = vmatprep.mubr.bf16.mxu1 %v7515_v23  ;;  %v7667_v21 = vld [vmem:[%s10046_s1 + $0x278] sm:$0xff]   ;;  %v7593_v23 = vld [vmem:[%s8177_s15 + $0x890] ss:$84 sps:$4 sm:$0xff]  }
  0x61   : > { %6553 = vmatpush3.bf16.msra.mxu1 %v7586_v44  ;;  %v7668_v22 = vld [vmem:[%s10046_s1 + $0x238] sm:$0xff]  }
  0x62   : > { %6554 = vmatprep.subr.bf16.mxu1 %v7601_v49  ;;  %v7625_v44 = vld [vmem:[%s8177_s15 + $0x5f8] ss:$84 sps:$4 sm:$0xff]  }
  0x63   : > { %v7665_v49 = vld [vmem:[%s10046_s1 + $0x2d8] sm:$0xff]  }
  0x65   : > { %6555 = vmatpush3.bf16.msra.mxu1 %v7602_v50  ;;  %v7631_v50 = vld [vmem:[%s8177_s15 + $0x6a0] ss:$84 sps:$4 sm:$0xff]  }
  0x66   : > { %6764 = vmatprep.subr.bf16.mxu1 %v7617_v57  ;;  %v7697_v57 = vld [vmem:[%s10046_s1 + $0x2e8] sm:$0xff]  }
  0x67   : > { %3744 = vmatmul.mubr.bf16.gmra.mrb[32].mxu0 %v7517_v27  ;;  %3873 = vmatmul.mubr.bf16.gmra.mrb[32].mxu1 %v7518_v28  ;;  %v7683_v27 = vld [vmem:[%s10046_s1 + $0x340] sm:$0xff]   ;;  %v7599_v28 = vld [vmem:[%s8177_s15 + $0x938] ss:$84 sps:$4 sm:$0xff]  }
  0x68   : > { %3751 = vmatprep.mubr.bf16.mxu0 %v7523_v31  ;;  %3880 = vmatprep.mubr.bf16.mxu1 %v7525_v32  ;;  %v7607_v31 = vld [vmem:[%s8177_s15 + $0x4ac] ss:$84 sps:$4 sm:$0xff]  }
  0x69   : > { %v7609_v32 = vld [vmem:[%s8177_s15 + $0x9e0] ss:$84 sps:$4 sm:$0xff]  }
  0x6f   : > { %3752 = vmatmul.mubr.bf16.gmra.mrb[36].mxu0 %v7527_v33  ;;  %3881 = vmatmul.mubr.bf16.gmra.mrb[36].mxu1 %v7528_v34  ;;  %v7610_v33 = vld [vmem:[%s8177_s15 + $0x4a8] ss:$84 sps:$4 sm:$0xff]  }
  0x70   : > { %3759 = vmatprep.mubr.bf16.mxu0 %v7531_v37  ;;  %3888 = vmatprep.mubr.bf16.mxu1 %v7533_v38  ;;  %v7611_v34 = vld [vmem:[%s8177_s15 + $0x554] ss:$84 sps:$4 sm:$0xff]   ;;  %v7616_v37 = vld [vmem:[%s8177_s15 + $0x550] ss:$84 sps:$4 sm:$0xff]  }
  0x71   : > { %v7618_v38 = vld [vmem:[%s10046_s1 + $0x280] sm:$0xff]  }
  0x77   : > { %3760 = vmatmul.mubr.bf16.gmra.mrb[40].mxu0 %v7535_v39  ;;  %3889 = vmatmul.mubr.bf16.gmra.mrb[40].mxu1 %v7536_v40  ;;  %v7621_v39 = vld [vmem:[%s8177_s15 + $0x5fc] ss:$84 sps:$4 sm:$0xff]   ;;  %v7623_v40 = vld [vmem:[%s8177_s15 + $0xc4] ss:$84 sps:$4 sm:$0xff]  }
  0x78   : > { %3767 = vmatprep.mubr.bf16.mxu0 %v7539_v41  ;;  %3896 = vmatprep.mubr.bf16.mxu1 %v7541_v42  ;;  %v7633_v41 = vld [vmem:[%s10046_s1 + $0x2c8] sm:$0xff]  }
  0x79   : > { %v7634_v42 = vld [vmem:[%s10046_s1 + $0x288] sm:$0xff]  }
  0x7f   : > { %3768 = vmatmul.mubr.bf16.gmra.mrb[44].mxu0 %v7543_v45  ;;  %3897 = vmatmul.mubr.bf16.gmra.mrb[44].mxu1 %v7544_v46  ;;  %v7626_v45 = vld [vmem:[%s8177_s15 + $0xc0] ss:$84 sps:$4 sm:$0xff]   ;;  %v7627_v46 = vld [vmem:[%s8177_s15 + $0x6a4] ss:$84 sps:$4 sm:$0xff]  }
  0x80   : > { %3904 = vmatprep.mubr.bf16.mxu1 %v7547_v47  ;;  %4001 = vmatprep.mubr.bf16.mxu0 %v7551_v48  ;;  %v7629_v47 = vld [vmem:[%s8177_s15 + $0x16c] ss:$84 sps:$4 sm:$0xff]   ;;  %v7650_v48 = vld [vmem:[%s10046_s1 + $0x290] sm:$0xff]  }
  0x87   : > { %3905 = vmatmul.mubr.bf16.gmra.mrb[48].mxu1 %v7552_v52  ;;  %4002 = vmatmul.mubr.bf16.vlgmr.msra.gmra.mrb[48].mxu0 %v7549_v51  ;;  %v7632_v51 = vld [vmem:[%s8177_s15 + $0x168] ss:$84 sps:$4 sm:$0xff]  }
  0x88   : > { %6653 = vmatpush3.bf16.msra.mxu0 %v7556_v53  ;;  %3912 = vmatprep.mubr.bf16.mxu1 %v7557_v54  ;;  %v7666_v52 = vld [vmem:[%s10046_s1 + $0x298] sm:$0xff]   ;;  %v7681_v53 = vld [vmem:[%s10046_s1 + $0x2e0] sm:$0xff]  }
  0x89   : > { %4009 = vmatprep.mubr.bf16.mxu0 %v7559_v55  ;;  %6654 = vmatprep.subr.bf16.mxu0 %v7571_v56  ;;  %v7637_v54 = vld [vmem:[%s8177_s15 + $0x74c] ss:$84 sps:$4 sm:$0xff]   ;;  %v7639_v55 = vld [vmem:[%s8177_s15 + $0x214] ss:$84 sps:$4 sm:$0xff]  }
  0x8a   : > { %v7682_v56 = vld [vmem:[%s10046_s1 + $0x2a0] sm:$0xff]  }
  0x8c   : > { %6655 = vmatpush3.bf16.msra.mxu0 %v7572_v58  ;;  %v7641_v58 = vld [vmem:[%s8177_s15 + $0x748] ss:$84 sps:$4 sm:$0xff]  }
  0x8d   : > { %6656 = vmatprep.subr.bf16.mxu0 %v7587_v59  ;;  %v7642_v59 = vld [vmem:[%s8177_s15 + $0x210] ss:$84 sps:$4 sm:$0xff]  }
  0x8f   : > { %3913 = vmatmul.mubr.bf16.gmra.mrb[52].mxu1 %v7561_v60  ;;  %4010 = vmatmul.mubr.bf16.gmra.mrb[52].mxu0 %v7562_v61  ;;  %v7698_v60 = vld [vmem:[%s10046_s1 + $0x2a8] sm:$0xff]   ;;  %v7713_v61 = vld [vmem:[%s10046_s1 + $0x2f0] sm:$0xff]  }
  0x90   : > { %3920 = vmatprep.mubr.bf16.mxu1 %v7563_v62  ;;  %4017 = vmatprep.mubr.bf16.mxu0 %v7565_v63  ;;  %v7643_v62 = vld [vmem:[%s8177_s15 + $0x7f4] ss:$84 sps:$4 sm:$0xff]   ;;  %v7645_v63 = vld [vmem:[%s8177_s15 + $0x2bc] ss:$84 sps:$4 sm:$0xff]  }
  0x91   : > { %6657 = vmatpush3.bf16.msra.mxu0 %v7588_v0  ;;  %v7714_v0 = vld [vmem:[%s10046_s1 + $0x2b0] sm:$0xff]  }
  0x92   : > { %6658 = vmatprep.subr.bf16.mxu0 %v7603_v1  ;;  %v7729_v1 = vld [vmem:[%s10046_s1 + $0x2f8] sm:$0xff]  }
  0x95   : > { %6659 = vmatpush3.bf16.msra.mxu0 %v7604_v3  ;;  %v7745_v3 = vld [vmem:[%s10046_s1 + $0x3c0] sm:$0xff]  }
  0x96   : > { %6660 = vmatprep.subr.bf16.mxu0 %v7619_v4  ;;  %v7647_v4 = vld [vmem:[%s8177_s15 + $0x7f0] ss:$84 sps:$4 sm:$0xff]  }
  0x97   : > { %3921 = vmatmul.mubr.bf16.gmra.mrb[56].mxu1 %v7567_v2  ;;  %4018 = vmatmul.mubr.bf16.gmra.mrb[56].mxu0 %v7568_v5  ;;  %v7730_v2 = vld [vmem:[%s10046_s1 + $0x2b8] sm:$0xff]  }
  0x98   : > { %3928 = vmatprep.mubr.bf16.mxu1 %v7573_v6  ;;  %4025 = vmatprep.mubr.bf16.mxu0 %v7575_v7  ;;  %v7648_v5 = vld [vmem:[%s8177_s15 + $0x2b8] ss:$84 sps:$4 sm:$0xff]   ;;  %v7653_v6 = vld [vmem:[%s8177_s15 + $0x89c] ss:$84 sps:$4 sm:$0xff]  }
  0x99   : > { %6661 = vmatpush3.bf16.msra.mxu0 %v7620_v8  ;;  %v7655_v7 = vld [vmem:[%s8177_s15 + $0x364] ss:$84 sps:$4 sm:$0xff]  }
  0x9a   : > { %6662 = vmatprep.subr.bf16.mxu0 %v7635_v9  ;;  %v7657_v8 = vld [vmem:[%s8177_s15 + $0x898] ss:$84 sps:$4 sm:$0xff]   ;;  %v7658_v9 = vld [vmem:[%s8177_s15 + $0x360] ss:$84 sps:$4 sm:$0xff]  }
  0x9d   : > { %6663 = vmatpush3.bf16.msra.mxu0 %v7636_v12  ;;  %v7663_v12 = vld [vmem:[%s8177_s15 + $0x940] ss:$84 sps:$4 sm:$0xff]  }
  0x9e   : > { %6664 = vmatprep.subr.bf16.mxu0 %v7651_v13  ;;  %v7664_v13 = vld [vmem:[%s8177_s15 + $0x408] ss:$84 sps:$4 sm:$0xff]  }
  0x9f   : > { %3929 = vmatmul.mubr.bf16.gmra.mrb[60].mxu1 %v7577_v10  ;;  %4026 = vmatmul.mubr.bf16.gmra.mrb[60].mxu0 %v7578_v11  ;;  %v7659_v10 = vld [vmem:[%s8177_s15 + $0x944] ss:$84 sps:$4 sm:$0xff]   ;;  %v7661_v11 = vld [vmem:[%s8177_s15 + $0x40c] ss:$84 sps:$4 sm:$0xff]  }
  0xa0   : > { %3936 = vmatprep.mubr.bf16.mxu1 %v7579_v14  ;;  %4033 = vmatprep.mubr.bf16.mxu0 %v7581_v15  ;;  %v7669_v14 = vld [vmem:[%s8177_s15 + $0x9ec] ss:$84 sps:$4 sm:$0xff]   ;;  %v7671_v15 = vld [vmem:[%s8177_s15 + $0x4b4] ss:$84 sps:$4 sm:$0xff]  }
  0xa1   : > { %6665 = vmatpush3.bf16.msra.mxu0 %v7652_v16  ;;  %v7673_v16 = vld [vmem:[%s8177_s15 + $0x9e8] ss:$84 sps:$4 sm:$0xff]  }
  0xa2   : > { %6666 = vmatprep.subr.bf16.mxu0 %v7667_v21 }
  0xa5   : > { %6667 = vmatpush3.bf16.msra.mxu0 %v7668_v22 }
  0xa6   : > { %6876 = vmatprep.subr.bf16.mxu0 %v7683_v27  ;;  %v7679_v27 = vld [vmem:[%s8177_s15 + $0x24] ss:$84 sps:$4 sm:$0xff]  }
  0xa7   : > { %3937 = vmatmul.mubr.bf16.gmra.mrb[64].mxu1 %v7583_v17  ;;  %4034 = vmatmul.mubr.bf16.gmra.mrb[64].mxu0 %v7584_v18  ;;  %v7674_v17 = vld [vmem:[%s8177_s15 + $0x4b0] ss:$84 sps:$4 sm:$0xff]  }
  0xa8   : > { %3944 = vmatprep.mubr.bf16.mxu1 %v7589_v19  ;;  %4041 = vmatprep.mubr.bf16.mxu0 %v7591_v20 }
  0xaf   : > { %3945 = vmatmul.mubr.bf16.gmra.mrb[68].mxu1 %v7593_v23  ;;  %4042 = vmatmul.mubr.bf16.gmra.mrb[68].mxu0 %v7594_v24 }
  0xb0   : > { %3952 = vmatprep.mubr.bf16.mxu1 %v7595_v25  ;;  %4049 = vmatprep.mubr.bf16.mxu0 %v7597_v26  ;;  %v7675_v26 = vld [vmem:[%s8177_s15 + $0x55c] ss:$84 sps:$4 sm:$0xff]  }
  0xb7   : > { %3953 = vmatmul.mubr.bf16.gmra.mrb[72].mxu1 %v7599_v28  ;;  %4050 = vmatmul.mubr.bf16.gmra.mrb[72].mxu0 %v7600_v29 }
  0xb8   : > { %3960 = vmatprep.mubr.bf16.mxu1 %v7605_v30  ;;  %4057 = vmatprep.mubr.bf16.mxu0 %v7607_v31 }
  0xbf   : > { %3961 = vmatmul.mubr.bf16.gmra.mrb[76].mxu1 %v7609_v32  ;;  %4058 = vmatmul.mubr.bf16.gmra.mrb[76].mxu0 %v7610_v33  ;;  %v7677_v32 = vld [vmem:[%s8177_s15 + $0x20] ss:$84 sps:$4 sm:$0xff]   ;;  %v7680_v33 = vld [vmem:[%s8177_s15 + $0x558] ss:$84 sps:$4 sm:$0xff]  }
  0xc0   : > { %4065 = vmatprep.mubr.bf16.mxu0 %v7611_v34  ;;  %4162 = vmatprep.mubr.bf16.mxu1 %v7615_v35 }
  0xc7   : > { %4066 = vmatmul.mubr.bf16.gmra.mrb[80].mxu0 %v7616_v37  ;;  %4163 = vmatmul.mubr.bf16.vlgmr.msra.gmra.mrb[80].mxu1 %v7613_v36 }
  0xc8   : > { %6765 = vmatpush3.bf16.msra.mxu1 %v7618_v38  ;;  %4073 = vmatprep.mubr.bf16.mxu0 %v7621_v39 }
  0xc9   : > { %4170 = vmatprep.mubr.bf16.mxu1 %v7623_v40  ;;  %6766 = vmatprep.subr.bf16.mxu1 %v7633_v41 }
  0xcc   : > { %6767 = vmatpush3.bf16.msra.mxu1 %v7634_v42  ;;  %v7684_v42 = vld [vmem:[%s10046_s1 + $0x300] sm:$0xff]  }
  0xcd   : > { %6768 = vmatprep.subr.bf16.mxu1 %v7649_v43  ;;  %v7685_v43 = vld [vmem:[%s8177_s15 + $0x604] ss:$84 sps:$4 sm:$0xff]  }
  0xcf   : > { %4074 = vmatmul.mubr.bf16.gmra.mrb[84].mxu0 %v7625_v44  ;;  %4171 = vmatmul.mubr.bf16.gmra.mrb[84].mxu1 %v7626_v45 }
  0xd0   : > { %4081 = vmatprep.mubr.bf16.mxu0 %v7627_v46  ;;  %4178 = vmatprep.mubr.bf16.mxu1 %v7629_v47  ;;  %v7687_v46 = vld [vmem:[%s8177_s15 + $0xcc] ss:$84 sps:$4 sm:$0xff]  }
  0xd1   : > { %6769 = vmatpush3.bf16.msra.mxu1 %v7650_v48  ;;  %v7699_v47 = vld [vmem:[%s10046_s1 + $0x348] sm:$0xff]  }
  0xd2   : > { %6770 = vmatprep.subr.bf16.mxu1 %v7665_v49 }
  0xd5   : > { %6771 = vmatpush3.bf16.msra.mxu1 %v7666_v52  ;;  %v7689_v52 = vld [vmem:[%s8177_s15 + $0x600] ss:$84 sps:$4 sm:$0xff]  }
  0xd6   : > { %6772 = vmatprep.subr.bf16.mxu1 %v7681_v53  ;;  %v7690_v53 = vld [vmem:[%s8177_s15 + $0xc8] ss:$84 sps:$4 sm:$0xff]  }
  0xd7   : > { %4082 = vmatmul.mubr.bf16.gmra.mrb[88].mxu0 %v7631_v50  ;;  %4179 = vmatmul.mubr.bf16.gmra.mrb[88].mxu1 %v7632_v51  ;;  %v7700_v50 = vld [vmem:[%s10046_s1 + $0x308] sm:$0xff]   ;;  %v7715_v51 = vld [vmem:[%s10046_s1 + $0x350] sm:$0xff]  }
  0xd8   : > { %4089 = vmatprep.mubr.bf16.mxu0 %v7637_v54  ;;  %4186 = vmatprep.mubr.bf16.mxu1 %v7639_v55 }
  0xd9   : > { %6773 = vmatpush3.bf16.msra.mxu1 %v7682_v56 }
  0xda   : > { %6774 = vmatprep.subr.bf16.mxu1 %v7697_v57 }
  0xdd   : > { %6775 = vmatpush3.bf16.msra.mxu1 %v7698_v60 }
  0xde   : > { %6776 = vmatprep.subr.bf16.mxu1 %v7713_v61 }
  0xdf   : > { %4090 = vmatmul.mubr.bf16.gmra.mrb[92].mxu0 %v7641_v58  ;;  %4187 = vmatmul.mubr.bf16.gmra.mrb[92].mxu1 %v7642_v59 }
  0xe0   : > { %4097 = vmatprep.mubr.bf16.mxu0 %v7643_v62  ;;  %4194 = vmatprep.mubr.bf16.mxu1 %v7645_v63  ;;  %v7691_v62 = vld [vmem:[%s8177_s15 + $0x6ac] ss:$84 sps:$4 sm:$0xff]   ;;  %v7693_v63 = vld [vmem:[%s8177_s15 + $0x174] ss:$84 sps:$4 sm:$0xff]  }
  0xe1   : > { %6777 = vmatpush3.bf16.msra.mxu1 %v7714_v0 }
  0xe2   : > { %6778 = vmatprep.subr.bf16.mxu1 %v7729_v1 }
  0xe5   : > { %6779 = vmatpush3.bf16.msra.mxu1 %v7730_v2  ;;  %v7716_v2 = vld [vmem:[%s10046_s1 + $0x310] sm:$0xff]  }
  0xe6   : > { %6988 = vmatprep.subr.bf16.mxu1 %v7745_v3 }
  0xe7   : > { %4098 = vmatmul.mubr.bf16.gmra.mrb[96].mxu0 %v7647_v4  ;;  %4195 = vmatmul.mubr.bf16.gmra.mrb[96].mxu1 %v7648_v5  ;;  %v7731_v5 = vld [vmem:[%s10046_s1 + $0x358] sm:$0xff]  }
  0xe8   : > { %4105 = vmatprep.mubr.bf16.mxu0 %v7653_v6  ;;  %4202 = vmatprep.mubr.bf16.mxu1 %v7655_v7  ;;  %v7732_v6 = vld [vmem:[%s10046_s1 + $0x318] sm:$0xff]   ;;  %v7747_v7 = vld [vmem:[%s10046_s1 + $0x360] sm:$0xff]  }
  0xef   : > { %4106 = vmatmul.mubr.bf16.gmra.mrb[100].mxu0 %v7657_v8  ;;  %4203 = vmatmul.mubr.bf16.gmra.mrb[100].mxu1 %v7658_v9  ;;  %v7695_v8 = vld [vmem:[%s8177_s15 + $0x6a8] ss:$84 sps:$4 sm:$0xff]   ;;  %v7696_v9 = vld [vmem:[%s8177_s15 + $0x170] ss:$84 sps:$4 sm:$0xff]  }
  0xf0   : > { %4113 = vmatprep.mubr.bf16.mxu0 %v7659_v10  ;;  %4210 = vmatprep.mubr.bf16.mxu1 %v7661_v11 }
  0xf7   : > { %4114 = vmatmul.mubr.bf16.gmra.mrb[104].mxu0 %v7663_v12  ;;  %4211 = vmatmul.mubr.bf16.gmra.mrb[104].mxu1 %v7664_v13 }
  0xf8   : > { %4121 = vmatprep.mubr.bf16.mxu0 %v7669_v14  ;;  %4218 = vmatprep.mubr.bf16.mxu1 %v7671_v15 }
  0xfa   : > { %v6292_v18 = vpop.f32.mrb[0].mxu1  ;;  %v6220_v19 = vpop.f32.mrb[0].mxu0 }
  0xfb   : > { %v6293_v20 = vpop.f32.mrb[1].mxu1  ;;  %v6221_v21 = vpop.f32.mrb[1].mxu0 }
  0xfc   : > { %v8558_v22 = vadd.f32 %v6293_v20, %v6292_v18  ;;  %v6295_v23 = vpop.f32.mrb[2].mxu1  ;;  %v8560_v24 = vadd.f32 %v6221_v21, %v6220_v19  ;;  %v6223_v25 = vpop.f32.mrb[2].mxu0  ;;  %v7701_v18 = vld [vmem:[%s8177_s15 + $0x754] ss:$84 sps:$4 sm:$0xff]   ;;  %v7703_v19 = vld [vmem:[%s8177_s15 + $0x21c] ss:$84 sps:$4 sm:$0xff]  }
  0xfd   : > { %v6296_v28 = vpop.f32.mrb[3].mxu1  ;;  %v6224_v29 = vpop.f32.mrb[3].mxu0 }
  0xfe   : > { %v8564_v30 = vadd.f32 %v6296_v28, %v6295_v23  ;;  %v8566_v31 = vadd.f32 %v6224_v29, %v6223_v25  ;;  %v7748_v23 = vld [vmem:[%s10046_s1 + $0x320] sm:$0xff]   ;;  %v7763_v25 = vld [vmem:[%s10046_s1 + $0x368] sm:$0xff]   ;;  %v7779_v29 = vld [vmem:[%s10046_s1 + $0x370] sm:$0xff]  }
  0xff   : > { %4122 = vmatmul.mubr.bf16.gmra.mrb[108].mxu0 %v7673_v16  ;;  %4219 = vmatmul.mubr.bf16.gmra.mrb[108].mxu1 %v7674_v17  ;;  %v7764_v28 = vld [vmem:[%s10046_s1 + $0x328] sm:$0xff]  }
 0x100   : > { %4226 = vmatprep.mubr.bf16.mxu1 %v7675_v26  ;;  %4323 = vmatprep.mubr.bf16.mxu0 %v7679_v27 }
 0x102   : > { %v6298_v34 = vpop.f32.mrb[4].mxu1  ;;  %v6226_v35 = vpop.f32.mrb[4].mxu0 }
 0x103   : > { %v6299_v36 = vpop.f32.mrb[5].mxu1  ;;  %v6227_v37 = vpop.f32.mrb[5].mxu0 }
 0x104   : > { %v8570_v38 = vadd.f32 %v6299_v36, %v6298_v34  ;;  %v6301_v39 = vpop.f32.mrb[6].mxu1  ;;  %v8572_v40 = vadd.f32 %v6227_v37, %v6226_v35  ;;  %v6229_v41 = vpop.f32.mrb[6].mxu0 }
 0x105   : > { %v6302_v44 = vpop.f32.mrb[7].mxu1  ;;  %v6230_v45 = vpop.f32.mrb[7].mxu0 }
 0x106   : > { %v8582_v48 = vadd.f32 %v6302_v44, %v6301_v39  ;;  %v8584_v49 = vadd.f32 %v6230_v45, %v6229_v41  ;;  %v7707_v44 = vld [vmem:[%s8177_s15 + $0x7fc] ss:$84 sps:$4 sm:$0xff]   ;;  %v7709_v45 = vld [vmem:[%s8177_s15 + $0x2c4] ss:$84 sps:$4 sm:$0xff]  }
 0x107   : > { %4227 = vmatmul.mubr.bf16.gmra.mrb[112].mxu1 %v7680_v33  ;;  %4324 = vmatmul.mubr.bf16.vlgmr.msra.gmra.mrb[112].mxu0 %v7677_v32  ;;  %v7705_v32 = vld [vmem:[%s8177_s15 + $0x750] ss:$84 sps:$4 sm:$0xff]   ;;  %v7706_v33 = vld [vmem:[%s8177_s15 + $0x218] ss:$84 sps:$4 sm:$0xff]  }
 0x108   : > { %6877 = vmatpush3.bf16.msra.mxu0 %v7684_v42  ;;  %4234 = vmatprep.mubr.bf16.mxu1 %v7685_v43 }
 0x109   : > { %4331 = vmatprep.mubr.bf16.mxu0 %v7687_v46  ;;  %6878 = vmatprep.subr.bf16.mxu0 %v7699_v47 }
 0x10a   : > { %v6304_v54 = vpop.f32.mrb[8].mxu1  ;;  %v6232_v55 = vpop.f32.mrb[8].mxu0 }
 0x10b   : > { %v6305_v56 = vpop.f32.mrb[9].mxu1  ;;  %v6233_v57 = vpop.f32.mrb[9].mxu0 }
 0x10c   : > { %v8594_v58 = vadd.f32 %v6305_v56, %v6304_v54  ;;  %v6307_v59 = vpop.f32.mrb[10].mxu1  ;;  %v8596_v60 = vadd.f32 %v6233_v57, %v6232_v55  ;;  %v6235_v61 = vpop.f32.mrb[10].mxu0  ;;  %6879 = vmatpush3.bf16.msra.mxu0 %v7700_v50  ;;  %v7780_v50 = vld [vmem:[%s10046_s1 + $0x330] sm:$0xff]   ;;  %v7795_v54 = vld [vmem:[%s10046_s1 + $0x378] sm:$0xff]  }
 0x10d   : > { %v6308_v0 = vpop.f32.mrb[11].mxu1  ;;  %v6236_v1 = vpop.f32.mrb[11].mxu0  ;;  %6880 = vmatprep.subr.bf16.mxu0 %v7715_v51  ;;  %v7796_v55 = vld [vmem:[%s10046_s1 + $0x338] sm:$0xff]  }
 0x10e   : > { %v8603_v3 = vadd.f32 %v6308_v0, %v6307_v59  ;;  %v8605_v4 = vadd.f32 %v6236_v1, %v6235_v61  ;;  %v7711_v57 = vld [vmem:[%s8177_s15 + $0x7f8] ss:$84 sps:$4 sm:$0xff]   ;;  %v7712_v59 = vld [vmem:[%s8177_s15 + $0x2c0] ss:$84 sps:$4 sm:$0xff]  }
 0x10f   : > { %4235 = vmatmul.mubr.bf16.gmra.mrb[116].mxu1 %v7689_v52  ;;  %4332 = vmatmul.mubr.bf16.gmra.mrb[116].mxu0 %v7690_v53 }
 0x110   : > { %4242 = vmatprep.mubr.bf16.mxu1 %v7691_v62  ;;  %4339 = vmatprep.mubr.bf16.mxu0 %v7693_v63 }
 0x111   : > { %6881 = vmatpush3.bf16.msra.mxu0 %v7716_v2 }
 0x112   : > { %v6310_v10 = vpop.f32.mrb[12].mxu1  ;;  %v6238_v11 = vpop.f32.mrb[12].mxu0  ;;  %6882 = vmatprep.subr.bf16.mxu0 %v7731_v5 }
 0x113   : > { %v6311_v12 = vpop.f32.mrb[13].mxu1  ;;  %v6239_v13 = vpop.f32.mrb[13].mxu0 }
 0x114   : > { %v8618_v14 = vadd.f32 %v6311_v12, %v6310_v10  ;;  %v6313_v15 = vpop.f32.mrb[14].mxu1  ;;  %v8620_v16 = vadd.f32 %v6239_v13, %v6238_v11  ;;  %v6241_v17 = vpop.f32.mrb[14].mxu0 }
 0x115   : > { %v6314_v20 = vpop.f32.mrb[15].mxu1  ;;  %v6242_v21 = vpop.f32.mrb[15].mxu0  ;;  %6883 = vmatpush3.bf16.msra.mxu0 %v7732_v6  ;;  %v7717_v6 = vld [vmem:[%s8177_s15 + $0x8a4] ss:$84 sps:$4 sm:$0xff]  }
 0x116   : > { %v8630_v26 = vadd.f32 %v6314_v20, %v6313_v15  ;;  %v8632_v27 = vadd.f32 %v6242_v21, %v6241_v17  ;;  %6884 = vmatprep.subr.bf16.mxu0 %v7747_v7  ;;  %v7719_v7 = vld [vmem:[%s8177_s15 + $0x36c] ss:$84 sps:$4 sm:$0xff]   ;;  %v7722_v17 = vld [vmem:[%s8177_s15 + $0x368] ss:$84 sps:$4 sm:$0xff]  }
 0x117   : > { %4243 = vmatmul.mubr.bf16.gmra.mrb[120].mxu1 %v7695_v8  ;;  %4340 = vmatmul.mubr.bf16.gmra.mrb[120].mxu0 %v7696_v9  ;;  %v7721_v15 = vld [vmem:[%s8177_s15 + $0x8a0] ss:$84 sps:$4 sm:$0xff]  }
 0x118   : > { %4250 = vmatprep.mubr.bf16.mxu1 %v7701_v18  ;;  %4347 = vmatprep.mubr.bf16.mxu0 %v7703_v19 }
 0x119   : > { %6885 = vmatpush3.bf16.msra.mxu0 %v7748_v23 }
 0x11a   : > { %v6332_v34 = vpop.f32.mrb[16].mxu1  ;;  %v6244_v35 = vpop.f32.mrb[16].mxu0  ;;  %6886 = vmatprep.subr.bf16.mxu0 %v7763_v25 }
 0x11b   : > { %v6333_v36 = vpop.f32.mrb[17].mxu1  ;;  %v6245_v37 = vpop.f32.mrb[17].mxu0 }
 0x11c   : > { %v6334_v39 = vadd.f32 %v6333_v36, %v6332_v34  ;;  %v6335_v41 = vpop.f32.mrb[18].mxu1  ;;  %v8642_v42 = vadd.f32 %v6245_v37, %v6244_v35  ;;  %v6247_v43 = vpop.f32.mrb[18].mxu0 }
 0x11d   : > { %v6336_v46 = vpop.f32.mrb[19].mxu1  ;;  %v6248_v47 = vpop.f32.mrb[19].mxu0  ;;  %6887 = vmatpush3.bf16.msra.mxu0 %v7764_v28 }
 0x11e   : > { %v8650_v51 = vadd.f32 %v6334_v39, %v8560_v24  ;;  %v6337_v52 = vadd.f32 %v6336_v46, %v6335_v41  ;;  %v8652_v53 = vadd.f32 %v6248_v47, %v6247_v43  ;;  %6888 = vmatprep.subr.bf16.mxu0 %v7779_v29  ;;  %v7811_v24 = vld [vmem:[%s10046_s1 + $0x440] sm:$0xff]   ;;  %v7727_v39 = vld [vmem:[%s8177_s15 + $0x948] ss:$84 sps:$4 sm:$0xff]  }
 0x11f   : > { %4251 = vmatmul.mubr.bf16.gmra.mrb[124].mxu1 %v7705_v32  ;;  %4348 = vmatmul.mubr.bf16.gmra.mrb[124].mxu0 %v7706_v33  ;;  %v7723_v29 = vld [vmem:[%s8177_s15 + $0x94c] ss:$84 sps:$4 sm:$0xff]   ;;  %v7725_v32 = vld [vmem:[%s8177_s15 + $0x414] ss:$84 sps:$4 sm:$0xff]   ;;  %v7728_v41 = vld [vmem:[%s8177_s15 + $0x410] ss:$84 sps:$4 sm:$0xff]  }
 0x120   : > { %v8661_v56 = vadd.f32 %v6337_v52, %v8566_v31  ;;  %4258 = vmatprep.mubr.bf16.mxu1 %v7707_v44  ;;  %4355 = vmatprep.mubr.bf16.mxu0 %v7709_v45 }
 0x121   : > { %6889 = vmatpush3.bf16.msra.mxu0 %v7780_v50 }
 0x122   : > { %v6338_v61 = vpop.f32.mrb[20].mxu1  ;;  %v6250_v62 = vpop.f32.mrb[20].mxu0  ;;  %6890 = vmatprep.subr.bf16.mxu0 %v7795_v54  ;;  %v7733_v54 = vld [vmem:[%s8177_s15 + $0x9f4] ss:$84 sps:$4 sm:$0xff]  }
 0x123   : > { %v6339_v63 = vpop.f32.mrb[21].mxu1  ;;  %v6251_v0 = vpop.f32.mrb[21].mxu0 }
 0x124   : > { %v6340_v1 = vadd.f32 %v6339_v63, %v6338_v61  ;;  %v6341_v2 = vpop.f32.mrb[22].mxu1  ;;  %v8668_v31 = vadd.f32 %v6251_v0, %v6250_v62  ;;  %v6253_v5 = vpop.f32.mrb[22].mxu0  ;;  %v7737_v63 = vld [vmem:[%s8177_s15 + $0x9f0] ss:$84 sps:$4 sm:$0xff]   ;;  %v7738_v0 = vld [vmem:[%s8177_s15 + $0x4b8] ss:$84 sps:$4 sm:$0xff]  }
 0x125   : > { %v6342_v8 = vpop.f32.mrb[23].mxu1  ;;  %v6254_v9 = vpop.f32.mrb[23].mxu0  ;;  %6891 = vmatpush3.bf16.msra.mxu0 %v7796_v55  ;;  %v7735_v55 = vld [vmem:[%s8177_s15 + $0x4bc] ss:$84 sps:$4 sm:$0xff]  }
 0x126   : > { %v8673_v10 = vadd.f32 %v6340_v1, %v8572_v40  ;;  %v6343_v11 = vadd.f32 %v6342_v8, %v6341_v2  ;;  %v8675_v12 = vadd.f32 %v6254_v9, %v6253_v5  ;;  %7100 = vmatprep.subr.bf16.mxu0 %v7811_v24 }
 0x127   : > { %4259 = vmatmul.mubr.bf16.gmra.mrb[128].mxu1 %v7711_v57  ;;  %4356 = vmatmul.mubr.bf16.gmra.mrb[128].mxu0 %v7712_v59 }
 0x128   : > { %v8678_v13 = vadd.f32 %v6343_v11, %v8584_v49  ;;  %4266 = vmatprep.mubr.bf16.mxu1 %v7717_v6  ;;  %4363 = vmatprep.mubr.bf16.mxu0 %v7719_v7  ;;  %v7739_v11 = vld [vmem:[%s8177_s15 + $0x564] ss:$84 sps:$4 sm:$0xff]  }
 0x12a   : > { %v6344_v18 = vpop.f32.mrb[24].mxu1  ;;  %v6256_v19 = vpop.f32.mrb[24].mxu0 }
 0x12b   : > { %v6345_v20 = vpop.f32.mrb[25].mxu1  ;;  %v6257_v40 = vpop.f32.mrb[25].mxu0 }
 0x12c   : > { %v6346_v21 = vadd.f32 %v6345_v20, %v6344_v18  ;;  %v6347_v23 = vpop.f32.mrb[26].mxu1  ;;  %v8682_v25 = vadd.f32 %v6257_v40, %v6256_v19  ;;  %v6259_v28 = vpop.f32.mrb[26].mxu0 }
 0x12d   : > { %v6348_v33 = vpop.f32.mrb[27].mxu1  ;;  %v6260_v49 = vpop.f32.mrb[27].mxu0 }
 0x12e   : > { %v8687_v34 = vadd.f32 %v6346_v21, %v8596_v60  ;;  %v6349_v35 = vadd.f32 %v6348_v33, %v6347_v23  ;;  %v8689_v36 = vadd.f32 %v6260_v49, %v6259_v28  ;;  %v7741_v21 = vld [vmem:[%s8177_s15 + $0x28] ss:$84 sps:$4 sm:$0xff]   ;;  %v7744_v23 = vld [vmem:[%s8177_s15 + $0x560] ss:$84 sps:$4 sm:$0xff]  }
 0x12f   : > { %4267 = vmatmul.mubr.bf16.gmra.mrb[132].mxu1 %v7721_v15  ;;  %4364 = vmatmul.mubr.bf16.gmra.mrb[132].mxu0 %v7722_v17  ;;  %v7743_v15 = vld [vmem:[%s8177_s15 + $0x2c] ss:$84 sps:$4 sm:$0xff]  }
 0x130   : > { %v8692_v37 = vadd.f32 %v6349_v35, %v8605_v4  ;;  %4274 = vmatprep.mubr.bf16.mxu1 %v7723_v29  ;;  %4371 = vmatprep.mubr.bf16.mxu0 %v7725_v32 }
 0x132   : > { %v6350_v43 = vpop.f32.mrb[28].mxu1  ;;  %v6262_v44 = vpop.f32.mrb[28].mxu0 }
 0x133   : > { %v6351_v45 = vpop.f32.mrb[29].mxu1  ;;  %v6263_v46 = vpop.f32.mrb[29].mxu0 }
 0x134   : > { %v6352_v60 = vadd.f32 %v6351_v45, %v6350_v43  ;;  %v6353_v47 = vpop.f32.mrb[30].mxu1  ;;  %v8696_v50 = vadd.f32 %v6263_v46, %v6262_v44  ;;  %v6265_v52 = vpop.f32.mrb[30].mxu0  ;;  %v7751_v45 = vld [vmem:[%s8177_s15 + $0xd4] ss:$84 sps:$4 sm:$0xff]  }
 0x135   : > { %v6354_v24 = vpop.f32.mrb[31].mxu1  ;;  %v6266_v4 = vpop.f32.mrb[31].mxu0  ;;  %v7761_v46 = vld [vmem:[%s10046_s1 + $0x3c8] sm:$0xff]  }
 0x136   : > { %v8701_v57 = vadd.f32 %v6352_v60, %v8620_v16  ;;  %v6355_v59 = vadd.f32 %v6354_v24, %v6353_v47  ;;  %v8703_v61 = vadd.f32 %v6266_v4, %v6265_v52  ;;  %v7753_v24 = vld [vmem:[%s8177_s15 + $0x608] ss:$84 sps:$4 sm:$0xff]   ;;  %v7754_v4 = vld [vmem:[%s8177_s15 + $0xd0] ss:$84 sps:$4 sm:$0xff]  }
 0x137   : > { %4275 = vmatmul.mubr.bf16.gmra.mrb[136].mxu1 %v7727_v39  ;;  %4372 = vmatmul.mubr.bf16.gmra.mrb[136].mxu0 %v7728_v41  ;;  %v7746_v41 = vld [vmem:[%s10046_s1 + $0x380] sm:$0xff]  }
 0x138   : > { %v8706_v62 = vadd.f32 %v6355_v59, %v8632_v27  ;;  %4282 = vmatprep.mubr.bf16.mxu1 %v7733_v54  ;;  %4379 = vmatprep.mubr.bf16.mxu0 %v7735_v55  ;;  %v7762_v55 = vld [vmem:[%s10046_s1 + $0x388] sm:$0xff]  }
 0x13a   : > { %v6356_v1 = vpop.f32.mrb[32].mxu1  ;;  %v6268_v2 = vpop.f32.mrb[32].mxu0 }
 0x13b   : > { %v6357_v5 = vpop.f32.mrb[33].mxu1  ;;  %v6269_v6 = vpop.f32.mrb[33].mxu0 }
 0x13c   : > { %v6358_v16 = vadd.f32 %v6357_v5, %v6356_v1  ;;  %v6359_v7 = vpop.f32.mrb[34].mxu1  ;;  %v8710_v8 = vadd.f32 %v6269_v6, %v6268_v2  ;;  %v6271_v9 = vpop.f32.mrb[34].mxu0 }
 0x13d   : > { %v6360_v17 = vpop.f32.mrb[35].mxu1  ;;  %v6272_v27 = vpop.f32.mrb[35].mxu0 }
 0x13e   : > { %v8715_v18 = vadd.f32 %v6358_v16, %v8642_v42  ;;  %v6361_v19 = vadd.f32 %v6360_v17, %v6359_v7  ;;  %v8717_v20 = vadd.f32 %v6272_v27, %v6271_v9  ;;  %v7755_v16 = vld [vmem:[%s8177_s15 + $0x6b4] ss:$84 sps:$4 sm:$0xff]   ;;  %v7757_v7 = vld [vmem:[%s8177_s15 + $0x17c] ss:$84 sps:$4 sm:$0xff]  }
 0x13f   : > { %4283 = vmatmul.mubr.bf16.gmra.mrb[140].mxu1 %v7737_v63  ;;  %4380 = vmatmul.mubr.bf16.gmra.mrb[140].mxu0 %v7738_v0 }
 0x140   : > { %v8720_v40 = vadd.f32 %v6361_v19, %v8652_v53  ;;  %4387 = vmatprep.mubr.bf16.mxu0 %v7739_v11  ;;  %4484 = vmatprep.mubr.bf16.mxu1 %v7743_v15  ;;  %v7749_v53 = vld [vmem:[%s8177_s15 + $0x60c] ss:$84 sps:$4 sm:$0xff]   ;;  %v7778_v15 = vld [vmem:[%s10046_s1 + $0x390] sm:$0xff]  }
 0x142   : > { %v6362_v28 = vpop.f32.mrb[36].mxu1  ;;  %v6274_v29 = vpop.f32.mrb[36].mxu0 }
 0x143   : > { %v6363_v32 = vpop.f32.mrb[37].mxu1  ;;  %v6275_v33 = vpop.f32.mrb[37].mxu0 }
 0x144   : > { %v6364_v42 = vadd.f32 %v6363_v32, %v6362_v28  ;;  %v6365_v49 = vpop.f32.mrb[38].mxu1  ;;  %v8724_v35 = vadd.f32 %v6275_v33, %v6274_v29  ;;  %v6277_v39 = vpop.f32.mrb[38].mxu0  ;;  %v7759_v29 = vld [vmem:[%s8177_s15 + $0x6b0] ss:$84 sps:$4 sm:$0xff]   ;;  %v7760_v32 = vld [vmem:[%s8177_s15 + $0x178] ss:$84 sps:$4 sm:$0xff]  }
 0x145   : > { %v6366_v43 = vpop.f32.mrb[39].mxu1  ;;  %v6278_v44 = vpop.f32.mrb[39].mxu0 }
 0x146   : > { %v8735_v60 = vadd.f32 %v6364_v42, %v8668_v31  ;;  %v6367_v47 = vadd.f32 %v6366_v43, %v6365_v49  ;;  %v8737_v52 = vadd.f32 %v6278_v44, %v6277_v39  ;;  %v7777_v31 = vld [vmem:[%s10046_s1 + $0x3d0] sm:$0xff]  }
 0x147   : > { %4388 = vmatmul.mubr.bf16.gmra.mrb[144].mxu0 %v7744_v23  ;;  %4485 = vmatmul.mubr.bf16.vlgmr.msra.gmra.mrb[144].mxu1 %v7741_v21  ;;  %v7793_v21 = vld [vmem:[%s10046_s1 + $0x3d8] sm:$0xff]  }
 0x148   : > { %v8740_v54 = vadd.f32 %v6367_v47, %v8675_v12  ;;  %6989 = vmatpush3.bf16.msra.mxu1 %v7746_v41  ;;  %4395 = vmatprep.mubr.bf16.mxu0 %v7749_v53  ;;  %v7794_v23 = vld [vmem:[%s10046_s1 + $0x398] sm:$0xff]  }
 0x149   : > { %4492 = vmatprep.mubr.bf16.mxu1 %v7751_v45  ;;  %6990 = vmatprep.subr.bf16.mxu1 %v7761_v46  ;;  %v7765_v44 = vld [vmem:[%s8177_s15 + $0x75c] ss:$84 sps:$4 sm:$0xff]   ;;  %v7767_v45 = vld [vmem:[%s8177_s15 + $0x224] ss:$84 sps:$4 sm:$0xff]  }
 0x14a   : > { %v6368_v59 = vpop.f32.mrb[40].mxu1  ;;  %v6280_v63 = vpop.f32.mrb[40].mxu0 }
 0x14b   : > { %v6369_v12 = vpop.f32.mrb[41].mxu1  ;;  %v6281_v0 = vpop.f32.mrb[41].mxu0 }
 0x14c   : > { %v6370_v1 = vadd.f32 %v6369_v12, %v6368_v59  ;;  %v6371_v2 = vpop.f32.mrb[42].mxu1  ;;  %v8750_v5 = vadd.f32 %v6281_v0, %v6280_v63  ;;  %v6283_v6 = vpop.f32.mrb[42].mxu0  ;;  %6991 = vmatpush3.bf16.msra.mxu1 %v7762_v55  ;;  %v7810_v55 = vld [vmem:[%s10046_s1 + $0x3a0] sm:$0xff]   ;;  %v7826_v12 = vld [vmem:[%s10046_s1 + $0x3a8] sm:$0xff]  }
 0x14d   : > { %v6372_v9 = vpop.f32.mrb[43].mxu1  ;;  %v6284_v11 = vpop.f32.mrb[43].mxu0  ;;  %6992 = vmatprep.subr.bf16.mxu1 %v7777_v31  ;;  %v7825_v31 = vld [vmem:[%s10046_s1 + $0x3e8] sm:$0xff]  }
 0x14e   : > { %v8758_v17 = vadd.f32 %v6370_v1, %v8682_v25  ;;  %v6373_v27 = vadd.f32 %v6372_v9, %v6371_v2  ;;  %v8760_v19 = vadd.f32 %v6284_v11, %v6283_v6  ;;  %v7809_v25 = vld [vmem:[%s10046_s1 + $0x3e0] sm:$0xff]   ;;  %v7769_v0 = vld [vmem:[%s8177_s15 + $0x758] ss:$84 sps:$4 sm:$0xff]  }
 0x14f   : > { %4396 = vmatmul.mubr.bf16.gmra.mrb[148].mxu0 %v7753_v24  ;;  %4493 = vmatmul.mubr.bf16.gmra.mrb[148].mxu1 %v7754_v4  ;;  %v7770_v1 = vld [vmem:[%s8177_s15 + $0x220] ss:$84 sps:$4 sm:$0xff]  }
 0x150   : > { %v8769_v28 = vadd.f32 %v6373_v27, %v8689_v36  ;;  %4403 = vmatprep.mubr.bf16.mxu0 %v7755_v16  ;;  %4500 = vmatprep.mubr.bf16.mxu1 %v7757_v7  ;;  %v7771_v27 = vld [vmem:[%s8177_s15 + $0x804] ss:$84 sps:$4 sm:$0xff]  }
 0x151   : > { %6993 = vmatpush3.bf16.msra.mxu1 %v7778_v15 }
 0x152   : > { %v6374_v33 = vpop.f32.mrb[44].mxu1  ;;  %v6286_v42 = vpop.f32.mrb[44].mxu0  ;;  %6994 = vmatprep.subr.bf16.mxu1 %v7793_v21  ;;  %v7773_v21 = vld [vmem:[%s8177_s15 + $0x2cc] ss:$84 sps:$4 sm:$0xff]  }
 0x153   : > { %v6375_v49 = vpop.f32.mrb[45].mxu1  ;;  %v6287_v39 = vpop.f32.mrb[45].mxu0 }
 0x154   : > { %v6376_v41 = vadd.f32 %v6375_v49, %v6374_v33  ;;  %v6377_v53 = vpop.f32.mrb[46].mxu1  ;;  %v8776_v36 = vadd.f32 %v6287_v39, %v6286_v42  ;;  %v6289_v43 = vpop.f32.mrb[46].mxu0  ;;  %v7857_v39 = vld [vmem:[%s10046_s1 + $0x3f8] sm:$0xff]  }
 0x155   : > { %v6378_v46 = vpop.f32.mrb[47].mxu1  ;;  %v6290_v47 = vpop.f32.mrb[47].mxu0  ;;  %6995 = vmatpush3.bf16.msra.mxu1 %v7794_v23 }
 0x156   : > { %v8787_v24 = vadd.f32 %v6376_v41, %v8696_v50  ;;  %v6379_v4 = vadd.f32 %v6378_v46, %v6377_v53  ;;  %v8789_v59 = vadd.f32 %v6290_v47, %v6289_v43  ;;  %6996 = vmatprep.subr.bf16.mxu1 %v7809_v25  ;;  %v7841_v50 = vld [vmem:[%s10046_s1 + $0x3f0] sm:$0xff]   ;;  %v7858_v41 = vld [vmem:[%s10046_s1 + $0x3b8] sm:$0xff]   ;;  %v7873_v53 = vld [vmem:[%s10046_s1 + $0x4c0] sm:$0xff]  }
 0x157   : > { %4404 = vmatmul.mubr.bf16.gmra.mrb[152].mxu0 %v7759_v29  ;;  %4501 = vmatmul.mubr.bf16.gmra.mrb[152].mxu1 %v7760_v32  ;;  %v7842_v29 = vld [vmem:[%s10046_s1 + $0x3b0] sm:$0xff]  }
 0x158   : > { %v8792_v63 = vadd.f32 %v6379_v4, %v8703_v61  ;;  %4411 = vmatprep.mubr.bf16.mxu0 %v7765_v44  ;;  %4508 = vmatprep.mubr.bf16.mxu1 %v7767_v45  ;;  %v7775_v43 = vld [vmem:[%s8177_s15 + $0x800] ss:$84 sps:$4 sm:$0xff]   ;;  %v7776_v44 = vld [vmem:[%s8177_s15 + $0x2c8] ss:$84 sps:$4 sm:$0xff]  }
 0x159   : > { %6997 = vmatpush3.bf16.msra.mxu1 %v7810_v55 }
 0x15a   : > { %v6380_v2 = vpop.f32.mrb[48].mxu1  ;;  %v6444_v6 = vpop.f32.mrb[48].mxu0  ;;  %6998 = vmatprep.subr.bf16.mxu1 %v7825_v31 }
 0x15b   : > { %v6381_v61 = vpop.f32.mrb[49].mxu1  ;;  %v6445_v16 = vpop.f32.mrb[49].mxu0 }
 0x15c   : > { %v6382_v7 = vadd.f32 %v6381_v61, %v6380_v2  ;;  %v6446_v9 = vadd.f32 %v6445_v16, %v6444_v6  ;;  %v6383_v11 = vpop.f32.mrb[50].mxu1  ;;  %v6447_v15 = vpop.f32.mrb[50].mxu0 }
 0x15d   : > { %v6384_v23 = vpop.f32.mrb[51].mxu1  ;;  %v6448_v25 = vpop.f32.mrb[51].mxu0  ;;  %6999 = vmatpush3.bf16.msra.mxu1 %v7826_v12 }
 0x15e   : > { %v6385_v32 = vadd.f32 %v6384_v23, %v6383_v11  ;;  %v6449_v33 = vadd.f32 %v6448_v25, %v6447_v15  ;;  %v8808_v42 = vadd.f32 %v6382_v7, %v8710_v8  ;;  %v8811_v49 = vadd.f32 %v6446_v9, %v8650_v51  ;;  %7000 = vmatprep.subr.bf16.mxu1 %v7841_v50  ;;  %v7781_v50 = vld [vmem:[%s8177_s15 + $0x8ac] ss:$84 sps:$4 sm:$0xff]   ;;  %v7785_v11 = vld [vmem:[%s8177_s15 + $0x8a8] ss:$84 sps:$4 sm:$0xff]   ;;  %v7786_v15 = vld [vmem:[%s8177_s15 + $0x370] ss:$84 sps:$4 sm:$0xff]  }
 0x15f   : > { %4412 = vmatmul.mubr.bf16.gmra.mrb[156].mxu0 %v7769_v0  ;;  %4509 = vmatmul.mubr.bf16.gmra.mrb[156].mxu1 %v7770_v1 }
 0x160   : > { %4419 = vmatprep.mubr.bf16.mxu0 %v7771_v27  ;;  %4516 = vmatprep.mubr.bf16.mxu1 %v7773_v21  ;;  %v8820_v8 = vadd.f32 %v6385_v32, %v8717_v20  ;;  %v8823_v51 = vadd.f32 %v6449_v33, %v8661_v56  ;;  %v7783_v56 = vld [vmem:[%s8177_s15 + $0x374] ss:$84 sps:$4 sm:$0xff]  }
 0x161   : > { %7001 = vmatpush3.bf16.msra.mxu1 %v7842_v29  ;;  %v7787_v33 = vld [vmem:[%s8177_s15 + $0x954] ss:$84 sps:$4 sm:$0xff]  }
 0x162   : > { %v6386_v45 = vpop.f32.mrb[52].mxu1  ;;  %v6450_v46 = vpop.f32.mrb[52].mxu0  ;;  %7002 = vmatprep.subr.bf16.mxu1 %v7857_v39  ;;  %v7789_v39 = vld [vmem:[%s8177_s15 + $0x41c] ss:$84 sps:$4 sm:$0xff]  }
 0x163   : > { %v6387_v47 = vpop.f32.mrb[53].mxu1  ;;  %v6451_v55 = vpop.f32.mrb[53].mxu0 }
 0x164   : > { %v6388_v31 = vadd.f32 %v6387_v47, %v6386_v45  ;;  %v6452_v4 = vadd.f32 %v6451_v55, %v6450_v46  ;;  %v6389_v20 = vpop.f32.mrb[54].mxu1  ;;  %v6453_v12 = vpop.f32.mrb[54].mxu0 }
 0x165   : > { %v6390_v0 = vpop.f32.mrb[55].mxu1  ;;  %v6454_v1 = vpop.f32.mrb[55].mxu0  ;;  %7003 = vmatpush3.bf16.msra.mxu1 %v7858_v41 }
 0x166   : > { %v6391_v2 = vadd.f32 %v6390_v0, %v6389_v20  ;;  %v6455_v6 = vadd.f32 %v6454_v1, %v6453_v12  ;;  %v8833_v61 = vadd.f32 %v6388_v31, %v8724_v35  ;;  %v8836_v16 = vadd.f32 %v6452_v4, %v8673_v10  ;;  %7212 = vmatprep.subr.bf16.mxu1 %v7873_v53  ;;  %v7791_v4 = vld [vmem:[%s8177_s15 + $0x950] ss:$84 sps:$4 sm:$0xff]   ;;  %v7792_v20 = vld [vmem:[%s8177_s15 + $0x418] ss:$84 sps:$4 sm:$0xff]  }
 0x167   : > { %4420 = vmatmul.mubr.bf16.gmra.mrb[160].mxu0 %v7775_v43  ;;  %4517 = vmatmul.mubr.bf16.gmra.mrb[160].mxu1 %v7776_v44  ;;  %v7797_v0 = vld [vmem:[%s8177_s15 + $0x9fc] ss:$84 sps:$4 sm:$0xff]   ;;  %v7799_v1 = vld [vmem:[%s8177_s15 + $0x4c4] ss:$84 sps:$4 sm:$0xff]  }
 0x168   : > { %4427 = vmatprep.mubr.bf16.mxu0 %v7781_v50  ;;  %4524 = vmatprep.mubr.bf16.mxu1 %v7783_v56  ;;  %v8839_v7 = vadd.f32 %v6391_v2, %v8737_v52  ;;  %v8842_v9 = vadd.f32 %v6455_v6, %v8678_v13 }
 0x16a   : > { %v6392_v35 = vpop.f32.mrb[56].mxu1  ;;  %v6456_v27 = vpop.f32.mrb[56].mxu0 }
 0x16b   : > { %v6393_v21 = vpop.f32.mrb[57].mxu1  ;;  %v6457_v10 = vpop.f32.mrb[57].mxu0 }
 0x16c   : > { %v6394_v23 = vadd.f32 %v6393_v21, %v6392_v35  ;;  %v6458_v25 = vadd.f32 %v6457_v10, %v6456_v27  ;;  %v6395_v29 = vpop.f32.mrb[58].mxu1  ;;  %v6459_v32 = vpop.f32.mrb[58].mxu0 }
 0x16d   : > { %v6396_v41 = vpop.f32.mrb[59].mxu1  ;;  %v6460_v53 = vpop.f32.mrb[59].mxu0 }
 0x16e   : > { %v6397_v52 = vadd.f32 %v6396_v41, %v6395_v29  ;;  %v6461_v43 = vadd.f32 %v6460_v53, %v6459_v32  ;;  %v8849_v13 = vadd.f32 %v6394_v23, %v8750_v5  ;;  %v8852_v44 = vadd.f32 %v6458_v25, %v8687_v34  ;;  %v7801_v25 = vld [vmem:[%s8177_s15 + $0x9f8] ss:$84 sps:$4 sm:$0xff]   ;;  %v7802_v29 = vld [vmem:[%s8177_s15 + $0x4c0] ss:$84 sps:$4 sm:$0xff]  }
 0x16f   : > { %4428 = vmatmul.mubr.bf16.gmra.mrb[164].mxu0 %v7785_v11  ;;  %4525 = vmatmul.mubr.bf16.gmra.mrb[164].mxu1 %v7786_v15  ;;  %v7803_v41 = vld [vmem:[%s8177_s15 + $0x56c] ss:$84 sps:$4 sm:$0xff]   ;;  %v7807_v53 = vld [vmem:[%s8177_s15 + $0x34] ss:$84 sps:$4 sm:$0xff]  }
 0x170   : > { %4435 = vmatprep.mubr.bf16.mxu0 %v7787_v33  ;;  %4532 = vmatprep.mubr.bf16.mxu1 %v7789_v39  ;;  %v8855_v45 = vadd.f32 %v6397_v52, %v8760_v19  ;;  %v8858_v46 = vadd.f32 %v6461_v43, %v8692_v37 }
 0x172   : > { %v6398_v47 = vpop.f32.mrb[60].mxu1  ;;  %v6462_v55 = vpop.f32.mrb[60].mxu0 }
 0x173   : > { %v6399_v31 = vpop.f32.mrb[61].mxu1  ;;  %v6463_v5 = vpop.f32.mrb[61].mxu0 }
 0x174   : > { %v6400_v34 = vadd.f32 %v6399_v31, %v6398_v47  ;;  %v6464_v12 = vadd.f32 %v6463_v5, %v6462_v55  ;;  %v6401_v50 = vpop.f32.mrb[62].mxu1  ;;  %v6465_v56 = vpop.f32.mrb[62].mxu0 }
 0x175   : > { %v6402_v2 = vpop.f32.mrb[63].mxu1  ;;  %v6466_v6 = vpop.f32.mrb[63].mxu0 }
 0x176   : > { %v6403_v19 = vadd.f32 %v6402_v2, %v6401_v50  ;;  %v6467_v11 = vadd.f32 %v6466_v6, %v6465_v56  ;;  %v8865_v37 = vadd.f32 %v6400_v34, %v8776_v36  ;;  %v8868_v15 = vadd.f32 %v6464_v12, %v8701_v57  ;;  %v7805_v12 = vld [vmem:[%s8177_s15 + $0x30] ss:$84 sps:$4 sm:$0xff]   ;;  %v7808_v50 = vld [vmem:[%s8177_s15 + $0x568] ss:$84 sps:$4 sm:$0xff]  }
 0x177   : > { %4436 = vmatmul.mubr.bf16.gmra.mrb[168].mxu0 %v7791_v4  ;;  %4533 = vmatmul.mubr.bf16.gmra.mrb[168].mxu1 %v7792_v20  ;;  %v7812_v2 = vld [vmem:[%s10046_s1 + $0x400] sm:$0xff]  }
 0x178   : > { %4443 = vmatprep.mubr.bf16.mxu0 %v7797_v0  ;;  %4540 = vmatprep.mubr.bf16.mxu1 %v7799_v1  ;;  %v8871_v35 = vadd.f32 %v6403_v19, %v8789_v59  ;;  %v8874_v27 = vadd.f32 %v6467_v11, %v8706_v62  ;;  %v7815_v11 = vld [vmem:[%s8177_s15 + $0xdc] ss:$84 sps:$4 sm:$0xff]  }
 0x17a   : > { %v6404_v21 = vpop.f32.mrb[64].mxu1  ;;  %v6468_v10 = vpop.f32.mrb[64].mxu0 }
 0x17b   : > { %v6405_v23 = vpop.f32.mrb[65].mxu1  ;;  %v6469_v36 = vpop.f32.mrb[65].mxu0 }
 0x17c   : > { %v6406_v57 = vadd.f32 %v6405_v23, %v6404_v21  ;;  %v6470_v32 = vadd.f32 %v6469_v36, %v6468_v10  ;;  %v6407_v33 = vpop.f32.mrb[66].mxu1  ;;  %v6471_v39 = vpop.f32.mrb[66].mxu0 }
 0x17d   : > { %v6408_v52 = vpop.f32.mrb[67].mxu1  ;;  %v6472_v43 = vpop.f32.mrb[67].mxu0 }
 0x17e   : > { %v6409_v59 = vadd.f32 %v6408_v52, %v6407_v33  ;;  %v6473_v47 = vadd.f32 %v6472_v43, %v6471_v39  ;;  %v8881_v62 = vadd.f32 %v6406_v57, %v8558_v22  ;;  %v8884_v55 = vadd.f32 %v6470_v32, %v8715_v18 }
 0x17f   : > { %4444 = vmatmul.mubr.bf16.gmra.mrb[172].mxu0 %v7801_v25  ;;  %4541 = vmatmul.mubr.bf16.gmra.mrb[172].mxu1 %v7802_v29  ;;  %v7828_v25 = vld [vmem:[%s10046_s1 + $0x408] sm:$0xff]  }
 0x180   : > { %4548 = vmatprep.mubr.bf16.mxu1 %v7803_v41  ;;  %4645 = vmatprep.mubr.bf16.mxu0 %v7807_v53  ;;  %v8887_v31 = vadd.f32 %v6409_v59, %v8564_v30  ;;  %v8890_v5 = vadd.f32 %v6473_v47, %v8720_v40  ;;  %v7813_v30 = vld [vmem:[%s8177_s15 + $0x614] ss:$84 sps:$4 sm:$0xff]   ;;  %v7817_v41 = vld [vmem:[%s8177_s15 + $0x610] ss:$84 sps:$4 sm:$0xff]   ;;  %v7818_v53 = vld [vmem:[%s8177_s15 + $0xd8] ss:$84 sps:$4 sm:$0xff]  }
 0x181   : > { %v7827_v40 = vld [vmem:[%s10046_s1 + $0x448] sm:$0xff]   ;;  %v7819_v47 = vld [vmem:[%s8177_s15 + $0x6bc] ss:$84 sps:$4 sm:$0xff]  }
 0x182   : > { %v6410_v4 = vpop.f32.mrb[68].mxu1  ;;  %v6474_v20 = vpop.f32.mrb[68].mxu0 }
 0x183   : > { %v6411_v34 = vpop.f32.mrb[69].mxu1  ;;  %v6475_v22 = vpop.f32.mrb[69].mxu0 }
 0x184   : > { %v6412_v18 = vadd.f32 %v6411_v34, %v6410_v4  ;;  %v6476_v56 = vadd.f32 %v6475_v22, %v6474_v20  ;;  %v6413_v0 = vpop.f32.mrb[70].mxu1  ;;  %v6477_v1 = vpop.f32.mrb[70].mxu0  ;;  %v7821_v4 = vld [vmem:[%s8177_s15 + $0x184] ss:$84 sps:$4 sm:$0xff]   ;;  %v7844_v34 = vld [vmem:[%s10046_s1 + $0x410] sm:$0xff]  }
 0x185   : > { %v6414_v6 = vpop.f32.mrb[71].mxu1  ;;  %v6478_v19 = vpop.f32.mrb[71].mxu0 }
 0x186   : > { %v6415_v21 = vadd.f32 %v6414_v6, %v6413_v0  ;;  %v6479_v10 = vadd.f32 %v6478_v19, %v6477_v1  ;;  %v8903_v23 = vadd.f32 %v6412_v18, %v8570_v38  ;;  %v8906_v36 = vadd.f32 %v6476_v56, %v8735_v60  ;;  %v7843_v60 = vld [vmem:[%s10046_s1 + $0x450] sm:$0xff]   ;;  %v7823_v19 = vld [vmem:[%s8177_s15 + $0x6b8] ss:$84 sps:$4 sm:$0xff]  }
 0x187   : > { %4549 = vmatmul.mubr.bf16.gmra.mrb[176].mxu1 %v7808_v50  ;;  %4646 = vmatmul.mubr.bf16.vlgmr.msra.gmra.mrb[176].mxu0 %v7805_v12  ;;  %v7859_v50 = vld [vmem:[%s10046_s1 + $0x458] sm:$0xff]  }
 0x188   : > { %7101 = vmatpush3.bf16.msra.mxu0 %v7812_v2  ;;  %4556 = vmatprep.mubr.bf16.mxu1 %v7813_v30  ;;  %v8912_v29 = vadd.f32 %v6415_v21, %v8582_v48  ;;  %v8915_v38 = vadd.f32 %v6479_v10, %v8740_v54  ;;  %v7875_v30 = vld [vmem:[%s10046_s1 + $0x460] sm:$0xff]  }
 0x189   : > { %4653 = vmatprep.mubr.bf16.mxu0 %v7815_v11  ;;  %7102 = vmatprep.subr.bf16.mxu0 %v7827_v40  ;;  %v7824_v11 = vld [vmem:[%s8177_s15 + $0x180] ss:$84 sps:$4 sm:$0xff]  }
 0x18a   : > { %v6416_v57 = vpop.f32.mrb[72].mxu1  ;;  %v6480_v32 = vpop.f32.mrb[72].mxu0 }
 0x18b   : > { %v6417_v33 = vpop.f32.mrb[73].mxu1  ;;  %v6481_v39 = vpop.f32.mrb[73].mxu0 }
 0x18c   : > { %v6418_v52 = vadd.f32 %v6417_v33, %v6416_v57  ;;  %v6482_v43 = vadd.f32 %v6481_v39, %v6480_v32  ;;  %v6419_v48 = vpop.f32.mrb[74].mxu1  ;;  %v6483_v59 = vpop.f32.mrb[74].mxu0  ;;  %7103 = vmatpush3.bf16.msra.mxu0 %v7828_v25  ;;  %v7829_v25 = vld [vmem:[%s8177_s15 + $0x764] ss:$84 sps:$4 sm:$0xff]  }
 0x18d   : > { %v6420_v54 = vpop.f32.mrb[75].mxu1  ;;  %v6484_v20 = vpop.f32.mrb[75].mxu0  ;;  %7104 = vmatprep.subr.bf16.mxu0 %v7843_v60  ;;  %v7831_v60 = vld [vmem:[%s8177_s15 + $0x22c] ss:$84 sps:$4 sm:$0xff]  }
 0x18e   : > { %v6421_v22 = vadd.f32 %v6420_v54, %v6419_v48  ;;  %v6485_v12 = vadd.f32 %v6484_v20, %v6483_v59  ;;  %v8931_v18 = vadd.f32 %v6418_v52, %v8594_v58  ;;  %v8934_v56 = vadd.f32 %v6482_v43, %v8758_v17  ;;  %v7860_v58 = vld [vmem:[%s10046_s1 + $0x418] sm:$0xff]   ;;  %v7876_v33 = vld [vmem:[%s10046_s1 + $0x420] sm:$0xff]   ;;  %v7891_v43 = vld [vmem:[%s10046_s1 + $0x468] sm:$0xff]  }
 0x18f   : > { %4557 = vmatmul.mubr.bf16.gmra.mrb[180].mxu1 %v7817_v41  ;;  %4654 = vmatmul.mubr.bf16.gmra.mrb[180].mxu0 %v7818_v53  ;;  %v7833_v20 = vld [vmem:[%s8177_s15 + $0x760] ss:$84 sps:$4 sm:$0xff]  }
 0x190   : > { %4564 = vmatprep.mubr.bf16.mxu1 %v7819_v47  ;;  %4661 = vmatprep.mubr.bf16.mxu0 %v7821_v4  ;;  %v8937_v0 = vadd.f32 %v6421_v22, %v8603_v3  ;;  %v8940_v1 = vadd.f32 %v6485_v12, %v8769_v28  ;;  %v7907_v4 = vld [vmem:[%s10046_s1 + $0x470] sm:$0xff]  }
 0x191   : > { %7105 = vmatpush3.bf16.msra.mxu0 %v7844_v34  ;;  %v7834_v34 = vld [vmem:[%s8177_s15 + $0x228] ss:$84 sps:$4 sm:$0xff]  }
 0x192   : > { %v6422_v17 = vpop.f32.mrb[76].mxu1  ;;  %v6486_v2 = vpop.f32.mrb[76].mxu0  ;;  %7106 = vmatprep.subr.bf16.mxu0 %v7859_v50 }
 0x193   : > { %v6423_v6 = vpop.f32.mrb[77].mxu1  ;;  %v6487_v3 = vpop.f32.mrb[77].mxu0 }
 0x194   : > { %v6424_v40 = vadd.f32 %v6423_v6, %v6422_v17  ;;  %v6488_v28 = vadd.f32 %v6487_v3, %v6486_v2  ;;  %v6425_v21 = vpop.f32.mrb[78].mxu1  ;;  %v6489_v10 = vpop.f32.mrb[78].mxu0  ;;  %v7837_v17 = vld [vmem:[%s8177_s15 + $0x2d4] ss:$84 sps:$4 sm:$0xff]  }
 0x195   : > { %v6426_v57 = vpop.f32.mrb[79].mxu1  ;;  %v6490_v32 = vpop.f32.mrb[79].mxu0  ;;  %7107 = vmatpush3.bf16.msra.mxu0 %v7860_v58  ;;  %v7835_v58 = vld [vmem:[%s8177_s15 + $0x80c] ss:$84 sps:$4 sm:$0xff]   ;;  %v7908_v6 = vld [vmem:[%s10046_s1 + $0x430] sm:$0xff]  }
 0x196   : > { %v6427_v39 = vadd.f32 %v6426_v57, %v6425_v21  ;;  %v6491_v41 = vadd.f32 %v6490_v32, %v6489_v10  ;;  %7108 = vmatprep.subr.bf16.mxu0 %v7875_v30  ;;  %v8956_v53 = vadd.f32 %v6424_v40, %v8618_v14  ;;  %v8959_v52 = vadd.f32 %v6488_v28, %v8787_v24  ;;  %v7892_v24 = vld [vmem:[%s10046_s1 + $0x428] sm:$0xff]   ;;  %v7923_v28 = vld [vmem:[%s10046_s1 + $0x478] sm:$0xff]   ;;  %v7840_v32 = vld [vmem:[%s8177_s15 + $0x2d0] ss:$84 sps:$4 sm:$0xff]  }
 0x197   : > { %4565 = vmatmul.mubr.bf16.gmra.mrb[184].mxu1 %v7823_v19  ;;  %4662 = vmatmul.mubr.bf16.gmra.mrb[184].mxu0 %v7824_v11  ;;  %v7839_v57 = vld [vmem:[%s8177_s15 + $0x808] ss:$84 sps:$4 sm:$0xff]  }
 0x198   : > { %4572 = vmatprep.mubr.bf16.mxu1 %v7829_v25  ;;  %4669 = vmatprep.mubr.bf16.mxu0 %v7831_v60  ;;  %v8965_v48 = vadd.f32 %v6427_v39, %v8630_v26  ;;  %v8968_v14 = vadd.f32 %v6491_v41, %v8792_v63 }
 0x199   : > { %7109 = vmatpush3.bf16.msra.mxu0 %v7876_v33 }
 0x19a   : > { %v6492_v59 = vpop.f32.mrb[80].mxu0  ;;  %v6556_v47 = vpop.f32.mrb[80].mxu1  ;;  %7110 = vmatprep.subr.bf16.mxu0 %v7891_v43 }
 0x19b   : > { %v6493_v54 = vpop.f32.mrb[81].mxu0  ;;  %v6557_v26 = vpop.f32.mrb[81].mxu1 }
 0x19c   : > { %v6494_v22 = vadd.f32 %v6493_v54, %v6492_v59  ;;  %v6558_v63 = vadd.f32 %v6557_v26, %v6556_v47  ;;  %v6495_v12 = vpop.f32.mrb[82].mxu0  ;;  %v6559_v50 = vpop.f32.mrb[82].mxu1  ;;  %v7847_v59 = vld [vmem:[%s8177_s15 + $0x37c] ss:$84 sps:$4 sm:$0xff]  }
 0x19d   : > { %v6496_v2 = vpop.f32.mrb[83].mxu0  ;;  %v6560_v30 = vpop.f32.mrb[83].mxu1  ;;  %7111 = vmatpush3.bf16.msra.mxu0 %v7892_v24  ;;  %v7845_v24 = vld [vmem:[%s8177_s15 + $0x8b4] ss:$84 sps:$4 sm:$0xff]  }
 0x19e   : > { %v8984_v3 = vadd.f32 %v6494_v22, %v8808_v42  ;;  %v8987_v19 = vadd.f32 %v6558_v63, %v8811_v49  ;;  %v6497_v11 = vadd.f32 %v6496_v2, %v6495_v12  ;;  %v6561_v40 = vadd.f32 %v6560_v30, %v6559_v50  ;;  %7112 = vmatprep.subr.bf16.mxu0 %v7907_v4  ;;  %v7924_v49 = vld [vmem:[%s10046_s1 + $0x438] sm:$0xff]  }
 0x19f   : > { %4573 = vmatmul.mubr.bf16.gmra.mrb[188].mxu1 %v7833_v20  ;;  %4670 = vmatmul.mubr.bf16.gmra.mrb[188].mxu0 %v7834_v34 }
 0x1a0   : > { %v8993_v21 = vadd.f32 %v6497_v11, %v8820_v8  ;;  %v8996_v42 = vadd.f32 %v6561_v40, %v8823_v51  ;;  %4580 = vmatprep.mubr.bf16.mxu1 %v7835_v58  ;;  %4677 = vmatprep.mubr.bf16.mxu0 %v7837_v17  ;;  %v9004_v8 = vld [vmem:[%s10046_s1 + $0x500] sm:$0xff]   ;;  %v7850_v17 = vld [vmem:[%s8177_s15 + $0x378] ss:$84 sps:$4 sm:$0xff]   ;;  %v7851_v40 = vld [vmem:[%s8177_s15 + $0x95c] ss:$84 sps:$4 sm:$0xff]  }
 0x1a1   : > { %7113 = vmatpush3.bf16.msra.mxu0 %v7908_v6  ;;  %v7849_v58 = vld [vmem:[%s8177_s15 + $0x8b0] ss:$84 sps:$4 sm:$0xff]  }
 0x1a2   : > { %v6498_v10 = vpop.f32.mrb[84].mxu0  ;;  %v6562_v25 = vpop.f32.mrb[84].mxu1  ;;  %7114 = vmatprep.subr.bf16.mxu0 %v7923_v28  ;;  %v7853_v28 = vld [vmem:[%s8177_s15 + $0x424] ss:$84 sps:$4 sm:$0xff]  }
 0x1a3   : > { %v6499_v60 = vpop.f32.mrb[85].mxu0  ;;  %v6563_v51 = vpop.f32.mrb[85].mxu1 }
 0x1a4   : > { %v6500_v33 = vadd.f32 %v6499_v60, %v6498_v10  ;;  %v6564_v39 = vadd.f32 %v6563_v51, %v6562_v25  ;;  %v6501_v41 = vpop.f32.mrb[86].mxu0  ;;  %v6565_v43 = vpop.f32.mrb[86].mxu1 }
 0x1a5   : > { %v6502_v47 = vpop.f32.mrb[87].mxu0  ;;  %v6566_v4 = vpop.f32.mrb[87].mxu1  ;;  %7115 = vmatpush3.bf16.msra.mxu0 %v7924_v49 }
 0x1a6   : > { %v9011_v54 = vadd.f32 %v6500_v33, %v8833_v61  ;;  %v9014_v26 = vadd.f32 %v6564_v39, %v8836_v16  ;;  %v6503_v20 = vadd.f32 %v6502_v47, %v6501_v41  ;;  %v6567_v34 = vadd.f32 %v6566_v4, %v6565_v43  ;;  %7342 = vmatprep.subr.bf16.mxu0 %v9004_v8  ;;  %v7856_v41 = vld [vmem:[%s8177_s15 + $0x420] ss:$84 sps:$4 sm:$0xff]   ;;  %v7861_v4 = vld [vmem:[%s8177_s15 + $0xa04] ss:$84 sps:$4 sm:$0xff]  }
 0x1a7   : > { %4581 = vmatmul.mubr.bf16.gmra.mrb[192].mxu1 %v7839_v57  ;;  %4678 = vmatmul.mubr.bf16.gmra.mrb[192].mxu0 %v7840_v32 }
 0x1a8   : > { %v9018_v22 = vadd.f32 %v6503_v20, %v8839_v7  ;;  %v9021_v63 = vadd.f32 %v6567_v34, %v8842_v9  ;;  %4588 = vmatprep.mubr.bf16.mxu1 %v7845_v24  ;;  %4685 = vmatprep.mubr.bf16.mxu0 %v7847_v59  ;;  %v7863_v20 = vld [vmem:[%s8177_s15 + $0x4cc] ss:$84 sps:$4 sm:$0xff]  }
 0x1aa   : > { %v6504_v61 = vpop.f32.mrb[88].mxu0  ;;  %v6568_v12 = vpop.f32.mrb[88].mxu1 }
 0x1ab   : > { %v6505_v16 = vpop.f32.mrb[89].mxu0  ;;  %v6569_v50 = vpop.f32.mrb[89].mxu1 }
 0x1ac   : > { %v6506_v2 = vadd.f32 %v6505_v16, %v6504_v61  ;;  %v6570_v30 = vadd.f32 %v6569_v50, %v6568_v12  ;;  %v6507_v6 = vpop.f32.mrb[90].mxu0  ;;  %v6571_v11 = vpop.f32.mrb[90].mxu1 }
 0x1ad   : > { %v6508_v49 = vpop.f32.mrb[91].mxu0  ;;  %v6572_v7 = vpop.f32.mrb[91].mxu1 }
 0x1ae   : > { %v9028_v9 = vadd.f32 %v6506_v2, %v8849_v13  ;;  %v9031_v10 = vadd.f32 %v6570_v30, %v8852_v44  ;;  %v6509_v25 = vadd.f32 %v6508_v49, %v6507_v6  ;;  %v6573_v60 = vadd.f32 %v6572_v7, %v6571_v11  ;;  %v7855_v44 = vld [vmem:[%s8177_s15 + $0x958] ss:$84 sps:$4 sm:$0xff]   ;;  %v7866_v6 = vld [vmem:[%s8177_s15 + $0x4c8] ss:$84 sps:$4 sm:$0xff]  }
 0x1af   : > { %4589 = vmatmul.mubr.bf16.gmra.mrb[196].mxu1 %v7849_v58  ;;  %4686 = vmatmul.mubr.bf16.gmra.mrb[196].mxu0 %v7850_v17  ;;  %v7867_v7 = vld [vmem:[%s8177_s15 + $0x574] ss:$84 sps:$4 sm:$0xff]  }
 0x1b0   : > { %v9034_v51 = vadd.f32 %v6509_v25, %v8855_v45  ;;  %v9037_v57 = vadd.f32 %v6573_v60, %v8858_v46  ;;  %4596 = vmatprep.mubr.bf16.mxu1 %v7851_v40  ;;  %4693 = vmatprep.mubr.bf16.mxu0 %v7853_v28  ;;  %v7871_v25 = vld [vmem:[%s8177_s15 + $0x3c] ss:$84 sps:$4 sm:$0xff]  }
 0x1b2   : > { %v6510_v32 = vpop.f32.mrb[92].mxu0  ;;  %v6574_v13 = vpop.f32.mrb[92].mxu1 }
 0x1b3   : > { %v6511_v33 = vpop.f32.mrb[93].mxu0  ;;  %v6575_v39 = vpop.f32.mrb[93].mxu1 }
 0x1b4   : > { %v6512_v43 = vadd.f32 %v6511_v33, %v6510_v32  ;;  %v6576_v24 = vadd.f32 %v6575_v39, %v6574_v13  ;;  %v6513_v59 = vpop.f32.mrb[94].mxu0  ;;  %v6577_v47 = vpop.f32.mrb[94].mxu1 }
 0x1b5   : > { %v6514_v34 = vpop.f32.mrb[95].mxu0  ;;  %v6578_v45 = vpop.f32.mrb[95].mxu1 }
 0x1b6   : > { %v9044_v46 = vadd.f32 %v6512_v43, %v8865_v37  ;;  %v9047_v61 = vadd.f32 %v6576_v24, %v8868_v15  ;;  %v6515_v12 = vadd.f32 %v6514_v34, %v6513_v59  ;;  %v6579_v16 = vadd.f32 %v6578_v45, %v6577_v47  ;;  %v7865_v15 = vld [vmem:[%s8177_s15 + $0xa00] ss:$84 sps:$4 sm:$0xff]   ;;  %v7872_v59 = vld [vmem:[%s8177_s15 + $0x570] ss:$84 sps:$4 sm:$0xff]  }
 0x1b7   : > { %4597 = vmatmul.mubr.bf16.gmra.mrb[200].mxu1 %v7855_v44  ;;  %4694 = vmatmul.mubr.bf16.gmra.mrb[200].mxu0 %v7856_v41  ;;  %v7877_v45 = vld [vmem:[%s8177_s15 + $0x61c] ss:$84 sps:$4 sm:$0xff]  }
 0x1b8   : > { %v9050_v50 = vadd.f32 %v6515_v12, %v8871_v35  ;;  %v9053_v58 = vadd.f32 %v6579_v16, %v8874_v27  ;;  %4604 = vmatprep.mubr.bf16.mxu1 %v7861_v4  ;;  %4701 = vmatprep.mubr.bf16.mxu0 %v7863_v20  ;;  %v7879_v16 = vld [vmem:[%s8177_s15 + $0xe4] ss:$84 sps:$4 sm:$0xff]  }
 0x1ba   : > { %v6516_v17 = vpop.f32.mrb[96].mxu0  ;;  %v6580_v37 = vpop.f32.mrb[96].mxu1 }
 0x1bb   : > { %v6517_v2 = vpop.f32.mrb[97].mxu0  ;;  %v6581_v30 = vpop.f32.mrb[97].mxu1 }
 0x1bc   : > { %v6518_v11 = vadd.f32 %v6517_v2, %v6516_v17  ;;  %v6582_v40 = vadd.f32 %v6581_v30, %v6580_v37  ;;  %v6519_v28 = vpop.f32.mrb[98].mxu0  ;;  %v6583_v49 = vpop.f32.mrb[98].mxu1  ;;  %v7889_v17 = vld [vmem:[%s10046_s1 + $0x4c8] sm:$0xff]  }
 0x1bd   : > { %v6520_v60 = vpop.f32.mrb[99].mxu0  ;;  %v6584_v35 = vpop.f32.mrb[99].mxu1 }
 0x1be   : > { %v9060_v27 = vadd.f32 %v6518_v11, %v8881_v62  ;;  %v9063_v32 = vadd.f32 %v6582_v40, %v8884_v55  ;;  %v6521_v13 = vadd.f32 %v6520_v60, %v6519_v28  ;;  %v6585_v33 = vadd.f32 %v6584_v35, %v6583_v49  ;;  %v7869_v55 = vld [vmem:[%s8177_s15 + $0x38] ss:$84 sps:$4 sm:$0xff]  }
 0x1bf   : > { %4605 = vmatmul.mubr.bf16.gmra.mrb[204].mxu1 %v7865_v15  ;;  %4702 = vmatmul.mubr.bf16.gmra.mrb[204].mxu0 %v7866_v6 }
 0x1c0   : > { %v9066_v39 = vadd.f32 %v6521_v13, %v8887_v31  ;;  %v9069_v44 = vadd.f32 %v6585_v33, %v8890_v5  ;;  %4709 = vmatprep.mubr.bf16.mxu0 %v7867_v7  ;;  %4806 = vmatprep.mubr.bf16.mxu1 %v7871_v25  ;;  %v7874_v31 = vld [vmem:[%s10046_s1 + $0x480] sm:$0xff]  }
 0x1c1   : > { %v7882_v7 = vld [vmem:[%s8177_s15 + $0xe0] ss:$84 sps:$4 sm:$0xff]   ;;  %v7883_v33 = vld [vmem:[%s8177_s15 + $0x6c4] ss:$84 sps:$4 sm:$0xff]  }
 0x1c2   : > { %v6522_v41 = vpop.f32.mrb[100].mxu0  ;;  %v6586_v62 = vpop.f32.mrb[100].mxu1 }
 0x1c3   : > { %v6523_v43 = vpop.f32.mrb[101].mxu0  ;;  %v6587_v24 = vpop.f32.mrb[101].mxu1 }
 0x1c4   : > { %v6524_v47 = vadd.f32 %v6523_v43, %v6522_v41  ;;  %v6588_v4 = vadd.f32 %v6587_v24, %v6586_v62  ;;  %v6525_v20 = vpop.f32.mrb[102].mxu0  ;;  %v6589_v34 = vpop.f32.mrb[102].mxu1  ;;  %v7885_v41 = vld [vmem:[%s8177_s15 + $0x18c] ss:$84 sps:$4 sm:$0xff]   ;;  %v7906_v24 = vld [vmem:[%s10046_s1 + $0x490] sm:$0xff]  }
 0x1c5   : > { %v6526_v5 = vpop.f32.mrb[103].mxu0  ;;  %v6590_v12 = vpop.f32.mrb[103].mxu1 }
 0x1c6   : > { %v9082_v37 = vadd.f32 %v6524_v47, %v8903_v23  ;;  %v9085_v2 = vadd.f32 %v6588_v4, %v8906_v36  ;;  %v6527_v30 = vadd.f32 %v6526_v5, %v6525_v20  ;;  %v6591_v15 = vadd.f32 %v6590_v12, %v6589_v34  ;;  %v7890_v23 = vld [vmem:[%s10046_s1 + $0x488] sm:$0xff]   ;;  %v7905_v36 = vld [vmem:[%s10046_s1 + $0x4d0] sm:$0xff]   ;;  %v7921_v20 = vld [vmem:[%s10046_s1 + $0x4d8] sm:$0xff]  }
 0x1c7   : > { %4710 = vmatmul.mubr.bf16.gmra.mrb[208].mxu0 %v7872_v59  ;;  %4807 = vmatmul.mubr.bf16.vlgmr.msra.gmra.mrb[208].mxu1 %v7869_v55 }
 0x1c8   : > { %v9088_v6 = vadd.f32 %v6527_v30, %v8912_v29  ;;  %v9091_v11 = vadd.f32 %v6591_v15, %v8915_v38  ;;  %7213 = vmatpush3.bf16.msra.mxu1 %v7874_v31  ;;  %4717 = vmatprep.mubr.bf16.mxu0 %v7877_v45  ;;  %v7881_v38 = vld [vmem:[%s8177_s15 + $0x618] ss:$84 sps:$4 sm:$0xff]  }
 0x1c9   : > { %4814 = vmatprep.mubr.bf16.mxu1 %v7879_v16  ;;  %7214 = vmatprep.subr.bf16.mxu1 %v7889_v17  ;;  %v7888_v16 = vld [vmem:[%s8177_s15 + $0x188] ss:$84 sps:$4 sm:$0xff]  }
 0x1ca   : > { %v6528_v40 = vpop.f32.mrb[104].mxu0  ;;  %v6592_v29 = vpop.f32.mrb[104].mxu1 }
 0x1cb   : > { %v6529_v28 = vpop.f32.mrb[105].mxu0  ;;  %v6593_v49 = vpop.f32.mrb[105].mxu1 }
 0x1cc   : > { %v6530_v25 = vadd.f32 %v6529_v28, %v6528_v40  ;;  %v6594_v60 = vadd.f32 %v6593_v49, %v6592_v29  ;;  %v6531_v35 = vpop.f32.mrb[106].mxu0  ;;  %v6595_v13 = vpop.f32.mrb[106].mxu1  ;;  %7215 = vmatpush3.bf16.msra.mxu1 %v7890_v23  ;;  %v7895_v40 = vld [vmem:[%s8177_s15 + $0x234] ss:$84 sps:$4 sm:$0xff]   ;;  %v7938_v49 = vld [vmem:[%s10046_s1 + $0x4a0] sm:$0xff]  }
 0x1cd   : > { %v6532_v62 = vpop.f32.mrb[107].mxu0  ;;  %v6596_v43 = vpop.f32.mrb[107].mxu1  ;;  %7216 = vmatprep.subr.bf16.mxu1 %v7905_v36  ;;  %v7893_v36 = vld [vmem:[%s8177_s15 + $0x76c] ss:$84 sps:$4 sm:$0xff]  }
 0x1ce   : > { %v9107_v55 = vadd.f32 %v6530_v25, %v8931_v18  ;;  %v9110_v59 = vadd.f32 %v6594_v60, %v8934_v56  ;;  %v6533_v47 = vadd.f32 %v6532_v62, %v6531_v35  ;;  %v6597_v4 = vadd.f32 %v6596_v43, %v6595_v13  ;;  %v7922_v18 = vld [vmem:[%s10046_s1 + $0x498] sm:$0xff]   ;;  %v7952_v35 = vld [vmem:[%s10046_s1 + $0x4e8] sm:$0xff]  }
 0x1cf   : > { %4718 = vmatmul.mubr.bf16.gmra.mrb[212].mxu0 %v7881_v38  ;;  %4815 = vmatmul.mubr.bf16.gmra.mrb[212].mxu1 %v7882_v7 }
 0x1d0   : > { %v9116_v34 = vadd.f32 %v6533_v47, %v8937_v0  ;;  %v9119_v31 = vadd.f32 %v6597_v4, %v8940_v1  ;;  %4725 = vmatprep.mubr.bf16.mxu0 %v7883_v33  ;;  %4822 = vmatprep.mubr.bf16.mxu1 %v7885_v41  ;;  %v7937_v0 = vld [vmem:[%s10046_s1 + $0x4e0] sm:$0xff]  }
 0x1d1   : > { %7217 = vmatpush3.bf16.msra.mxu1 %v7906_v24  ;;  %v7887_v1 = vld [vmem:[%s8177_s15 + $0x6c0] ss:$84 sps:$4 sm:$0xff]   ;;  %v7898_v24 = vld [vmem:[%s8177_s15 + $0x230] ss:$84 sps:$4 sm:$0xff]  }
 0x1d2   : > { %v6534_v56 = vpop.f32.mrb[108].mxu0  ;;  %v6598_v45 = vpop.f32.mrb[108].mxu1  ;;  %7218 = vmatprep.subr.bf16.mxu1 %v7921_v20 }
 0x1d3   : > { %v6535_v5 = vpop.f32.mrb[109].mxu0  ;;  %v6599_v12 = vpop.f32.mrb[109].mxu1 }
 0x1d4   : > { %v6536_v17 = vadd.f32 %v6535_v5, %v6534_v56  ;;  %v6600_v30 = vadd.f32 %v6599_v12, %v6598_v45  ;;  %v6537_v15 = vpop.f32.mrb[110].mxu0  ;;  %v6601_v23 = vpop.f32.mrb[110].mxu1  ;;  %v7899_v56 = vld [vmem:[%s8177_s15 + $0x814] ss:$84 sps:$4 sm:$0xff]   ;;  %v7901_v45 = vld [vmem:[%s8177_s15 + $0x2dc] ss:$84 sps:$4 sm:$0xff]  }
 0x1d5   : > { %v6538_v29 = vpop.f32.mrb[111].mxu0  ;;  %v6602_v28 = vpop.f32.mrb[111].mxu1  ;;  %7219 = vmatpush3.bf16.msra.mxu1 %v7922_v18  ;;  %v7967_v12 = vld [vmem:[%s10046_s1 + $0x4b0] sm:$0xff]  }
 0x1d6   : > { %v9135_v38 = vadd.f32 %v6536_v17, %v8956_v53  ;;  %v9138_v7 = vadd.f32 %v6600_v30, %v8959_v52  ;;  %v6539_v25 = vadd.f32 %v6538_v29, %v6537_v15  ;;  %v6603_v60 = vadd.f32 %v6602_v28, %v6601_v23  ;;  %7220 = vmatprep.subr.bf16.mxu1 %v7937_v0  ;;  %v7953_v52 = vld [vmem:[%s10046_s1 + $0x4a8] sm:$0xff]   ;;  %v7980_v15 = vld [vmem:[%s10046_s1 + $0x4f8] sm:$0xff]  }
 0x1d7   : > { %4726 = vmatmul.mubr.bf16.gmra.mrb[216].mxu0 %v7887_v1  ;;  %4823 = vmatmul.mubr.bf16.gmra.mrb[216].mxu1 %v7888_v16 }
 0x1d8   : > { %v9144_v13 = vadd.f32 %v6539_v25, %v8965_v48  ;;  %v9147_v53 = vadd.f32 %v6603_v60, %v8968_v14  ;;  %4733 = vmatprep.mubr.bf16.mxu0 %v7893_v36  ;;  %4830 = vmatprep.mubr.bf16.mxu1 %v7895_v40  ;;  %v7966_v48 = vld [vmem:[%s10046_s1 + $0x4f0] sm:$0xff]   ;;  %v7897_v14 = vld [vmem:[%s8177_s15 + $0x768] ss:$84 sps:$4 sm:$0xff]  }
 0x1d9   : > { %7221 = vmatpush3.bf16.msra.mxu1 %v7938_v49  ;;  %v7903_v49 = vld [vmem:[%s8177_s15 + $0x810] ss:$84 sps:$4 sm:$0xff]  }
 0x1da   : > { %v6604_v33 = vpop.f32.mrb[112].mxu1  ;;  %v6668_v41 = vpop.f32.mrb[112].mxu0  ;;  %7222 = vmatprep.subr.bf16.mxu1 %v7952_v35 }
 0x1db   : > { %v6605_v62 = vpop.f32.mrb[113].mxu1  ;;  %v6669_v43 = vpop.f32.mrb[113].mxu0 }
 0x1dc   : > { %v6606_v47 = vadd.f32 %v6605_v62, %v6604_v33  ;;  %v6670_v4 = vadd.f32 %v6669_v43, %v6668_v41  ;;  %v6607_v20 = vpop.f32.mrb[114].mxu1  ;;  %v6671_v18 = vpop.f32.mrb[114].mxu0  ;;  %v7911_v33 = vld [vmem:[%s8177_s15 + $0x384] ss:$84 sps:$4 sm:$0xff]  }
 0x1dd   : > { %v6608_v0 = vpop.f32.mrb[115].mxu1  ;;  %v6672_v5 = vpop.f32.mrb[115].mxu0  ;;  %7223 = vmatpush3.bf16.msra.mxu1 %v7953_v52  ;;  %v7909_v52 = vld [vmem:[%s8177_s15 + $0x8bc] ss:$84 sps:$4 sm:$0xff]  }
 0x1de   : > { %v9163_v1 = vadd.f32 %v6606_v47, %v8984_v3  ;;  %v9166_v16 = vadd.f32 %v6670_v4, %v8987_v19  ;;  %v6609_v17 = vadd.f32 %v6608_v0, %v6607_v20  ;;  %v6673_v30 = vadd.f32 %v6672_v5, %v6671_v18  ;;  %7224 = vmatprep.subr.bf16.mxu1 %v7966_v48  ;;  %v7981_v19 = vld [vmem:[%s10046_s1 + $0x4b8] sm:$0xff]  }
 0x1df   : > { %4734 = vmatmul.mubr.bf16.gmra.mrb[220].mxu0 %v7897_v14  ;;  %4831 = vmatmul.mubr.bf16.gmra.mrb[220].mxu1 %v7898_v24 }
 0x1e0   : > { %v9172_v23 = vadd.f32 %v6609_v17, %v8993_v21  ;;  %v9175_v3 = vadd.f32 %v6673_v30, %v8996_v42  ;;  %4741 = vmatprep.mubr.bf16.mxu0 %v7899_v56  ;;  %4838 = vmatprep.mubr.bf16.mxu1 %v7901_v45  ;;  %v7904_v21 = vld [vmem:[%s8177_s15 + $0x2d8] ss:$84 sps:$4 sm:$0xff]   ;;  %v7914_v45 = vld [vmem:[%s8177_s15 + $0x380] ss:$84 sps:$4 sm:$0xff]  }
 0x1e1   : > { %7225 = vmatpush3.bf16.msra.mxu1 %v7967_v12  ;;  %v7915_v30 = vld [vmem:[%s8177_s15 + $0x964] ss:$84 sps:$4 sm:$0xff]  }
 0x1e2   : > { %v6610_v36 = vpop.f32.mrb[116].mxu1  ;;  %v6674_v40 = vpop.f32.mrb[116].mxu0  ;;  %7226 = vmatprep.subr.bf16.mxu1 %v7980_v15  ;;  %v7917_v15 = vld [vmem:[%s8177_s15 + $0x42c] ss:$84 sps:$4 sm:$0xff]  }
 0x1e3   : > { %v6611_v29 = vpop.f32.mrb[117].mxu1  ;;  %v6675_v28 = vpop.f32.mrb[117].mxu0 }
 0x1e4   : > { %v6612_v25 = vadd.f32 %v6611_v29, %v6610_v36  ;;  %v6676_v60 = vadd.f32 %v6675_v28, %v6674_v40  ;;  %v6613_v42 = vpop.f32.mrb[118].mxu1  ;;  %v6677_v35 = vpop.f32.mrb[118].mxu0 }
 0x1e5   : > { %v6614_v41 = vpop.f32.mrb[119].mxu1  ;;  %v6678_v48 = vpop.f32.mrb[119].mxu0  ;;  %7227 = vmatpush3.bf16.msra.mxu1 %v7981_v19 }
 0x1e6   : > { %v9185_v62 = vadd.f32 %v6612_v25, %v9011_v54  ;;  %v9188_v43 = vadd.f32 %v6676_v60, %v9014_v26  ;;  %v6615_v14 = vadd.f32 %v6614_v41, %v6613_v42  ;;  %v6679_v24 = vadd.f32 %v6678_v48, %v6677_v35  ;;  %v7913_v26 = vld [vmem:[%s8177_s15 + $0x8b8] ss:$84 sps:$4 sm:$0xff]   ;;  %v7920_v42 = vld [vmem:[%s8177_s15 + $0x428] ss:$84 sps:$4 sm:$0xff]  }
 0x1e7   : > { %4742 = vmatmul.mubr.bf16.gmra.mrb[224].mxu0 %v7903_v49  ;;  %4839 = vmatmul.mubr.bf16.gmra.mrb[224].mxu1 %v7904_v21  ;;  %v7925_v48 = vld [vmem:[%s8177_s15 + $0xa0c] ss:$84 sps:$4 sm:$0xff]  }
 0x1e8   : > { %v9191_v47 = vadd.f32 %v6615_v14, %v9018_v22  ;;  %v9194_v4 = vadd.f32 %v6679_v24, %v9021_v63  ;;  %4749 = vmatprep.mubr.bf16.mxu0 %v7909_v52  ;;  %4846 = vmatprep.mubr.bf16.mxu1 %v7911_v33  ;;  %v7927_v14 = vld [vmem:[%s8177_s15 + $0x4d4] ss:$84 sps:$4 sm:$0xff]  }
 0x1ea   : > { %v6616_v20 = vpop.f32.mrb[120].mxu1  ;;  %v6680_v54 = vpop.f32.mrb[120].mxu0 }
 0x1eb   : > { %v6617_v18 = vpop.f32.mrb[121].mxu1  ;;  %v6681_v56 = vpop.f32.mrb[121].mxu0 }
 0x1ec   : > { %v6618_v0 = vadd.f32 %v6617_v18, %v6616_v20  ;;  %v6682_v5 = vadd.f32 %v6681_v56, %v6680_v54  ;;  %v6619_v12 = vpop.f32.mrb[122].mxu1  ;;  %v6683_v17 = vpop.f32.mrb[122].mxu0 }
 0x1ed   : > { %v6620_v19 = vpop.f32.mrb[123].mxu1  ;;  %v6684_v22 = vpop.f32.mrb[123].mxu0 }
 0x1ee   : > { %v9201_v63 = vadd.f32 %v6618_v0, %v9028_v9  ;;  %v9204_v36 = vadd.f32 %v6682_v5, %v9031_v10  ;;  %v6621_v40 = vadd.f32 %v6620_v19, %v6619_v12  ;;  %v6685_v29 = vadd.f32 %v6684_v22, %v6683_v17  ;;  %v7919_v10 = vld [vmem:[%s8177_s15 + $0x960] ss:$84 sps:$4 sm:$0xff]   ;;  %v7930_v12 = vld [vmem:[%s8177_s15 + $0x4d0] ss:$84 sps:$4 sm:$0xff]  }
 0x1ef   : > { %4750 = vmatmul.mubr.bf16.gmra.mrb[228].mxu0 %v7913_v26  ;;  %4847 = vmatmul.mubr.bf16.gmra.mrb[228].mxu1 %v7914_v45  ;;  %v7931_v22 = vld [vmem:[%s8177_s15 + $0x57c] ss:$84 sps:$4 sm:$0xff]  }
 0x1f0   : > { %v9207_v28 = vadd.f32 %v6621_v40, %v9034_v51  ;;  %v9210_v49 = vadd.f32 %v6685_v29, %v9037_v57  ;;  %4757 = vmatprep.mubr.bf16.mxu0 %v7915_v30  ;;  %4854 = vmatprep.mubr.bf16.mxu1 %v7917_v15  ;;  %v7935_v40 = vld [vmem:[%s8177_s15 + $0x44] ss:$84 sps:$4 sm:$0xff]  }
 0x1f2   : > { %v6622_v21 = vpop.f32.mrb[124].mxu1  ;;  %v6686_v9 = vpop.f32.mrb[124].mxu0 }
 0x1f3   : > { %v6623_v25 = vpop.f32.mrb[125].mxu1  ;;  %v6687_v60 = vpop.f32.mrb[125].mxu0 }
 0x1f4   : > { %v6624_v35 = vadd.f32 %v6623_v25, %v6622_v21  ;;  %v6688_v52 = vadd.f32 %v6687_v60, %v6686_v9  ;;  %v6625_v33 = vpop.f32.mrb[126].mxu1  ;;  %v6689_v41 = vpop.f32.mrb[126].mxu0 }
 0x1f5   : > { %v6626_v24 = vpop.f32.mrb[127].mxu1  ;;  %v6690_v51 = vpop.f32.mrb[127].mxu0 }
 0x1f6   : > { %v9217_v57 = vadd.f32 %v6624_v35, %v9044_v46  ;;  %v9220_v20 = vadd.f32 %v6688_v52, %v9047_v61  ;;  %v6627_v54 = vadd.f32 %v6626_v24, %v6625_v33  ;;  %v6691_v18 = vadd.f32 %v6690_v51, %v6689_v41  ;;  %v7929_v61 = vld [vmem:[%s8177_s15 + $0xa08] ss:$84 sps:$4 sm:$0xff]   ;;  %v7936_v33 = vld [vmem:[%s8177_s15 + $0x578] ss:$84 sps:$4 sm:$0xff]  }
 0x1f7   : > { %4758 = vmatmul.mubr.bf16.gmra.mrb[232].mxu0 %v7919_v10  ;;  %4855 = vmatmul.mubr.bf16.gmra.mrb[232].mxu1 %v7920_v42  ;;  %v7940_v51 = vld [vmem:[%s8177_s15 + $0x624] ss:$84 sps:$4 sm:$0xff]  }
 0x1f8   : > { %v9223_v56 = vadd.f32 %v6627_v54, %v9050_v50  ;;  %v9226_v26 = vadd.f32 %v6691_v18, %v9053_v58  ;;  %4765 = vmatprep.mubr.bf16.mxu0 %v7925_v48  ;;  %4862 = vmatprep.mubr.bf16.mxu1 %v7927_v14  ;;  %v7942_v18 = vld [vmem:[%s8177_s15 + $0xec] ss:$84 sps:$4 sm:$0xff]  }
 0x1fa   : > { %v6628_v45 = vpop.f32.mrb[128].mxu1  ;;  %v6692_v46 = vpop.f32.mrb[128].mxu0 }
 0x1fb   : > { %v6629_v0 = vpop.f32.mrb[129].mxu1  ;;  %v6693_v5 = vpop.f32.mrb[129].mxu0 }
 0x1fc   : > { %v6630_v17 = vadd.f32 %v6629_v0, %v6628_v45  ;;  %v6694_v30 = vadd.f32 %v6693_v5, %v6692_v46  ;;  %v6631_v15 = vpop.f32.mrb[130].mxu1  ;;  %v6695_v19 = vpop.f32.mrb[130].mxu0 }
 0x1fd   : > { %v6632_v29 = vpop.f32.mrb[131].mxu1  ;;  %v6696_v50 = vpop.f32.mrb[131].mxu0 }
 0x1fe   : > { %v9233_v58 = vadd.f32 %v6630_v17, %v9060_v27  ;;  %v9236_v21 = vadd.f32 %v6694_v30, %v9063_v32  ;;  %v6633_v9 = vadd.f32 %v6632_v29, %v6631_v15  ;;  %v6697_v25 = vadd.f32 %v6696_v50, %v6695_v19  ;;  %v7933_v32 = vld [vmem:[%s8177_s15 + $0x40] ss:$84 sps:$4 sm:$0xff]   ;;  %v7945_v19 = vld [vmem:[%s8177_s15 + $0xe8] ss:$84 sps:$4 sm:$0xff]  }
 0x1ff   : > { %4766 = vmatmul.mubr.bf16.gmra.mrb[236].mxu0 %v7929_v61  ;;  %4863 = vmatmul.mubr.bf16.gmra.mrb[236].mxu1 %v7930_v12  ;;  %v7944_v15 = vld [vmem:[%s8177_s15 + $0x620] ss:$84 sps:$4 sm:$0xff]  }
 0x200   : > { %v9239_v60 = vadd.f32 %v6633_v9, %v9066_v39  ;;  %v9242_v10 = vadd.f32 %v6697_v25, %v9069_v44  ;;  %4870 = vmatprep.mubr.bf16.mxu1 %v7931_v22  ;;  %4967 = vmatprep.mubr.bf16.mxu0 %v7935_v40  ;;  %v7994_v44 = vld [vmem:[%s10046_s1 + $0x508] sm:$0xff]  }
 0x201   : > { %v7946_v50 = vld [vmem:[%s8177_s15 + $0x6cc] ss:$84 sps:$4 sm:$0xff]   ;;  %v7948_v9 = vld [vmem:[%s8177_s15 + $0x194] ss:$84 sps:$4 sm:$0xff]  }
 0x202   : > { %v6634_v42 = vpop.f32.mrb[132].mxu1  ;;  %v6698_v27 = vpop.f32.mrb[132].mxu0 }
 0x203   : > { %v6635_v35 = vpop.f32.mrb[133].mxu1  ;;  %v6699_v52 = vpop.f32.mrb[133].mxu0 }
 0x204   : > { %v6636_v41 = vadd.f32 %v6635_v35, %v6634_v42  ;;  %v6700_v48 = vadd.f32 %v6699_v52, %v6698_v27  ;;  %v6637_v14 = vpop.f32.mrb[134].mxu1  ;;  %v6701_v24 = vpop.f32.mrb[134].mxu0 }
 0x205   : > { %v6638_v54 = vpop.f32.mrb[135].mxu1  ;;  %v6702_v39 = vpop.f32.mrb[135].mxu0 }
 0x206   : > { %v9252_v45 = vadd.f32 %v6636_v41, %v9082_v37  ;;  %v9255_v46 = vadd.f32 %v6700_v48, %v9085_v2  ;;  %v6639_v0 = vadd.f32 %v6638_v54, %v6637_v14  ;;  %v6703_v5 = vadd.f32 %v6702_v39, %v6701_v24  ;;  %v7951_v14 = vld [vmem:[%s8177_s15 + $0x190] ss:$84 sps:$4 sm:$0xff]  }
 0x207   : > { %4871 = vmatmul.mubr.bf16.gmra.mrb[240].mxu1 %v7936_v33  ;;  %4968 = vmatmul.mubr.bf16.vlgmr.msra.gmra.mrb[240].mxu0 %v7933_v32 }
 0x208   : > { %v9258_v61 = vadd.f32 %v6639_v0, %v9088_v6  ;;  %v9261_v12 = vadd.f32 %v6703_v5, %v9091_v11  ;;  %7343 = vmatpush3.bf16.msra.mxu0 %v9004_v8  ;;  %4878 = vmatprep.mubr.bf16.mxu1 %v7940_v51 }
 0x209   : > { %4975 = vmatprep.mubr.bf16.mxu0 %v7942_v18  ;;  %7344 = vmatprep.subr.bf16.mxu0 %v7994_v44  ;;  %v7954_v18 = vld [vmem:[%s8177_s15 + $0x774] ss:$84 sps:$4 sm:$0xff]  }
 0x20a   : > { %v6640_v37 = vpop.f32.mrb[136].mxu1  ;;  %v6704_v2 = vpop.f32.mrb[136].mxu0 }
 0x20b   : > { %v6641_v17 = vpop.f32.mrb[137].mxu1  ;;  %v6705_v30 = vpop.f32.mrb[137].mxu0 }
 0x20c   : > { %v6642_v22 = vadd.f32 %v6641_v17, %v6640_v37  ;;  %v6706_v40 = vadd.f32 %v6705_v30, %v6704_v2  ;;  %v6643_v6 = vpop.f32.mrb[138].mxu1  ;;  %v6707_v29 = vpop.f32.mrb[138].mxu0  ;;  %7345 = vmatpush3.bf16.msra.mxu0 %v7994_v44  ;;  %v7956_v44 = vld [vmem:[%s8177_s15 + $0x23c] ss:$84 sps:$4 sm:$0xff]  }
 0x20d   : > { %v6644_v11 = vpop.f32.mrb[139].mxu1  ;;  %v6708_v25 = vpop.f32.mrb[139].mxu0 }
 0x20e   : > { %v9269_v8 = vadd.f32 %v6642_v22, %v9107_v55  ;;  %v9272_v42 = vadd.f32 %v6706_v40, %v9110_v59  ;;  %v6645_v27 = vadd.f32 %v6644_v11, %v6643_v6  ;;  %v6709_v35 = vadd.f32 %v6708_v25, %v6707_v29  ;;  %v7950_v59 = vld [vmem:[%s8177_s15 + $0x6c8] ss:$84 sps:$4 sm:$0xff]   ;;  %v7959_v40 = vld [vmem:[%s8177_s15 + $0x238] ss:$84 sps:$4 sm:$0xff]  }
 0x20f   : > { %4879 = vmatmul.mubr.bf16.gmra.mrb[244].mxu1 %v7944_v15  ;;  %4976 = vmatmul.mubr.bf16.gmra.mrb[244].mxu0 %v7945_v19  ;;  %v7962_v11 = vld [vmem:[%s8177_s15 + $0x81c] ss:$84 sps:$4 sm:$0xff]   ;;  %v7965_v25 = vld [vmem:[%s8177_s15 + $0x2e4] ss:$84 sps:$4 sm:$0xff]  }
 0x210   : > { %v9275_v52 = vadd.f32 %v6645_v27, %v9116_v34  ;;  %v9278_v32 = vadd.f32 %v6709_v35, %v9119_v31  ;;  %4886 = vmatprep.mubr.bf16.mxu1 %v7946_v50  ;;  %4983 = vmatprep.mubr.bf16.mxu0 %v7948_v9 }
 0x212   : > { %v6646_v33 = vpop.f32.mrb[140].mxu1  ;;  %v6710_v55 = vpop.f32.mrb[140].mxu0 }
 0x213   : > { %v6647_v41 = vpop.f32.mrb[141].mxu1  ;;  %v6711_v48 = vpop.f32.mrb[141].mxu0 }
 0x214   : > { %v6648_v24 = vadd.f32 %v6647_v41, %v6646_v33  ;;  %v6712_v51 = vadd.f32 %v6711_v48, %v6710_v55  ;;  %v6649_v54 = vpop.f32.mrb[142].mxu1  ;;  %v6713_v39 = vpop.f32.mrb[142].mxu0 }
 0x215   : > { %v6650_v0 = vpop.f32.mrb[143].mxu1  ;;  %v6714_v34 = vpop.f32.mrb[143].mxu0 }
 0x216   : > { %v9285_v31 = vadd.f32 %v6648_v24, %v9135_v38  ;;  %v9288_v5 = vadd.f32 %v6712_v51, %v9138_v7  ;;  %v6651_v37 = vadd.f32 %v6650_v0, %v6649_v54  ;;  %v6715_v2 = vadd.f32 %v6714_v34, %v6713_v39  ;;  %v7958_v7 = vld [vmem:[%s8177_s15 + $0x770] ss:$84 sps:$4 sm:$0xff]   ;;  %v7963_v51 = vld [vmem:[%s8177_s15 + $0x2e0] ss:$84 sps:$4 sm:$0xff]  }
 0x217   : > { %4887 = vmatmul.mubr.bf16.gmra.mrb[248].mxu1 %v7950_v59  ;;  %4984 = vmatmul.mubr.bf16.gmra.mrb[248].mxu0 %v7951_v14  ;;  %v7970_v0 = vld [vmem:[%s8177_s15 + $0x8c4] ss:$84 sps:$4 sm:$0xff]   ;;  %v7973_v34 = vld [vmem:[%s8177_s15 + $0x38c] ss:$84 sps:$4 sm:$0xff]  }
 0x218   : > { %v9291_v17 = vadd.f32 %v6651_v37, %v9144_v13  ;;  %v9294_v30 = vadd.f32 %v6715_v2, %v9147_v53  ;;  %4894 = vmatprep.mubr.bf16.mxu1 %v7954_v18  ;;  %4991 = vmatprep.mubr.bf16.mxu0 %v7956_v44 }
 0x21a   : > { %v6716_v15 = vpop.f32.mrb[144].mxu0  ;;  %v6780_v38 = vpop.f32.mrb[144].mxu1 }
 0x21b   : > { %v6717_v19 = vpop.f32.mrb[145].mxu0  ;;  %v6781_v22 = vpop.f32.mrb[145].mxu1 }
 0x21c   : > { %v6718_v6 = vadd.f32 %v6717_v19, %v6716_v15  ;;  %v6782_v29 = vadd.f32 %v6781_v22, %v6780_v38  ;;  %v6719_v50 = vpop.f32.mrb[146].mxu0  ;;  %v6783_v9 = vpop.f32.mrb[146].mxu1 }
 0x21d   : > { %v6720_v27 = vpop.f32.mrb[147].mxu0  ;;  %v6784_v13 = vpop.f32.mrb[147].mxu1 }
 0x21e   : > { %v9301_v53 = vadd.f32 %v6718_v6, %v9163_v1  ;;  %v9304_v35 = vadd.f32 %v6782_v29, %v9166_v16  ;;  %v6721_v33 = vadd.f32 %v6720_v27, %v6719_v50  ;;  %v6785_v55 = vadd.f32 %v6784_v13, %v6783_v9  ;;  %v7960_v16 = vld [vmem:[%s8177_s15 + $0x818] ss:$84 sps:$4 sm:$0xff]   ;;  %v7971_v29 = vld [vmem:[%s8177_s15 + $0x388] ss:$84 sps:$4 sm:$0xff]  }
 0x21f   : > { %4895 = vmatmul.mubr.bf16.gmra.mrb[252].mxu1 %v7958_v7  ;;  %4992 = vmatmul.mubr.bf16.gmra.mrb[252].mxu0 %v7959_v40  ;;  %v7976_v27 = vld [vmem:[%s8177_s15 + $0x96c] ss:$84 sps:$4 sm:$0xff]   ;;  %v7979_v13 = vld [vmem:[%s8177_s15 + $0x434] ss:$84 sps:$4 sm:$0xff]  }
 0x220   : > { %v9307_v41 = vadd.f32 %v6721_v33, %v9172_v23  ;;  %v9310_v48 = vadd.f32 %v6785_v55, %v9175_v3  ;;  %4902 = vmatprep.mubr.bf16.mxu1 %v7962_v11  ;;  %4999 = vmatprep.mubr.bf16.mxu0 %v7965_v25 }
 0x222   : > { %v6722_v59 = vpop.f32.mrb[148].mxu0  ;;  %v6786_v1 = vpop.f32.mrb[148].mxu1 }
 0x223   : > { %v6723_v14 = vpop.f32.mrb[149].mxu0  ;;  %v6787_v24 = vpop.f32.mrb[149].mxu1 }
 0x224   : > { %v6724_v54 = vadd.f32 %v6723_v14, %v6722_v59  ;;  %v6788_v39 = vadd.f32 %v6787_v24, %v6786_v1  ;;  %v6725_v18 = vpop.f32.mrb[150].mxu0  ;;  %v6789_v44 = vpop.f32.mrb[150].mxu1 }
 0x225   : > { %v6726_v37 = vpop.f32.mrb[151].mxu0  ;;  %v6790_v23 = vpop.f32.mrb[151].mxu1 }
 0x226   : > { %v9317_v3 = vadd.f32 %v6724_v54, %v9185_v62  ;;  %v9320_v2 = vadd.f32 %v6788_v39, %v9188_v43  ;;  %v6727_v15 = vadd.f32 %v6726_v37, %v6725_v18  ;;  %v6791_v38 = vadd.f32 %v6790_v23, %v6789_v44  ;;  %v7968_v43 = vld [vmem:[%s8177_s15 + $0x8c0] ss:$84 sps:$4 sm:$0xff]   ;;  %v7977_v39 = vld [vmem:[%s8177_s15 + $0x430] ss:$84 sps:$4 sm:$0xff]  }
 0x227   : > { %4903 = vmatmul.mubr.bf16.gmra.mrb[0].mxu1 %v7960_v16  ;;  %5000 = vmatmul.mubr.bf16.gmra.mrb[0].mxu0 %v7963_v51  ;;  %v7984_v37 = vld [vmem:[%s8177_s15 + $0xa14] ss:$84 sps:$4 sm:$0xff]   ;;  %v7987_v23 = vld [vmem:[%s8177_s15 + $0x4dc] ss:$84 sps:$4 sm:$0xff]  }
 0x228   : > { %v9323_v19 = vadd.f32 %v6727_v15, %v9191_v47  ;;  %v9326_v22 = vadd.f32 %v6791_v38, %v9194_v4  ;;  %4910 = vmatprep.mubr.bf16.mxu1 %v7970_v0  ;;  %5007 = vmatprep.mubr.bf16.mxu0 %v7973_v34 }
 0x22a   : > { %v6728_v7 = vpop.f32.mrb[152].mxu0  ;;  %v6792_v62 = vpop.f32.mrb[152].mxu1 }
 0x22b   : > { %v6729_v40 = vpop.f32.mrb[153].mxu0  ;;  %v6793_v6 = vpop.f32.mrb[153].mxu1 }
 0x22c   : > { %v6730_v50 = vadd.f32 %v6729_v40, %v6728_v7  ;;  %v6794_v9 = vadd.f32 %v6793_v6, %v6792_v62  ;;  %v6731_v11 = vpop.f32.mrb[154].mxu0  ;;  %v6795_v25 = vpop.f32.mrb[154].mxu1 }
 0x22d   : > { %v6732_v33 = vpop.f32.mrb[155].mxu0  ;;  %v6796_v47 = vpop.f32.mrb[155].mxu1 }
 0x22e   : > { %v9333_v4 = vadd.f32 %v6730_v50, %v9201_v63  ;;  %v9336_v55 = vadd.f32 %v6794_v9, %v9204_v36  ;;  %v6733_v59 = vadd.f32 %v6732_v33, %v6731_v11  ;;  %v6797_v1 = vadd.f32 %v6796_v47, %v6795_v25  ;;  %v7974_v36 = vld [vmem:[%s8177_s15 + $0x968] ss:$84 sps:$4 sm:$0xff]   ;;  %v7985_v9 = vld [vmem:[%s8177_s15 + $0x4d8] ss:$84 sps:$4 sm:$0xff]  }
 0x22f   : > { %4911 = vmatmul.mubr.bf16.gmra.mrb[4].mxu1 %v7968_v43  ;;  %5008 = vmatmul.mubr.bf16.gmra.mrb[4].mxu0 %v7971_v29  ;;  %v7990_v33 = vld [vmem:[%s8177_s15 + $0x584] ss:$84 sps:$4 sm:$0xff]   ;;  %v7993_v47 = vld [vmem:[%s8177_s15 + $0x4c] ss:$84 sps:$4 sm:$0xff]  }
 0x230   : > { %v9339_v14 = vadd.f32 %v6733_v59, %v9207_v28  ;;  %v9342_v24 = vadd.f32 %v6797_v1, %v9210_v49  ;;  %4918 = vmatprep.mubr.bf16.mxu1 %v7976_v27  ;;  %5015 = vmatprep.mubr.bf16.mxu0 %v7979_v13 }
 0x232   : > { %v6734_v16 = vpop.f32.mrb[156].mxu0  ;;  %v6798_v63 = vpop.f32.mrb[156].mxu1 }
 0x233   : > { %v6735_v51 = vpop.f32.mrb[157].mxu0  ;;  %v6799_v54 = vpop.f32.mrb[157].mxu1 }
 0x234   : > { %v6736_v18 = vadd.f32 %v6735_v51, %v6734_v16  ;;  %v6800_v44 = vadd.f32 %v6799_v54, %v6798_v63  ;;  %v6737_v0 = vpop.f32.mrb[158].mxu0  ;;  %v6801_v34 = vpop.f32.mrb[158].mxu1 }
 0x235   : > { %v6738_v15 = vpop.f32.mrb[159].mxu0  ;;  %v6802_v28 = vpop.f32.mrb[159].mxu1 }
 0x236   : > { %v9349_v49 = vadd.f32 %v6736_v18, %v9217_v57  ;;  %v9352_v38 = vadd.f32 %v6800_v44, %v9220_v20  ;;  %v6739_v7 = vadd.f32 %v6738_v15, %v6737_v0  ;;  %v6803_v62 = vadd.f32 %v6802_v28, %v6801_v34  ;;  %v7982_v20 = vld [vmem:[%s8177_s15 + $0xa10] ss:$84 sps:$4 sm:$0xff]   ;;  %v7991_v44 = vld [vmem:[%s8177_s15 + $0x48] ss:$84 sps:$4 sm:$0xff]   ;;  %v7997_v15 = vld [vmem:[%s8177_s15 + $0x62c] ss:$84 sps:$4 sm:$0xff]  }
 0x237   : > { %4919 = vmatmul.mubr.bf16.gmra.mrb[8].mxu1 %v7974_v36  ;;  %5016 = vmatmul.mubr.bf16.gmra.mrb[8].mxu0 %v7977_v39  ;;  %v8000_v28 = vld [vmem:[%s8177_s15 + $0xf4] ss:$84 sps:$4 sm:$0xff]  }
 0x238   : > { %v9355_v40 = vadd.f32 %v6739_v7, %v9223_v56  ;;  %v9358_v6 = vadd.f32 %v6803_v62, %v9226_v26  ;;  %4926 = vmatprep.mubr.bf16.mxu1 %v7984_v37  ;;  %5023 = vmatprep.mubr.bf16.mxu0 %v7987_v23 }
 0x23a   : > { %v6740_v43 = vpop.f32.mrb[160].mxu0  ;;  %v6804_v57 = vpop.f32.mrb[160].mxu1 }
 0x23b   : > { %v6741_v29 = vpop.f32.mrb[161].mxu0  ;;  %v6805_v50 = vpop.f32.mrb[161].mxu1 }
 0x23c   : > { %v6742_v11 = vadd.f32 %v6741_v29, %v6740_v43  ;;  %v6806_v25 = vadd.f32 %v6805_v50, %v6804_v57  ;;  %v6743_v27 = vpop.f32.mrb[162].mxu0  ;;  %v6807_v13 = vpop.f32.mrb[162].mxu1 }
 0x23d   : > { %v6744_v59 = vpop.f32.mrb[163].mxu0  ;;  %v6808_v56 = vpop.f32.mrb[163].mxu1 }
 0x23e   : > { %v9365_v26 = vadd.f32 %v6742_v11, %v9233_v58  ;;  %v9368_v1 = vadd.f32 %v6806_v25, %v9236_v21  ;;  %v6745_v16 = vadd.f32 %v6744_v59, %v6743_v27  ;;  %v6809_v63 = vadd.f32 %v6808_v56, %v6807_v13  ;;  %v7988_v21 = vld [vmem:[%s8177_s15 + $0x580] ss:$84 sps:$4 sm:$0xff]   ;;  %v7998_v25 = vld [vmem:[%s8177_s15 + $0xf0] ss:$84 sps:$4 sm:$0xff]  }
 0x23f   : > { %4927 = vmatmul.mubr.bf16.gmra.mrb[12].mxu1 %v7982_v20  ;;  %5024 = vmatmul.mubr.bf16.gmra.mrb[12].mxu0 %v7985_v9  ;;  %v8003_v59 = vld [vmem:[%s8177_s15 + $0x6d4] ss:$84 sps:$4 sm:$0xff]   ;;  %v8006_v56 = vld [vmem:[%s8177_s15 + $0x19c] ss:$84 sps:$4 sm:$0xff]  }
 0x240   : > { %v9371_v51 = vadd.f32 %v6745_v16, %v9239_v60  ;;  %v9374_v54 = vadd.f32 %v6809_v63, %v9242_v10  ;;  %5031 = vmatprep.mubr.bf16.mxu0 %v7990_v33  ;;  %5128 = vmatprep.mubr.bf16.mxu1 %v7993_v47 }
 0x242   : > { %v6746_v36 = vpop.f32.mrb[164].mxu0  ;;  %v6810_v58 = vpop.f32.mrb[164].mxu1 }
 0x243   : > { %v6747_v39 = vpop.f32.mrb[165].mxu0  ;;  %v6811_v18 = vpop.f32.mrb[165].mxu1 }
 0x244   : > { %v6748_v0 = vadd.f32 %v6747_v39, %v6746_v36  ;;  %v6812_v34 = vadd.f32 %v6811_v18, %v6810_v58  ;;  %v6749_v37 = vpop.f32.mrb[166].mxu0  ;;  %v6813_v23 = vpop.f32.mrb[166].mxu1 }
 0x245   : > { %v6750_v7 = vpop.f32.mrb[167].mxu0  ;;  %v6814_v60 = vpop.f32.mrb[167].mxu1 }
 0x246   : > { %v9381_v10 = vadd.f32 %v6748_v0, %v9252_v45  ;;  %v9384_v62 = vadd.f32 %v6812_v34, %v9255_v46  ;;  %v6751_v43 = vadd.f32 %v6750_v7, %v6749_v37  ;;  %v6815_v57 = vadd.f32 %v6814_v60, %v6813_v23  ;;  %v7995_v46 = vld [vmem:[%s8177_s15 + $0x628] ss:$84 sps:$4 sm:$0xff]   ;;  %v8004_v34 = vld [vmem:[%s8177_s15 + $0x198] ss:$84 sps:$4 sm:$0xff]  }
 0x247   : > { %5032 = vmatmul.mubr.bf16.gmra.mrb[16].mxu0 %v7988_v21  ;;  %5129 = vmatmul.mubr.bf16.vlgmr.msra.gmra.mrb[16].mxu1 %v7991_v44  ;;  %v8009_v7 = vld [vmem:[%s8177_s15 + $0x77c] ss:$84 sps:$4 sm:$0xff]   ;;  %v8012_v60 = vld [vmem:[%s8177_s15 + $0x244] ss:$84 sps:$4 sm:$0xff]  }
 0x248   : > { %v9387_v29 = vadd.f32 %v6751_v43, %v9258_v61  ;;  %v9390_v50 = vadd.f32 %v6815_v57, %v9261_v12  ;;  %5039 = vmatprep.mubr.bf16.mxu0 %v7997_v15  ;;  %5136 = vmatprep.mubr.bf16.mxu1 %v8000_v28 }
 0x24a   : > { %v6752_v20 = vpop.f32.mrb[168].mxu0  ;;  %v6816_v45 = vpop.f32.mrb[168].mxu1 }
 0x24b   : > { %v6753_v9 = vpop.f32.mrb[169].mxu0  ;;  %v6817_v11 = vpop.f32.mrb[169].mxu1 }
 0x24c   : > { %v6754_v27 = vadd.f32 %v6753_v9, %v6752_v20  ;;  %v6818_v13 = vadd.f32 %v6817_v11, %v6816_v45  ;;  %v6755_v33 = vpop.f32.mrb[170].mxu0  ;;  %v6819_v47 = vpop.f32.mrb[170].mxu1 }
 0x24d   : > { %v6756_v16 = vpop.f32.mrb[171].mxu0  ;;  %v6820_v61 = vpop.f32.mrb[171].mxu1 }
 0x24e   : > { %v9397_v12 = vadd.f32 %v6754_v27, %v9269_v8  ;;  %v9400_v63 = vadd.f32 %v6818_v13, %v9272_v42  ;;  %v6757_v36 = vadd.f32 %v6756_v16, %v6755_v33  ;;  %v6821_v58 = vadd.f32 %v6820_v61, %v6819_v47  ;;  %v8001_v42 = vld [vmem:[%s8177_s15 + $0x6d0] ss:$84 sps:$4 sm:$0xff]   ;;  %v8010_v13 = vld [vmem:[%s8177_s15 + $0x240] ss:$84 sps:$4 sm:$0xff]  }
 0x24f   : > { %5040 = vmatmul.mubr.bf16.gmra.mrb[20].mxu0 %v7995_v46  ;;  %5137 = vmatmul.mubr.bf16.gmra.mrb[20].mxu1 %v7998_v25  ;;  %v8015_v16 = vld [vmem:[%s8177_s15 + $0x824] ss:$84 sps:$4 sm:$0xff]   ;;  %v8018_v61 = vld [vmem:[%s8177_s15 + $0x2ec] ss:$84 sps:$4 sm:$0xff]  }
 0x250   : > { %v9403_v39 = vadd.f32 %v6757_v36, %v9275_v52  ;;  %v9406_v18 = vadd.f32 %v6821_v58, %v9278_v32  ;;  %5047 = vmatprep.mubr.bf16.mxu0 %v8003_v59  ;;  %5144 = vmatprep.mubr.bf16.mxu1 %v8006_v56 }
 0x252   : > { %v6758_v21 = vpop.f32.mrb[172].mxu0  ;;  %v6822_v8 = vpop.f32.mrb[172].mxu1 }
 0x253   : > { %v6759_v44 = vpop.f32.mrb[173].mxu0  ;;  %v6823_v0 = vpop.f32.mrb[173].mxu1 }
 0x254   : > { %v6760_v37 = vadd.f32 %v6759_v44, %v6758_v21  ;;  %v6824_v23 = vadd.f32 %v6823_v0, %v6822_v8  ;;  %v6761_v15 = vpop.f32.mrb[174].mxu0  ;;  %v6825_v28 = vpop.f32.mrb[174].mxu1 }
 0x255   : > { %v6762_v43 = vpop.f32.mrb[175].mxu0  ;;  %v6826_v52 = vpop.f32.mrb[175].mxu1 }
 0x256   : > { %v9413_v32 = vadd.f32 %v6760_v37, %v9285_v31  ;;  %v9416_v57 = vadd.f32 %v6824_v23, %v9288_v5  ;;  %v6763_v20 = vadd.f32 %v6762_v43, %v6761_v15  ;;  %v6827_v45 = vadd.f32 %v6826_v52, %v6825_v28  ;;  %v8007_v5 = vld [vmem:[%s8177_s15 + $0x778] ss:$84 sps:$4 sm:$0xff]   ;;  %v8016_v23 = vld [vmem:[%s8177_s15 + $0x2e8] ss:$84 sps:$4 sm:$0xff]  }
 0x257   : > { %5048 = vmatmul.mubr.bf16.gmra.mrb[24].mxu0 %v8001_v42  ;;  %5145 = vmatmul.mubr.bf16.gmra.mrb[24].mxu1 %v8004_v34  ;;  %v8021_v43 = vld [vmem:[%s8177_s15 + $0x8cc] ss:$84 sps:$4 sm:$0xff]   ;;  %v8024_v52 = vld [vmem:[%s8177_s15 + $0x394] ss:$84 sps:$4 sm:$0xff]  }
 0x258   : > { %v9419_v9 = vadd.f32 %v6763_v20, %v9291_v17  ;;  %v9422_v11 = vadd.f32 %v6827_v45, %v9294_v30  ;;  %5055 = vmatprep.mubr.bf16.mxu0 %v8009_v7  ;;  %5152 = vmatprep.mubr.bf16.mxu1 %v8012_v60 }
 0x25a   : > { %v6828_v46 = vpop.f32.mrb[176].mxu1  ;;  %v6892_v31 = vpop.f32.mrb[176].mxu0 }
 0x25b   : > { %v6829_v25 = vpop.f32.mrb[177].mxu1  ;;  %v6893_v27 = vpop.f32.mrb[177].mxu0 }
 0x25c   : > { %v6830_v33 = vadd.f32 %v6829_v25, %v6828_v46  ;;  %v6894_v47 = vadd.f32 %v6893_v27, %v6892_v31  ;;  %v6831_v59 = vpop.f32.mrb[178].mxu1  ;;  %v6895_v56 = vpop.f32.mrb[178].mxu0 }
 0x25d   : > { %v6832_v36 = vpop.f32.mrb[179].mxu1  ;;  %v6896_v17 = vpop.f32.mrb[179].mxu0 }
 0x25e   : > { %v9429_v30 = vadd.f32 %v6830_v33, %v9301_v53  ;;  %v9432_v58 = vadd.f32 %v6894_v47, %v9304_v35  ;;  %v6833_v21 = vadd.f32 %v6832_v36, %v6831_v59  ;;  %v6897_v8 = vadd.f32 %v6896_v17, %v6895_v56  ;;  %v8013_v35 = vld [vmem:[%s8177_s15 + $0x820] ss:$84 sps:$4 sm:$0xff]   ;;  %v8022_v47 = vld [vmem:[%s8177_s15 + $0x390] ss:$84 sps:$4 sm:$0xff]  }
 0x25f   : > { %5056 = vmatmul.mubr.bf16.gmra.mrb[28].mxu0 %v8007_v5  ;;  %5153 = vmatmul.mubr.bf16.gmra.mrb[28].mxu1 %v8010_v13  ;;  %v8027_v36 = vld [vmem:[%s8177_s15 + $0x974] ss:$84 sps:$4 sm:$0xff]   ;;  %v8030_v17 = vld [vmem:[%s8177_s15 + $0x43c] ss:$84 sps:$4 sm:$0xff]  }
 0x260   : > { %v9435_v44 = vadd.f32 %v6833_v21, %v9307_v41  ;;  %v9438_v0 = vadd.f32 %v6897_v8, %v9310_v48  ;;  %5063 = vmatprep.mubr.bf16.mxu0 %v8015_v16  ;;  %5160 = vmatprep.mubr.bf16.mxu1 %v8018_v61 }
 0x262   : > { %v6834_v42 = vpop.f32.mrb[180].mxu1  ;;  %v6898_v53 = vpop.f32.mrb[180].mxu0 }
 0x263   : > { %v6835_v34 = vpop.f32.mrb[181].mxu1  ;;  %v6899_v37 = vpop.f32.mrb[181].mxu0 }
 0x264   : > { %v6836_v15 = vadd.f32 %v6835_v34, %v6834_v42  ;;  %v6900_v28 = vadd.f32 %v6899_v37, %v6898_v53  ;;  %v6837_v7 = vpop.f32.mrb[182].mxu1  ;;  %v6901_v60 = vpop.f32.mrb[182].mxu0 }
 0x265   : > { %v6838_v20 = vpop.f32.mrb[183].mxu1  ;;  %v6902_v41 = vpop.f32.mrb[183].mxu0 }
 0x266   : > { %v9445_v48 = vadd.f32 %v6836_v15, %v9317_v3  ;;  %v9448_v45 = vadd.f32 %v6900_v28, %v9320_v2  ;;  %v6839_v46 = vadd.f32 %v6838_v20, %v6837_v7  ;;  %v6903_v31 = vadd.f32 %v6902_v41, %v6901_v60  ;;  %v8019_v2 = vld [vmem:[%s8177_s15 + $0x8c8] ss:$84 sps:$4 sm:$0xff]   ;;  %v8028_v28 = vld [vmem:[%s8177_s15 + $0x438] ss:$84 sps:$4 sm:$0xff]  }
 0x267   : > { %5064 = vmatmul.mubr.bf16.gmra.mrb[32].mxu0 %v8013_v35  ;;  %5161 = vmatmul.mubr.bf16.gmra.mrb[32].mxu1 %v8016_v23  ;;  %v8033_v20 = vld [vmem:[%s8177_s15 + $0xa1c] ss:$84 sps:$4 sm:$0xff]   ;;  %v8036_v41 = vld [vmem:[%s8177_s15 + $0x4e4] ss:$84 sps:$4 sm:$0xff]  }
 0x268   : > { %v9451_v25 = vadd.f32 %v6839_v46, %v9323_v19  ;;  %v9454_v27 = vadd.f32 %v6903_v31, %v9326_v22  ;;  %5071 = vmatprep.mubr.bf16.mxu0 %v8021_v43  ;;  %5168 = vmatprep.mubr.bf16.mxu1 %v8024_v52 }
 0x26a   : > { %v6840_v5 = vpop.f32.mrb[184].mxu1  ;;  %v6904_v3 = vpop.f32.mrb[184].mxu0 }
 0x26b   : > { %v6841_v13 = vpop.f32.mrb[185].mxu1  ;;  %v6905_v33 = vpop.f32.mrb[185].mxu0 }
 0x26c   : > { %v6842_v59 = vadd.f32 %v6841_v13, %v6840_v5  ;;  %v6906_v56 = vadd.f32 %v6905_v33, %v6904_v3  ;;  %v6843_v16 = vpop.f32.mrb[186].mxu1  ;;  %v6907_v61 = vpop.f32.mrb[186].mxu0 }
 0x26d   : > { %v6844_v21 = vpop.f32.mrb[187].mxu1  ;;  %v6908_v19 = vpop.f32.mrb[187].mxu0 }
 0x26e   : > { %v9461_v22 = vadd.f32 %v6842_v59, %v9333_v4  ;;  %v9464_v8 = vadd.f32 %v6906_v56, %v9336_v55  ;;  %v6845_v42 = vadd.f32 %v6844_v21, %v6843_v16  ;;  %v6909_v53 = vadd.f32 %v6908_v19, %v6907_v61  ;;  %v8025_v55 = vld [vmem:[%s8177_s15 + $0x970] ss:$84 sps:$4 sm:$0xff]   ;;  %v8034_v56 = vld [vmem:[%s8177_s15 + $0x4e0] ss:$84 sps:$4 sm:$0xff]  }
 0x26f   : > { %5072 = vmatmul.mubr.bf16.gmra.mrb[36].mxu0 %v8019_v2  ;;  %5169 = vmatmul.mubr.bf16.gmra.mrb[36].mxu1 %v8022_v47  ;;  %v8039_v21 = vld [vmem:[%s8177_s15 + $0x58c] ss:$84 sps:$4 sm:$0xff]   ;;  %v8040_v19 = vld [vmem:[%s8177_s15 + $0x50] ss:$84 sps:$4 sm:$0xff]  }
 0x270   : > { %v9467_v34 = vadd.f32 %v6845_v42, %v9339_v14  ;;  %v9470_v37 = vadd.f32 %v6909_v53, %v9342_v24  ;;  %5079 = vmatprep.mubr.bf16.mxu0 %v8027_v36  ;;  %5176 = vmatprep.mubr.bf16.mxu1 %v8030_v17 }
 0x272   : > { %v6846_v35 = vpop.f32.mrb[188].mxu1  ;;  %v6910_v4 = vpop.f32.mrb[188].mxu0 }
 0x273   : > { %v6847_v23 = vpop.f32.mrb[189].mxu1  ;;  %v6911_v15 = vpop.f32.mrb[189].mxu0 }
 0x274   : > { %v6848_v7 = vadd.f32 %v6847_v23, %v6846_v35  ;;  %v6912_v60 = vadd.f32 %v6911_v15, %v6910_v4  ;;  %v6849_v43 = vpop.f32.mrb[190].mxu1  ;;  %v6913_v52 = vpop.f32.mrb[190].mxu0 }
 0x275   : > { %v6850_v46 = vpop.f32.mrb[191].mxu1  ;;  %v6914_v14 = vpop.f32.mrb[191].mxu0 }
 0x276   : > { %v9477_v24 = vadd.f32 %v6848_v7, %v9349_v49  ;;  %v9480_v31 = vadd.f32 %v6912_v60, %v9352_v38  ;;  %v6851_v5 = vadd.f32 %v6850_v46, %v6849_v43  ;;  %v6915_v3 = vadd.f32 %v6914_v14, %v6913_v52  ;;  %v8031_v38 = vld [vmem:[%s8177_s15 + $0xa18] ss:$84 sps:$4 sm:$0xff]   ;;  %v8037_v7 = vld [vmem:[%s8177_s15 + $0x588] ss:$84 sps:$4 sm:$0xff]   ;;  %v8045_v14 = vld [vmem:[%s8177_s15 + $0x1a0] ss:$84 sps:$4 sm:$0xff]  }
 0x277   : > { %5080 = vmatmul.mubr.bf16.gmra.mrb[40].mxu0 %v8025_v55  ;;  %5177 = vmatmul.mubr.bf16.gmra.mrb[40].mxu1 %v8028_v28  ;;  %v8041_v60 = vld [vmem:[%s8177_s15 + $0xf8] ss:$84 sps:$4 sm:$0xff]   ;;  %v8044_v46 = vld [vmem:[%s8177_s15 + $0x634] ss:$84 sps:$4 sm:$0xff]  }
 0x278   : > { %v9483_v13 = vadd.f32 %v6851_v5, %v9355_v40  ;;  %v9486_v33 = vadd.f32 %v6915_v3, %v9358_v6  ;;  %5087 = vmatprep.mubr.bf16.mxu0 %v8033_v20  ;;  %5184 = vmatprep.mubr.bf16.mxu1 %v8036_v41 }
 0x27a   : > { %v6852_v2 = vpop.f32.mrb[192].mxu1  ;;  %v6916_v49 = vpop.f32.mrb[192].mxu0 }
 0x27b   : > { %v6853_v47 = vpop.f32.mrb[193].mxu1  ;;  %v6917_v59 = vpop.f32.mrb[193].mxu0 }
 0x27c   : > { %v6854_v16 = vadd.f32 %v6853_v47, %v6852_v2  ;;  %v6918_v61 = vadd.f32 %v6917_v59, %v6916_v49  ;;  %v6855_v36 = vpop.f32.mrb[194].mxu1  ;;  %v6919_v17 = vpop.f32.mrb[194].mxu0 }
 0x27d   : > { %v6856_v42 = vpop.f32.mrb[195].mxu1  ;;  %v6920_v40 = vpop.f32.mrb[195].mxu0 }
 0x27e   : > { %v9493_v6 = vadd.f32 %v6854_v16, %v9365_v26  ;;  %v9496_v53 = vadd.f32 %v6918_v61, %v9368_v1  ;;  %v6857_v35 = vadd.f32 %v6856_v42, %v6855_v36  ;;  %v6921_v4 = vadd.f32 %v6920_v40, %v6919_v17  ;;  %v8042_v16 = vld [vmem:[%s8177_s15 + $0x630] ss:$84 sps:$4 sm:$0xff]   ;;  %v8046_v61 = vld [vmem:[%s8177_s15 + $0x248] ss:$84 sps:$4 sm:$0xff]  }
 0x27f   : > { %5088 = vmatmul.mubr.bf16.gmra.mrb[44].mxu0 %v8031_v38  ;;  %5185 = vmatmul.mubr.bf16.gmra.mrb[44].mxu1 %v8034_v56  ;;  %v8049_v42 = vld [vmem:[%s8177_s15 + $0x6dc] ss:$84 sps:$4 sm:$0xff]  }
 0x280   : > { %v9499_v23 = vadd.f32 %v6857_v35, %v9371_v51  ;;  %v9502_v15 = vadd.f32 %v6921_v4, %v9374_v54  ;;  %5192 = vmatprep.mubr.bf16.mxu1 %v8039_v21  ;;  %7346 = vmatprep.mubr.msk.bf16.mxu0 %vm3598_vm0, %v8040_v19  ;;  %v8050_v40 = vld [vmem:[%s8177_s15 + $0x2f0] ss:$84 sps:$4 sm:$0xff]  }
 0x282   : > { %v6858_v26 = vpop.f32.mrb[196].mxu1  ;;  %v6922_v55 = vpop.f32.mrb[196].mxu0 }
 0x283   : > { %v6859_v28 = vpop.f32.mrb[197].mxu1  ;;  %v6923_v1 = vpop.f32.mrb[197].mxu0 }
 0x284   : > { %v6860_v43 = vadd.f32 %v6859_v28, %v6858_v26  ;;  %v6924_v52 = vadd.f32 %v6923_v1, %v6922_v55  ;;  %v6861_v20 = vpop.f32.mrb[198].mxu1  ;;  %v6925_v41 = vpop.f32.mrb[198].mxu0 }
 0x285   : > { %v6862_v51 = vpop.f32.mrb[199].mxu1  ;;  %v6926_v5 = vpop.f32.mrb[199].mxu0 }
 0x286   : > { %v9510_v54 = vadd.f32 %v6860_v43, %v9381_v10  ;;  %v9513_v3 = vadd.f32 %v6924_v52, %v9384_v62  ;;  %v6863_v2 = vadd.f32 %v6862_v51, %v6861_v20  ;;  %v6927_v49 = vadd.f32 %v6926_v5, %v6925_v41  ;;  %v8047_v43 = vld [vmem:[%s8177_s15 + $0x6d8] ss:$84 sps:$4 sm:$0xff]   ;;  %v8055_v5 = vld [vmem:[%s8177_s15 + $0x440] ss:$84 sps:$4 sm:$0xff]  }
 0x287   : > { %5193 = vmatmul.mubr.bf16.gmra.mrb[48].mxu1 %v8037_v7  ;;  %7347 = vmatmul.mubr.msk.bf16.vlgmr.msra.gmra.mrb[48].mxu0 %vm3598_vm0, %v8041_v60  ;;  %v8051_v52 = vld [vmem:[%s8177_s15 + $0x398] ss:$84 sps:$4 sm:$0xff]  }
 0x288   : > { %v9517_v47 = vadd.f32 %v6863_v2, %v9387_v29  ;;  %v9520_v59 = vadd.f32 %v6927_v49, %v9390_v50  ;;  %5200 = vmatprep.mubr.bf16.mxu1 %v8044_v46  ;;  %7350 = vmatprep.mubr.msk.bf16.mxu0 %vm3598_vm0, %v8045_v14  ;;  %v8054_v51 = vld [vmem:[%s8177_s15 + $0x784] ss:$84 sps:$4 sm:$0xff]  }
 0x28a   : > { %v6864_v10 = vpop.f32.mrb[200].mxu1  ;;  %v6928_v38 = vpop.f32.mrb[200].mxu0 }
 0x28b   : > { %v6865_v62 = vpop.f32.mrb[201].mxu1  ;;  %v6929_v56 = vpop.f32.mrb[201].mxu0 }
 0x28c   : > { %v6866_v36 = vadd.f32 %v6865_v62, %v6864_v10  ;;  %v6930_v17 = vadd.f32 %v6929_v56, %v6928_v38  ;;  %v6867_v21 = vpop.f32.mrb[202].mxu1  ;;  %v6931_v19 = vpop.f32.mrb[202].mxu0 }
 0x28d   : > { %v6868_v29 = vpop.f32.mrb[203].mxu1  ;;  %v6932_v35 = vpop.f32.mrb[203].mxu0 }
 0x28e   : > { %v9528_v50 = vadd.f32 %v6866_v36, %v9397_v12  ;;  %v9531_v4 = vadd.f32 %v6930_v17, %v9400_v63  ;;  %v6869_v26 = vadd.f32 %v6868_v29, %v6867_v21  ;;  %v6933_v55 = vadd.f32 %v6932_v35, %v6931_v19  ;;  %v8052_v36 = vld [vmem:[%s8177_s15 + $0x780] ss:$84 sps:$4 sm:$0xff]   ;;  %v8056_v17 = vld [vmem:[%s8177_s15 + $0x4e8] ss:$84 sps:$4 sm:$0xff]   ;;  %v8060_v35 = vld [vmem:[%s8177_s15 + $0x590] ss:$84 sps:$4 sm:$0xff]  }
 0x28f   : > { %5201 = vmatmul.mubr.bf16.gmra.mrb[52].mxu1 %v8042_v16  ;;  %7351 = vmatmul.mubr.msk.bf16.gmra.mrb[52].mxu0 %vm3598_vm0, %v8046_v61  ;;  %v8059_v29 = vld [vmem:[%s8177_s15 + $0x82c] ss:$84 sps:$4 sm:$0xff]  }
 0x290   : > { %v9535_v28 = vadd.f32 %v6869_v26, %v9403_v39  ;;  %v9538_v1 = vadd.f32 %v6933_v55, %v9406_v18  ;;  %5208 = vmatprep.mubr.bf16.mxu1 %v8049_v42  ;;  %7354 = vmatprep.mubr.msk.bf16.mxu0 %vm3598_vm0, %v8050_v40 }
 0x292   : > { %v6870_v12 = vpop.f32.mrb[204].mxu1  ;;  %v6934_v7 = vpop.f32.mrb[204].mxu0 }
 0x293   : > { %v6871_v63 = vpop.f32.mrb[205].mxu1  ;;  %v6935_v60 = vpop.f32.mrb[205].mxu0 }
 0x294   : > { %v6872_v20 = vadd.f32 %v6871_v63, %v6870_v12  ;;  %v6936_v41 = vadd.f32 %v6935_v60, %v6934_v7  ;;  %v6873_v46 = vpop.f32.mrb[206].mxu1  ;;  %v6937_v14 = vpop.f32.mrb[206].mxu0 }
 0x295   : > { %v6874_v39 = vpop.f32.mrb[207].mxu1  ;;  %v6938_v2 = vpop.f32.mrb[207].mxu0 }
 0x296   : > { %v9546_v18 = vadd.f32 %v6872_v20, %v9413_v32  ;;  %v9549_v49 = vadd.f32 %v6936_v41, %v9416_v57  ;;  %v6875_v10 = vadd.f32 %v6874_v39, %v6873_v46  ;;  %v6939_v38 = vadd.f32 %v6938_v2, %v6937_v14  ;;  %v8057_v20 = vld [vmem:[%s8177_s15 + $0x828] ss:$84 sps:$4 sm:$0xff]   ;;  %v8061_v41 = vld [vmem:[%s8177_s15 + $0x638] ss:$84 sps:$4 sm:$0xff]   ;;  %v8065_v2 = vld [vmem:[%s8177_s15 + $0x6e0] ss:$84 sps:$4 sm:$0xff]  }
 0x297   : > { %5209 = vmatmul.mubr.bf16.gmra.mrb[56].mxu1 %v8047_v43  ;;  %7355 = vmatmul.mubr.msk.bf16.gmra.mrb[56].mxu0 %vm3598_vm0, %v8051_v52  ;;  %v8064_v39 = vld [vmem:[%s8177_s15 + $0x8d4] ss:$84 sps:$4 sm:$0xff]  }
 0x298   : > { %v9553_v62 = vadd.f32 %v6875_v10, %v9419_v9  ;;  %v9556_v56 = vadd.f32 %v6939_v38, %v9422_v11  ;;  %5216 = vmatprep.mubr.bf16.mxu1 %v8054_v51  ;;  %7358 = vmatprep.mubr.msk.bf16.mxu0 %vm3598_vm0, %v8055_v5 }
 0x29a   : > { %v6940_v32 = vpop.f32.mrb[208].mxu0  ;;  %v7004_v16 = vpop.f32.mrb[208].mxu1 }
 0x29b   : > { %v6941_v57 = vpop.f32.mrb[209].mxu0  ;;  %v7005_v61 = vpop.f32.mrb[209].mxu1 }
 0x29c   : > { %v6942_v21 = vadd.f32 %v6941_v57, %v6940_v32  ;;  %v7006_v19 = vadd.f32 %v7005_v61, %v7004_v16  ;;  %v6943_v42 = vpop.f32.mrb[210].mxu0  ;;  %v7007_v40 = vpop.f32.mrb[210].mxu1 }
 0x29d   : > { %v6944_v9 = vpop.f32.mrb[211].mxu0  ;;  %v7008_v26 = vpop.f32.mrb[211].mxu1 }
 0x29e   : > { %v9564_v11 = vadd.f32 %v6942_v21, %v9429_v30  ;;  %v9567_v55 = vadd.f32 %v7006_v19, %v9432_v58  ;;  %v6945_v12 = vadd.f32 %v6944_v9, %v6943_v42  ;;  %v7009_v7 = vadd.f32 %v7008_v26, %v7007_v40  ;;  %v8062_v21 = vld [vmem:[%s8177_s15 + $0x8d0] ss:$84 sps:$4 sm:$0xff]   ;;  %v8066_v19 = vld [vmem:[%s8177_s15 + $0x788] ss:$84 sps:$4 sm:$0xff]  }
 0x29f   : > { %5217 = vmatmul.mubr.bf16.gmra.mrb[60].mxu1 %v8052_v36  ;;  %7359 = vmatmul.mubr.msk.bf16.gmra.mrb[60].mxu0 %vm3598_vm0, %v8056_v17  ;;  %v8069_v9 = vld [vmem:[%s8177_s15 + $0x97c] ss:$84 sps:$4 sm:$0xff]  }
 0x2a0   : > { %v9571_v63 = vadd.f32 %v6945_v12, %v9435_v44  ;;  %v9574_v60 = vadd.f32 %v7009_v7, %v9438_v0  ;;  %5224 = vmatprep.mubr.bf16.mxu1 %v8059_v29  ;;  %7362 = vmatprep.mubr.msk.bf16.mxu0 %vm3598_vm0, %v8060_v35  ;;  %v8070_v26 = vld [vmem:[%s8177_s15 + $0x830] ss:$84 sps:$4 sm:$0xff]  }
 0x2a2   : > { %v6946_v30 = vpop.f32.mrb[212].mxu0  ;;  %v7010_v43 = vpop.f32.mrb[212].mxu1 }
 0x2a3   : > { %v6947_v58 = vpop.f32.mrb[213].mxu0  ;;  %v7011_v52 = vpop.f32.mrb[213].mxu1 }
 0x2a4   : > { %v6948_v46 = vadd.f32 %v6947_v58, %v6946_v30  ;;  %v7012_v14 = vadd.f32 %v7011_v52, %v7010_v43  ;;  %v6949_v51 = vpop.f32.mrb[214].mxu0  ;;  %v7013_v5 = vpop.f32.mrb[214].mxu1 }
 0x2a5   : > { %v6950_v44 = vpop.f32.mrb[215].mxu0  ;;  %v7014_v10 = vpop.f32.mrb[215].mxu1 }
 0x2a6   : > { %v9582_v0 = vadd.f32 %v6948_v46, %v9445_v48  ;;  %v9585_v38 = vadd.f32 %v7012_v14, %v9448_v45  ;;  %v6951_v32 = vadd.f32 %v6950_v44, %v6949_v51  ;;  %v7015_v16 = vadd.f32 %v7014_v10, %v7013_v5  ;;  %v8067_v46 = vld [vmem:[%s8177_s15 + $0x978] ss:$84 sps:$4 sm:$0xff]   ;;  %v8075_v10 = vld [vmem:[%s8177_s15 + $0x980] ss:$84 sps:$4 sm:$0xff]  }
 0x2a7   : > { %5225 = vmatmul.mubr.bf16.gmra.mrb[64].mxu1 %v8057_v20  ;;  %7363 = vmatmul.mubr.msk.bf16.gmra.mrb[64].mxu0 %vm3598_vm0, %v8061_v41  ;;  %v8071_v14 = vld [vmem:[%s8177_s15 + $0x8d8] ss:$84 sps:$4 sm:$0xff]  }
 0x2a8   : > { %v9589_v57 = vadd.f32 %v6951_v32, %v9451_v25  ;;  %v9592_v61 = vadd.f32 %v7015_v16, %v9454_v27  ;;  %5232 = vmatprep.mubr.bf16.mxu1 %v8064_v39  ;;  %7366 = vmatprep.mubr.msk.bf16.mxu0 %vm3598_vm0, %v8065_v2  ;;  %v8074_v44 = vld [vmem:[%s8177_s15 + $0xa24] ss:$84 sps:$4 sm:$0xff]  }
 0x2aa   : > { %v6952_v48 = vpop.f32.mrb[216].mxu0  ;;  %v7016_v36 = vpop.f32.mrb[216].mxu1 }
 0x2ab   : > { %v6953_v45 = vpop.f32.mrb[217].mxu0  ;;  %v7017_v17 = vpop.f32.mrb[217].mxu1 }
 0x2ac   : > { %v6954_v42 = vadd.f32 %v6953_v45, %v6952_v48  ;;  %v7018_v40 = vadd.f32 %v7017_v17, %v7016_v36  ;;  %v6955_v29 = vpop.f32.mrb[218].mxu0  ;;  %v7019_v35 = vpop.f32.mrb[218].mxu1 }
 0x2ad   : > { %v6956_v25 = vpop.f32.mrb[219].mxu0  ;;  %v7020_v12 = vpop.f32.mrb[219].mxu1 }
 0x2ae   : > { %v9600_v27 = vadd.f32 %v6954_v42, %v9461_v22  ;;  %v9603_v7 = vadd.f32 %v7018_v40, %v9464_v8  ;;  %v6957_v30 = vadd.f32 %v6956_v25, %v6955_v29  ;;  %v7021_v43 = vadd.f32 %v7020_v12, %v7019_v35  ;;  %v8076_v40 = vld [vmem:[%s8177_s15 + $0xa28] ss:$84 sps:$4 sm:$0xff]  }
 0x2af   : > { %5233 = vmatmul.mubr.bf16.gmra.mrb[68].mxu1 %v8062_v21  ;;  %7367 = vmatmul.mubr.msk.bf16.gmra.mrb[68].mxu0 %vm3598_vm0, %v8066_v19 }
 0x2b0   : > { %v9607_v58 = vadd.f32 %v6957_v30, %v9467_v34  ;;  %v9610_v52 = vadd.f32 %v7021_v43, %v9470_v37  ;;  %5240 = vmatprep.mubr.bf16.mxu1 %v8069_v9  ;;  %7370 = vmatprep.mubr.msk.bf16.mxu0 %vm3598_vm0, %v8070_v26 }
 0x2b2   : > { %v6958_v22 = vpop.f32.mrb[220].mxu0  ;;  %v7022_v20 = vpop.f32.mrb[220].mxu1 }
 0x2b3   : > { %v6959_v8 = vpop.f32.mrb[221].mxu0  ;;  %v7023_v41 = vpop.f32.mrb[221].mxu1 }
 0x2b4   : > { %v6960_v51 = vadd.f32 %v6959_v8, %v6958_v22  ;;  %v7024_v5 = vadd.f32 %v7023_v41, %v7022_v20  ;;  %v6961_v39 = vpop.f32.mrb[222].mxu0  ;;  %v7025_v2 = vpop.f32.mrb[222].mxu1 }
 0x2b5   : > { %v6962_v34 = vpop.f32.mrb[223].mxu0  ;;  %v7026_v32 = vpop.f32.mrb[223].mxu1 }
 0x2b6   : > { %v9618_v37 = vadd.f32 %v6960_v51, %v9477_v24  ;;  %v9621_v16 = vadd.f32 %v7024_v5, %v9480_v31  ;;  %v6963_v48 = vadd.f32 %v6962_v34, %v6961_v39  ;;  %v7027_v36 = vadd.f32 %v7026_v32, %v7025_v2  ;;  %v8072_v31 = vld [vmem:[%s8177_s15 + $0xa20] ss:$84 sps:$4 sm:$0xff]  }
 0x2b7   : > { %5241 = vmatmul.mubr.bf16.gmra.mrb[72].mxu1 %v8067_v46  ;;  %7371 = vmatmul.mubr.msk.bf16.gmra.mrb[72].mxu0 %vm3598_vm0, %v8071_v14 }
 0x2b8   : > { %v9625_v45 = vadd.f32 %v6963_v48, %v9483_v13  ;;  %v9628_v17 = vadd.f32 %v7027_v36, %v9486_v33  ;;  %5248 = vmatprep.mubr.bf16.mxu1 %v8074_v44  ;;  %7374 = vmatprep.mubr.msk.bf16.mxu0 %vm3598_vm0, %v8075_v10 }
 0x2ba   : > { %v6964_v21 = vpop.f32.mrb[224].mxu0  ;;  %v7028_v24 = vpop.f32.mrb[224].mxu1 }
 0x2bb   : > { %v6965_v19 = vpop.f32.mrb[225].mxu0  ;;  %v7029_v42 = vpop.f32.mrb[225].mxu1 }
 0x2bc   : > { %v6966_v29 = vadd.f32 %v6965_v19, %v6964_v21  ;;  %v7030_v35 = vadd.f32 %v7029_v42, %v7028_v24  ;;  %v6967_v9 = vpop.f32.mrb[226].mxu0  ;;  %v7031_v26 = vpop.f32.mrb[226].mxu1 }
 0x2bd   : > { %v6968_v25 = vpop.f32.mrb[227].mxu0  ;;  %v7032_v12 = vpop.f32.mrb[227].mxu1 }
 0x2be   : > { %v9634_v13 = vadd.f32 %v6966_v29, %v9493_v6  ;;  %v9637_v33 = vadd.f32 %v7030_v35, %v9496_v53  ;;  %v6969_v30 = vadd.f32 %v6968_v25, %v6967_v9  ;;  %v7033_v43 = vadd.f32 %v7032_v12, %v7031_v26 }
 0x2bf   : > { %5249 = vmatmul.mubr.bf16.gmra.mrb[76].mxu1 %v8072_v31  ;;  %7375 = vmatmul.mubr.msk.bf16.gmra.mrb[76].mxu0 %vm3598_vm0, %v8076_v40 }
 0x2c0   : > { %v9641_v22 = vadd.f32 %v6969_v30, %v9499_v23  ;;  %v9644_v20 = vadd.f32 %v7033_v43, %v9502_v15 }
 0x2c2   : > { %v6970_v8 = vpop.f32.mrb[228].mxu0  ;;  %v7034_v41 = vpop.f32.mrb[228].mxu1 }
 0x2c3   : > { %v6971_v46 = vpop.f32.mrb[229].mxu0  ;;  %v7035_v14 = vpop.f32.mrb[229].mxu1 }
 0x2c4   : > { %v6972_v6 = vadd.f32 %v6971_v46, %v6970_v8  ;;  %v7036_v51 = vadd.f32 %v7035_v14, %v7034_v41  ;;  %v6973_v5 = vpop.f32.mrb[230].mxu0  ;;  %v7037_v53 = vpop.f32.mrb[230].mxu1 }
 0x2c5   : > { %v6974_v39 = vpop.f32.mrb[231].mxu0  ;;  %v7038_v2 = vpop.f32.mrb[231].mxu1 }
 0x2c6   : > { %v9647_v44 = vadd.f32 %v6972_v6, %v9510_v54  ;;  %v9650_v10 = vadd.f32 %v7036_v51, %v9513_v3  ;;  %v6975_v23 = vadd.f32 %v6974_v39, %v6973_v5  ;;  %v7039_v34 = vadd.f32 %v7038_v2, %v7037_v53 }
 0x2c8   : > { %v9653_v15 = vadd.f32 %v6975_v23, %v9517_v47  ;;  %v9656_v32 = vadd.f32 %v7039_v34, %v9520_v59 }
 0x2ca   : > { %v6976_v48 = vpop.f32.mrb[232].mxu0  ;;  %v7040_v36 = vpop.f32.mrb[232].mxu1 }
 0x2cb   : > { %v6977_v21 = vpop.f32.mrb[233].mxu0  ;;  %v7041_v24 = vpop.f32.mrb[233].mxu1 }
 0x2cc   : > { %v6978_v19 = vadd.f32 %v6977_v21, %v6976_v48  ;;  %v7042_v42 = vadd.f32 %v7041_v24, %v7040_v36  ;;  %v6979_v31 = vpop.f32.mrb[234].mxu0  ;;  %v7043_v54 = vpop.f32.mrb[234].mxu1 }
 0x2cd   : > { %v6980_v40 = vpop.f32.mrb[235].mxu0  ;;  %v7044_v29 = vpop.f32.mrb[235].mxu1 }
 0x2ce   : > { %v9659_v3 = vadd.f32 %v6978_v19, %v9528_v50  ;;  %v9662_v35 = vadd.f32 %v7042_v42, %v9531_v4  ;;  %v6981_v47 = vadd.f32 %v6980_v40, %v6979_v31  ;;  %v7045_v9 = vadd.f32 %v7044_v29, %v7043_v54 }
 0x2d0   : > { %v9665_v59 = vadd.f32 %v6981_v47, %v9535_v28  ;;  %v9668_v26 = vadd.f32 %v7045_v9, %v9538_v1 }
 0x2d2   : > { %v6982_v25 = vpop.f32.mrb[236].mxu0  ;;  %v7046_v12 = vpop.f32.mrb[236].mxu1 }
 0x2d3   : > { %v6983_v30 = vpop.f32.mrb[237].mxu0  ;;  %v7047_v43 = vpop.f32.mrb[237].mxu1 }
 0x2d4   : > { %v6984_v8 = vadd.f32 %v6983_v30, %v6982_v25  ;;  %v7048_v41 = vadd.f32 %v7047_v43, %v7046_v12  ;;  %v6985_v46 = vpop.f32.mrb[238].mxu0  ;;  %v7049_v50 = vpop.f32.mrb[238].mxu1 }
 0x2d5   : > { %v6986_v14 = vpop.f32.mrb[239].mxu0  ;;  %v7050_v6 = vpop.f32.mrb[239].mxu1 }
 0x2d6   : > { %v9671_v4 = vadd.f32 %v6984_v8, %v9546_v18  ;;  %v9674_v51 = vadd.f32 %v7048_v41, %v9549_v49  ;;  %v6987_v28 = vadd.f32 %v6986_v14, %v6985_v46  ;;  %v7051_v5 = vadd.f32 %v7050_v6, %v7049_v50 }
 0x2d8   : > { %v9677_v1 = vadd.f32 %v6987_v28, %v9553_v62  ;;  %v9680_v53 = vadd.f32 %v7051_v5, %v9556_v56 }
 0x2da   : > { %v7052_v39 = vpop.f32.mrb[240].mxu1  ;;  %v7116_v2 = vpop.f32.mrb[240].mxu0 }
 0x2db   : > { %v7053_v23 = vpop.f32.mrb[241].mxu1  ;;  %v7117_v34 = vpop.f32.mrb[241].mxu0 }
 0x2dc   : > { %v7054_v48 = vadd.f32 %v7053_v23, %v7052_v39  ;;  %v7118_v36 = vadd.f32 %v7117_v34, %v7116_v2  ;;  %v7055_v21 = vpop.f32.mrb[242].mxu1  ;;  %v7119_v18 = vpop.f32.mrb[242].mxu0 }
 0x2dd   : > { %v7056_v24 = vpop.f32.mrb[243].mxu1  ;;  %v7120_v19 = vpop.f32.mrb[243].mxu0 }
 0x2de   : > { %v9683_v49 = vadd.f32 %v7054_v48, %v9564_v11  ;;  %v9686_v42 = vadd.f32 %v7118_v36, %v9567_v55  ;;  %v7057_v62 = vadd.f32 %v7056_v24, %v7055_v21  ;;  %v7121_v31 = vadd.f32 %v7120_v19, %v7119_v18 }
 0x2e0   : > { %v9689_v56 = vadd.f32 %v7057_v62, %v9571_v63  ;;  %v9692_v54 = vadd.f32 %v7121_v31, %v9574_v60 }
 0x2e2   : > { %v7058_v40 = vpop.f32.mrb[244].mxu1  ;;  %v7122_v29 = vpop.f32.mrb[244].mxu0 }
 0x2e3   : > { %v7059_v47 = vpop.f32.mrb[245].mxu1  ;;  %v7123_v9 = vpop.f32.mrb[245].mxu0 }
 0x2e4   : > { %v7060_v25 = vadd.f32 %v7059_v47, %v7058_v40  ;;  %v7124_v12 = vadd.f32 %v7123_v9, %v7122_v29  ;;  %v7061_v30 = vpop.f32.mrb[246].mxu1  ;;  %v7125_v11 = vpop.f32.mrb[246].mxu0 }
 0x2e5   : > { %v7062_v43 = vpop.f32.mrb[247].mxu1  ;;  %v7126_v8 = vpop.f32.mrb[247].mxu0 }
 0x2e6   : > { %v9695_v55 = vadd.f32 %v7060_v25, %v9582_v0  ;;  %v9698_v41 = vadd.f32 %v7124_v12, %v9585_v38  ;;  %v7063_v63 = vadd.f32 %v7062_v43, %v7061_v30  ;;  %v7127_v46 = vadd.f32 %v7126_v8, %v7125_v11 }
 0x2e8   : > { %v9701_v60 = vadd.f32 %v7063_v63, %v9589_v57  ;;  %v9704_v50 = vadd.f32 %v7127_v46, %v9592_v61 }
 0x2ea   : > { %v7064_v14 = vpop.f32.mrb[248].mxu1  ;;  %v7128_v6 = vpop.f32.mrb[248].mxu0 }
 0x2eb   : > { %v7065_v28 = vpop.f32.mrb[249].mxu1  ;;  %v7129_v5 = vpop.f32.mrb[249].mxu0 }
 0x2ec   : > { %v7066_v39 = vadd.f32 %v7065_v28, %v7064_v14  ;;  %v7130_v2 = vadd.f32 %v7129_v5, %v7128_v6  ;;  %v7067_v23 = vpop.f32.mrb[250].mxu1  ;;  %v7131_v0 = vpop.f32.mrb[250].mxu0 }
 0x2ed   : > { %v7068_v34 = vpop.f32.mrb[251].mxu1  ;;  %v7132_v48 = vpop.f32.mrb[251].mxu0 }
 0x2ee   : > { %v9707_v38 = vadd.f32 %v7066_v39, %v9600_v27  ;;  %v9710_v36 = vadd.f32 %v7130_v2, %v9603_v7  ;;  %v7069_v57 = vadd.f32 %v7068_v34, %v7067_v23  ;;  %v7133_v21 = vadd.f32 %v7132_v48, %v7131_v0 }
 0x2f0   : > { %v9713_v61 = vadd.f32 %v7069_v57, %v9607_v58  ;;  %v9716_v18 = vadd.f32 %v7133_v21, %v9610_v52 }
 0x2f2   : > { %v7070_v24 = vpop.f32.mrb[252].mxu1  ;;  %v7134_v19 = vpop.f32.mrb[252].mxu0 }
 0x2f3   : > { %v7071_v62 = vpop.f32.mrb[253].mxu1  ;;  %v7135_v31 = vpop.f32.mrb[253].mxu0 }
 0x2f4   : > { %v7072_v40 = vadd.f32 %v7071_v62, %v7070_v24  ;;  %v7136_v29 = vadd.f32 %v7135_v31, %v7134_v19  ;;  %v7073_v47 = vpop.f32.mrb[254].mxu1  ;;  %v7137_v27 = vpop.f32.mrb[254].mxu0 }
 0x2f5   : > { %v7074_v9 = vpop.f32.mrb[255].mxu1  ;;  %v7138_v25 = vpop.f32.mrb[255].mxu0 }
 0x2f6   : > { %v9719_v7 = vadd.f32 %v7072_v40, %v9618_v37  ;;  %v9722_v12 = vadd.f32 %v7136_v29, %v9621_v16  ;;  %v7075_v58 = vadd.f32 %v7074_v9, %v7073_v47  ;;  %v7139_v30 = vadd.f32 %v7138_v25, %v7137_v27 }
 0x2f8   : > { %v9725_v52 = vadd.f32 %v7075_v58, %v9625_v45  ;;  %v9728_v11 = vadd.f32 %v7139_v30, %v9628_v17 }
 0x2fa   : > { %v7076_v43 = vpop.f32.mrb[0].mxu1  ;;  %v7140_v8 = vpop.f32.mrb[0].mxu0 }
 0x2fb   : > { %v7077_v63 = vpop.f32.mrb[1].mxu1  ;;  %v7141_v46 = vpop.f32.mrb[1].mxu0 }
 0x2fc   : > { %v7078_v14 = vadd.f32 %v7077_v63, %v7076_v43  ;;  %v7142_v6 = vadd.f32 %v7141_v46, %v7140_v8  ;;  %v7079_v28 = vpop.f32.mrb[2].mxu1  ;;  %v7143_v37 = vpop.f32.mrb[2].mxu0 }
 0x2fd   : > { %v7080_v5 = vpop.f32.mrb[3].mxu1  ;;  %v7144_v39 = vpop.f32.mrb[3].mxu0 }
 0x2fe   : > { %v9731_v16 = vadd.f32 %v7078_v14, %v9634_v13  ;;  %v9734_v2 = vadd.f32 %v7142_v6, %v9637_v33  ;;  %v7081_v45 = vadd.f32 %v7080_v5, %v7079_v28  ;;  %v7145_v23 = vadd.f32 %v7144_v39, %v7143_v37 }
 0x300   : > { %v9737_v17 = vadd.f32 %v7081_v45, %v9641_v22  ;;  %v9740_v0 = vadd.f32 %v7145_v23, %v9644_v20 }
 0x302   : > { %v7082_v34 = vpop.f32.mrb[4].mxu1  ;;  %v7146_v48 = vpop.f32.mrb[4].mxu0 }
 0x303   : > { %v7083_v57 = vpop.f32.mrb[5].mxu1  ;;  %v7147_v21 = vpop.f32.mrb[5].mxu0 }
 0x304   : > { %v7084_v24 = vadd.f32 %v7083_v57, %v7082_v34  ;;  %v7148_v19 = vadd.f32 %v7147_v21, %v7146_v48  ;;  %v7085_v62 = vpop.f32.mrb[6].mxu1  ;;  %v7149_v13 = vpop.f32.mrb[6].mxu0 }
 0x305   : > { %v7086_v31 = vpop.f32.mrb[7].mxu1  ;;  %v7150_v40 = vpop.f32.mrb[7].mxu0 }
 0x306   : > { %v9743_v33 = vadd.f32 %v7084_v24, %v9647_v44  ;;  %v9746_v29 = vadd.f32 %v7148_v19, %v9650_v10  ;;  %v7087_v22 = vadd.f32 %v7086_v31, %v7085_v62  ;;  %v7151_v47 = vadd.f32 %v7150_v40, %v7149_v13 }
 0x308   : > { %v9749_v20 = vadd.f32 %v7087_v22, %v9653_v15  ;;  %v9752_v27 = vadd.f32 %v7151_v47, %v9656_v32 }
 0x30a   : > { %v7088_v9 = vpop.f32.mrb[8].mxu1  ;;  %v7152_v25 = vpop.f32.mrb[8].mxu0 }
 0x30b   : > { %v7089_v58 = vpop.f32.mrb[9].mxu1  ;;  %v7153_v30 = vpop.f32.mrb[9].mxu0 }
 0x30c   : > { %v7090_v43 = vadd.f32 %v7089_v58, %v7088_v9  ;;  %v7154_v8 = vadd.f32 %v7153_v30, %v7152_v25  ;;  %v7091_v63 = vpop.f32.mrb[10].mxu1  ;;  %v7155_v44 = vpop.f32.mrb[10].mxu0 }
 0x30d   : > { %v7092_v46 = vpop.f32.mrb[11].mxu1  ;;  %v7156_v14 = vpop.f32.mrb[11].mxu0 }
 0x30e   : > { %v9755_v10 = vadd.f32 %v7090_v43, %v9659_v3  ;;  %v9758_v6 = vadd.f32 %v7154_v8, %v9662_v35  ;;  %v7093_v15 = vadd.f32 %v7092_v46, %v7091_v63  ;;  %v7157_v28 = vadd.f32 %v7156_v14, %v7155_v44 }
 0x310   : > { %v9761_v32 = vadd.f32 %v7093_v15, %v9665_v59  ;;  %v9764_v37 = vadd.f32 %v7157_v28, %v9668_v26 }
 0x312   : > { %v7094_v5 = vpop.f32.mrb[12].mxu1  ;;  %v7158_v39 = vpop.f32.mrb[12].mxu0 }
 0x313   : > { %v7095_v45 = vpop.f32.mrb[13].mxu1  ;;  %v7159_v23 = vpop.f32.mrb[13].mxu0 }
 0x314   : > { %v7096_v34 = vadd.f32 %v7095_v45, %v7094_v5  ;;  %v7160_v48 = vadd.f32 %v7159_v23, %v7158_v39  ;;  %v7097_v57 = vpop.f32.mrb[14].mxu1  ;;  %v7161_v3 = vpop.f32.mrb[14].mxu0 }
 0x315   : > { %v7098_v21 = vpop.f32.mrb[15].mxu1  ;;  %v7162_v24 = vpop.f32.mrb[15].mxu0 }
 0x316   : > { %v9767_v35 = vadd.f32 %v7096_v34, %v9671_v4  ;;  %v9770_v19 = vadd.f32 %v7160_v48, %v9674_v51  ;;  %v7099_v59 = vadd.f32 %v7098_v21, %v7097_v57  ;;  %v7163_v62 = vadd.f32 %v7162_v24, %v7161_v3 }
 0x318   : > { %v9773_v26 = vadd.f32 %v7099_v59, %v9677_v1  ;;  %v9776_v13 = vadd.f32 %v7163_v62, %v9680_v53 }
 0x31a   : > { %v7164_v31 = vpop.f32.mrb[16].mxu0  ;;  %v7228_v40 = vpop.f32.mrb[16].mxu1 }
 0x31b   : > { %v7165_v22 = vpop.f32.mrb[17].mxu0  ;;  %v7229_v47 = vpop.f32.mrb[17].mxu1 }
 0x31c   : > { %v7166_v9 = vadd.f32 %v7165_v22, %v7164_v31  ;;  %v7230_v25 = vadd.f32 %v7229_v47, %v7228_v40  ;;  %v7167_v58 = vpop.f32.mrb[18].mxu0  ;;  %v7231_v4 = vpop.f32.mrb[18].mxu1 }
 0x31d   : > { %v7168_v30 = vpop.f32.mrb[19].mxu0  ;;  %v7232_v43 = vpop.f32.mrb[19].mxu1 }
 0x31e   : > { %v9779_v51 = vadd.f32 %v7166_v9, %v9683_v49  ;;  %v7169_v8 = vadd.f32 %v7168_v30, %v7167_v58  ;;  %v7233_v63 = vadd.f32 %v7232_v43, %v7231_v4  ;;  %v9782_v1 = vadd.f32 %v7230_v25, %v9686_v42 }
 0x320   : > { %v9785_v53 = vadd.f32 %v7169_v8, %v9689_v56  ;;  %v9788_v44 = vadd.f32 %v7233_v63, %v9692_v54 }
 0x322   : > { %v7170_v46 = vpop.f32.mrb[20].mxu0  ;;  %v7234_v14 = vpop.f32.mrb[20].mxu1 }
 0x323   : > { %v7171_v15 = vpop.f32.mrb[21].mxu0  ;;  %v7235_v28 = vpop.f32.mrb[21].mxu1 }
 0x324   : > { %v7172_v5 = vadd.f32 %v7171_v15, %v7170_v46  ;;  %v7236_v39 = vadd.f32 %v7235_v28, %v7234_v14  ;;  %v7173_v45 = vpop.f32.mrb[22].mxu0  ;;  %v7237_v49 = vpop.f32.mrb[22].mxu1 }
 0x325   : > { %v7174_v23 = vpop.f32.mrb[23].mxu0  ;;  %v7238_v34 = vpop.f32.mrb[23].mxu1 }
 0x326   : > { %v9791_v48 = vadd.f32 %v7172_v5, %v9695_v55  ;;  %v7175_v42 = vadd.f32 %v7174_v23, %v7173_v45  ;;  %v7239_v57 = vadd.f32 %v7238_v34, %v7237_v49  ;;  %v9794_v56 = vadd.f32 %v7236_v39, %v9698_v41 }
 0x328   : > { %v9797_v54 = vadd.f32 %v7175_v42, %v9701_v60  ;;  %v9800_v3 = vadd.f32 %v7239_v57, %v9704_v50 }
 0x32a   : > { %v7176_v21 = vpop.f32.mrb[24].mxu0  ;;  %v7240_v24 = vpop.f32.mrb[24].mxu1 }
 0x32b   : > { %v7177_v59 = vpop.f32.mrb[25].mxu0  ;;  %v7241_v62 = vpop.f32.mrb[25].mxu1 }
 0x32c   : > { %v7178_v31 = vadd.f32 %v7177_v59, %v7176_v21  ;;  %v7242_v40 = vadd.f32 %v7241_v62, %v7240_v24  ;;  %v7179_v22 = vpop.f32.mrb[26].mxu0  ;;  %v7243_v55 = vpop.f32.mrb[26].mxu1 }
 0x32d   : > { %v7180_v47 = vpop.f32.mrb[27].mxu0  ;;  %v7244_v9 = vpop.f32.mrb[27].mxu1 }
 0x32e   : > { %v9803_v25 = vadd.f32 %v7178_v31, %v9707_v38  ;;  %v7181_v41 = vadd.f32 %v7180_v47, %v7179_v22  ;;  %v7245_v58 = vadd.f32 %v7244_v9, %v7243_v55  ;;  %v9806_v60 = vadd.f32 %v7242_v40, %v9710_v36 }
 0x330   : > { %v9809_v50 = vadd.f32 %v7181_v41, %v9713_v61  ;;  %v9812_v4 = vadd.f32 %v7245_v58, %v9716_v18 }
 0x332   : > { %v7182_v30 = vpop.f32.mrb[28].mxu0  ;;  %v7246_v43 = vpop.f32.mrb[28].mxu1 }
 0x333   : > { %v7183_v8 = vpop.f32.mrb[29].mxu0  ;;  %v7247_v63 = vpop.f32.mrb[29].mxu1 }
 0x334   : > { %v7184_v46 = vadd.f32 %v7183_v8, %v7182_v30  ;;  %v7248_v14 = vadd.f32 %v7247_v63, %v7246_v43  ;;  %v7185_v15 = vpop.f32.mrb[30].mxu0  ;;  %v7249_v38 = vpop.f32.mrb[30].mxu1 }
 0x335   : > { %v7186_v28 = vpop.f32.mrb[31].mxu0  ;;  %v7250_v5 = vpop.f32.mrb[31].mxu1 }
 0x336   : > { %v9815_v39 = vadd.f32 %v7184_v46, %v9719_v7  ;;  %v7187_v36 = vadd.f32 %v7186_v28, %v7185_v15  ;;  %v7251_v45 = vadd.f32 %v7250_v5, %v7249_v38  ;;  %v9818_v61 = vadd.f32 %v7248_v14, %v9722_v12 }
 0x338   : > { %v9821_v18 = vadd.f32 %v7187_v36, %v9725_v52  ;;  %v9824_v49 = vadd.f32 %v7251_v45, %v9728_v11 }
 0x33a   : > { %v7188_v23 = vpop.f32.mrb[32].mxu0  ;;  %v7252_v34 = vpop.f32.mrb[32].mxu1 }
 0x33b   : > { %v7189_v42 = vpop.f32.mrb[33].mxu0  ;;  %v7253_v57 = vpop.f32.mrb[33].mxu1 }
 0x33c   : > { %v7190_v21 = vadd.f32 %v7189_v42, %v7188_v23  ;;  %v7254_v24 = vadd.f32 %v7253_v57, %v7252_v34  ;;  %v7191_v59 = vpop.f32.mrb[34].mxu0  ;;  %v7255_v7 = vpop.f32.mrb[34].mxu1 }
 0x33d   : > { %v7192_v62 = vpop.f32.mrb[35].mxu0  ;;  %v7256_v31 = vpop.f32.mrb[35].mxu1 }
 0x33e   : > { %v9827_v40 = vadd.f32 %v7190_v21, %v9731_v16  ;;  %v7193_v12 = vadd.f32 %v7192_v62, %v7191_v59  ;;  %v7257_v22 = vadd.f32 %v7256_v31, %v7255_v7  ;;  %v9830_v52 = vadd.f32 %v7254_v24, %v9734_v2 }
 0x340   : > { %v9833_v11 = vadd.f32 %v7193_v12, %v9737_v17  ;;  %v9836_v55 = vadd.f32 %v7257_v22, %v9740_v0 }
 0x342   : > { %v7194_v47 = vpop.f32.mrb[36].mxu0  ;;  %v7258_v9 = vpop.f32.mrb[36].mxu1 }
 0x343   : > { %v7195_v41 = vpop.f32.mrb[37].mxu0  ;;  %v7259_v58 = vpop.f32.mrb[37].mxu1 }
 0x344   : > { %v7196_v30 = vadd.f32 %v7195_v41, %v7194_v47  ;;  %v7260_v43 = vadd.f32 %v7259_v58, %v7258_v9  ;;  %v7197_v8 = vpop.f32.mrb[38].mxu0  ;;  %v7261_v16 = vpop.f32.mrb[38].mxu1 }
 0x345   : > { %v7198_v63 = vpop.f32.mrb[39].mxu0  ;;  %v7262_v46 = vpop.f32.mrb[39].mxu1 }
 0x346   : > { %v9839_v14 = vadd.f32 %v7196_v30, %v9743_v33  ;;  %v7199_v2 = vadd.f32 %v7198_v63, %v7197_v8  ;;  %v7263_v15 = vadd.f32 %v7262_v46, %v7261_v16  ;;  %v9842_v17 = vadd.f32 %v7260_v43, %v9746_v29 }
 0x348   : > { %v9845_v0 = vadd.f32 %v7199_v2, %v9749_v20  ;;  %v9848_v38 = vadd.f32 %v7263_v15, %v9752_v27  ;;  %v9877_v2 = vld [vmem:[%s10047_s2] ss:$0 sm:$0xff] }
 0x34a   : > { %v7200_v28 = vpop.f32.mrb[40].mxu0  ;;  %v7264_v5 = vpop.f32.mrb[40].mxu1 }
 0x34b   : > { %v7201_v36 = vpop.f32.mrb[41].mxu0  ;;  %v7265_v45 = vpop.f32.mrb[41].mxu1 }
 0x34c   : > { %v7202_v23 = vadd.f32 %v7201_v36, %v7200_v28  ;;  %v7266_v34 = vadd.f32 %v7265_v45, %v7264_v5  ;;  %v7203_v42 = vpop.f32.mrb[42].mxu0  ;;  %v7267_v33 = vpop.f32.mrb[42].mxu1 }
 0x34d   : > { %v7204_v57 = vpop.f32.mrb[43].mxu0  ;;  %v7268_v21 = vpop.f32.mrb[43].mxu1 }
 0x34e   : > { %v9851_v24 = vadd.f32 %v7202_v23, %v9755_v10  ;;  %v7205_v29 = vadd.f32 %v7204_v57, %v7203_v42  ;;  %v7269_v59 = vadd.f32 %v7268_v21, %v7267_v33  ;;  %v9854_v20 = vadd.f32 %v7266_v34, %v9758_v6 }
 0x350   : > { %v9857_v27 = vadd.f32 %v7205_v29, %v9761_v32  ;;  %v9860_v7 = vadd.f32 %v7269_v59, %v9764_v37 }
 0x352   : > { %v7206_v62 = vpop.f32.mrb[44].mxu0  ;;  %v7270_v31 = vpop.f32.mrb[44].mxu1 }
 0x353   : > { %v7207_v12 = vpop.f32.mrb[45].mxu0  ;;  %v7271_v22 = vpop.f32.mrb[45].mxu1 }
 0x354   : > { %v7208_v47 = vadd.f32 %v7207_v12, %v7206_v62  ;;  %v7272_v9 = vadd.f32 %v7271_v22, %v7270_v31  ;;  %v7209_v41 = vpop.f32.mrb[46].mxu0  ;;  %v7273_v10 = vpop.f32.mrb[46].mxu1 }
 0x355   : > { %v7210_v58 = vpop.f32.mrb[47].mxu0  ;;  %v7274_v30 = vpop.f32.mrb[47].mxu1 }
 0x356   : > { %v9863_v43 = vadd.f32 %v7208_v47, %v9767_v35  ;;  %v7211_v6 = vadd.f32 %v7210_v58, %v7209_v41  ;;  %v7275_v32 = vadd.f32 %v7274_v30, %v7273_v10  ;;  %v9866_v8 = vadd.f32 %v7272_v9, %v9770_v19  ;;  %v9883_v19 = vld [vmem:[%s10048_s3] ss:$0 sm:$0xff] }
 0x358   : > { %v9869_v37 = vadd.f32 %v7211_v6, %v9773_v26  ;;  %v9872_v16 = vadd.f32 %v7275_v32, %v9776_v13 }
 0x35a   : > { %v7276_v63 = vpop.f32.mrb[48].mxu1  ;;  %v7348_v46 = vpop.f32.mrb[48].mxu0 }
 0x35b   : > { %v5300_v35 = vadd.f32 %v7348_v46, %v9794_v56  ;;  %v7277_v15 = vpop.f32.mrb[49].mxu1  ;;  %v5291_v28 = vpop.f32.mrb[49].mxu0 }
 0x35c   : > { %v7278_v26 = vadd.f32 %v7277_v15, %v7276_v63  ;;  %v5292_v13 = vadd.f32 %v5291_v28, %v9782_v1  ;;  %v7279_v5 = vpop.f32.mrb[50].mxu1  ;;  %v7349_v36 = vpop.f32.mrb[50].mxu0 }
 0x35d   : > { %v5427_v45 = vmul.f32 %v9877_v2, %v5300_v35  ;;  %v5303_v23 = vadd.f32 %v7349_v36, %v9800_v3  ;;  %v7280_v34 = vpop.f32.mrb[51].mxu1  ;;  %v5294_v42 = vpop.f32.mrb[51].mxu0 }
 0x35e   : > { %v5425_v56 = vmul.f32 %v9877_v2, %v5292_v13  ;;  %v7281_v33 = vadd.f32 %v7280_v34, %v7279_v5  ;;  %v5295_v57 = vadd.f32 %v5294_v42, %v9788_v44  ;;  %v9892_v21 = vadd.f32 %v7278_v26, %v9779_v51 }
 0x35f   : > { %v5466_v29 = vadd.f32 %v9883_v19, %v5427_v45  ;;  %v5428_v1 = vmul.f32 %v9877_v2, %v5303_v23 }
 0x360   : > { %v5464_v3 = vadd.f32 %v9883_v19, %v5425_v56  ;;  %v5426_v59 = vmul.f32 %v9877_v2, %v5295_v57  ;;  %v9904_v44 = vadd.f32 %v7281_v33, %v9785_v53 }
 0x361   : > { %v5498_v51 = vmax.f32 %v5466_v29, 0.0  ;;  %v5467_v62 = vadd.f32 %v9883_v19, %v5428_v1 }
 0x362   : > { %v5496_v31 = vmax.f32 %v5464_v3, 0.0  ;;  %v5465_v12 = vadd.f32 %v9883_v19, %v5426_v59  ;;  %v7282_v22 = vpop.f32.mrb[52].mxu1  ;;  %v7352_v47 = vpop.f32.mrb[52].mxu0 }
 0x363   : > { %5530 = vst [vmem:[%s9899_s11 + $0x10] sm:$0xff] %v5498_v51  ;;  %v5499_v9 = vmax.f32 %v5467_v62, 0.0  ;;  %v5316_v41 = vadd.f32 %v7352_v47, %v9818_v61  ;;  %v7283_v10 = vpop.f32.mrb[53].mxu1  ;;  %v5307_v58 = vpop.f32.mrb[53].mxu0 }
 0x364   : > { %5528 = vst [vmem:[%s9899_s11] sm:$0xff] %v5496_v31  ;;  %v5497_v30 = vmax.f32 %v5465_v12, 0.0  ;;  %v7284_v53 = vadd.f32 %v7283_v10, %v7282_v22  ;;  %v5308_v6 = vadd.f32 %v5307_v58, %v9806_v60  ;;  %v7285_v32 = vpop.f32.mrb[54].mxu1  ;;  %v7353_v63 = vpop.f32.mrb[54].mxu0 }
 0x365   : > { %5531 = vst [vmem:[%s9899_s11 + $0x18] sm:$0xff] %v5499_v9  ;;  %v5431_v46 = vmul.f32 %v9877_v2, %v5316_v41  ;;  %v5319_v35 = vadd.f32 %v7353_v63, %v9824_v49  ;;  %v7286_v15 = vpop.f32.mrb[55].mxu1  ;;  %v5310_v28 = vpop.f32.mrb[55].mxu0 }
 0x366   : > { %5529 = vst [vmem:[%s9899_s11 + $0x8] sm:$0xff] %v5497_v30  ;;  %v5429_v61 = vmul.f32 %v9877_v2, %v5308_v6  ;;  %v7287_v26 = vadd.f32 %v7286_v15, %v7285_v32  ;;  %v5311_v13 = vadd.f32 %v5310_v28, %v9812_v4  ;;  %v9919_v5 = vadd.f32 %v7284_v53, %v9791_v48 }
 0x367   : > { %v5470_v60 = vadd.f32 %v9883_v19, %v5431_v46  ;;  %v5432_v36 = vmul.f32 %v9877_v2, %v5319_v35 }
 0x368   : > { %v5468_v45 = vadd.f32 %v9883_v19, %v5429_v61  ;;  %v5430_v49 = vmul.f32 %v9877_v2, %v5311_v13  ;;  %v9926_v23 = vadd.f32 %v7287_v26, %v9797_v54 }
 0x369   : > { %v5502_v34 = vmax.f32 %v5470_v60, 0.0  ;;  %v5471_v42 = vadd.f32 %v9883_v19, %v5432_v36 }
 0x36a   : > { %v5500_v4 = vmax.f32 %v5468_v45, 0.0  ;;  %v5469_v48 = vadd.f32 %v9883_v19, %v5430_v49  ;;  %v7288_v56 = vpop.f32.mrb[56].mxu1  ;;  %v7356_v33 = vpop.f32.mrb[56].mxu0 }
 0x36b   : > { %5534 = vst [vmem:[%s9899_s11 + $0x30] sm:$0xff] %v5502_v34  ;;  %v5503_v57 = vmax.f32 %v5471_v42, 0.0  ;;  %v5332_v29 = vadd.f32 %v7356_v33, %v9842_v17  ;;  %v7289_v1 = vpop.f32.mrb[57].mxu1  ;;  %v5323_v3 = vpop.f32.mrb[57].mxu0 }
 0x36c   : > { %5532 = vst [vmem:[%s9899_s11 + $0x20] sm:$0xff] %v5500_v4  ;;  %v5501_v59 = vmax.f32 %v5469_v48, 0.0  ;;  %v7290_v54 = vadd.f32 %v7289_v1, %v7288_v56  ;;  %v5324_v51 = vadd.f32 %v5323_v3, %v9830_v52  ;;  %v7291_v62 = vpop.f32.mrb[58].mxu1  ;;  %v7357_v31 = vpop.f32.mrb[58].mxu0 }
 0x36d   : > { %5535 = vst [vmem:[%s9899_s11 + $0x38] sm:$0xff] %v5503_v57  ;;  %v5435_v12 = vmul.f32 %v9877_v2, %v5332_v29  ;;  %v5335_v22 = vadd.f32 %v7357_v31, %v9848_v38  ;;  %v7292_v47 = vpop.f32.mrb[59].mxu1  ;;  %v5326_v9 = vpop.f32.mrb[59].mxu0 }
 0x36e   : > { %5533 = vst [vmem:[%s9899_s11 + $0x28] sm:$0xff] %v5501_v59  ;;  %v5433_v17 = vmul.f32 %v9877_v2, %v5324_v51  ;;  %v7293_v41 = vadd.f32 %v7292_v47, %v7291_v62  ;;  %v5327_v10 = vadd.f32 %v5326_v9, %v9836_v55  ;;  %v9941_v58 = vadd.f32 %v7290_v54, %v9803_v25 }
 0x36f   : > { %v5474_v52 = vadd.f32 %v9883_v19, %v5435_v12  ;;  %v5436_v30 = vmul.f32 %v9877_v2, %v5335_v22 }
 0x370   : > { %v5472_v53 = vadd.f32 %v9883_v19, %v5433_v17  ;;  %v5434_v38 = vmul.f32 %v9877_v2, %v5327_v10  ;;  %v9948_v6 = vadd.f32 %v7293_v41, %v9809_v50 }
 0x371   : > { %v5506_v32 = vmax.f32 %v5474_v52, 0.0  ;;  %v5475_v63 = vadd.f32 %v9883_v19, %v5436_v30 }
 0x372   : > { %v5504_v55 = vmax.f32 %v5472_v53, 0.0  ;;  %v5473_v25 = vadd.f32 %v9883_v19, %v5434_v38  ;;  %v7294_v46 = vpop.f32.mrb[60].mxu1  ;;  %v7360_v35 = vpop.f32.mrb[60].mxu0 }
 0x373   : > { %5538 = vst [vmem:[%s9899_s11 + $0x50] sm:$0xff] %v5506_v32  ;;  %v5507_v15 = vmax.f32 %v5475_v63, 0.0  ;;  %v5348_v28 = vadd.f32 %v7360_v35, %v9866_v8  ;;  %v7295_v61 = vpop.f32.mrb[61].mxu1  ;;  %v5339_v26 = vpop.f32.mrb[61].mxu0 }
 0x374   : > { %5536 = vst [vmem:[%s9899_s11 + $0x40] sm:$0xff] %v5504_v55  ;;  %v5505_v13 = vmax.f32 %v5473_v25, 0.0  ;;  %v7296_v50 = vadd.f32 %v7295_v61, %v7294_v46  ;;  %v5340_v60 = vadd.f32 %v5339_v26, %v9854_v20  ;;  %v7297_v36 = vpop.f32.mrb[62].mxu1  ;;  %v7361_v45 = vpop.f32.mrb[62].mxu0 }
 0x375   : > { %5539 = vst [vmem:[%s9899_s11 + $0x58] sm:$0xff] %v5507_v15  ;;  %v5439_v49 = vmul.f32 %v9877_v2, %v5348_v28  ;;  %v5351_v34 = vadd.f32 %v7361_v45, %v9872_v16  ;;  %v7298_v42 = vpop.f32.mrb[63].mxu1  ;;  %v5342_v4 = vpop.f32.mrb[63].mxu0 }
 0x376   : > { %5537 = vst [vmem:[%s9899_s11 + $0x48] sm:$0xff] %v5505_v13  ;;  %v5437_v8 = vmul.f32 %v9877_v2, %v5340_v60  ;;  %v7299_v48 = vadd.f32 %v7298_v42, %v7297_v36  ;;  %v5343_v56 = vadd.f32 %v5342_v4, %v9860_v7  ;;  %v5219_v33 = vadd.f32 %v7296_v50, %v9815_v39 }
 0x377   : > { %v5478_v20 = vadd.f32 %v9883_v19, %v5439_v49  ;;  %v5440_v57 = vmul.f32 %v9877_v2, %v5351_v34 }
 0x378   : > { %v5476_v29 = vadd.f32 %v9883_v19, %v5437_v8  ;;  %v5438_v16 = vmul.f32 %v9877_v2, %v5343_v56  ;;  %v5222_v1 = vadd.f32 %v7299_v48, %v9821_v18 }
 0x379   : > { %v5510_v3 = vmax.f32 %v5478_v20, 0.0  ;;  %v5479_v59 = vadd.f32 %v9883_v19, %v5440_v57 }
 0x37a   : > { %v5508_v54 = vmax.f32 %v5476_v29, 0.0  ;;  %v5477_v7 = vadd.f32 %v9883_v19, %v5438_v16  ;;  %v7300_v51 = vpop.f32.mrb[64].mxu1  ;;  %v7364_v39 = vpop.f32.mrb[64].mxu0 }
 0x37b   : > { %5542 = vst [vmem:[%s9899_s11 + $0x70] sm:$0xff] %v5510_v3  ;;  %v5511_v62 = vmax.f32 %v5479_v59, 0.0  ;;  %v5364_v31 = vadd.f32 %v7364_v39, %v9919_v5  ;;  %v7301_v12 = vpop.f32.mrb[65].mxu1  ;;  %v5355_v22 = vpop.f32.mrb[65].mxu0 }
 0x37c   : > { %5540 = vst [vmem:[%s9899_s11 + $0x60] sm:$0xff] %v5508_v54  ;;  %v5509_v47 = vmax.f32 %v5477_v7, 0.0  ;;  %v7302_v9 = vadd.f32 %v7301_v12, %v7300_v51  ;;  %v5356_v18 = vadd.f32 %v5355_v22, %v9892_v21  ;;  %v7303_v17 = vpop.f32.mrb[66].mxu1  ;;  %v7365_v41 = vpop.f32.mrb[66].mxu0 }
 0x37d   : > { %5543 = vst [vmem:[%s9899_s11 + $0x78] sm:$0xff] %v5511_v62  ;;  %v5443_v10 = vmul.f32 %v9877_v2, %v5364_v31  ;;  %v5367_v52 = vadd.f32 %v7365_v41, %v9926_v23  ;;  %v7304_v30 = vpop.f32.mrb[67].mxu1  ;;  %v5358_v53 = vpop.f32.mrb[67].mxu0 }
 0x37e   : > { %5541 = vst [vmem:[%s9899_s11 + $0x68] sm:$0xff] %v5509_v47  ;;  %v5441_v5 = vmul.f32 %v9877_v2, %v5356_v18  ;;  %v7305_v38 = vadd.f32 %v7304_v30, %v7303_v17  ;;  %v5359_v32 = vadd.f32 %v5358_v53, %v9904_v44  ;;  %v5227_v63 = vadd.f32 %v7302_v9, %v9827_v40 }
 0x37f   : > { %v5482_v21 = vadd.f32 %v9883_v19, %v5443_v10  ;;  %v5444_v55 = vmul.f32 %v9877_v2, %v5367_v52 }
 0x380   : > { %v5480_v25 = vadd.f32 %v9883_v19, %v5441_v5  ;;  %v5442_v23 = vmul.f32 %v9877_v2, %v5359_v32  ;;  %v5230_v46 = vadd.f32 %v7305_v38, %v9833_v11 }
 0x381   : > { %v5514_v35 = vmax.f32 %v5482_v21, 0.0  ;;  %v5483_v15 = vadd.f32 %v9883_v19, %v5444_v55 }
 0x382   : > { %v5512_v28 = vmax.f32 %v5480_v25, 0.0  ;;  %v5481_v44 = vadd.f32 %v9883_v19, %v5442_v23  ;;  %v7306_v61 = vpop.f32.mrb[68].mxu1  ;;  %v7368_v40 = vpop.f32.mrb[68].mxu0 }
 0x383   : > { %5546 = vst [vmem:[%s9899_s11 + $0x90] sm:$0xff] %v5514_v35  ;;  %v5515_v26 = vmax.f32 %v5483_v15, 0.0  ;;  %v5380_v13 = vadd.f32 %v7368_v40, %v5219_v33  ;;  %v7307_v50 = vpop.f32.mrb[69].mxu1  ;;  %v5371_v60 = vpop.f32.mrb[69].mxu0 }
 0x384   : > { %5544 = vst [vmem:[%s9899_s11 + $0x80] sm:$0xff] %v5512_v28  ;;  %v5513_v36 = vmax.f32 %v5481_v44, 0.0  ;;  %v7308_v45 = vadd.f32 %v7307_v50, %v7306_v61  ;;  %v5372_v11 = vadd.f32 %v5371_v60, %v9941_v58  ;;  %v7309_v49 = vpop.f32.mrb[70].mxu1  ;;  %v7369_v34 = vpop.f32.mrb[70].mxu0 }
 0x385   : > { %5547 = vst [vmem:[%s9899_s11 + $0x98] sm:$0xff] %v5515_v26  ;;  %v5447_v42 = vmul.f32 %v9877_v2, %v5380_v13  ;;  %v5383_v4 = vadd.f32 %v7369_v34, %v5222_v1  ;;  %v7310_v8 = vpop.f32.mrb[71].mxu1  ;;  %v5374_v48 = vpop.f32.mrb[71].mxu0 }
 0x386   : > { %5545 = vst [vmem:[%s9899_s11 + $0x88] sm:$0xff] %v5513_v36  ;;  %v5445_v56 = vmul.f32 %v9877_v2, %v5372_v11  ;;  %v7311_v33 = vadd.f32 %v7310_v8, %v7309_v49  ;;  %v5375_v20 = vadd.f32 %v5374_v48, %v9948_v6  ;;  %v5235_v57 = vadd.f32 %v7308_v45, %v9839_v14 }
 0x387   : > { %v5486_v29 = vadd.f32 %v9883_v19, %v5447_v42  ;;  %v5448_v58 = vmul.f32 %v9877_v2, %v5383_v4 }
 0x388   : > { %v5484_v16 = vadd.f32 %v9883_v19, %v5445_v56  ;;  %v5446_v1 = vmul.f32 %v9877_v2, %v5375_v20  ;;  %v5238_v3 = vadd.f32 %v7311_v33, %v9845_v0 }
 0x389   : > { %v5518_v59 = vmax.f32 %v5486_v29, 0.0  ;;  %v5487_v54 = vadd.f32 %v9883_v19, %v5448_v58 }
 0x38a   : > { %v5516_v7 = vmax.f32 %v5484_v16, 0.0  ;;  %v5485_v6 = vadd.f32 %v9883_v19, %v5446_v1  ;;  %v7312_v51 = vpop.f32.mrb[72].mxu1  ;;  %v7372_v14 = vpop.f32.mrb[72].mxu0 }
 0x38b   : > { %5550 = vst [vmem:[%s9899_s11 + $0xb0] sm:$0xff] %v5518_v59  ;;  %v5519_v39 = vmax.f32 %v5487_v54, 0.0  ;;  %v5396_v62 = vadd.f32 %v7372_v14, %v5235_v57  ;;  %v7313_v31 = vpop.f32.mrb[73].mxu1  ;;  %v5387_v12 = vpop.f32.mrb[73].mxu0 }
 0x38c   : > { %5548 = vst [vmem:[%s9899_s11 + $0xa0] sm:$0xff] %v5516_v7  ;;  %v5517_v22 = vmax.f32 %v5485_v6, 0.0  ;;  %v7314_v47 = vadd.f32 %v7313_v31, %v7312_v51  ;;  %v5388_v9 = vadd.f32 %v5387_v12, %v5227_v63  ;;  %v7315_v0 = vpop.f32.mrb[74].mxu1  ;;  %v7373_v18 = vpop.f32.mrb[74].mxu0 }
 0x38d   : > { %5551 = vst [vmem:[%s9899_s11 + $0xb8] sm:$0xff] %v5519_v39  ;;  %v5451_v17 = vmul.f32 %v9877_v2, %v5396_v62  ;;  %v5399_v41 = vadd.f32 %v7373_v18, %v5238_v3  ;;  %v7316_v10 = vpop.f32.mrb[75].mxu1  ;;  %v5390_v52 = vpop.f32.mrb[75].mxu0 }
 0x38e   : > { %5549 = vst [vmem:[%s9899_s11 + $0xa8] sm:$0xff] %v5517_v22  ;;  %v5449_v30 = vmul.f32 %v9877_v2, %v5388_v9  ;;  %v7317_v53 = vadd.f32 %v7316_v10, %v7315_v0  ;;  %v5391_v5 = vadd.f32 %v5390_v52, %v5230_v46  ;;  %v5243_v38 = vadd.f32 %v7314_v47, %v9851_v24 }
 0x38f   : > { %v5490_v32 = vadd.f32 %v9883_v19, %v5451_v17  ;;  %v5452_v63 = vmul.f32 %v9877_v2, %v5399_v41 }
 0x390   : > { %v5488_v21 = vadd.f32 %v9883_v19, %v5449_v30  ;;  %v5450_v55 = vmul.f32 %v9877_v2, %v5391_v5  ;;  %v5246_v25 = vadd.f32 %v7317_v53, %v9857_v27 }
 0x391   : > { %v5522_v23 = vmax.f32 %v5490_v32, 0.0  ;;  %v5491_v35 = vadd.f32 %v9883_v19, %v5452_v63 }
 0x392   : > { %v5520_v15 = vmax.f32 %v5488_v21, 0.0  ;;  %v5489_v46 = vadd.f32 %v9883_v19, %v5450_v55  ;;  %v7318_v24 = vpop.f32.mrb[76].mxu1  ;;  %v7376_v28 = vpop.f32.mrb[76].mxu0 }
 0x393   : > { %5554 = vst [vmem:[%s9899_s11 + $0xd0] sm:$0xff] %v5522_v23  ;;  %v5523_v44 = vmax.f32 %v5491_v35, 0.0  ;;  %v7319_v61 = vpop.f32.mrb[77].mxu1  ;;  %v5403_v40 = vpop.f32.mrb[77].mxu0 }
 0x394   : > { %5552 = vst [vmem:[%s9899_s11 + $0xc0] sm:$0xff] %v5520_v15  ;;  %v5521_v26 = vmax.f32 %v5489_v46, 0.0  ;;  %v7320_v13 = vadd.f32 %v7319_v61, %v7318_v24  ;;  %v5404_v50 = vadd.f32 %v5403_v40, %v5243_v38  ;;  %v7321_v60 = vpop.f32.mrb[78].mxu1  ;;  %v7377_v27 = vpop.f32.mrb[78].mxu0 }
 0x395   : > { %5555 = vst [vmem:[%s9899_s11 + $0xd8] sm:$0xff] %v5523_v44  ;;  %v7322_v36 = vpop.f32.mrb[79].mxu1  ;;  %v5406_v45 = vpop.f32.mrb[79].mxu0 }
 0x396   : > { %5553 = vst [vmem:[%s9899_s11 + $0xc8] sm:$0xff] %v5521_v26  ;;  %v5251_v11 = vadd.f32 %v7320_v13, %v9863_v43  ;;  %v5453_v49 = vmul.f32 %v9877_v2, %v5404_v50  ;;  %v7323_v34 = vadd.f32 %v7322_v36, %v7321_v60  ;;  %v5407_v42 = vadd.f32 %v5406_v45, %v5246_v25 }
 0x398   : > { %v5412_v4 = vadd.f32 %v7376_v28, %v5251_v11  ;;  %v5492_v8 = vadd.f32 %v9883_v19, %v5453_v49  ;;  %v5254_v48 = vadd.f32 %v7323_v34, %v9869_v37  ;;  %v5454_v56 = vmul.f32 %v9877_v2, %v5407_v42 }
 0x39a   : > { %v5455_v33 = vmul.f32 %v9877_v2, %v5412_v4  ;;  %v5524_v20 = vmax.f32 %v5492_v8, 0.0  ;;  %v5415_v57 = vadd.f32 %v7377_v27, %v5254_v48  ;;  %v5493_v43 = vadd.f32 %v9883_v19, %v5454_v56 }
 0x39c   : > { %v5494_v29 = vadd.f32 %v9883_v19, %v5455_v33  ;;  %5556 = vst [vmem:[%s9899_s11 + $0xe0] sm:$0xff] %v5524_v20  ;;  %v5456_v58 = vmul.f32 %v9877_v2, %v5415_v57  ;;  %v5525_v16 = vmax.f32 %v5493_v43, 0.0 }
 0x39e   : > { %v5526_v1 = vmax.f32 %v5494_v29, 0.0  ;;  %v5495_v3 = vadd.f32 %v9883_v19, %v5456_v58  ;;  %5557 = vst [vmem:[%s9899_s11 + $0xe8] sm:$0xff] %v5525_v16 }
 0x3a0   : > { %5558 = vst [vmem:[%s9899_s11 + $0xf0] sm:$0xff] %v5526_v1  ;;  %v5527_v37 = vmax.f32 %v5495_v3, 0.0 }
 0x3a2   : > { %5559 = vst [vmem:[%s9899_s11 + $0xf8] sm:$0xff] %v5527_v37 }
 0x3a3 PF: > { %s14_s17 = sadd.s32 1, %s8099_s17   ;;  %s10050_s15 = smov %s8095_s16 }
 0x3a4   : > { %p11_p5 = scmp.ge.s32.totalorder %s14_s17, 4   ;;  %s10051_s16 = smov %s10053_s18 }
 0x3a6   :  { %13 = sbr.rel (!%p11_p5) target bundleno = 2 (0x2), region = 75 }

// kernel: _lambda_.7
= control target key start
LH: loop header
LB: loop body
LE: loop exit
PB: predicated region body
PF: predicated region fallthrough
CT: control target
= control target key end

     0   :  { %s1916_s15 = smov 0   ;;  %s1918_s16 = smov 0   ;;  %s2238_s0 = inlined_call_operand.vmem [shape: bf16[512,432], index: 0, kind: input, shape index: {}]   ;;  %s2239_s1 = inlined_call_operand.vmem [shape: bf16[432,128], index: 1, kind: input, shape index: {}]   ;;  %s2240_s2 = inlined_call_operand.vmem [shape: f32[1,128], index: 2, kind: input, shape index: {}]   ;;  %s2241_s3 = inlined_call_operand.vmem [shape: f32[1,128], index: 3, kind: input, shape index: {}]   ;;  %s2242_s4 = inlined_call_operand.vmem [shape: f32[512,128], index: 4, kind: output, shape index: {}]  }
   0x1   :  { %s1920_s17 = smov 0  }
   0x2 LB: > { %s26_s18 = sadd.s32 1, %s1884_s16  ;;  %p1488_p0 = scmp.ge.s32.totalorder %s1888_s17, 1  ;;  %s1888_s17 = sphi %s1920_s17, %s14_s17   ;;  %s1884_s16 = sphi %s1918_s16, %s2244_s16   ;;  %s1880_s15 = sphi %s1916_s15, %s2243_s15  }
   0x3   : > { %p28_p1 = scmp.ge.s32.totalorder %s26_s18, 2  ;;  %p203_p2 = scmp.lt.s32.totalorder %s1888_s17, 3 }
   0x5   : > { %s2246_s18 = smov (%p28_p1, %s26_s18), 0  ;;  %p204_p3 = pnand %p1488_p0, %p203_p2 }
   0x6   : > { %v1743_v0 = vld [vmem:[%s2239_s1 + $0x80] sm:$0xff] (!%p204_p3)   ;;  %v1890_v1 = vmov (!%p204_p3), 0   ;;  %v1744_v2 = vld [vmem:[%s2239_s1 + $0x88] sm:$0xff] (!%p204_p3)   ;;  %v1747_v5 = vld [vmem:[%s2239_s1 + $0x90] sm:$0xff] (!%p204_p3)   ;;  %s1489_s11 = sshll.u32 (!%p204_p3), %s1880_s15, 5  ;;  %vm854_vm0 = vcmask (!%p204_p3), 392192  }
   0x7   : > { %207 = sbr.rel (%p204_p3) target bundleno = 394 (0x18a), region = 36  ;;  %1064 = vmatprep.subr.bf16.mxu1 (!%p204_p3), %v1890_v1  ;;  %v1745_v3 = vld [vmem:[%s2239_s1 + $0x40] sm:$0xff] (!%p204_p3)   ;;  %v1748_v6 = vld [vmem:[%s2239_s1 + $0x48] sm:$0xff] (!%p204_p3)   ;;  %v1751_v8 = vld [vmem:[%s2239_s1 + $0x50] sm:$0xff] (!%p204_p3)   ;;  %p244_p4 = scmp.lt.s32.totalorder (!%p204_p3), %s1489_s11, 63 }
   0x8   : > { %1065 = vmatpush1.bf16.msra.mxu1 (!%p204_p3), %v1743_v0  ;;  %v1746_v4 = vld [vmem:[%s2239_s1] sm:$0xff] (!%p204_p3)   ;;  %1606 = vmatprep.subr.bf16.mxu0 (!%p204_p3), %v1745_v3  ;;  %v1749_v7 = vld [vmem:[%s2239_s1 + $0x8] sm:$0xff] (!%p204_p3)   ;;  %v1752_v9 = vld [vmem:[%s2239_s1 + $0x10] sm:$0xff] (!%p204_p3)  }
   0x9   : > { %1066 = vmatprep.subr.bf16.mxu1 (!%p204_p3), %v1890_v1  ;;  %1607 = vmatpush3.bf16.msra.mxu0 (!%p204_p3), %v1746_v4  ;;  %v1750_v10 = vld [vmem:[%s2239_s1 + $0x98] sm:$0xff] (!%p204_p3)   ;;  %v1753_v12 = vld [vmem:[%s2239_s1 + $0xa0] sm:$0xff] (!%p204_p3)   ;;  %v1756_v15 = vld [vmem:[%s2239_s1 + $0xa8] sm:$0xff] (!%p204_p3)  }
   0xa   : > { %1608 = vmatprep.subr.bf16.mxu0 (!%p204_p3), %v1748_v6  ;;  %v1754_v11 = vld [vmem:[%s2239_s1 + $0x58] sm:$0xff] (!%p204_p3)   ;;  %v1757_v14 = vld [vmem:[%s2239_s1 + $0x60] sm:$0xff] (!%p204_p3)   ;;  %v1760_v17 = vld [vmem:[%s2239_s1 + $0x68] sm:$0xff] (!%p204_p3)  }
   0xb   : > { %v1755_v13 = vld [vmem:[%s2239_s1 + $0x18] sm:$0xff] (!%p204_p3)   ;;  %v1758_v16 = vld [vmem:[%s2239_s1 + $0x20] sm:$0xff] (!%p204_p3)   ;;  %v1759_v18 = vld [vmem:[%s2239_s1 + $0xb0] sm:$0xff] (!%p204_p3)  }
   0xc   : > { %1067 = vmatpush1.bf16.msra.mxu1 (!%p204_p3), %v1744_v2  ;;  %v1761_v19 = vld [vmem:[%s2239_s1 + $0x28] sm:$0xff] (!%p204_p3)   ;;  %v1763_v20 = vld [vmem:[%s2239_s1 + $0x70] sm:$0xff] (!%p204_p3)   ;;  %v1762_v21 = vld [vmem:[%s2239_s1 + $0xb8] sm:$0xff] (!%p204_p3)  }
   0xd   : > { %1068 = vmatprep.subr.bf16.mxu1 (!%p204_p3), %v1890_v1  ;;  %1609 = vmatpush3.bf16.msra.mxu0 (!%p204_p3), %v1749_v7  ;;  %v1764_v22 = vld [vmem:[%s2239_s1 + $0x30] sm:$0xff] (!%p204_p3)   ;;  %v1766_v23 = vld [vmem:[%s2239_s1 + $0x78] sm:$0xff] (!%p204_p3)   ;;  %v1765_v27 = vld [vmem:[%s2239_s1 + $0xc0] sm:$0xff] (!%p204_p3)  }
   0xe   : > { %1610 = vmatprep.subr.bf16.mxu0 %v1751_v8  ;;  %s2248_s11 = smov (!%p244_p4, %s1489_s11), 63  ;;  %v1767_v25 = vld [vmem:[%s2239_s1 + $0x38] sm:$0xff]   ;;  %v1771_v30 = vld [vmem:[%s2239_s1 + $0xc8] sm:$0xff]   ;;  %v1772_v31 = vld [vmem:[%s2239_s1 + $0xd0] sm:$0xff]  }
   0xf   : > { %s1605_s7 = sshll.u32 %s2248_s11, 4  ;;  %s1493_s12 = sshll.u32 %s2248_s11, 3 }
  0x10   : > { %1069 = vmatpush1.bf16.msra.mxu1 %v1747_v5  ;;  %s2010_s19 = scalar_lea.vmem %s2238_s0, %s1605_s7 }
  0x11   : > { %1070 = vmatprep.subr.bf16.mxu1 %v1890_v1  ;;  %1611 = vmatpush3.bf16.msra.mxu0 %v1752_v9  ;;  %v1770_v24 = vld [vmem:[%s2010_s19 + $0x4] ss:$16 sps:$4 sm:$0xff]   ;;  %v1775_v26 = vld [vmem:[%s2010_s19 + $0xc] ss:$16 sps:$4 sm:$0xff]   ;;  %v1768_v28 = vld [vmem:[%s2010_s19] ss:$16 sps:$4 sm:$0xff]  }
  0x12   : > { %1612 = vmatprep.subr.bf16.mxu0 %v1754_v11  ;;  %935 = vmatprep.mubr.bf16.mxu0 %v1770_v24  ;;  %v1776_v29 = vld [vmem:[%s2010_s19 + $0x24] ss:$16 sps:$4 sm:$0xff]   ;;  %v1778_v32 = vld [vmem:[%s2010_s19 + $0x20] ss:$16 sps:$4 sm:$0xff]   ;;  %v1773_v33 = vld [vmem:[%s2010_s19 + $0x8] ss:$16 sps:$4 sm:$0xff]  }
  0x13   : > { %1585 = vmatprep.mubr.msk.bf16.mxu1 %vm854_vm0, %v1775_v26  ;;  %v1782_v34 = vld [vmem:[%s2010_s19 + $0x44] ss:$16 sps:$4 sm:$0xff]   ;;  %v1779_v35 = vld [vmem:[%s2010_s19 + $0x2c] ss:$16 sps:$4 sm:$0xff]   ;;  %v1784_v36 = vld [vmem:[%s2010_s19 + $0x40] ss:$16 sps:$4 sm:$0xff]  }
  0x14   : > { %1071 = vmatpush1.bf16.msra.mxu1 %v1750_v10  ;;  %v1781_v37 = vld [vmem:[%s2010_s19 + $0x28] ss:$16 sps:$4 sm:$0xff]   ;;  %v1788_v38 = vld [vmem:[%s2010_s19 + $0x64] ss:$16 sps:$4 sm:$0xff]   ;;  %v1785_v39 = vld [vmem:[%s2010_s19 + $0x4c] ss:$16 sps:$4 sm:$0xff]  }
  0x15   : > { %1072 = vmatprep.subr.bf16.mxu1 %v1890_v1  ;;  %1613 = vmatpush3.bf16.msra.mxu0 %v1755_v13  ;;  %v1790_v40 = vld [vmem:[%s2010_s19 + $0x60] ss:$16 sps:$4 sm:$0xff]   ;;  %v1787_v41 = vld [vmem:[%s2010_s19 + $0x48] ss:$16 sps:$4 sm:$0xff]   ;;  %v1794_v42 = vld [vmem:[%s2010_s19 + $0x84] ss:$16 sps:$4 sm:$0xff]  }
  0x16   : > { %1614 = vmatprep.subr.bf16.mxu0 %v1757_v14  ;;  %v1791_v43 = vld [vmem:[%s2010_s19 + $0x6c] ss:$16 sps:$4 sm:$0xff]   ;;  %v1796_v44 = vld [vmem:[%s2010_s19 + $0x80] ss:$16 sps:$4 sm:$0xff]   ;;  %v1793_v45 = vld [vmem:[%s2010_s19 + $0x68] ss:$16 sps:$4 sm:$0xff]  }
  0x17   : > { %v1800_v46 = vld [vmem:[%s2010_s19 + $0xa4] ss:$16 sps:$4 sm:$0xff]   ;;  %v1797_v47 = vld [vmem:[%s2010_s19 + $0x8c] ss:$16 sps:$4 sm:$0xff]   ;;  %v1802_v48 = vld [vmem:[%s2010_s19 + $0xa0] ss:$16 sps:$4 sm:$0xff]  }
  0x18   : > { %1073 = vmatpush1.bf16.msra.mxu1 %v1753_v12  ;;  %v1799_v49 = vld [vmem:[%s2010_s19 + $0x88] ss:$16 sps:$4 sm:$0xff]   ;;  %v1806_v50 = vld [vmem:[%s2010_s19 + $0xc4] ss:$16 sps:$4 sm:$0xff]   ;;  %v1803_v51 = vld [vmem:[%s2010_s19 + $0xac] ss:$16 sps:$4 sm:$0xff]  }
  0x19   : > { %1074 = vmatprep.subr.bf16.mxu1 %v1890_v1  ;;  %1615 = vmatpush3.bf16.msra.mxu0 %v1758_v16  ;;  %v1808_v52 = vld [vmem:[%s2010_s19 + $0xc0] ss:$16 sps:$4 sm:$0xff]   ;;  %v1805_v53 = vld [vmem:[%s2010_s19 + $0xa8] ss:$16 sps:$4 sm:$0xff]   ;;  %v1812_v54 = vld [vmem:[%s2010_s19 + $0xe4] ss:$16 sps:$4 sm:$0xff]  }
  0x1a   : > { %1616 = vmatprep.subr.bf16.mxu0 %v1760_v17  ;;  %v1809_v55 = vld [vmem:[%s2010_s19 + $0xcc] ss:$16 sps:$4 sm:$0xff]   ;;  %v1814_v56 = vld [vmem:[%s2010_s19 + $0xe0] ss:$16 sps:$4 sm:$0xff]   ;;  %v1811_v57 = vld [vmem:[%s2010_s19 + $0xc8] ss:$16 sps:$4 sm:$0xff]  }
  0x1b   : > { %v1818_v58 = vld [vmem:[%s2010_s19 + $0x104] ss:$16 sps:$4 sm:$0xff]   ;;  %v1815_v59 = vld [vmem:[%s2010_s19 + $0xec] ss:$16 sps:$4 sm:$0xff]   ;;  %v1820_v60 = vld [vmem:[%s2010_s19 + $0x100] ss:$16 sps:$4 sm:$0xff]  }
  0x1c   : > { %1075 = vmatpush1.bf16.msra.mxu1 %v1756_v15  ;;  %v1817_v61 = vld [vmem:[%s2010_s19 + $0xe8] ss:$16 sps:$4 sm:$0xff]   ;;  %v1824_v62 = vld [vmem:[%s2010_s19 + $0x124] ss:$16 sps:$4 sm:$0xff]   ;;  %v1821_v63 = vld [vmem:[%s2010_s19 + $0x10c] ss:$16 sps:$4 sm:$0xff]  }
  0x1d   : > { %1076 = vmatprep.subr.bf16.mxu1 %v1890_v1  ;;  %1617 = vmatpush3.bf16.msra.mxu0 %v1761_v19  ;;  %v1826_v0 = vld [vmem:[%s2010_s19 + $0x120] ss:$16 sps:$4 sm:$0xff]   ;;  %v1830_v2 = vld [vmem:[%s2010_s19 + $0x144] ss:$16 sps:$4 sm:$0xff]   ;;  %v1827_v3 = vld [vmem:[%s2010_s19 + $0x12c] ss:$16 sps:$4 sm:$0xff]  }
  0x1e   : > { %1618 = vmatprep.subr.bf16.mxu0 %v1763_v20  ;;  %v1832_v4 = vld [vmem:[%s2010_s19 + $0x140] ss:$16 sps:$4 sm:$0xff]   ;;  %v1829_v5 = vld [vmem:[%s2010_s19 + $0x128] ss:$16 sps:$4 sm:$0xff]   ;;  %v1836_v6 = vld [vmem:[%s2010_s19 + $0x164] ss:$16 sps:$4 sm:$0xff]  }
  0x1f   : > { %v1833_v7 = vld [vmem:[%s2010_s19 + $0x14c] ss:$16 sps:$4 sm:$0xff]   ;;  %v1838_v8 = vld [vmem:[%s2010_s19 + $0x160] ss:$16 sps:$4 sm:$0xff]   ;;  %v1835_v9 = vld [vmem:[%s2010_s19 + $0x148] ss:$16 sps:$4 sm:$0xff]  }
  0x20   : > { %1077 = vmatpush1.bf16.msra.mxu1 %v1759_v18  ;;  %v1842_v10 = vld [vmem:[%s2010_s19 + $0x184] ss:$16 sps:$4 sm:$0xff]   ;;  %v1839_v11 = vld [vmem:[%s2010_s19 + $0x16c] ss:$16 sps:$4 sm:$0xff]   ;;  %v1844_v12 = vld [vmem:[%s2010_s19 + $0x180] ss:$16 sps:$4 sm:$0xff]  }
  0x21   : > { %1078 = vmatprep.subr.bf16.mxu1 %v1890_v1  ;;  %1619 = vmatpush3.bf16.msra.mxu0 %v1764_v22  ;;  %v1841_v13 = vld [vmem:[%s2010_s19 + $0x168] ss:$16 sps:$4 sm:$0xff]   ;;  %v1848_v14 = vld [vmem:[%s2010_s19 + $0x1a4] ss:$16 sps:$4 sm:$0xff]   ;;  %v1845_v15 = vld [vmem:[%s2010_s19 + $0x18c] ss:$16 sps:$4 sm:$0xff]  }
  0x22   : > { %1620 = vmatprep.subr.bf16.mxu0 %v1766_v23  ;;  %v1850_v16 = vld [vmem:[%s2010_s19 + $0x1a0] ss:$16 sps:$4 sm:$0xff]   ;;  %v1847_v17 = vld [vmem:[%s2010_s19 + $0x188] ss:$16 sps:$4 sm:$0xff]   ;;  %v1854_v18 = vld [vmem:[%s2010_s19 + $0x1c4] ss:$16 sps:$4 sm:$0xff]  }
  0x23   : > { %v1851_v19 = vld [vmem:[%s2010_s19 + $0x1ac] ss:$16 sps:$4 sm:$0xff]   ;;  %v1856_v20 = vld [vmem:[%s2010_s19 + $0x1c0] ss:$16 sps:$4 sm:$0xff]   ;;  %v1860_v22 = vld [vmem:[%s2010_s19 + $0x1e4] ss:$16 sps:$4 sm:$0xff]  }
  0x24   : > { %1079 = vmatpush1.bf16.msra.mxu1 %v1762_v21  ;;  %v1853_v21 = vld [vmem:[%s2010_s19 + $0x1a8] ss:$16 sps:$4 sm:$0xff]   ;;  %v1857_v23 = vld [vmem:[%s2010_s19 + $0x1cc] ss:$16 sps:$4 sm:$0xff]   ;;  %v1862_v24 = vld [vmem:[%s2010_s19 + $0x1e0] ss:$16 sps:$4 sm:$0xff]  }
  0x25   : > { %1080 = vmatprep.subr.bf16.mxu1 %v1890_v1  ;;  %1621 = vmatpush3.bf16.msra.mxu0 %v1767_v25  ;;  %v1859_v25 = vld [vmem:[%s2010_s19 + $0x1c8] ss:$16 sps:$4 sm:$0xff]   ;;  %v1863_v26 = vld [vmem:[%s2010_s19 + $0x1ec] ss:$16 sps:$4 sm:$0xff]  }
  0x28   : > { %1081 = vmatpush1.bf16.msra.mxu1 %v1765_v27  ;;  %936 = vmatmul.mubr.bf16.vlgmr.msra.gmra.mrb[0].mxu0 %v1768_v28  ;;  %v1865_v27 = vld [vmem:[%s2010_s19 + $0x1e8] ss:$16 sps:$4 sm:$0xff]  }
  0x29   : > { %1082 = vmatprep.subr.bf16.mxu1 %v1890_v1  ;;  %943 = vmatprep.mubr.bf16.mxu0 %v1776_v29 }
  0x2c   : > { %1083 = vmatpush1.bf16.msra.mxu1 %v1771_v30 }
  0x2d   : > { %1084 = vmatprep.subr.bf16.mxu1 %v1890_v1  ;;  %v1823_v1 = vld [vmem:[%s2010_s19 + $0x108] ss:$16 sps:$4 sm:$0xff]   ;;  %s2134_s19 = scalar_lea.vmem %s2242_s4, %s1493_s12 }
  0x30   : > { %1085 = vmatpush1.bf16.msra.mxu1 %v1772_v31  ;;  %944 = vmatmul.mubr.bf16.gmra.mrb[4].mxu0 %v1778_v32 }
  0x31   : > { %951 = vmatprep.mubr.bf16.mxu0 %v1782_v34 }
  0x33   : > { %1097 = vmatmul.mubr.bf16.vlgmr.msra.gmra.mrb[0].mxu1 %v1773_v33 }
  0x34   : > { %1586 = vmatprep.mubr.msk.bf16.mxu1 %vm854_vm0, %v1779_v35 }
  0x38   : > { %952 = vmatmul.mubr.bf16.gmra.mrb[8].mxu0 %v1784_v36  ;;  %v2120_v36 = vld [vmem:[%s2240_s2] ss:$0 sm:$0xff] }
  0x39   : > { %959 = vmatprep.mubr.bf16.mxu0 %v1788_v38 }
  0x3b   : > { %1105 = vmatmul.mubr.bf16.gmra.mrb[4].mxu1 %v1781_v37 }
  0x3c   : > { %1587 = vmatprep.mubr.msk.bf16.mxu1 %vm854_vm0, %v1785_v39 }
  0x40   : > { %960 = vmatmul.mubr.bf16.gmra.mrb[12].mxu0 %v1790_v40 }
  0x41   : > { %967 = vmatprep.mubr.bf16.mxu0 %v1794_v42  ;;  %v2125_v42 = vld [vmem:[%s2241_s3] ss:$0 sm:$0xff] }
  0x43   : > { %1113 = vmatmul.mubr.bf16.gmra.mrb[8].mxu1 %v1787_v41 }
  0x44   : > { %1588 = vmatprep.mubr.msk.bf16.mxu1 %vm854_vm0, %v1791_v43 }
  0x48   : > { %968 = vmatmul.mubr.bf16.gmra.mrb[16].mxu0 %v1796_v44 }
  0x49   : > { %975 = vmatprep.mubr.bf16.mxu0 %v1800_v46 }
  0x4b   : > { %1121 = vmatmul.mubr.bf16.gmra.mrb[12].mxu1 %v1793_v45 }
  0x4c   : > { %1589 = vmatprep.mubr.msk.bf16.mxu1 %vm854_vm0, %v1797_v47 }
  0x50   : > { %976 = vmatmul.mubr.bf16.gmra.mrb[20].mxu0 %v1802_v48 }
  0x51   : > { %983 = vmatprep.mubr.bf16.mxu0 %v1806_v50 }
  0x53   : > { %1129 = vmatmul.mubr.bf16.gmra.mrb[16].mxu1 %v1799_v49 }
  0x54   : > { %1590 = vmatprep.mubr.msk.bf16.mxu1 %vm854_vm0, %v1803_v51 }
  0x58   : > { %984 = vmatmul.mubr.bf16.gmra.mrb[24].mxu0 %v1808_v52 }
  0x59   : > { %991 = vmatprep.mubr.bf16.mxu0 %v1812_v54 }
  0x5b   : > { %1137 = vmatmul.mubr.bf16.gmra.mrb[20].mxu1 %v1805_v53 }
  0x5c   : > { %1591 = vmatprep.mubr.msk.bf16.mxu1 %vm854_vm0, %v1809_v55 }
  0x60   : > { %992 = vmatmul.mubr.bf16.gmra.mrb[28].mxu0 %v1814_v56 }
  0x61   : > { %999 = vmatprep.mubr.bf16.mxu0 %v1818_v58 }
  0x63   : > { %1145 = vmatmul.mubr.bf16.gmra.mrb[24].mxu1 %v1811_v57 }
  0x64   : > { %1592 = vmatprep.mubr.msk.bf16.mxu1 %vm854_vm0, %v1815_v59 }
  0x68   : > { %1000 = vmatmul.mubr.bf16.gmra.mrb[32].mxu0 %v1820_v60 }
  0x69   : > { %1007 = vmatprep.mubr.bf16.mxu0 %v1824_v62 }
  0x6b   : > { %1153 = vmatmul.mubr.bf16.gmra.mrb[28].mxu1 %v1817_v61 }
  0x6c   : > { %1593 = vmatprep.mubr.msk.bf16.mxu1 %vm854_vm0, %v1821_v63 }
  0x70   : > { %1008 = vmatmul.mubr.bf16.gmra.mrb[36].mxu0 %v1826_v0 }
  0x71   : > { %1015 = vmatprep.mubr.bf16.mxu0 %v1830_v2 }
  0x73   : > { %1161 = vmatmul.mubr.bf16.gmra.mrb[32].mxu1 %v1823_v1 }
  0x74   : > { %1594 = vmatprep.mubr.msk.bf16.mxu1 %vm854_vm0, %v1827_v3 }
  0x78   : > { %1016 = vmatmul.mubr.bf16.gmra.mrb[40].mxu0 %v1832_v4 }
  0x79   : > { %1023 = vmatprep.mubr.bf16.mxu0 %v1836_v6 }
  0x7b   : > { %1169 = vmatmul.mubr.bf16.gmra.mrb[36].mxu1 %v1829_v5 }
  0x7c   : > { %1595 = vmatprep.mubr.msk.bf16.mxu1 %vm854_vm0, %v1833_v7 }
  0x80   : > { %1024 = vmatmul.mubr.bf16.gmra.mrb[44].mxu0 %v1838_v8 }
  0x81   : > { %1031 = vmatprep.mubr.bf16.mxu0 %v1842_v10 }
  0x83   : > { %1177 = vmatmul.mubr.bf16.gmra.mrb[40].mxu1 %v1835_v9 }
  0x84   : > { %1596 = vmatprep.mubr.msk.bf16.mxu1 %vm854_vm0, %v1839_v11 }
  0x88   : > { %1032 = vmatmul.mubr.bf16.gmra.mrb[48].mxu0 %v1844_v12 }
  0x89   : > { %1039 = vmatprep.mubr.bf16.mxu0 %v1848_v14 }
  0x8b   : > { %1185 = vmatmul.mubr.bf16.gmra.mrb[44].mxu1 %v1841_v13 }
  0x8c   : > { %1597 = vmatprep.mubr.msk.bf16.mxu1 %vm854_vm0, %v1845_v15 }
  0x90   : > { %1040 = vmatmul.mubr.bf16.gmra.mrb[52].mxu0 %v1850_v16 }
  0x91   : > { %1047 = vmatprep.mubr.bf16.mxu0 %v1854_v18 }
  0x93   : > { %1193 = vmatmul.mubr.bf16.gmra.mrb[48].mxu1 %v1847_v17 }
  0x94   : > { %1598 = vmatprep.mubr.msk.bf16.mxu1 %vm854_vm0, %v1851_v19 }
  0x98   : > { %1048 = vmatmul.mubr.bf16.gmra.mrb[56].mxu0 %v1856_v20 }
  0x99   : > { %1055 = vmatprep.mubr.bf16.mxu0 %v1860_v22 }
  0x9b   : > { %1201 = vmatmul.mubr.bf16.gmra.mrb[52].mxu1 %v1853_v21 }
  0x9c   : > { %1599 = vmatprep.mubr.msk.bf16.mxu1 %vm854_vm0, %v1857_v23 }
  0xa0   : > { %1056 = vmatmul.mubr.bf16.gmra.mrb[60].mxu0 %v1862_v24 }
  0xa3   : > { %1209 = vmatmul.mubr.bf16.gmra.mrb[56].mxu1 %v1859_v25 }
  0xa4   : > { %1600 = vmatprep.mubr.msk.bf16.mxu1 %vm854_vm0, %v1863_v26 }
  0xab   : > { %1217 = vmatmul.mubr.bf16.gmra.mrb[60].mxu1 %v1865_v27 }
  0xfb   : > { %v1622_v28 = vpop.f32.mrb[0].mxu0 }
  0xfc   : > { %v1623_v29 = vpop.f32.mrb[1].mxu0 }
  0xfd   : > { %v1624_v30 = vadd.f32 %v1623_v29, %v1622_v28  ;;  %v1625_v31 = vpop.f32.mrb[2].mxu0 }
  0xfe   : > { %v1626_v32 = vpop.f32.mrb[3].mxu0 }
  0xff   : > { %v1627_v33 = vadd.f32 %v1626_v32, %v1625_v31 }
 0x103   : > { %v1628_v34 = vpop.f32.mrb[4].mxu0 }
 0x104   : > { %v1629_v37 = vpop.f32.mrb[5].mxu0 }
 0x105   : > { %v1630_v40 = vadd.f32 %v1629_v37, %v1628_v34  ;;  %v1631_v41 = vpop.f32.mrb[6].mxu0 }
 0x106   : > { %v1098_v35 = vpop.f32.mrb[0].mxu1  ;;  %v1632_v44 = vpop.f32.mrb[7].mxu0 }
 0x107   : > { %v1099_v38 = vadd.f32 %v1624_v30, %v1098_v35  ;;  %v1100_v39 = vpop.f32.mrb[1].mxu1  ;;  %v1633_v48 = vadd.f32 %v1632_v44, %v1631_v41 }
 0x108   : > { %v1101_v43 = vpop.f32.mrb[2].mxu1 }
 0x109   : > { %v1232_v45 = vmul.f32 %v2120_v36, %v1099_v38  ;;  %v1102_v46 = vadd.f32 %v1627_v33, %v1101_v43  ;;  %v1103_v47 = vpop.f32.mrb[3].mxu1 }
 0x10b   : > { %v1271_v49 = vadd.f32 %v2125_v42, %v1232_v45  ;;  %v1233_v50 = vmul.f32 %v2120_v36, %v1102_v46  ;;  %v1634_v53 = vpop.f32.mrb[8].mxu0 }
 0x10c   : > { %v1635_v55 = vpop.f32.mrb[9].mxu0 }
 0x10d   : > { %v1303_v51 = vmax.f32 %v1271_v49, 0.0  ;;  %v1272_v52 = vadd.f32 %v2125_v42, %v1233_v50  ;;  %v1636_v59 = vadd.f32 %v1635_v55, %v1634_v53  ;;  %v1637_v60 = vpop.f32.mrb[10].mxu0 }
 0x10e   : > { %v1106_v54 = vpop.f32.mrb[4].mxu1  ;;  %v1638_v62 = vpop.f32.mrb[11].mxu0 }
 0x10f   : > { %1335 = vst [vmem:[%s2134_s19] sm:$0xff] %v1303_v51  ;;  %v1304_v56 = vmax.f32 %v1272_v52, 0.0  ;;  %v1107_v57 = vadd.f32 %v1630_v40, %v1106_v54  ;;  %v1108_v58 = vpop.f32.mrb[5].mxu1  ;;  %v1639_v2 = vadd.f32 %v1638_v62, %v1637_v60 }
 0x110   : > { %v1109_v61 = vpop.f32.mrb[6].mxu1 }
 0x111   : > { %1336 = vst [vmem:[%s2134_s19 + $0x8] sm:$0xff] %v1304_v56  ;;  %v1234_v63 = vmul.f32 %v2120_v36, %v1107_v57  ;;  %v1110_v0 = vadd.f32 %v1633_v48, %v1109_v61  ;;  %v1111_v1 = vpop.f32.mrb[7].mxu1 }
 0x113   : > { %v1273_v3 = vadd.f32 %v2125_v42, %v1234_v63  ;;  %v1235_v4 = vmul.f32 %v2120_v36, %v1110_v0  ;;  %v1640_v7 = vpop.f32.mrb[12].mxu0 }
 0x114   : > { %v1641_v9 = vpop.f32.mrb[13].mxu0 }
 0x115   : > { %v1305_v5 = vmax.f32 %v1273_v3, 0.0  ;;  %v1274_v6 = vadd.f32 %v2125_v42, %v1235_v4  ;;  %v1642_v13 = vadd.f32 %v1641_v9, %v1640_v7  ;;  %v1643_v14 = vpop.f32.mrb[14].mxu0 }
 0x116   : > { %v1114_v8 = vpop.f32.mrb[8].mxu1  ;;  %v1644_v16 = vpop.f32.mrb[15].mxu0 }
 0x117   : > { %1337 = vst [vmem:[%s2134_s19 + $0x10] sm:$0xff] %v1305_v5  ;;  %v1306_v10 = vmax.f32 %v1274_v6, 0.0  ;;  %v1115_v11 = vadd.f32 %v1636_v59, %v1114_v8  ;;  %v1116_v12 = vpop.f32.mrb[9].mxu1  ;;  %v1645_v20 = vadd.f32 %v1644_v16, %v1643_v14 }
 0x118   : > { %v1117_v15 = vpop.f32.mrb[10].mxu1 }
 0x119   : > { %1338 = vst [vmem:[%s2134_s19 + $0x18] sm:$0xff] %v1306_v10  ;;  %v1236_v17 = vmul.f32 %v2120_v36, %v1115_v11  ;;  %v1118_v18 = vadd.f32 %v1639_v2, %v1117_v15  ;;  %v1119_v19 = vpop.f32.mrb[11].mxu1 }
 0x11b   : > { %v1275_v21 = vadd.f32 %v2125_v42, %v1236_v17  ;;  %v1237_v22 = vmul.f32 %v2120_v36, %v1118_v18  ;;  %v1646_v25 = vpop.f32.mrb[16].mxu0 }
 0x11c   : > { %v1647_v27 = vpop.f32.mrb[17].mxu0 }
 0x11d   : > { %v1307_v23 = vmax.f32 %v1275_v21, 0.0  ;;  %v1276_v24 = vadd.f32 %v2125_v42, %v1237_v22  ;;  %v1648_v31 = vadd.f32 %v1647_v27, %v1646_v25  ;;  %v1649_v32 = vpop.f32.mrb[18].mxu0 }
 0x11e   : > { %v1122_v26 = vpop.f32.mrb[12].mxu1  ;;  %v1650_v34 = vpop.f32.mrb[19].mxu0 }
 0x11f   : > { %1339 = vst [vmem:[%s2134_s19 + $0x20] sm:$0xff] %v1307_v23  ;;  %v1308_v28 = vmax.f32 %v1276_v24, 0.0  ;;  %v1123_v29 = vadd.f32 %v1642_v13, %v1122_v26  ;;  %v1124_v30 = vpop.f32.mrb[13].mxu1  ;;  %v1651_v39 = vadd.f32 %v1650_v34, %v1649_v32 }
 0x120   : > { %v1125_v33 = vpop.f32.mrb[14].mxu1 }
 0x121   : > { %1340 = vst [vmem:[%s2134_s19 + $0x28] sm:$0xff] %v1308_v28  ;;  %v1238_v35 = vmul.f32 %v2120_v36, %v1123_v29  ;;  %v1126_v37 = vadd.f32 %v1645_v20, %v1125_v33  ;;  %v1127_v38 = vpop.f32.mrb[15].mxu1 }
 0x123   : > { %v1277_v40 = vadd.f32 %v2125_v42, %v1238_v35  ;;  %v1239_v41 = vmul.f32 %v2120_v36, %v1126_v37  ;;  %v1652_v45 = vpop.f32.mrb[20].mxu0 }
 0x124   : > { %v1653_v47 = vpop.f32.mrb[21].mxu0 }
 0x125   : > { %v1309_v43 = vmax.f32 %v1277_v40, 0.0  ;;  %v1278_v44 = vadd.f32 %v2125_v42, %v1239_v41  ;;  %v1654_v51 = vadd.f32 %v1653_v47, %v1652_v45  ;;  %v1655_v52 = vpop.f32.mrb[22].mxu0 }
 0x126   : > { %v1130_v46 = vpop.f32.mrb[16].mxu1  ;;  %v1656_v54 = vpop.f32.mrb[23].mxu0 }
 0x127   : > { %1341 = vst [vmem:[%s2134_s19 + $0x30] sm:$0xff] %v1309_v43  ;;  %v1310_v48 = vmax.f32 %v1278_v44, 0.0  ;;  %v1131_v49 = vadd.f32 %v1648_v31, %v1130_v46  ;;  %v1132_v50 = vpop.f32.mrb[17].mxu1  ;;  %v1657_v58 = vadd.f32 %v1656_v54, %v1655_v52 }
 0x128   : > { %v1133_v53 = vpop.f32.mrb[18].mxu1 }
 0x129   : > { %1342 = vst [vmem:[%s2134_s19 + $0x38] sm:$0xff] %v1310_v48  ;;  %v1240_v55 = vmul.f32 %v2120_v36, %v1131_v49  ;;  %v1134_v56 = vadd.f32 %v1651_v39, %v1133_v53  ;;  %v1135_v57 = vpop.f32.mrb[19].mxu1 }
 0x12b   : > { %v1279_v59 = vadd.f32 %v2125_v42, %v1240_v55  ;;  %v1241_v60 = vmul.f32 %v2120_v36, %v1134_v56  ;;  %v1658_v63 = vpop.f32.mrb[24].mxu0 }
 0x12c   : > { %v1659_v1 = vpop.f32.mrb[25].mxu0 }
 0x12d   : > { %v1311_v61 = vmax.f32 %v1279_v59, 0.0  ;;  %v1280_v62 = vadd.f32 %v2125_v42, %v1241_v60  ;;  %v1660_v5 = vadd.f32 %v1659_v1, %v1658_v63  ;;  %v1661_v6 = vpop.f32.mrb[26].mxu0 }
 0x12e   : > { %v1138_v0 = vpop.f32.mrb[20].mxu1  ;;  %v1662_v8 = vpop.f32.mrb[27].mxu0 }
 0x12f   : > { %1343 = vst [vmem:[%s2134_s19 + $0x40] sm:$0xff] %v1311_v61  ;;  %v1312_v2 = vmax.f32 %v1280_v62, 0.0  ;;  %v1139_v3 = vadd.f32 %v1654_v51, %v1138_v0  ;;  %v1140_v4 = vpop.f32.mrb[21].mxu1  ;;  %v1663_v12 = vadd.f32 %v1662_v8, %v1661_v6 }
 0x130   : > { %v1141_v7 = vpop.f32.mrb[22].mxu1 }
 0x131   : > { %1344 = vst [vmem:[%s2134_s19 + $0x48] sm:$0xff] %v1312_v2  ;;  %v1242_v9 = vmul.f32 %v2120_v36, %v1139_v3  ;;  %v1142_v10 = vadd.f32 %v1657_v58, %v1141_v7  ;;  %v1143_v11 = vpop.f32.mrb[23].mxu1 }
 0x133   : > { %v1281_v13 = vadd.f32 %v2125_v42, %v1242_v9  ;;  %v1243_v14 = vmul.f32 %v2120_v36, %v1142_v10  ;;  %v1664_v17 = vpop.f32.mrb[28].mxu0 }
 0x134   : > { %v1665_v19 = vpop.f32.mrb[29].mxu0 }
 0x135   : > { %v1313_v15 = vmax.f32 %v1281_v13, 0.0  ;;  %v1282_v16 = vadd.f32 %v2125_v42, %v1243_v14  ;;  %v1666_v23 = vadd.f32 %v1665_v19, %v1664_v17  ;;  %v1667_v24 = vpop.f32.mrb[30].mxu0 }
 0x136   : > { %v1146_v18 = vpop.f32.mrb[24].mxu1  ;;  %v1668_v26 = vpop.f32.mrb[31].mxu0 }
 0x137   : > { %1345 = vst [vmem:[%s2134_s19 + $0x50] sm:$0xff] %v1313_v15  ;;  %v1314_v20 = vmax.f32 %v1282_v16, 0.0  ;;  %v1147_v21 = vadd.f32 %v1660_v5, %v1146_v18  ;;  %v1148_v22 = vpop.f32.mrb[25].mxu1  ;;  %v1669_v30 = vadd.f32 %v1668_v26, %v1667_v24 }
 0x138   : > { %v1149_v25 = vpop.f32.mrb[26].mxu1 }
 0x139   : > { %1346 = vst [vmem:[%s2134_s19 + $0x58] sm:$0xff] %v1314_v20  ;;  %v1244_v27 = vmul.f32 %v2120_v36, %v1147_v21  ;;  %v1150_v28 = vadd.f32 %v1663_v12, %v1149_v25  ;;  %v1151_v29 = vpop.f32.mrb[27].mxu1 }
 0x13b   : > { %v1283_v31 = vadd.f32 %v2125_v42, %v1244_v27  ;;  %v1245_v32 = vmul.f32 %v2120_v36, %v1150_v28  ;;  %v1670_v35 = vpop.f32.mrb[32].mxu0 }
 0x13c   : > { %v1671_v38 = vpop.f32.mrb[33].mxu0 }
 0x13d   : > { %v1315_v33 = vmax.f32 %v1283_v31, 0.0  ;;  %v1284_v34 = vadd.f32 %v2125_v42, %v1245_v32  ;;  %v1672_v43 = vadd.f32 %v1671_v38, %v1670_v35  ;;  %v1673_v44 = vpop.f32.mrb[34].mxu0 }
 0x13e   : > { %v1154_v37 = vpop.f32.mrb[28].mxu1  ;;  %v1674_v46 = vpop.f32.mrb[35].mxu0 }
 0x13f   : > { %1347 = vst [vmem:[%s2134_s19 + $0x60] sm:$0xff] %v1315_v33  ;;  %v1316_v39 = vmax.f32 %v1284_v34, 0.0  ;;  %v1155_v40 = vadd.f32 %v1666_v23, %v1154_v37  ;;  %v1156_v41 = vpop.f32.mrb[29].mxu1  ;;  %v1675_v50 = vadd.f32 %v1674_v46, %v1673_v44 }
 0x140   : > { %v1157_v45 = vpop.f32.mrb[30].mxu1 }
 0x141   : > { %1348 = vst [vmem:[%s2134_s19 + $0x68] sm:$0xff] %v1316_v39  ;;  %v1246_v47 = vmul.f32 %v2120_v36, %v1155_v40  ;;  %v1158_v48 = vadd.f32 %v1669_v30, %v1157_v45  ;;  %v1159_v49 = vpop.f32.mrb[31].mxu1 }
 0x143   : > { %v1285_v51 = vadd.f32 %v2125_v42, %v1246_v47  ;;  %v1247_v52 = vmul.f32 %v2120_v36, %v1158_v48  ;;  %v1676_v55 = vpop.f32.mrb[36].mxu0 }
 0x144   : > { %v1677_v57 = vpop.f32.mrb[37].mxu0 }
 0x145   : > { %v1317_v53 = vmax.f32 %v1285_v51, 0.0  ;;  %v1286_v54 = vadd.f32 %v2125_v42, %v1247_v52  ;;  %v1678_v61 = vadd.f32 %v1677_v57, %v1676_v55  ;;  %v1679_v62 = vpop.f32.mrb[38].mxu0 }
 0x146   : > { %v1162_v56 = vpop.f32.mrb[32].mxu1  ;;  %v1680_v0 = vpop.f32.mrb[39].mxu0 }
 0x147   : > { %1349 = vst [vmem:[%s2134_s19 + $0x70] sm:$0xff] %v1317_v53  ;;  %v1318_v58 = vmax.f32 %v1286_v54, 0.0  ;;  %v1163_v59 = vadd.f32 %v1672_v43, %v1162_v56  ;;  %v1164_v60 = vpop.f32.mrb[33].mxu1  ;;  %v1681_v4 = vadd.f32 %v1680_v0, %v1679_v62 }
 0x148   : > { %v1165_v63 = vpop.f32.mrb[34].mxu1 }
 0x149   : > { %1350 = vst [vmem:[%s2134_s19 + $0x78] sm:$0xff] %v1318_v58  ;;  %v1248_v1 = vmul.f32 %v2120_v36, %v1163_v59  ;;  %v1166_v2 = vadd.f32 %v1675_v50, %v1165_v63  ;;  %v1167_v3 = vpop.f32.mrb[35].mxu1 }
 0x14b   : > { %v1287_v5 = vadd.f32 %v2125_v42, %v1248_v1  ;;  %v1249_v6 = vmul.f32 %v2120_v36, %v1166_v2  ;;  %v1682_v9 = vpop.f32.mrb[40].mxu0 }
 0x14c   : > { %v1683_v11 = vpop.f32.mrb[41].mxu0 }
 0x14d   : > { %v1319_v7 = vmax.f32 %v1287_v5, 0.0  ;;  %v1288_v8 = vadd.f32 %v2125_v42, %v1249_v6  ;;  %v1684_v15 = vadd.f32 %v1683_v11, %v1682_v9  ;;  %v1685_v16 = vpop.f32.mrb[42].mxu0 }
 0x14e   : > { %v1170_v10 = vpop.f32.mrb[36].mxu1  ;;  %v1686_v18 = vpop.f32.mrb[43].mxu0 }
 0x14f   : > { %1351 = vst [vmem:[%s2134_s19 + $0x80] sm:$0xff] %v1319_v7  ;;  %v1320_v12 = vmax.f32 %v1288_v8, 0.0  ;;  %v1171_v13 = vadd.f32 %v1678_v61, %v1170_v10  ;;  %v1172_v14 = vpop.f32.mrb[37].mxu1  ;;  %v1687_v22 = vadd.f32 %v1686_v18, %v1685_v16 }
 0x150   : > { %v1173_v17 = vpop.f32.mrb[38].mxu1 }
 0x151   : > { %1352 = vst [vmem:[%s2134_s19 + $0x88] sm:$0xff] %v1320_v12  ;;  %v1250_v19 = vmul.f32 %v2120_v36, %v1171_v13  ;;  %v1174_v20 = vadd.f32 %v1681_v4, %v1173_v17  ;;  %v1175_v21 = vpop.f32.mrb[39].mxu1 }
 0x153   : > { %v1289_v23 = vadd.f32 %v2125_v42, %v1250_v19  ;;  %v1251_v24 = vmul.f32 %v2120_v36, %v1174_v20  ;;  %v1688_v27 = vpop.f32.mrb[44].mxu0 }
 0x154   : > { %v1689_v29 = vpop.f32.mrb[45].mxu0 }
 0x155   : > { %v1321_v25 = vmax.f32 %v1289_v23, 0.0  ;;  %v1290_v26 = vadd.f32 %v2125_v42, %v1251_v24  ;;  %v1690_v33 = vadd.f32 %v1689_v29, %v1688_v27  ;;  %v1691_v34 = vpop.f32.mrb[46].mxu0 }
 0x156   : > { %v1178_v28 = vpop.f32.mrb[40].mxu1  ;;  %v1692_v37 = vpop.f32.mrb[47].mxu0 }
 0x157   : > { %1353 = vst [vmem:[%s2134_s19 + $0x90] sm:$0xff] %v1321_v25  ;;  %v1322_v30 = vmax.f32 %v1290_v26, 0.0  ;;  %v1179_v31 = vadd.f32 %v1684_v15, %v1178_v28  ;;  %v1180_v32 = vpop.f32.mrb[41].mxu1  ;;  %v1693_v41 = vadd.f32 %v1692_v37, %v1691_v34 }
 0x158   : > { %v1181_v35 = vpop.f32.mrb[42].mxu1 }
 0x159   : > { %1354 = vst [vmem:[%s2134_s19 + $0x98] sm:$0xff] %v1322_v30  ;;  %v1252_v38 = vmul.f32 %v2120_v36, %v1179_v31  ;;  %v1182_v39 = vadd.f32 %v1687_v22, %v1181_v35  ;;  %v1183_v40 = vpop.f32.mrb[43].mxu1 }
 0x15b   : > { %v1291_v43 = vadd.f32 %v2125_v42, %v1252_v38  ;;  %v1253_v44 = vmul.f32 %v2120_v36, %v1182_v39  ;;  %v1694_v47 = vpop.f32.mrb[48].mxu0 }
 0x15c   : > { %v1695_v49 = vpop.f32.mrb[49].mxu0 }
 0x15d   : > { %v1323_v45 = vmax.f32 %v1291_v43, 0.0  ;;  %v1292_v46 = vadd.f32 %v2125_v42, %v1253_v44  ;;  %v1696_v53 = vadd.f32 %v1695_v49, %v1694_v47  ;;  %v1697_v54 = vpop.f32.mrb[50].mxu0 }
 0x15e   : > { %v1186_v48 = vpop.f32.mrb[44].mxu1  ;;  %v1698_v56 = vpop.f32.mrb[51].mxu0 }
 0x15f   : > { %1355 = vst [vmem:[%s2134_s19 + $0xa0] sm:$0xff] %v1323_v45  ;;  %v1324_v50 = vmax.f32 %v1292_v46, 0.0  ;;  %v1187_v51 = vadd.f32 %v1690_v33, %v1186_v48  ;;  %v1188_v52 = vpop.f32.mrb[45].mxu1  ;;  %v1699_v60 = vadd.f32 %v1698_v56, %v1697_v54 }
 0x160   : > { %v1189_v55 = vpop.f32.mrb[46].mxu1 }
 0x161   : > { %1356 = vst [vmem:[%s2134_s19 + $0xa8] sm:$0xff] %v1324_v50  ;;  %v1254_v57 = vmul.f32 %v2120_v36, %v1187_v51  ;;  %v1190_v58 = vadd.f32 %v1693_v41, %v1189_v55  ;;  %v1191_v59 = vpop.f32.mrb[47].mxu1 }
 0x163   : > { %v1293_v61 = vadd.f32 %v2125_v42, %v1254_v57  ;;  %v1255_v62 = vmul.f32 %v2120_v36, %v1190_v58  ;;  %v1700_v1 = vpop.f32.mrb[52].mxu0 }
 0x164   : > { %v1701_v3 = vpop.f32.mrb[53].mxu0 }
 0x165   : > { %v1325_v63 = vmax.f32 %v1293_v61, 0.0  ;;  %v1294_v0 = vadd.f32 %v2125_v42, %v1255_v62  ;;  %v1702_v7 = vadd.f32 %v1701_v3, %v1700_v1  ;;  %v1703_v8 = vpop.f32.mrb[54].mxu0 }
 0x166   : > { %v1194_v2 = vpop.f32.mrb[48].mxu1  ;;  %v1704_v10 = vpop.f32.mrb[55].mxu0 }
 0x167   : > { %1357 = vst [vmem:[%s2134_s19 + $0xb0] sm:$0xff] %v1325_v63  ;;  %v1326_v4 = vmax.f32 %v1294_v0, 0.0  ;;  %v1195_v5 = vadd.f32 %v1696_v53, %v1194_v2  ;;  %v1196_v6 = vpop.f32.mrb[49].mxu1  ;;  %v1705_v14 = vadd.f32 %v1704_v10, %v1703_v8 }
 0x168   : > { %v1197_v9 = vpop.f32.mrb[50].mxu1 }
 0x169   : > { %1358 = vst [vmem:[%s2134_s19 + $0xb8] sm:$0xff] %v1326_v4  ;;  %v1256_v11 = vmul.f32 %v2120_v36, %v1195_v5  ;;  %v1198_v12 = vadd.f32 %v1699_v60, %v1197_v9  ;;  %v1199_v13 = vpop.f32.mrb[51].mxu1 }
 0x16b   : > { %v1295_v15 = vadd.f32 %v2125_v42, %v1256_v11  ;;  %v1257_v16 = vmul.f32 %v2120_v36, %v1198_v12  ;;  %v1706_v19 = vpop.f32.mrb[56].mxu0 }
 0x16c   : > { %v1707_v21 = vpop.f32.mrb[57].mxu0 }
 0x16d   : > { %v1327_v17 = vmax.f32 %v1295_v15, 0.0  ;;  %v1296_v18 = vadd.f32 %v2125_v42, %v1257_v16  ;;  %v1708_v25 = vadd.f32 %v1707_v21, %v1706_v19  ;;  %v1709_v26 = vpop.f32.mrb[58].mxu0 }
 0x16e   : > { %v1202_v20 = vpop.f32.mrb[52].mxu1  ;;  %v1710_v28 = vpop.f32.mrb[59].mxu0 }
 0x16f   : > { %1359 = vst [vmem:[%s2134_s19 + $0xc0] sm:$0xff] %v1327_v17  ;;  %v1328_v22 = vmax.f32 %v1296_v18, 0.0  ;;  %v1203_v23 = vadd.f32 %v1702_v7, %v1202_v20  ;;  %v1204_v24 = vpop.f32.mrb[53].mxu1  ;;  %v1711_v32 = vadd.f32 %v1710_v28, %v1709_v26 }
 0x170   : > { %v1205_v27 = vpop.f32.mrb[54].mxu1 }
 0x171   : > { %1360 = vst [vmem:[%s2134_s19 + $0xc8] sm:$0xff] %v1328_v22  ;;  %v1258_v29 = vmul.f32 %v2120_v36, %v1203_v23  ;;  %v1206_v30 = vadd.f32 %v1705_v14, %v1205_v27  ;;  %v1207_v31 = vpop.f32.mrb[55].mxu1 }
 0x173   : > { %v1297_v33 = vadd.f32 %v2125_v42, %v1258_v29  ;;  %v1259_v34 = vmul.f32 %v2120_v36, %v1206_v30  ;;  %v1712_v38 = vpop.f32.mrb[60].mxu0 }
 0x174   : > { %v1713_v40 = vpop.f32.mrb[61].mxu0 }
 0x175   : > { %v1329_v35 = vmax.f32 %v1297_v33, 0.0  ;;  %v1298_v37 = vadd.f32 %v2125_v42, %v1259_v34  ;;  %v1714_v45 = vadd.f32 %v1713_v40, %v1712_v38  ;;  %v1715_v46 = vpop.f32.mrb[62].mxu0 }
 0x176   : > { %v1210_v39 = vpop.f32.mrb[56].mxu1  ;;  %v1716_v48 = vpop.f32.mrb[63].mxu0 }
 0x177   : > { %1361 = vst [vmem:[%s2134_s19 + $0xd0] sm:$0xff] %v1329_v35  ;;  %v1330_v41 = vmax.f32 %v1298_v37, 0.0  ;;  %v1211_v43 = vadd.f32 %v1708_v25, %v1210_v39  ;;  %v1212_v44 = vpop.f32.mrb[57].mxu1  ;;  %v1717_v52 = vadd.f32 %v1716_v48, %v1715_v46 }
 0x178   : > { %v1213_v47 = vpop.f32.mrb[58].mxu1 }
 0x179   : > { %1362 = vst [vmem:[%s2134_s19 + $0xd8] sm:$0xff] %v1330_v41  ;;  %v1260_v49 = vmul.f32 %v2120_v36, %v1211_v43  ;;  %v1214_v50 = vadd.f32 %v1711_v32, %v1213_v47  ;;  %v1215_v51 = vpop.f32.mrb[59].mxu1 }
 0x17b   : > { %v1299_v53 = vadd.f32 %v2125_v42, %v1260_v49  ;;  %v1261_v54 = vmul.f32 %v2120_v36, %v1214_v50 }
 0x17d   : > { %v1331_v55 = vmax.f32 %v1299_v53, 0.0  ;;  %v1300_v56 = vadd.f32 %v2125_v42, %v1261_v54 }
 0x17e   : > { %v1218_v57 = vpop.f32.mrb[60].mxu1 }
 0x17f   : > { %1363 = vst [vmem:[%s2134_s19 + $0xe0] sm:$0xff] %v1331_v55  ;;  %v1332_v58 = vmax.f32 %v1300_v56, 0.0  ;;  %v1219_v59 = vadd.f32 %v1714_v45, %v1218_v57  ;;  %v1220_v60 = vpop.f32.mrb[61].mxu1 }
 0x180   : > { %v1221_v61 = vpop.f32.mrb[62].mxu1 }
 0x181   : > { %1364 = vst [vmem:[%s2134_s19 + $0xe8] sm:$0xff] %v1332_v58  ;;  %v1262_v62 = vmul.f32 %v2120_v36, %v1219_v59  ;;  %v1222_v63 = vadd.f32 %v1717_v52, %v1221_v61  ;;  %v1223_v0 = vpop.f32.mrb[63].mxu1 }
 0x183   : > { %v1301_v1 = vadd.f32 %v2125_v42, %v1262_v62  ;;  %v1263_v2 = vmul.f32 %v2120_v36, %v1222_v63 }
 0x185   : > { %v1333_v3 = vmax.f32 %v1301_v1, 0.0  ;;  %v1302_v4 = vadd.f32 %v2125_v42, %v1263_v2 }
 0x187   : > { %1365 = vst [vmem:[%s2134_s19 + $0xf0] sm:$0xff] %v1333_v3  ;;  %v1334_v5 = vmax.f32 %v1302_v4, 0.0 }
 0x189   : > { %1366 = vst [vmem:[%s2134_s19 + $0xf8] sm:$0xff] %v1334_v5 }
 0x18a PF: > { %s14_s17 = sadd.s32 1, %s1888_s17   ;;  %s2243_s15 = smov %s1884_s16 }
 0x18b   : > { %p11_p5 = scmp.ge.s32.totalorder %s14_s17, 4   ;;  %s2244_s16 = smov %s2246_s18 }
 0x18d   :  { %13 = sbr.rel (!%p11_p5) target bundleno = 2 (0x2), region = 75 }

// kernel: _lambda_.8
= control target key start
LH: loop header
LB: loop body
LE: loop exit
PB: predicated region body
PF: predicated region fallthrough
CT: control target
= control target key end

     0   :  { %s1090_s12 = smov 0   ;;  %s1092_s13 = smov 0   ;;  %s1525_s0 = inlined_call_operand.vmem [shape: f32[2,6,10,10,192], index: 0, kind: input, shape index: {}, may-alias: {0,1,2}]   ;;  %s1526_s1 = inlined_call_operand.vmem [shape: f32[2,6,10,10,192], index: 1, kind: input, shape index: {}, may-alias: {0,1,2}]   ;;  %s1527_s2 = inlined_call_operand.vmem [shape: f32[2,6,10,10,192], index: 2, kind: input, shape index: {}, may-alias: {0,1,2}]   ;;  %s1528_s3 = inlined_call_operand.vmem [shape: f32[2,4,8,8,192], index: 3, kind: output, shape index: {}]  }
   0x1   :  { %s1094_s14 = smov 0   ;;  %s1096_s15 = smov 0  }
   0x2   :  { %s1098_s16 = smov 0  }
   0x3 LB: > { %s22_s17 = sadd.s32 1, %s1060_s14  ;;  %s25_s18 = sadd.s32 1, %s1064_s15  ;;  %s1068_s16 = sphi %s1098_s16, %s13_s16   ;;  %s1064_s15 = sphi %s1096_s15, %s1532_s15   ;;  %s1060_s14 = sphi %s1094_s14, %s1531_s14   ;;  %s1056_s13 = sphi %s1092_s13, %s1530_s13   ;;  %s1052_s12 = sphi %s1090_s12, %s1529_s12  }
   0x4   : > { %p23_p0 = scmp.ge.s32.totalorder %s22_s17, 4  ;;  %p977_p1 = scmp.ge.s32.totalorder %s1068_s16, 1 }
   0x5   : > { %p197_p2 = scmp.lt.s32.totalorder %s1068_s16, 9 }
   0x6   : > { %s1534_s17 = smov (%p23_p0, %s22_s17), 0  ;;  %s1536_s18 = smov (!%p23_p0, %s25_s18), %s1064_s15 }
   0x7   : > { %p198_p3 = pnand %p977_p1, %p197_p2  ;;  %p27_p4 = scmp.ge.s32.totalorder %s1536_s18, 2 }
   0x8   : > { %p249_p5 = scmp.lt.s32.totalorder (!%p198_p3), %s1056_s13, 1  ;;  %p251_p6 = scmp.lt.s32.totalorder (!%p198_p3), %s1052_s12, 5  ;;  %vm521_vm0 = vcmask (!%p198_p3), 1046528   ;;  %vm602_vm1 = vcmask (!%p198_p3), 1045504   ;;  %vm820_vm2 = vcmask (!%p198_p3), 523264  }
   0x9   : > { %s1538_s18 = smov (%p27_p4, %s1536_s18), 0  ;;  %201 = sbr.rel (%p198_p3) target bundleno = 119 (0x77), region = 32 }
   0xa   : > { %s258_s19 = sadd.s32 (!%p198_p3), 1, %s1052_s12  ;;  %s269_s23 = sadd.s32 (!%p198_p3), 2, %s1052_s12 }
   0xb   : > { %p261_p7 = scmp.lt.s32.totalorder (!%p198_p3), %s258_s19, 5  ;;  %p272_p8 = scmp.lt.s32.totalorder (!%p198_p3), %s269_s23, 5 }
   0xc   : > { %p282_p9 = scmp.lt.s32.totalorder (!%p198_p3), %s1052_s12, 3 }
  0x10   : > { %s1540_s13 = smov (!%p249_p5, %s1056_s13), 1  ;;  %s1542_s19 = smov (!%p261_p7, %s258_s19), 5 }
  0x11   : > { %s252_s20 = scalar_select %p251_p6, %s1052_s12, 5 }
  0x12   : > { %s1128_s21 = smul.u32 240, %s1540_s13  ;;  %s1544_s23 = smov (!%p272_p8, %s269_s23), 5 }
  0x13   : > { %s986_s22 = smul.u32 40, %s252_s20  ;;  %s1546_s12 = smov (!%p282_p9, %s1052_s12), 3 }
  0x14   : > { %s988_s26 = smul.u32 40, %s1542_s19 }
  0x15   : > { %s255_s24 = sadd.s32 %s1128_s21, %s986_s22  ;;  %s989_s8 = smul.u32 40, %s1544_s23 }
  0x16   : > { %s978_s25 = sshll.u32 %s255_s24, 3  ;;  %s265_s30 = sadd.s32 %s988_s26, %s1128_s21 }
  0x17   : > { %s1135_s29 = scalar_lea.vmem %s1525_s0, %s978_s25  ;;  %s979_s4 = sshll.u32 %s265_s30, 3 }
  0x18   : > { %s1141_s7 = scalar_lea.vmem %s1526_s1, %s979_s4  ;;  %v289_v0 = vld [vmem:[%s1135_s29] sm:$0xff]  ;;  %v291_v1 = vld [vmem:[%s1135_s29 + $0x10] sm:$0x3]  ;;  %v1156_v12 = vld [vmem:[%s1135_s29 + $0x8] sm:$0xff]  ;;  %s276_s9 = sadd.s32 %s989_s8, %s1128_s21 }
  0x19   : > { %v293_v2 = vld [vmem:[%s1135_s29 + $0x20] sm:$0xff]  ;;  %v295_v3 = vld [vmem:[%s1135_s29 + $0x30] sm:$0x3]  ;;  %v1161_v15 = vld [vmem:[%s1135_s29 + $0x18] sm:$0x3]  ;;  %s980_s10 = sshll.u32 %s276_s9, 3 }
  0x1a   : > { %v297_v4 = vld [vmem:[%s1135_s29 + $0x40] sm:$0xff]  ;;  %v299_v5 = vld [vmem:[%s1135_s29 + $0x50] sm:$0x3]  ;;  %v1164_v16 = vld [vmem:[%s1135_s29 + $0x28] sm:$0xff]  ;;  %s1197_s20 = scalar_lea.vmem %s1527_s2, %s980_s10  ;;  %s981_s21 = sshll.u32 %s1546_s12, 4 }
  0x1b   : > { %v329_v6 = vld [vmem:[%s1141_s7] sm:$0xff]  ;;  %v331_v7 = vld [vmem:[%s1141_s7 + $0x10] sm:$0x3]  ;;  %v1167_v17 = vld [vmem:[%s1135_s29 + $0x38] sm:$0x3]  ;;  %s982_s22 = sshll.u32 %s1540_s13, 6 }
  0x1c   : > { %v301_v8 = vld [vmem:[%s1135_s29 + $0x60] sm:$0xff]  ;;  %v335_v10 = vld [vmem:[%s1141_s7 + $0x30] sm:$0x3]  ;;  %v1170_v18 = vld [vmem:[%s1135_s29 + $0x48] sm:$0xff]  ;;  %v369_v20 = vmax.f32 %v289_v0, %v329_v6  ;;  %v371_v21 = vmax.f32 %v291_v1, %v331_v7  ;;  %s1271_s12 = sadd.s32 %s982_s22, %s981_s21 }
  0x1d   : > { %v333_v9 = vld [vmem:[%s1141_s7 + $0x20] sm:$0xff]  ;;  %v339_v13 = vld [vmem:[%s1141_s7 + $0x50] sm:$0x3]  ;;  %v1173_v19 = vld [vmem:[%s1135_s29 + $0x68] sm:$0xff]  ;;  %v375_v26 = vmax.f32 %v295_v3, %v335_v10  ;;  %s983_s13 = sshll.u32 %s1271_s12, 3 }
  0x1e   : > { %v337_v11 = vld [vmem:[%s1141_s7 + $0x40] sm:$0xff]  ;;  %v373_v22 = vmax.f32 %v293_v2, %v333_v9  ;;  %v1177_v23 = vld [vmem:[%s1141_s7 + $0x8] sm:$0xff]  ;;  %v1180_v24 = vld [vmem:[%s1141_s7 + $0x18] sm:$0x3]  ;;  %v379_v28 = vmax.f32 %v299_v5, %v339_v13  ;;  %s1301_s25 = scalar_lea.vmem %s1528_s3, %s983_s13 }
  0x1f   : > { %v341_v14 = vld [vmem:[%s1141_s7 + $0x60] sm:$0xff]  ;;  %v1183_v25 = vld [vmem:[%s1141_s7 + $0x28] sm:$0xff]  ;;  %v377_v27 = vmax.f32 %v297_v4, %v337_v11  ;;  %v1186_v29 = vld [vmem:[%s1141_s7 + $0x38] sm:$0x3]  ;;  %v370_v35 = vmax.f32 %v1156_v12, %v1177_v23  ;;  %v372_v39 = vmax.f32 %v1161_v15, %v1180_v24 }
  0x20   : > { %v1189_v30 = vld [vmem:[%s1141_s7 + $0x48] sm:$0xff]  ;;  %v381_v32 = vmax.f32 %v301_v8, %v341_v14  ;;  %v1200_v33 = vld [vmem:[%s1135_s29 + $0x58] sm:$0x3]  ;;  %v409_v36 = vld [vmem:[%s1197_s20] sm:$0xff]  ;;  %v374_v40 = vmax.f32 %v1164_v16, %v1183_v25  ;;  %v376_v41 = vmax.f32 %v1167_v17, %v1186_v29 }
  0x21   : > { %v1192_v31 = vld [vmem:[%s1141_s7 + $0x68] sm:$0xff]  ;;  %v1203_v34 = vld [vmem:[%s1141_s7 + $0x58] sm:$0x3]  ;;  %v411_v37 = vld [vmem:[%s1197_s20 + $0x10] sm:$0x3]  ;;  %v378_v42 = vmax.f32 %v1170_v18, %v1189_v30  ;;  %v449_v46 = vmax.f32 %v369_v20, %v409_v36 }
  0x22   : > { %v413_v38 = vld [vmem:[%s1197_s20 + $0x20] sm:$0xff]  ;;  %v415_v43 = vld [vmem:[%s1197_s20 + $0x30] sm:$0x3]  ;;  %v451_v47 = vmax.f32 %v371_v21, %v411_v37  ;;  %v382_v49 = vmax.f32 %v1173_v19, %v1192_v31  ;;  %v380_v54 = vmax.f32 %v1200_v33, %v1203_v34  ;;  %v410_v3 = vld [vmem:[%s1197_s20 + $0x8] sm:$0xff] }
  0x23   : > { %v417_v44 = vld [vmem:[%s1197_s20 + $0x40] sm:$0xff]  ;;  %v419_v45 = vld [vmem:[%s1197_s20 + $0x50] sm:$0x3]  ;;  %v453_v48 = vmax.f32 %v373_v22, %v413_v38  ;;  %v455_v51 = vmax.f32 %v375_v26, %v415_v43  ;;  %v522_v56 = vrot.slane %v449_v46, 1  ;;  %v603_v62 = vrot.slane %v449_v46, 2  ;;  %v414_v9 = vld [vmem:[%s1197_s20 + $0x28] sm:$0xff] }
  0x24   : > { %v421_v50 = vld [vmem:[%s1197_s20 + $0x60] sm:$0xff]  ;;  %v1225_v52 = vmax.f32 %v377_v27, %v417_v44  ;;  %v459_v53 = vmax.f32 %v379_v28, %v419_v45  ;;  %v523_v57 = vrot.slane %v451_v47, 1  ;;  %v604_v0 = vrot.slane %v451_v47, 2  ;;  %v412_v4 = vld [vmem:[%s1197_s20 + $0x18] sm:$0x3]  ;;  %v418_v11 = vld [vmem:[%s1197_s20 + $0x48] sm:$0xff] }
  0x25   : > { %v1229_v55 = vmax.f32 %v381_v32, %v421_v50  ;;  %v528_v58 = vrot.slane %v453_v48, 1  ;;  %v529_v59 = vrot.slane %v455_v51, 1  ;;  %v609_v1 = vrot.slane %v453_v48, 2  ;;  %v416_v10 = vld [vmem:[%s1197_s20 + $0x38] sm:$0x3]  ;;  %v422_v17 = vld [vmem:[%s1197_s20 + $0x68] sm:$0xff] }
  0x26   : > { %v534_v60 = vrot.slane %v1225_v52, 1  ;;  %v535_v61 = vrot.slane %v459_v53, 1  ;;  %v524_v63 = vsel %vm521_vm0, %v522_v56, %v523_v57  ;;  %v610_v2 = vrot.slane %v455_v51, 2  ;;  %v420_v16 = vld [vmem:[%s1197_s20 + $0x58] sm:$0x3] }
  0x27   : > { %v530_v5 = vsel %vm521_vm0, %v528_v58, %v529_v59  ;;  %v586_v7 = vmax.f32 %v449_v46, %v524_v63  ;;  %v615_v8 = vrot.slane %v1225_v52, 2  ;;  %v605_v14 = vsel %vm602_vm1, %v603_v62, %v604_v0  ;;  %v303_v46 = vld [vmem:[%s1135_s29 + $0x70] sm:$0x3] }
  0x28   : > { %v1242_v6 = vsel %vm521_vm0, %v534_v60, %v535_v61  ;;  %v588_v12 = vmax.f32 %v453_v48, %v530_v5  ;;  %v611_v15 = vsel %vm602_vm1, %v609_v1, %v610_v2  ;;  %v616_v18 = vrot.slane %v459_v53, 2  ;;  %v343_v47 = vld [vmem:[%s1141_s7 + $0x70] sm:$0x3]  ;;  %v305_v53 = vld [vmem:[%s1135_s29 + $0x80] sm:$0xff] }
  0x29   : > { %v590_v13 = vmax.f32 %v1225_v52, %v1242_v6  ;;  %v667_v19 = vmax.f32 %v586_v7, %v605_v14  ;;  %v450_v20 = vmax.f32 %v370_v35, %v410_v3  ;;  %v452_v21 = vmax.f32 %v372_v39, %v412_v4  ;;  %v423_v60 = vld [vmem:[%s1197_s20 + $0x70] sm:$0x3]  ;;  %v425_v1 = vld [vmem:[%s1197_s20 + $0x80] sm:$0xff] }
  0x2a   : > { %v669_v22 = vmax.f32 %v588_v12, %v611_v15  ;;  %v1254_v23 = vmax.f32 %v374_v40, %v414_v9  ;;  %v456_v24 = vmax.f32 %v376_v41, %v416_v10  ;;  %v1256_v25 = vmax.f32 %v378_v42, %v418_v11  ;;  %v304_v10 = vld [vmem:[%s1135_s29 + $0x78] sm:$0x3] }
  0x2b   : > { %v1261_v26 = vsel %vm602_vm1, %v615_v8, %v616_v18  ;;  %v683_v27 = vmax.f32 %v667_v19, %v453_v48  ;;  %v460_v28 = vmax.f32 %v380_v54, %v420_v16  ;;  %v1263_v29 = vmax.f32 %v382_v49, %v422_v17  ;;  %v345_v54 = vld [vmem:[%s1141_s7 + $0x80] sm:$0xff]  ;;  %v346_v16 = vld [vmem:[%s1141_s7 + $0x88] sm:$0xff] }
  0x2c   : > { %v1266_v30 = vmax.f32 %v590_v13, %v1261_v26  ;;  %v685_v31 = vmax.f32 %v669_v22, %v1225_v52  ;;  %v525_v32 = vrot.slane %v450_v20, 1  ;;  %v526_v33 = vrot.slane %v452_v21, 1 }
  0x2d   : > { %v711_v34 = vmax.f32 %v683_v27, %v530_v5  ;;  %v531_v35 = vrot.slane %v1254_v23, 1  ;;  %v532_v36 = vrot.slane %v456_v24, 1  ;;  %v537_v37 = vrot.slane %v1256_v25, 1  ;;  %v426_v27 = vld [vmem:[%s1197_s20 + $0x88] sm:$0xff] }
  0x2e   : > { %v687_v38 = vmax.f32 %v1266_v30, %v1229_v55  ;;  %v713_v39 = vmax.f32 %v685_v31, %v1242_v6  ;;  %v527_v40 = vsel %vm521_vm0, %v525_v32, %v526_v33  ;;  %v538_v41 = vrot.slane %v460_v28, 1 }
  0x2f   : > { %v735_v42 = vmax.f32 %v711_v34, %v611_v15  ;;  %v533_v43 = vsel %vm521_vm0, %v531_v35, %v532_v36  ;;  %v587_v44 = vmax.f32 %v450_v20, %v527_v40  ;;  %v606_v45 = vrot.slane %v450_v20, 2  ;;  %v306_v15 = vld [vmem:[%s1135_s29 + $0x88] sm:$0xff] }
  0x30   : > { %v737_v48 = vmax.f32 %v713_v39, %v1261_v26  ;;  %v1282_v49 = vsel %vm521_vm0, %v537_v37, %v538_v41  ;;  %v589_v50 = vmax.f32 %v1254_v23, %v533_v43  ;;  %v607_v51 = vrot.slane %v452_v21, 2  ;;  %v307_v37 = vld [vmem:[%s1135_s29 + $0x90] sm:$0x3] }
  0x31   : > { %v751_v56 = vmax.f32 %v735_v42, %v1225_v52  ;;  %v591_v57 = vmax.f32 %v1256_v25, %v1282_v49  ;;  %v612_v58 = vrot.slane %v1254_v23, 2  ;;  %v613_v59 = vrot.slane %v456_v24, 2 }
  0x32   : > { %v608_v61 = vsel %vm602_vm1, %v606_v45, %v607_v51  ;;  %v618_v62 = vrot.slane %v1256_v25, 2  ;;  %v619_v63 = vrot.slane %v460_v28, 2  ;;  %v383_v0 = vmax.f32 %v303_v46, %v343_v47  ;;  %v349_v45 = vld [vmem:[%s1141_s7 + $0xa0] sm:$0xff] }
  0x33   : > { %v779_v2 = vmax.f32 %v751_v56, %v1242_v6  ;;  %v614_v52 = vsel %vm602_vm1, %v612_v58, %v613_v59  ;;  %v668_v3 = vmax.f32 %v587_v44, %v608_v61  ;;  %v385_v4 = vmax.f32 %v305_v53, %v345_v54  ;;  %v344_v6 = vld [vmem:[%s1141_s7 + $0x78] sm:$0x3]  ;;  %v347_v44 = vld [vmem:[%s1141_s7 + $0x90] sm:$0x3]  ;;  %v429_v59 = vld [vmem:[%s1197_s20 + $0xa0] sm:$0xff] }
  0x34   : > { %v1304_v5 = vsel %vm602_vm1, %v618_v62, %v619_v63  ;;  %v670_v7 = vmax.f32 %v589_v50, %v614_v52  ;;  %v463_v8 = vmax.f32 %v383_v0, %v423_v60  ;;  %v540_v9 = vrot.slane %v1229_v55, 1  ;;  %v427_v54 = vld [vmem:[%s1197_s20 + $0x90] sm:$0x3]  ;;  %v308_v60 = vld [vmem:[%s1135_s29 + $0x98] sm:$0x3] }
  0x35   : > { %v803_v11 = vmax.f32 %v779_v2, %v1261_v26  ;;  %v672_v12 = vmax.f32 %v591_v57, %v1304_v5  ;;  %v684_v13 = vmax.f32 %v668_v3, %v1254_v23  ;;  %v1312_v14 = vmax.f32 %v385_v4, %v425_v1  ;;  %v424_v23 = vld [vmem:[%s1197_s20 + $0x78] sm:$0x3]  ;;  %v350_v2 = vld [vmem:[%s1141_s7 + $0xa8] sm:$0xff] }
  0x36   : > { %v686_v17 = vmax.f32 %v670_v7, %v1256_v25  ;;  %v541_v18 = vrot.slane %v463_v8, 1  ;;  %v621_v19 = vrot.slane %v1229_v55, 2  ;;  %v622_v20 = vrot.slane %v463_v8, 2  ;;  %v348_v61 = vld [vmem:[%s1141_s7 + $0x98] sm:$0x3] }
  0x37   : > { %819 = vst [vmem:[%s1301_s25] sm:$0xff] %v803_v11  ;;  %v688_v21 = vmax.f32 %v672_v12, %v1263_v29  ;;  %v712_v22 = vmax.f32 %v684_v13, %v533_v43  ;;  %v753_v24 = vmax.f32 %v737_v48, %v1229_v55  ;;  %v384_v26 = vmax.f32 %v304_v10, %v344_v6  ;;  %v309_v43 = vld [vmem:[%s1135_s29 + $0xa0] sm:$0xff]  ;;  %v428_v8 = vld [vmem:[%s1197_s20 + $0x98] sm:$0x3]  ;;  %v430_v12 = vld [vmem:[%s1197_s20 + $0xa8] sm:$0xff] }
  0x38   : > { %v714_v28 = vmax.f32 %v686_v17, %v1282_v49  ;;  %v542_v30 = vsel %vm521_vm0, %v540_v9, %v541_v18  ;;  %v623_v31 = vsel %vm602_vm1, %v621_v19, %v622_v20  ;;  %v386_v32 = vmax.f32 %v306_v15, %v346_v16  ;;  %v311_v16 = vld [vmem:[%s1135_s29 + $0xb0] sm:$0x3] }
  0x39   : > { %v736_v33 = vmax.f32 %v712_v22, %v614_v52  ;;  %v592_v34 = vmax.f32 %v1229_v55, %v542_v30  ;;  %v715_v35 = vmax.f32 %v687_v38, %v542_v30  ;;  %v781_v36 = vmax.f32 %v753_v24, %v542_v30 }
  0x3a   : > { %v738_v39 = vmax.f32 %v714_v28, %v1304_v5  ;;  %v464_v40 = vmax.f32 %v384_v26, %v424_v23  ;;  %v1329_v41 = vmax.f32 %v386_v32, %v426_v27  ;;  %v543_v42 = vrot.slane %v1263_v29, 1  ;;  %v313_v27 = vld [vmem:[%s1135_s29 + $0xc0] sm:$0xff] }
  0x3b   : > { %v752_v46 = vmax.f32 %v736_v33, %v1256_v25  ;;  %v673_v55 = vmax.f32 %v592_v34, %v623_v31  ;;  %v739_v38 = vmax.f32 %v715_v35, %v623_v31  ;;  %v805_v47 = vmax.f32 %v781_v36, %v623_v31  ;;  %v353_v28 = vld [vmem:[%s1141_s7 + $0xc0] sm:$0xff] }
  0x3c   : > { %v544_v48 = vrot.slane %v464_v40, 1  ;;  %v624_v50 = vrot.slane %v1263_v29, 2  ;;  %v625_v51 = vrot.slane %v464_v40, 2  ;;  %v754_v53 = vmax.f32 %v738_v39, %v1263_v29  ;;  %v431_v39 = vld [vmem:[%s1197_s20 + $0xb0] sm:$0x3]  ;;  %v433_v40 = vld [vmem:[%s1197_s20 + $0xc0] sm:$0xff] }
  0x3d   : > { %v780_v56 = vmax.f32 %v752_v46, %v1282_v49  ;;  %v689_v57 = vmax.f32 %v673_v55, %v1312_v14  ;;  %822 = vst [vmem:[%s1301_s25 + $0x10] sm:$0xff] %v805_v47  ;;  %v387_v25 = vmax.f32 %v307_v37, %v347_v44  ;;  %v389_v58 = vmax.f32 %v309_v43, %v349_v45  ;;  %v310_v49 = vld [vmem:[%s1135_s29 + $0xa8] sm:$0xff]  ;;  %v312_v47 = vld [vmem:[%s1135_s29 + $0xb8] sm:$0x3] }
  0x3e   : > { %v545_v62 = vsel %vm521_vm0, %v543_v42, %v544_v48  ;;  %v626_v63 = vsel %vm602_vm1, %v624_v50, %v625_v51  ;;  %v546_v0 = vrot.slane %v1312_v14, 1  ;;  %v627_v1 = vrot.slane %v1312_v14, 2 }
  0x3f   : > { %v804_v52 = vmax.f32 %v780_v56, %v1304_v5  ;;  %v593_v3 = vmax.f32 %v1263_v29, %v545_v62  ;;  %v716_v4 = vmax.f32 %v688_v21, %v545_v62  ;;  %v782_v7 = vmax.f32 %v754_v53, %v545_v62  ;;  %v351_v21 = vld [vmem:[%s1141_s7 + $0xb0] sm:$0x3]  ;;  %v352_v56 = vld [vmem:[%s1141_s7 + $0xb8] sm:$0x3] }
  0x40   : > { %v467_v9 = vmax.f32 %v387_v25, %v427_v54  ;;  %v1354_v10 = vmax.f32 %v389_v58, %v429_v59  ;;  %v755_v6 = vmax.f32 %v739_v38, %v1312_v14  ;;  %v388_v11 = vmax.f32 %v308_v60, %v348_v61  ;;  %v314_v54 = vld [vmem:[%s1135_s29 + $0xc8] sm:$0xff] }
  0x41   : > { %821 = vst.msk [vmem:[%s1301_s25 + $0x8] sm:$0xff] %vm820_vm2, %v804_v52  ;;  %v674_v13 = vmax.f32 %v593_v3, %v626_v63  ;;  %v740_v5 = vmax.f32 %v716_v4, %v626_v63  ;;  %v806_v15 = vmax.f32 %v782_v7, %v626_v63  ;;  %v390_v29 = vmax.f32 %v310_v49, %v350_v2  ;;  %v434_v60 = vld [vmem:[%s1197_s20 + $0xc8] sm:$0xff]  ;;  %v315_v49 = vld [vmem:[%s1135_s29 + $0xd0] sm:$0x3]  ;;  %v317_v7 = vld [vmem:[%s1135_s29 + $0xe0] sm:$0xff] }
  0x42   : > { %v547_v17 = vrot.slane %v467_v9, 1  ;;  %v628_v18 = vrot.slane %v467_v9, 2  ;;  %v468_v19 = vmax.f32 %v388_v11, %v428_v8  ;;  %v549_v20 = vrot.slane %v1329_v41, 1  ;;  %v355_v8 = vld [vmem:[%s1141_s7 + $0xd0] sm:$0x3]  ;;  %v357_v9 = vld [vmem:[%s1141_s7 + $0xe0] sm:$0xff] }
  0x43   : > { %v690_v22 = vmax.f32 %v674_v13, %v1329_v41  ;;  %823 = vst.msk [vmem:[%s1301_s25 + $0x18] sm:$0xff] %vm820_vm2, %v806_v15  ;;  %v1366_v24 = vmax.f32 %v390_v29, %v430_v12  ;;  %v630_v26 = vrot.slane %v1329_v41, 2  ;;  %v756_v23 = vmax.f32 %v740_v5, %v1329_v41 }
  0x44   : > { %v548_v30 = vsel %vm521_vm0, %v546_v0, %v547_v17  ;;  %v629_v31 = vsel %vm602_vm1, %v627_v1, %v628_v18  ;;  %v550_v32 = vrot.slane %v468_v19, 1  ;;  %v631_v33 = vrot.slane %v468_v19, 2  ;;  %v432_v1 = vld [vmem:[%s1197_s20 + $0xb8] sm:$0x3]  ;;  %v435_v17 = vld [vmem:[%s1197_s20 + $0xd0] sm:$0x3] }
  0x45   : > { %v594_v34 = vmax.f32 %v1312_v14, %v548_v30  ;;  %v717_v35 = vmax.f32 %v689_v57, %v548_v30  ;;  %v783_v36 = vmax.f32 %v755_v6, %v548_v30  ;;  %v391_v37 = vmax.f32 %v311_v16, %v351_v21  ;;  %v354_v57 = vld [vmem:[%s1141_s7 + $0xc8] sm:$0xff]  ;;  %v437_v18 = vld [vmem:[%s1197_s20 + $0xe0] sm:$0xff] }
  0x46   : > { %v551_v42 = vsel %vm521_vm0, %v549_v20, %v550_v32  ;;  %v632_v43 = vsel %vm602_vm1, %v630_v26, %v631_v33  ;;  %v393_v44 = vmax.f32 %v313_v27, %v353_v28  ;;  %v552_v45 = vrot.slane %v1354_v10, 1  ;;  %v316_v26 = vld [vmem:[%s1135_s29 + $0xd8] sm:$0x3] }
  0x47   : > { %v675_v46 = vmax.f32 %v594_v34, %v629_v31  ;;  %v741_v55 = vmax.f32 %v717_v35, %v629_v31  ;;  %v807_v14 = vmax.f32 %v783_v36, %v629_v31  ;;  %v595_v38 = vmax.f32 %v1329_v41, %v551_v42  ;;  %v318_v35 = vld [vmem:[%s1135_s29 + $0xe8] sm:$0xff] }
  0x48   : > { %v718_v48 = vmax.f32 %v690_v22, %v551_v42  ;;  %v784_v50 = vmax.f32 %v756_v23, %v551_v42  ;;  %v471_v51 = vmax.f32 %v391_v37, %v431_v39  ;;  %v1382_v53 = vmax.f32 %v393_v44, %v433_v40  ;;  %v356_v23 = vld [vmem:[%s1141_s7 + $0xd8] sm:$0x3]  ;;  %v358_v36 = vld [vmem:[%s1141_s7 + $0xe8] sm:$0xff] }
  0x49   : > { %v691_v25 = vmax.f32 %v675_v46, %v1354_v10  ;;  %824 = vst [vmem:[%s1301_s25 + $0x20] sm:$0xff] %v807_v14  ;;  %v676_v58 = vmax.f32 %v595_v38, %v632_v43  ;;  %v633_v41 = vrot.slane %v1354_v10, 2  ;;  %v757_v59 = vmax.f32 %v741_v55, %v1354_v10  ;;  %v436_v37 = vld [vmem:[%s1197_s20 + $0xd8] sm:$0x3]  ;;  %v438_v14 = vld [vmem:[%s1197_s20 + $0xe8] sm:$0xff] }
  0x4a   : > { %v742_v61 = vmax.f32 %v718_v48, %v632_v43  ;;  %v808_v62 = vmax.f32 %v784_v50, %v632_v43  ;;  %v553_v63 = vrot.slane %v471_v51, 1  ;;  %v634_v0 = vrot.slane %v471_v51, 2 }
  0x4b   : > { %v692_v2 = vmax.f32 %v676_v58, %v1366_v24  ;;  %v392_v52 = vmax.f32 %v312_v47, %v352_v56  ;;  %v394_v3 = vmax.f32 %v314_v54, %v354_v57  ;;  %v555_v4 = vrot.slane %v1366_v24, 1 }
  0x4c   : > { %825 = vst.msk [vmem:[%s1301_s25 + $0x28] sm:$0xff] %vm820_vm2, %v808_v62  ;;  %v554_v6 = vsel %vm521_vm0, %v552_v45, %v553_v63  ;;  %v635_v11 = vsel %vm602_vm1, %v633_v41, %v634_v0  ;;  %v636_v12 = vrot.slane %v1366_v24, 2  ;;  %v758_v13 = vmax.f32 %v742_v61, %v1366_v24  ;;  %v319_v63 = vld [vmem:[%s1135_s29 + $0xf0] sm:$0x3] }
  0x4d   : > { %v596_v5 = vmax.f32 %v1354_v10, %v554_v6  ;;  %v719_v15 = vmax.f32 %v691_v25, %v554_v6  ;;  %v785_v29 = vmax.f32 %v757_v59, %v554_v6  ;;  %v472_v16 = vmax.f32 %v392_v52, %v432_v1  ;;  %v359_v0 = vld [vmem:[%s1141_s7 + $0xf0] sm:$0x3]  ;;  %v360_v6 = vld [vmem:[%s1141_s7 + $0xf8] sm:$0x3] }
  0x4e   : > { %v1408_v19 = vmax.f32 %v394_v3, %v434_v60  ;;  %v395_v20 = vmax.f32 %v315_v49, %v355_v8  ;;  %v397_v21 = vmax.f32 %v317_v7, %v357_v9  ;;  %v558_v22 = vrot.slane %v1382_v53, 1  ;;  %v439_v8 = vld [vmem:[%s1197_s20 + $0xf0] sm:$0x3]  ;;  %v320_v9 = vld [vmem:[%s1135_s29 + $0xf8] sm:$0x3] }
  0x4f   : > { %v677_v27 = vmax.f32 %v596_v5, %v635_v11  ;;  %v743_v28 = vmax.f32 %v719_v15, %v635_v11  ;;  %v809_v10 = vmax.f32 %v785_v29, %v635_v11  ;;  %v556_v30 = vrot.slane %v472_v16, 1  ;;  %v440_v15 = vld [vmem:[%s1197_s20 + $0xf8] sm:$0x3]  ;;  %v321_v29 = vld [vmem:[%s1135_s29 + $0x100] sm:$0xff] }
  0x50   : > { %v637_v31 = vrot.slane %v472_v16, 2  ;;  %v475_v32 = vmax.f32 %v395_v20, %v435_v17  ;;  %v1413_v33 = vmax.f32 %v397_v21, %v437_v18  ;;  %v639_v34 = vrot.slane %v1382_v53, 2  ;;  %v323_v16 = vld [vmem:[%s1135_s29 + $0x110] sm:$0x3]  ;;  %v361_v21 = vld [vmem:[%s1141_s7 + $0x100] sm:$0xff] }
  0x51   : > { %v693_v39 = vmax.f32 %v677_v27, %v1382_v53  ;;  %826 = vst [vmem:[%s1301_s25 + $0x30] sm:$0xff] %v809_v10  ;;  %v557_v40 = vsel %vm521_vm0, %v555_v4, %v556_v30  ;;  %v759_v42 = vmax.f32 %v743_v28, %v1382_v53  ;;  %v396_v43 = vmax.f32 %v316_v26, %v356_v23  ;;  %v322_v26 = vld [vmem:[%s1135_s29 + $0x108] sm:$0xff]  ;;  %v324_v30 = vld [vmem:[%s1135_s29 + $0x118] sm:$0x3] }
  0x52   : > { %v597_v44 = vmax.f32 %v1366_v24, %v557_v40  ;;  %v638_v45 = vsel %vm602_vm1, %v636_v12, %v637_v31  ;;  %v720_v46 = vmax.f32 %v692_v2, %v557_v40  ;;  %v786_v55 = vmax.f32 %v758_v13, %v557_v40  ;;  %v362_v31 = vld [vmem:[%s1141_s7 + $0x108] sm:$0xff]  ;;  %v1464_v40 = vld [vmem:[%s1135_s29 + $0x120] sm:$0xff] }
  0x53   : > { %v559_v38 = vrot.slane %v475_v32, 1  ;;  %v640_v47 = vrot.slane %v475_v32, 2  ;;  %v398_v48 = vmax.f32 %v318_v35, %v358_v36  ;;  %v476_v50 = vmax.f32 %v396_v43, %v436_v37  ;;  %v364_v32 = vld [vmem:[%s1141_s7 + $0x118] sm:$0x3] }
  0x54   : > { %v678_v51 = vmax.f32 %v597_v44, %v638_v45  ;;  %v744_v54 = vmax.f32 %v720_v46, %v638_v45  ;;  %v810_v56 = vmax.f32 %v786_v55, %v638_v45  ;;  %v561_v57 = vrot.slane %v1408_v19, 1 }
  0x55   : > { %v560_v25 = vsel %vm521_vm0, %v558_v22, %v559_v38  ;;  %v641_v24 = vsel %vm602_vm1, %v639_v34, %v640_v47  ;;  %v1429_v58 = vmax.f32 %v398_v48, %v438_v14  ;;  %v562_v41 = vrot.slane %v476_v50, 1  ;;  %v363_v22 = vld [vmem:[%s1141_s7 + $0x110] sm:$0x3] }
  0x56   : > { %v694_v59 = vmax.f32 %v678_v51, %v1408_v19  ;;  %827 = vst.msk [vmem:[%s1301_s25 + $0x38] sm:$0xff] %vm820_vm2, %v810_v56  ;;  %v598_v60 = vmax.f32 %v1382_v53, %v560_v25  ;;  %v721_v61 = vmax.f32 %v693_v39, %v560_v25  ;;  %v787_v62 = vmax.f32 %v759_v42, %v560_v25  ;;  %v441_v39 = vld [vmem:[%s1197_s20 + $0x100] sm:$0xff]  ;;  %v443_v38 = vld [vmem:[%s1197_s20 + $0x110] sm:$0x3] }
  0x57   : > { %v563_v1 = vsel %vm521_vm0, %v561_v57, %v562_v41  ;;  %v642_v49 = vrot.slane %v1408_v19, 2  ;;  %v643_v2 = vrot.slane %v476_v50, 2  ;;  %v760_v52 = vmax.f32 %v744_v54, %v1408_v19  ;;  %v1467_v42 = vld [vmem:[%s1141_s7 + $0x120] sm:$0xff] }
  0x58   : > { %v679_v3 = vmax.f32 %v598_v60, %v641_v24  ;;  %v745_v4 = vmax.f32 %v721_v61, %v641_v24  ;;  %v811_v7 = vmax.f32 %v787_v62, %v641_v24  ;;  %v599_v53 = vmax.f32 %v1408_v19, %v563_v1 }
  0x59   : > { %v644_v11 = vsel %vm602_vm1, %v642_v49, %v643_v2  ;;  %v722_v12 = vmax.f32 %v694_v59, %v563_v1  ;;  %v788_v13 = vmax.f32 %v760_v52, %v563_v1  ;;  %v399_v5 = vmax.f32 %v319_v63, %v359_v0  ;;  %v442_v2 = vld [vmem:[%s1197_s20 + $0x108] sm:$0xff] }
  0x5a   : > { %v695_v17 = vmax.f32 %v679_v3, %v1413_v33  ;;  %828 = vst [vmem:[%s1301_s25 + $0x40] sm:$0xff] %v811_v7  ;;  %v680_v18 = vmax.f32 %v599_v53, %v644_v11  ;;  %v564_v19 = vrot.slane %v1413_v33, 1  ;;  %v645_v20 = vrot.slane %v1413_v33, 2  ;;  %v444_v7 = vld [vmem:[%s1197_s20 + $0x118] sm:$0x3] }
  0x5b   : > { %v746_v23 = vmax.f32 %v722_v12, %v644_v11  ;;  %v812_v27 = vmax.f32 %v788_v13, %v644_v11  ;;  %v479_v28 = vmax.f32 %v399_v5, %v439_v8  ;;  %v761_v10 = vmax.f32 %v745_v4, %v1413_v33  ;;  %v327_v53 = vld [vmem:[%s1135_s29 + $0x130] sm:$0x3] }
  0x5c   : > { %v696_v34 = vmax.f32 %v680_v18, %v1429_v58  ;;  %v400_v35 = vmax.f32 %v320_v9, %v360_v6  ;;  %v567_v36 = vrot.slane %v1429_v58, 1  ;;  %v648_v37 = vrot.slane %v1429_v58, 2  ;;  %v367_v8 = vld [vmem:[%s1141_s7 + $0x130] sm:$0x3] }
  0x5d   : > { %829 = vst.msk [vmem:[%s1301_s25 + $0x48] sm:$0xff] %vm820_vm2, %v812_v27  ;;  %v565_v43 = vrot.slane %v479_v28, 1  ;;  %v646_v44 = vrot.slane %v479_v28, 2  ;;  %v762_v45 = vmax.f32 %v746_v23, %v1429_v58  ;;  %v401_v46 = vmax.f32 %v321_v29, %v361_v21  ;;  %v326_v21 = vld [vmem:[%s1135_s29 + $0x128] sm:$0xff]  ;;  %v328_v28 = vld [vmem:[%s1135_s29 + $0x138] sm:$0x3] }
  0x5e   : > { %v480_v55 = vmax.f32 %v400_v35, %v440_v15  ;;  %v403_v14 = vmax.f32 %v323_v16, %v363_v22  ;;  %v402_v47 = vmax.f32 %v322_v26, %v362_v31  ;;  %v404_v48 = vmax.f32 %v324_v30, %v364_v32  ;;  %v368_v30 = vld [vmem:[%s1141_s7 + $0x138] sm:$0x3] }
  0x5f   : > { %v566_v50 = vsel %vm521_vm0, %v564_v19, %v565_v43  ;;  %v647_v51 = vsel %vm602_vm1, %v645_v20, %v646_v44  ;;  %v481_v54 = vmax.f32 %v401_v46, %v441_v39  ;;  %v405_v56 = vmax.f32 %v1464_v40, %v1467_v42  ;;  %v445_v19 = vld [vmem:[%s1197_s20 + $0x120] sm:$0xff]  ;;  %v447_v20 = vld [vmem:[%s1197_s20 + $0x130] sm:$0x3]  ;;  %v446_v42 = vld [vmem:[%s1197_s20 + $0x128] sm:$0xff] }
  0x60   : > { %v600_v57 = vmax.f32 %v1413_v33, %v566_v50  ;;  %v723_v25 = vmax.f32 %v695_v17, %v566_v50  ;;  %v789_v24 = vmax.f32 %v761_v10, %v566_v50  ;;  %v568_v41 = vrot.slane %v480_v55, 1  ;;  %v366_v10 = vld [vmem:[%s1141_s7 + $0x128] sm:$0xff] }
  0x61   : > { %v649_v59 = vrot.slane %v480_v55, 2  ;;  %v483_v60 = vmax.f32 %v403_v14, %v443_v38  ;;  %v703_v61 = vrot.slane %v481_v54, 1  ;;  %v727_v62 = vrot.slane %v481_v54, 2  ;;  %v448_v55 = vld [vmem:[%s1197_s20 + $0x138] sm:$0x3] }
  0x62   : > { %v681_v63 = vmax.f32 %v600_v57, %v647_v51  ;;  %v747_v0 = vmax.f32 %v723_v25, %v647_v51  ;;  %v813_v1 = vmax.f32 %v789_v24, %v647_v51  ;;  %v569_v49 = vsel %vm521_vm0, %v567_v36, %v568_v41 }
  0x63   : > { %v601_v52 = vmax.f32 %v1429_v58, %v569_v49  ;;  %v650_v33 = vsel %vm602_vm1, %v648_v37, %v649_v59  ;;  %v724_v3 = vmax.f32 %v696_v34, %v569_v49  ;;  %v790_v4 = vmax.f32 %v762_v45, %v569_v49 }
  0x64   : > { %830 = vst [vmem:[%s1301_s25 + $0x50] sm:$0xff] %v813_v1  ;;  %v697_v9 = vmax.f32 %v681_v63, %v481_v54  ;;  %v704_v6 = vrot.slane %v483_v60, 1  ;;  %v728_v11 = vrot.slane %v483_v60, 2  ;;  %v763_v12 = vmax.f32 %v747_v0, %v481_v54 }
  0x65   : > { %v682_v13 = vmax.f32 %v601_v52, %v650_v33  ;;  %v748_v5 = vmax.f32 %v724_v3, %v650_v33  ;;  %v814_v58 = vmax.f32 %v790_v4, %v650_v33  ;;  %v482_v15 = vmax.f32 %v402_v47, %v442_v2 }
  0x66   : > { %v705_v29 = vsel %vm521_vm0, %v703_v61, %v704_v6  ;;  %v729_v16 = vsel %vm602_vm1, %v727_v62, %v728_v11  ;;  %v484_v17 = vmax.f32 %v404_v48, %v444_v7  ;;  %v407_v18 = vmax.f32 %v327_v53, %v367_v8 }
  0x67   : > { %831 = vst.msk [vmem:[%s1301_s25 + $0x58] sm:$0xff] %vm820_vm2, %v814_v58  ;;  %v725_v22 = vmax.f32 %v697_v9, %v705_v29  ;;  %v791_v26 = vmax.f32 %v763_v12, %v705_v29  ;;  %v698_v23 = vmax.f32 %v682_v13, %v482_v15  ;;  %v706_v27 = vrot.slane %v482_v15, 1 }
  0x68   : > { %v707_v31 = vrot.slane %v484_v17, 1  ;;  %v730_v32 = vrot.slane %v482_v15, 2  ;;  %v731_v34 = vrot.slane %v484_v17, 2  ;;  %v764_v35 = vmax.f32 %v748_v5, %v482_v15 }
  0x69   : > { %v749_v36 = vmax.f32 %v725_v22, %v729_v16  ;;  %v815_v37 = vmax.f32 %v791_v26, %v729_v16  ;;  %v485_v39 = vmax.f32 %v405_v56, %v445_v19  ;;  %v487_v40 = vmax.f32 %v407_v18, %v447_v20 }
  0x6a   : > { %v708_v43 = vsel %vm521_vm0, %v706_v27, %v707_v31  ;;  %v732_v44 = vsel %vm602_vm1, %v730_v32, %v731_v34  ;;  %v406_v45 = vmax.f32 %v326_v21, %v366_v10  ;;  %v408_v46 = vmax.f32 %v328_v28, %v368_v30 }
  0x6b   : > { %832 = vst [vmem:[%s1301_s25 + $0x60] sm:$0xff] %v815_v37  ;;  %v726_v14 = vmax.f32 %v698_v23, %v708_v43  ;;  %v792_v38 = vmax.f32 %v764_v35, %v708_v43  ;;  %v765_v47 = vmax.f32 %v749_v36, %v485_v39  ;;  %v771_v48 = vrot.slane %v485_v39, 1 }
  0x6c   : > { %v772_v50 = vrot.slane %v487_v40, 1  ;;  %v795_v51 = vrot.slane %v485_v39, 2  ;;  %v796_v54 = vrot.slane %v487_v40, 2  ;;  %v486_v57 = vmax.f32 %v406_v45, %v446_v42 }
  0x6d   : > { %v750_v56 = vmax.f32 %v726_v14, %v732_v44  ;;  %v816_v25 = vmax.f32 %v792_v38, %v732_v44  ;;  %v488_v24 = vmax.f32 %v408_v46, %v448_v55 }
  0x6e   : > { %v773_v41 = vsel %vm521_vm0, %v771_v48, %v772_v50  ;;  %v797_v59 = vsel %vm602_vm1, %v795_v51, %v796_v54  ;;  %v774_v60 = vrot.slane %v486_v57, 1  ;;  %v798_v61 = vrot.slane %v486_v57, 2 }
  0x6f   : > { %833 = vst.msk [vmem:[%s1301_s25 + $0x68] sm:$0xff] %vm820_vm2, %v816_v25  ;;  %v793_v62 = vmax.f32 %v765_v47, %v773_v41  ;;  %v766_v63 = vmax.f32 %v750_v56, %v486_v57  ;;  %v775_v0 = vrot.slane %v488_v24, 1  ;;  %v799_v1 = vrot.slane %v488_v24, 2 }
  0x71   : > { %v817_v49 = vmax.f32 %v793_v62, %v797_v59  ;;  %v776_v2 = vsel %vm521_vm0, %v774_v60, %v775_v0  ;;  %v800_v52 = vsel %vm602_vm1, %v798_v61, %v799_v1 }
  0x72   : > { %v794_v33 = vmax.f32 %v766_v63, %v776_v2 }
  0x73   : > { %834 = vst [vmem:[%s1301_s25 + $0x70] sm:$0xff] %v817_v49 }
  0x74   : > { %v818_v3 = vmax.f32 %v794_v33, %v800_v52 }
  0x76   : > { %835 = vst.msk [vmem:[%s1301_s25 + $0x78] sm:$0xff] %vm820_vm2, %v818_v3 }
  0x77 PF: > { %s13_s16 = sadd.s32 1, %s1068_s16   ;;  %s1529_s12 = smov %s1060_s14 }
  0x78   : > { %p10_p10 = scmp.ge.s32.totalorder %s13_s16, 10   ;;  %s1530_s13 = smov %s1064_s15 }
  0x79   : > { %s1531_s14 = smov %s1534_s17  ;;  %s1532_s15 = smov %s1538_s18 }
  0x7a   :  { %12 = sbr.rel (!%p10_p10) target bundleno = 3 (0x3), region = 68 }

// kernel: _lambda_.9
= control target key start
LH: loop header
LB: loop body
LE: loop exit
PB: predicated region body
PF: predicated region fallthrough
CT: control target
= control target key end

     0   :  { %s1245_s15 = smov 0   ;;  %s1247_s16 = smov 0   ;;  %s1503_s0 = inlined_call_operand.vmem [shape: bf16[512,192], index: 0, kind: input, shape index: {}]   ;;  %s1504_s1 = inlined_call_operand.vmem [shape: bf16[192,128], index: 1, kind: input, shape index: {}]   ;;  %s1505_s2 = inlined_call_operand.vmem [shape: f32[1,128], index: 2, kind: input, shape index: {}]   ;;  %s1506_s3 = inlined_call_operand.vmem [shape: f32[1,128], index: 3, kind: input, shape index: {}]   ;;  %s1507_s4 = inlined_call_operand.vmem [shape: f32[512,128], index: 4, kind: output, shape index: {}]  }
   0x1   :  { %s1249_s17 = smov 0  }
   0x2 LB: > { %s26_s18 = sadd.s32 1, %s1213_s16  ;;  %p1015_p0 = scmp.ge.s32.totalorder %s1217_s17, 1  ;;  %s1217_s17 = sphi %s1249_s17, %s14_s17   ;;  %s1213_s16 = sphi %s1247_s16, %s1509_s16   ;;  %s1209_s15 = sphi %s1245_s15, %s1508_s15  }
   0x3   : > { %p28_p1 = scmp.ge.s32.totalorder %s26_s18, 2  ;;  %p203_p2 = scmp.lt.s32.totalorder %s1217_s17, 3 }
   0x5   : > { %s1511_s18 = smov (%p28_p1, %s26_s18), 0  ;;  %p204_p3 = pnand %p1015_p0, %p203_p2 }
   0x6   : > { %v1135_v0 = vld [vmem:[%s1504_s1] sm:$0xff] (!%p204_p3)   ;;  %v1219_v1 = vmov (!%p204_p3), 0   ;;  %s1016_s21 = sshll.u32 (!%p204_p3), %s1209_s15, 5  ;;  %v1136_v2 = vld [vmem:[%s1504_s1 + $0x8] sm:$0xff] (!%p204_p3)   ;;  %v1137_v3 = vld [vmem:[%s1504_s1 + $0x10] sm:$0xff] (!%p204_p3)   ;;  %vm542_vm0 = vcmask (!%p204_p3), 523264  }
   0x7   : > { %207 = sbr.rel (%p204_p3) target bundleno = 332 (0x14c), region = 36  ;;  %591 = vmatprep.subr.bf16.mxu0 (!%p204_p3), %v1219_v1  ;;  %1086 = vmatprep.subr.bf16.mxu1 (!%p204_p3), %v1219_v1  ;;  %p244_p4 = scmp.lt.s32.totalorder (!%p204_p3), %s1016_s21, 63  ;;  %v1138_v4 = vld [vmem:[%s1504_s1 + $0x18] sm:$0xff] (!%p204_p3)   ;;  %v1139_v6 = vld [vmem:[%s1504_s1 + $0x20] sm:$0xff] (!%p204_p3)   ;;  %v1140_v8 = vld [vmem:[%s1504_s1 + $0x28] sm:$0xff] (!%p204_p3)  }
   0x8   : > { %592 = vmatpush1.bf16.msra.mxu0 (!%p204_p3), %v1135_v0  ;;  %1098 = vmatpush1.bf16.msra.mxu1 (!%p204_p3), %v1135_v0  ;;  %v1141_v9 = vld [vmem:[%s1504_s1 + $0x30] sm:$0xff] (!%p204_p3)   ;;  %v1142_v10 = vld [vmem:[%s1504_s1 + $0x38] sm:$0xff] (!%p204_p3)   ;;  %v1143_v11 = vld [vmem:[%s1504_s1 + $0x40] sm:$0xff] (!%p204_p3)  }
   0x9   : > { %593 = vmatprep.subr.bf16.mxu0 (!%p204_p3), %v1219_v1  ;;  %1087 = vmatprep.subr.bf16.mxu1 (!%p204_p3), %v1219_v1  ;;  %v1144_v12 = vld [vmem:[%s1504_s1 + $0x48] sm:$0xff] (!%p204_p3)   ;;  %v1145_v13 = vld [vmem:[%s1504_s1 + $0x50] sm:$0xff] (!%p204_p3)   ;;  %v1146_v14 = vld [vmem:[%s1504_s1 + $0x58] sm:$0xff] (!%p204_p3)  }
   0xa   : > { %v1384_v45 = vld [vmem:[%s1505_s2] ss:$0 sm:$0xff] (!%p204_p3) }
   0xb   : > { %v1389_v47 = vld [vmem:[%s1506_s3] ss:$0 sm:$0xff] (!%p204_p3) }
   0xc   : > { %594 = vmatpush1.bf16.msra.mxu0 (!%p204_p3), %v1136_v2  ;;  %1099 = vmatpush1.bf16.msra.mxu1 (!%p204_p3), %v1136_v2 }
   0xd   : > { %595 = vmatprep.subr.bf16.mxu0 (!%p204_p3), %v1219_v1  ;;  %1088 = vmatprep.subr.bf16.mxu1 (!%p204_p3), %v1219_v1 }
   0xe   : > { %s1513_s21 = smov (!%p244_p4, %s1016_s21), 63 }
   0xf   : > { %s1085_s26 = sshll.u32 %s1513_s21, 3 }
  0x10   : > { %596 = vmatpush1.bf16.msra.mxu0 %v1137_v3  ;;  %1100 = vmatpush1.bf16.msra.mxu1 %v1137_v3  ;;  %s1289_s5 = scalar_lea.vmem %s1503_s0, %s1085_s26  ;;  %s1402_s7 = scalar_lea.vmem %s1507_s4, %s1085_s26 }
  0x11   : > { %597 = vmatprep.subr.bf16.mxu0 %v1219_v1  ;;  %1089 = vmatprep.subr.bf16.mxu1 %v1219_v1  ;;  %v1149_v5 = vld [vmem:[%s1289_s5 + $0x4] ss:$8 sps:$4 sm:$0xff]   ;;  %v1147_v15 = vld [vmem:[%s1289_s5] ss:$8 sps:$4 sm:$0xff]   ;;  %v1153_v17 = vld [vmem:[%s1289_s5 + $0x14] ss:$8 sps:$4 sm:$0xff]  }
  0x12   : > { %v1152_v7 = vld [vmem:[%s1289_s5 + $0x84] ss:$8 sps:$4 sm:$0xff]   ;;  %1065 = vmatprep.mubr.msk.bf16.mxu0 %vm542_vm0, %v1149_v5  ;;  %v1150_v16 = vld [vmem:[%s1289_s5 + $0x80] ss:$8 sps:$4 sm:$0xff]   ;;  %v1155_v18 = vld [vmem:[%s1289_s5 + $0x94] ss:$8 sps:$4 sm:$0xff]  }
  0x13   : > { %1073 = vmatprep.mubr.msk.bf16.mxu1 %vm542_vm0, %v1152_v7  ;;  %v1157_v19 = vld [vmem:[%s1289_s5 + $0x10] ss:$8 sps:$4 sm:$0xff]   ;;  %v1159_v21 = vld [vmem:[%s1289_s5 + $0x24] ss:$8 sps:$4 sm:$0xff]   ;;  %v1163_v23 = vld [vmem:[%s1289_s5 + $0x20] ss:$8 sps:$4 sm:$0xff]  }
  0x14   : > { %598 = vmatpush1.bf16.msra.mxu0 %v1138_v4  ;;  %1101 = vmatpush1.bf16.msra.mxu1 %v1138_v4  ;;  %v1158_v20 = vld [vmem:[%s1289_s5 + $0x90] ss:$8 sps:$4 sm:$0xff]   ;;  %v1161_v22 = vld [vmem:[%s1289_s5 + $0xa4] ss:$8 sps:$4 sm:$0xff]   ;;  %v1164_v24 = vld [vmem:[%s1289_s5 + $0xa0] ss:$8 sps:$4 sm:$0xff]  }
  0x15   : > { %599 = vmatprep.subr.bf16.mxu0 %v1219_v1  ;;  %1090 = vmatprep.subr.bf16.mxu1 %v1219_v1  ;;  %v1165_v25 = vld [vmem:[%s1289_s5 + $0x34] ss:$8 sps:$4 sm:$0xff]   ;;  %v1169_v27 = vld [vmem:[%s1289_s5 + $0x30] ss:$8 sps:$4 sm:$0xff]   ;;  %v1171_v29 = vld [vmem:[%s1289_s5 + $0x44] ss:$8 sps:$4 sm:$0xff]  }
  0x16   : > { %v1167_v26 = vld [vmem:[%s1289_s5 + $0xb4] ss:$8 sps:$4 sm:$0xff]   ;;  %v1170_v28 = vld [vmem:[%s1289_s5 + $0xb0] ss:$8 sps:$4 sm:$0xff]   ;;  %v1173_v30 = vld [vmem:[%s1289_s5 + $0xc4] ss:$8 sps:$4 sm:$0xff]  }
  0x17   : > { %v1175_v31 = vld [vmem:[%s1289_s5 + $0x40] ss:$8 sps:$4 sm:$0xff]   ;;  %v1177_v33 = vld [vmem:[%s1289_s5 + $0x54] ss:$8 sps:$4 sm:$0xff]   ;;  %v1181_v35 = vld [vmem:[%s1289_s5 + $0x50] ss:$8 sps:$4 sm:$0xff]  }
  0x18   : > { %600 = vmatpush1.bf16.msra.mxu0 %v1139_v6  ;;  %1102 = vmatpush1.bf16.msra.mxu1 %v1139_v6  ;;  %v1176_v32 = vld [vmem:[%s1289_s5 + $0xc0] ss:$8 sps:$4 sm:$0xff]   ;;  %v1179_v34 = vld [vmem:[%s1289_s5 + $0xd4] ss:$8 sps:$4 sm:$0xff]   ;;  %v1182_v36 = vld [vmem:[%s1289_s5 + $0xd0] ss:$8 sps:$4 sm:$0xff]  }
  0x19   : > { %601 = vmatprep.subr.bf16.mxu0 %v1219_v1  ;;  %1091 = vmatprep.subr.bf16.mxu1 %v1219_v1  ;;  %v1183_v37 = vld [vmem:[%s1289_s5 + $0x64] ss:$8 sps:$4 sm:$0xff]   ;;  %v1187_v39 = vld [vmem:[%s1289_s5 + $0x60] ss:$8 sps:$4 sm:$0xff]   ;;  %v1189_v41 = vld [vmem:[%s1289_s5 + $0x74] ss:$8 sps:$4 sm:$0xff]  }
  0x1a   : > { %v1185_v38 = vld [vmem:[%s1289_s5 + $0xe4] ss:$8 sps:$4 sm:$0xff]   ;;  %v1188_v40 = vld [vmem:[%s1289_s5 + $0xe0] ss:$8 sps:$4 sm:$0xff]   ;;  %v1191_v42 = vld [vmem:[%s1289_s5 + $0xf4] ss:$8 sps:$4 sm:$0xff]  }
  0x1b   : > { %v1193_v43 = vld [vmem:[%s1289_s5 + $0x70] ss:$8 sps:$4 sm:$0xff]  }
  0x1c   : > { %602 = vmatpush1.bf16.msra.mxu0 %v1140_v8  ;;  %1103 = vmatpush1.bf16.msra.mxu1 %v1140_v8  ;;  %v1194_v44 = vld [vmem:[%s1289_s5 + $0xf0] ss:$8 sps:$4 sm:$0xff]  }
  0x1d   : > { %603 = vmatprep.subr.bf16.mxu0 %v1219_v1  ;;  %1092 = vmatprep.subr.bf16.mxu1 %v1219_v1 }
  0x20   : > { %604 = vmatpush1.bf16.msra.mxu0 %v1141_v9  ;;  %1104 = vmatpush1.bf16.msra.mxu1 %v1141_v9 }
  0x21   : > { %605 = vmatprep.subr.bf16.mxu0 %v1219_v1  ;;  %1093 = vmatprep.subr.bf16.mxu1 %v1219_v1 }
  0x24   : > { %606 = vmatpush1.bf16.msra.mxu0 %v1142_v10  ;;  %1105 = vmatpush1.bf16.msra.mxu1 %v1142_v10 }
  0x25   : > { %607 = vmatprep.subr.bf16.mxu0 %v1219_v1  ;;  %1094 = vmatprep.subr.bf16.mxu1 %v1219_v1 }
  0x28   : > { %608 = vmatpush1.bf16.msra.mxu0 %v1143_v11  ;;  %1106 = vmatpush1.bf16.msra.mxu1 %v1143_v11 }
  0x29   : > { %609 = vmatprep.subr.bf16.mxu0 %v1219_v1  ;;  %1095 = vmatprep.subr.bf16.mxu1 %v1219_v1 }
  0x2c   : > { %610 = vmatpush1.bf16.msra.mxu0 %v1144_v12  ;;  %1107 = vmatpush1.bf16.msra.mxu1 %v1144_v12 }
  0x2d   : > { %611 = vmatprep.subr.bf16.mxu0 %v1219_v1  ;;  %1096 = vmatprep.subr.bf16.mxu1 %v1219_v1 }
  0x30   : > { %612 = vmatpush1.bf16.msra.mxu0 %v1145_v13  ;;  %1108 = vmatpush1.bf16.msra.mxu1 %v1145_v13 }
  0x31   : > { %613 = vmatprep.subr.bf16.mxu0 %v1219_v1  ;;  %1097 = vmatprep.subr.bf16.mxu1 %v1219_v1 }
  0x34   : > { %614 = vmatpush1.bf16.msra.mxu0 %v1146_v14  ;;  %1109 = vmatpush1.bf16.msra.mxu1 %v1146_v14 }
  0x37   : > { %624 = vmatmul.mubr.bf16.vlgmr.msra.gmra.mrb[0].mxu0 %v1147_v15  ;;  %688 = vmatmul.mubr.bf16.vlgmr.msra.gmra.mrb[0].mxu1 %v1150_v16 }
  0x38   : > { %1066 = vmatprep.mubr.msk.bf16.mxu0 %vm542_vm0, %v1153_v17  ;;  %1074 = vmatprep.mubr.msk.bf16.mxu1 %vm542_vm0, %v1155_v18 }
  0x3f   : > { %632 = vmatmul.mubr.bf16.gmra.mrb[4].mxu0 %v1157_v19  ;;  %696 = vmatmul.mubr.bf16.gmra.mrb[4].mxu1 %v1158_v20 }
  0x40   : > { %1067 = vmatprep.mubr.msk.bf16.mxu0 %vm542_vm0, %v1159_v21  ;;  %1075 = vmatprep.mubr.msk.bf16.mxu1 %vm542_vm0, %v1161_v22 }
  0x47   : > { %640 = vmatmul.mubr.bf16.gmra.mrb[8].mxu0 %v1163_v23  ;;  %704 = vmatmul.mubr.bf16.gmra.mrb[8].mxu1 %v1164_v24 }
  0x48   : > { %1068 = vmatprep.mubr.msk.bf16.mxu0 %vm542_vm0, %v1165_v25  ;;  %1076 = vmatprep.mubr.msk.bf16.mxu1 %vm542_vm0, %v1167_v26 }
  0x4f   : > { %648 = vmatmul.mubr.bf16.gmra.mrb[12].mxu0 %v1169_v27  ;;  %712 = vmatmul.mubr.bf16.gmra.mrb[12].mxu1 %v1170_v28 }
  0x50   : > { %1069 = vmatprep.mubr.msk.bf16.mxu0 %vm542_vm0, %v1171_v29  ;;  %1077 = vmatprep.mubr.msk.bf16.mxu1 %vm542_vm0, %v1173_v30 }
  0x57   : > { %656 = vmatmul.mubr.bf16.gmra.mrb[16].mxu0 %v1175_v31  ;;  %720 = vmatmul.mubr.bf16.gmra.mrb[16].mxu1 %v1176_v32 }
  0x58   : > { %1070 = vmatprep.mubr.msk.bf16.mxu0 %vm542_vm0, %v1177_v33  ;;  %1078 = vmatprep.mubr.msk.bf16.mxu1 %vm542_vm0, %v1179_v34 }
  0x5f   : > { %664 = vmatmul.mubr.bf16.gmra.mrb[20].mxu0 %v1181_v35  ;;  %728 = vmatmul.mubr.bf16.gmra.mrb[20].mxu1 %v1182_v36 }
  0x60   : > { %1071 = vmatprep.mubr.msk.bf16.mxu0 %vm542_vm0, %v1183_v37  ;;  %1079 = vmatprep.mubr.msk.bf16.mxu1 %vm542_vm0, %v1185_v38 }
  0x67   : > { %672 = vmatmul.mubr.bf16.gmra.mrb[24].mxu0 %v1187_v39  ;;  %736 = vmatmul.mubr.bf16.gmra.mrb[24].mxu1 %v1188_v40 }
  0x68   : > { %1072 = vmatprep.mubr.msk.bf16.mxu0 %vm542_vm0, %v1189_v41  ;;  %1080 = vmatprep.mubr.msk.bf16.mxu1 %vm542_vm0, %v1191_v42 }
  0x6f   : > { %680 = vmatmul.mubr.bf16.gmra.mrb[28].mxu0 %v1193_v43  ;;  %744 = vmatmul.mubr.bf16.gmra.mrb[28].mxu1 %v1194_v44 }
 0x10a   : > { %v625_v46 = vpop.f32.mrb[0].mxu0  ;;  %v689_v48 = vpop.f32.mrb[0].mxu1 }
 0x10b   : > { %v759_v49 = vmul.f32 %v1384_v45, %v625_v46  ;;  %v775_v50 = vmul.f32 %v1384_v45, %v689_v48  ;;  %v627_v51 = vpop.f32.mrb[1].mxu0  ;;  %v691_v52 = vpop.f32.mrb[1].mxu1 }
 0x10c   : > { %v628_v53 = vpop.f32.mrb[2].mxu0  ;;  %v692_v54 = vpop.f32.mrb[2].mxu1 }
 0x10d   : > { %v798_v55 = vadd.f32 %v1389_v47, %v759_v49  ;;  %v814_v56 = vadd.f32 %v1389_v47, %v775_v50  ;;  %v760_v57 = vmul.f32 %v1384_v45, %v628_v53  ;;  %v776_v58 = vmul.f32 %v1384_v45, %v692_v54  ;;  %v630_v59 = vpop.f32.mrb[3].mxu0  ;;  %v694_v60 = vpop.f32.mrb[3].mxu1 }
 0x10f   : > { %v830_v61 = vmax.f32 %v798_v55, 0.0  ;;  %v846_v62 = vmax.f32 %v814_v56, 0.0  ;;  %v799_v63 = vadd.f32 %v1389_v47, %v760_v57  ;;  %v815_v0 = vadd.f32 %v1389_v47, %v776_v58 }
 0x111   : > { %862 = vst [vmem:[%s1402_s7] sm:$0xff] %v830_v61  ;;  %878 = vst [vmem:[%s1402_s7 + $0x80] sm:$0xff] %v846_v62  ;;  %v831_v1 = vmax.f32 %v799_v63, 0.0  ;;  %v847_v2 = vmax.f32 %v815_v0, 0.0 }
 0x112   : > { %v633_v3 = vpop.f32.mrb[4].mxu0  ;;  %v697_v4 = vpop.f32.mrb[4].mxu1 }
 0x113   : > { %863 = vst [vmem:[%s1402_s7 + $0x8] sm:$0xff] %v831_v1  ;;  %879 = vst [vmem:[%s1402_s7 + $0x88] sm:$0xff] %v847_v2  ;;  %v761_v5 = vmul.f32 %v1384_v45, %v633_v3  ;;  %v777_v6 = vmul.f32 %v1384_v45, %v697_v4  ;;  %v635_v7 = vpop.f32.mrb[5].mxu0  ;;  %v699_v8 = vpop.f32.mrb[5].mxu1 }
 0x114   : > { %v636_v9 = vpop.f32.mrb[6].mxu0  ;;  %v700_v10 = vpop.f32.mrb[6].mxu1 }
 0x115   : > { %v800_v11 = vadd.f32 %v1389_v47, %v761_v5  ;;  %v816_v12 = vadd.f32 %v1389_v47, %v777_v6  ;;  %v762_v13 = vmul.f32 %v1384_v45, %v636_v9  ;;  %v778_v14 = vmul.f32 %v1384_v45, %v700_v10  ;;  %v638_v15 = vpop.f32.mrb[7].mxu0  ;;  %v702_v16 = vpop.f32.mrb[7].mxu1 }
 0x117   : > { %v832_v17 = vmax.f32 %v800_v11, 0.0  ;;  %v848_v18 = vmax.f32 %v816_v12, 0.0  ;;  %v801_v19 = vadd.f32 %v1389_v47, %v762_v13  ;;  %v817_v20 = vadd.f32 %v1389_v47, %v778_v14 }
 0x119   : > { %864 = vst [vmem:[%s1402_s7 + $0x10] sm:$0xff] %v832_v17  ;;  %880 = vst [vmem:[%s1402_s7 + $0x90] sm:$0xff] %v848_v18  ;;  %v833_v21 = vmax.f32 %v801_v19, 0.0  ;;  %v849_v22 = vmax.f32 %v817_v20, 0.0 }
 0x11a   : > { %v641_v23 = vpop.f32.mrb[8].mxu0  ;;  %v705_v24 = vpop.f32.mrb[8].mxu1 }
 0x11b   : > { %865 = vst [vmem:[%s1402_s7 + $0x18] sm:$0xff] %v833_v21  ;;  %881 = vst [vmem:[%s1402_s7 + $0x98] sm:$0xff] %v849_v22  ;;  %v763_v25 = vmul.f32 %v1384_v45, %v641_v23  ;;  %v779_v26 = vmul.f32 %v1384_v45, %v705_v24  ;;  %v643_v27 = vpop.f32.mrb[9].mxu0  ;;  %v707_v28 = vpop.f32.mrb[9].mxu1 }
 0x11c   : > { %v644_v29 = vpop.f32.mrb[10].mxu0  ;;  %v708_v30 = vpop.f32.mrb[10].mxu1 }
 0x11d   : > { %v802_v31 = vadd.f32 %v1389_v47, %v763_v25  ;;  %v818_v32 = vadd.f32 %v1389_v47, %v779_v26  ;;  %v764_v33 = vmul.f32 %v1384_v45, %v644_v29  ;;  %v780_v34 = vmul.f32 %v1384_v45, %v708_v30  ;;  %v646_v35 = vpop.f32.mrb[11].mxu0  ;;  %v710_v36 = vpop.f32.mrb[11].mxu1 }
 0x11f   : > { %v834_v37 = vmax.f32 %v802_v31, 0.0  ;;  %v850_v38 = vmax.f32 %v818_v32, 0.0  ;;  %v803_v39 = vadd.f32 %v1389_v47, %v764_v33  ;;  %v819_v40 = vadd.f32 %v1389_v47, %v780_v34 }
 0x121   : > { %866 = vst [vmem:[%s1402_s7 + $0x20] sm:$0xff] %v834_v37  ;;  %882 = vst [vmem:[%s1402_s7 + $0xa0] sm:$0xff] %v850_v38  ;;  %v835_v41 = vmax.f32 %v803_v39, 0.0  ;;  %v851_v42 = vmax.f32 %v819_v40, 0.0 }
 0x122   : > { %v649_v43 = vpop.f32.mrb[12].mxu0  ;;  %v713_v44 = vpop.f32.mrb[12].mxu1 }
 0x123   : > { %867 = vst [vmem:[%s1402_s7 + $0x28] sm:$0xff] %v835_v41  ;;  %883 = vst [vmem:[%s1402_s7 + $0xa8] sm:$0xff] %v851_v42  ;;  %v765_v46 = vmul.f32 %v1384_v45, %v649_v43  ;;  %v781_v48 = vmul.f32 %v1384_v45, %v713_v44  ;;  %v651_v49 = vpop.f32.mrb[13].mxu0  ;;  %v715_v50 = vpop.f32.mrb[13].mxu1 }
 0x124   : > { %v652_v51 = vpop.f32.mrb[14].mxu0  ;;  %v716_v52 = vpop.f32.mrb[14].mxu1 }
 0x125   : > { %v804_v53 = vadd.f32 %v1389_v47, %v765_v46  ;;  %v820_v54 = vadd.f32 %v1389_v47, %v781_v48  ;;  %v766_v55 = vmul.f32 %v1384_v45, %v652_v51  ;;  %v782_v56 = vmul.f32 %v1384_v45, %v716_v52  ;;  %v654_v57 = vpop.f32.mrb[15].mxu0  ;;  %v718_v58 = vpop.f32.mrb[15].mxu1 }
 0x127   : > { %v836_v59 = vmax.f32 %v804_v53, 0.0  ;;  %v852_v60 = vmax.f32 %v820_v54, 0.0  ;;  %v805_v61 = vadd.f32 %v1389_v47, %v766_v55  ;;  %v821_v62 = vadd.f32 %v1389_v47, %v782_v56 }
 0x129   : > { %868 = vst [vmem:[%s1402_s7 + $0x30] sm:$0xff] %v836_v59  ;;  %884 = vst [vmem:[%s1402_s7 + $0xb0] sm:$0xff] %v852_v60  ;;  %v837_v63 = vmax.f32 %v805_v61, 0.0  ;;  %v853_v0 = vmax.f32 %v821_v62, 0.0 }
 0x12a   : > { %v657_v1 = vpop.f32.mrb[16].mxu0  ;;  %v721_v2 = vpop.f32.mrb[16].mxu1 }
 0x12b   : > { %869 = vst [vmem:[%s1402_s7 + $0x38] sm:$0xff] %v837_v63  ;;  %885 = vst [vmem:[%s1402_s7 + $0xb8] sm:$0xff] %v853_v0  ;;  %v767_v3 = vmul.f32 %v1384_v45, %v657_v1  ;;  %v783_v4 = vmul.f32 %v1384_v45, %v721_v2  ;;  %v659_v5 = vpop.f32.mrb[17].mxu0  ;;  %v723_v6 = vpop.f32.mrb[17].mxu1 }
 0x12c   : > { %v660_v7 = vpop.f32.mrb[18].mxu0  ;;  %v724_v8 = vpop.f32.mrb[18].mxu1 }
 0x12d   : > { %v806_v9 = vadd.f32 %v1389_v47, %v767_v3  ;;  %v822_v10 = vadd.f32 %v1389_v47, %v783_v4  ;;  %v768_v11 = vmul.f32 %v1384_v45, %v660_v7  ;;  %v784_v12 = vmul.f32 %v1384_v45, %v724_v8  ;;  %v662_v13 = vpop.f32.mrb[19].mxu0  ;;  %v726_v14 = vpop.f32.mrb[19].mxu1 }
 0x12f   : > { %v838_v15 = vmax.f32 %v806_v9, 0.0  ;;  %v854_v16 = vmax.f32 %v822_v10, 0.0  ;;  %v807_v17 = vadd.f32 %v1389_v47, %v768_v11  ;;  %v823_v18 = vadd.f32 %v1389_v47, %v784_v12 }
 0x131   : > { %870 = vst [vmem:[%s1402_s7 + $0x40] sm:$0xff] %v838_v15  ;;  %886 = vst [vmem:[%s1402_s7 + $0xc0] sm:$0xff] %v854_v16  ;;  %v839_v19 = vmax.f32 %v807_v17, 0.0  ;;  %v855_v20 = vmax.f32 %v823_v18, 0.0 }
 0x132   : > { %v665_v21 = vpop.f32.mrb[20].mxu0  ;;  %v729_v22 = vpop.f32.mrb[20].mxu1 }
 0x133   : > { %871 = vst [vmem:[%s1402_s7 + $0x48] sm:$0xff] %v839_v19  ;;  %887 = vst [vmem:[%s1402_s7 + $0xc8] sm:$0xff] %v855_v20  ;;  %v769_v23 = vmul.f32 %v1384_v45, %v665_v21  ;;  %v785_v24 = vmul.f32 %v1384_v45, %v729_v22  ;;  %v667_v25 = vpop.f32.mrb[21].mxu0  ;;  %v731_v26 = vpop.f32.mrb[21].mxu1 }
 0x134   : > { %v668_v27 = vpop.f32.mrb[22].mxu0  ;;  %v732_v28 = vpop.f32.mrb[22].mxu1 }
 0x135   : > { %v808_v29 = vadd.f32 %v1389_v47, %v769_v23  ;;  %v824_v30 = vadd.f32 %v1389_v47, %v785_v24  ;;  %v770_v31 = vmul.f32 %v1384_v45, %v668_v27  ;;  %v786_v32 = vmul.f32 %v1384_v45, %v732_v28  ;;  %v670_v33 = vpop.f32.mrb[23].mxu0  ;;  %v734_v34 = vpop.f32.mrb[23].mxu1 }
 0x137   : > { %v840_v35 = vmax.f32 %v808_v29, 0.0  ;;  %v856_v36 = vmax.f32 %v824_v30, 0.0  ;;  %v809_v37 = vadd.f32 %v1389_v47, %v770_v31  ;;  %v825_v38 = vadd.f32 %v1389_v47, %v786_v32 }
 0x139   : > { %872 = vst [vmem:[%s1402_s7 + $0x50] sm:$0xff] %v840_v35  ;;  %888 = vst [vmem:[%s1402_s7 + $0xd0] sm:$0xff] %v856_v36  ;;  %v841_v39 = vmax.f32 %v809_v37, 0.0  ;;  %v857_v40 = vmax.f32 %v825_v38, 0.0 }
 0x13a   : > { %v673_v41 = vpop.f32.mrb[24].mxu0  ;;  %v737_v42 = vpop.f32.mrb[24].mxu1 }
 0x13b   : > { %873 = vst [vmem:[%s1402_s7 + $0x58] sm:$0xff] %v841_v39  ;;  %889 = vst [vmem:[%s1402_s7 + $0xd8] sm:$0xff] %v857_v40  ;;  %v771_v43 = vmul.f32 %v1384_v45, %v673_v41  ;;  %v787_v44 = vmul.f32 %v1384_v45, %v737_v42  ;;  %v675_v46 = vpop.f32.mrb[25].mxu0  ;;  %v739_v48 = vpop.f32.mrb[25].mxu1 }
 0x13c   : > { %v676_v49 = vpop.f32.mrb[26].mxu0  ;;  %v740_v50 = vpop.f32.mrb[26].mxu1 }
 0x13d   : > { %v810_v51 = vadd.f32 %v1389_v47, %v771_v43  ;;  %v826_v52 = vadd.f32 %v1389_v47, %v787_v44  ;;  %v772_v53 = vmul.f32 %v1384_v45, %v676_v49  ;;  %v788_v54 = vmul.f32 %v1384_v45, %v740_v50  ;;  %v678_v55 = vpop.f32.mrb[27].mxu0  ;;  %v742_v56 = vpop.f32.mrb[27].mxu1 }
 0x13f   : > { %v842_v57 = vmax.f32 %v810_v51, 0.0  ;;  %v858_v58 = vmax.f32 %v826_v52, 0.0  ;;  %v811_v59 = vadd.f32 %v1389_v47, %v772_v53  ;;  %v827_v60 = vadd.f32 %v1389_v47, %v788_v54 }
 0x141   : > { %874 = vst [vmem:[%s1402_s7 + $0x60] sm:$0xff] %v842_v57  ;;  %890 = vst [vmem:[%s1402_s7 + $0xe0] sm:$0xff] %v858_v58  ;;  %v843_v61 = vmax.f32 %v811_v59, 0.0  ;;  %v859_v62 = vmax.f32 %v827_v60, 0.0 }
 0x142   : > { %v681_v63 = vpop.f32.mrb[28].mxu0  ;;  %v745_v0 = vpop.f32.mrb[28].mxu1 }
 0x143   : > { %875 = vst [vmem:[%s1402_s7 + $0x68] sm:$0xff] %v843_v61  ;;  %891 = vst [vmem:[%s1402_s7 + $0xe8] sm:$0xff] %v859_v62  ;;  %v773_v1 = vmul.f32 %v1384_v45, %v681_v63  ;;  %v789_v2 = vmul.f32 %v1384_v45, %v745_v0  ;;  %v683_v3 = vpop.f32.mrb[29].mxu0  ;;  %v747_v4 = vpop.f32.mrb[29].mxu1 }
 0x144   : > { %v684_v5 = vpop.f32.mrb[30].mxu0  ;;  %v748_v6 = vpop.f32.mrb[30].mxu1 }
 0x145   : > { %v812_v7 = vadd.f32 %v1389_v47, %v773_v1  ;;  %v828_v8 = vadd.f32 %v1389_v47, %v789_v2  ;;  %v774_v9 = vmul.f32 %v1384_v45, %v684_v5  ;;  %v790_v10 = vmul.f32 %v1384_v45, %v748_v6  ;;  %v686_v11 = vpop.f32.mrb[31].mxu0  ;;  %v750_v12 = vpop.f32.mrb[31].mxu1 }
 0x147   : > { %v844_v13 = vmax.f32 %v812_v7, 0.0  ;;  %v860_v14 = vmax.f32 %v828_v8, 0.0  ;;  %v813_v15 = vadd.f32 %v1389_v47, %v774_v9  ;;  %v829_v16 = vadd.f32 %v1389_v47, %v790_v10 }
 0x149   : > { %876 = vst [vmem:[%s1402_s7 + $0x70] sm:$0xff] %v844_v13  ;;  %892 = vst [vmem:[%s1402_s7 + $0xf0] sm:$0xff] %v860_v14  ;;  %v845_v17 = vmax.f32 %v813_v15, 0.0  ;;  %v861_v18 = vmax.f32 %v829_v16, 0.0 }
 0x14b   : > { %877 = vst [vmem:[%s1402_s7 + $0x78] sm:$0xff] %v845_v17  ;;  %893 = vst [vmem:[%s1402_s7 + $0xf8] sm:$0xff] %v861_v18 }
 0x14c PF: > { %s14_s17 = sadd.s32 1, %s1217_s17   ;;  %s1508_s15 = smov %s1213_s16 }
 0x14d   : > { %p11_p5 = scmp.ge.s32.totalorder %s14_s17, 4   ;;  %s1509_s16 = smov %s1511_s18 }
 0x14f   :  { %13 = sbr.rel (!%p11_p5) target bundleno = 2 (0x2), region = 75 }

</bundles_post_ra>
